<compile_context>
chip_gen: v6e
topology: v6e:2x2x1
jax: 0.10.0
libtpu: 0.0.40
codegen_flags: <defaults>
</compile_context>

<pallas_src>
import functools
import math

import jax
import jax.numpy as jnp
from jax.experimental import pallas as pl
from jax.experimental.pallas import tpu as pltpu

N_HEADS = 4
D_KEYS = 48
D_VALUES = 48
LN_EPS = 1e-5


# ---------------------------------------------------------------------------
# fused kernel: one invocation processes all (batch, node) pairs
# ---------------------------------------------------------------------------
def _decoder_layer_kernel(
    # flattened activations [S, D] with S = B*N*L
    dec_ref, enc_time_ref, enc_tgt_ref,
    # self-attention params (head-stacked)
    sa_wq, sa_bq, sa_wk, sa_bk, sa_wv, sa_bv, sa_wo, sa_bo, sa_g, sa_b,
    # cross-attention params (head-stacked)
    ca_wq, ca_bq, ca_wk, ca_bk, ca_wv, ca_bv, ca_wo, ca_bo, ca_g, ca_b,
    # time FFN params
    tf_w1, tf_b1, tf_w2, tf_b2, tf_g, tf_b,
    # target FFN params
    gf_w1, gf_b1, gf_w2, gf_b2, gf_g, gf_b,
    # outputs
    self_attn_ref, cross_attn_ref, time_out_ref, tgt_out_ref,
    *, bn, seq_len, n_heads, d_keys):
    f32 = jnp.float32
    scale = 1.0 / math.sqrt(d_keys)

    def layer_norm(x, g_ref, b_ref):
        mu = jnp.mean(x, axis=-1, keepdims=True)
        var = jnp.mean((x - mu) ** 2, axis=-1, keepdims=True)
        return (x - mu) * jax.lax.rsqrt(var + LN_EPS) * g_ref[...] + b_ref[...]

    def softmax(s):
        s = s - jnp.max(s, axis=-1, keepdims=True)
        e = jnp.exp(s)
        # Reciprocal goes to the EUP slot (free next to the exp) instead of a
        # VALU divide.
        return e * pl.reciprocal(jnp.sum(e, axis=-1, keepdims=True), approx=True)

    def split_bn(x):   # [B*N*L, d] -> [B*N, L, d]  (leading-dim-only split)
        return x.reshape(bn, seq_len, x.shape[-1])

    def merge_bn(x):   # [B*N, L, d] -> [B*N*L, d]
        return x.reshape(bn * seq_len, x.shape[-1])

    def attention(q_src, kv_src, tgt_src, wq, bq, wk, bk, wv, bv, wo, bo,
                  attn_out_ref):
        """Multi-head time attention; returns projected contexts (pre-LN)."""
        proj_t = None
        proj_g = None
        for h in range(n_heads):           # static python loop, n_heads == 4
            wq_h, wk_h, wv_h, wo_h = wq[h], wk[h], wv[h], wo[h]
            qh = jnp.dot(q_src, wq_h, preferred_element_type=f32) + bq[h]
            kh = jnp.dot(kv_src, wk_h, preferred_element_type=f32) + bk[h]
            vh = jnp.dot(kv_src, wv_h, preferred_element_type=f32) + bv[h]
            scores = jnp.einsum('bld,bmd->blm', split_bn(qh), split_bn(kh),
                                preferred_element_type=f32) * scale   # [BN,L,L]
            attn = softmax(scores)
            attn_out_ref[h] = attn.astype(attn_out_ref.dtype)         # [BN,L,L]
            ctx = merge_bn(jnp.einsum('blm,bmd->bld', attn, split_bn(vh),
                                      preferred_element_type=f32))    # [S, dv]
            ph = jnp.dot(ctx, wo_h, preferred_element_type=f32)
            proj_t = ph if proj_t is None else proj_t + ph
            if tgt_src is not None:
                vgh = jnp.dot(tgt_src, wv_h, preferred_element_type=f32) + bv[h]
                ctxg = merge_bn(jnp.einsum('blm,bmd->bld', attn, split_bn(vgh),
                                           preferred_element_type=f32))
                pg = jnp.dot(ctxg, wo_h, preferred_element_type=f32)
                proj_g = pg if proj_g is None else proj_g + pg
        o_t = proj_t + bo[...]
        o_g = None if tgt_src is None else proj_g + bo[...]
        return o_t, o_g

    def ffn(x, w1, b1, w2, b2, g, b):
        h1 = jnp.maximum(
            jnp.dot(x, w1[...], preferred_element_type=f32) + b1[...], 0.0)
        y = jnp.dot(h1, w2[...], preferred_element_type=f32) + b2[...]
        return layer_norm(x + y, g, b)

    x = dec_ref[...].astype(f32)             # [S, D]
    enc_t = enc_time_ref[...].astype(f32)
    enc_g = enc_tgt_ref[...].astype(f32)

    # --- decoder self attention -------------------------------------------
    o_t, _ = attention(x, x, None,
                       sa_wq, sa_bq, sa_wk, sa_bk, sa_wv, sa_bv, sa_wo, sa_bo,
                       self_attn_ref)
    self_time = layer_norm(o_t + x, sa_g, sa_b)

    # --- decoder cross attention --------------------------------------------
    o_t, o_g = attention(self_time, enc_t, enc_g,
                         ca_wq, ca_bq, ca_wk, ca_bk, ca_wv, ca_bv, ca_wo, ca_bo,
                         cross_attn_ref)
    cross_time = layer_norm(o_t + self_time, ca_g, ca_b)
    cross_tgt = layer_norm(o_g + enc_g, ca_g, ca_b)

    # --- position-wise FFNs (dropout = identity in eval) ---------------------
    time_out_ref[...] = ffn(cross_time, tf_w1, tf_b1, tf_w2, tf_b2,
                            tf_g, tf_b).astype(time_out_ref.dtype)
    tgt_out_ref[...] = ffn(cross_tgt, gf_w1, gf_b1, gf_w2, gf_b2,
                           gf_g, gf_b).astype(tgt_out_ref.dtype)


# ---------------------------------------------------------------------------
# wrapper
# ---------------------------------------------------------------------------
def _stack_heads(p, d_model):
    """Re-layout standard [D, H*dk]-style attention params to head-stacked."""
    H, dk, dv = N_HEADS, D_KEYS, D_VALUES
    return dict(
        wq=p["wq"].reshape(d_model, H, dk).transpose(1, 0, 2),   # [H, D, dk]
        bq=p["bq"].reshape(H, 1, dk),                            # [H, 1, dk]
        wk=p["wk"].reshape(d_model, H, dk).transpose(1, 0, 2),
        bk=p["bk"].reshape(H, 1, dk),
        wv=p["wv"].reshape(d_model, H, dv).transpose(1, 0, 2),
        bv=p["bv"].reshape(H, 1, dv),
        wo=p["wo"].reshape(H, dv, d_model),                      # [H, dv, D]
        bo=p["bo"], ln_g=p["ln_g"], ln_b=p["ln_b"],
    )


def decoder_layer(params, decoder_time_input, encoder_output_time,
                  encoder_output_target):
    B, N, L, D = decoder_time_input.shape
    BN = B * N
    S = BN * L
    H = N_HEADS

    sa = _stack_heads(params["self_attn"], D)
    ca = _stack_heads(params["cross_attn"], D)
    tf = params["time_fc"]
    gf = params["target_fc"]

    kernel = functools.partial(_decoder_layer_kernel, bn=BN, seq_len=L,
                               n_heads=H, d_keys=D_KEYS)

    flat = lambda a: a.reshape(S, D)
    vmem = pl.BlockSpec(memory_space=pltpu.MemorySpace.VMEM)

    ins = (
        flat(decoder_time_input), flat(encoder_output_time),
        flat(encoder_output_target),
        sa["wq"], sa["bq"], sa["wk"], sa["bk"], sa["wv"], sa["bv"],
        sa["wo"], sa["bo"], sa["ln_g"], sa["ln_b"],
        ca["wq"], ca["bq"], ca["wk"], ca["bk"], ca["wv"], ca["bv"],
        ca["wo"], ca["bo"], ca["ln_g"], ca["ln_b"],
        tf["w1"], tf["b1"], tf["w2"], tf["b2"], tf["ln_g"], tf["ln_b"],
        gf["w1"], gf["b1"], gf["w2"], gf["b2"], gf["ln_g"], gf["ln_b"],
    )

    self_attn, cross_attn, time_out, tgt_out = pl.pallas_call(
        kernel,
        out_shape=(
            jax.ShapeDtypeStruct((H, BN, L, L), jnp.float32),
            jax.ShapeDtypeStruct((H, BN, L, L), jnp.float32),
            jax.ShapeDtypeStruct((S, D), jnp.float32),
            jax.ShapeDtypeStruct((S, D), jnp.float32),
        ),
        in_specs=[vmem] * len(ins),
        out_specs=(vmem, vmem, vmem, vmem),
    )(*ins)

    # [H, BN, L, L] -> [B, N, H, L, L]  (tiny re-layout, done in XLA)
    self_attn_score = jnp.transpose(self_attn, (1, 0, 2, 3)).reshape(B, N, H, L, L)
    cross_attn_score = jnp.transpose(cross_attn, (1, 0, 2, 3)).reshape(B, N, H, L, L)
    cross_time_value = time_out.reshape(B, N, L, D)
    cross_target = tgt_out.reshape(B, N, L, D)
    # matches PyTorch return order: (self_attn_score, cross_time_value,
    #                                cross_attn, cross_target)
    return self_attn_score, cross_time_value, cross_attn_score, cross_target


# ---------------------------------------------------------------------------
# deterministic parameter init (synthetic weights, trunc_normal-like scale 0.02)
# ---------------------------------------------------------------------------
def init_attn_params(key, d_model):
    ks = jax.random.split(key, 4)

    def lin(k, din, dout):
        return jax.random.normal(k, (din, dout), jnp.float32) * 0.02

    return dict(
        wq=lin(ks[0], d_model, N_HEADS * D_KEYS),
        bq=jnp.zeros((1, N_HEADS * D_KEYS), jnp.float32),
        wk=lin(ks[1], d_model, N_HEADS * D_KEYS),
        bk=jnp.zeros((1, N_HEADS * D_KEYS), jnp.float32),
        wv=lin(ks[2], d_model, N_HEADS * D_VALUES),
        bv=jnp.zeros((1, N_HEADS * D_VALUES), jnp.float32),
        wo=lin(ks[3], N_HEADS * D_VALUES, d_model),
        bo=jnp.zeros((1, d_model), jnp.float32),
        ln_g=jnp.ones((1, d_model), jnp.float32),
        ln_b=jnp.zeros((1, d_model), jnp.float32),
    )


def init_ffn_params(key, d_model):
    k1, k2 = jax.random.split(key)
    return dict(
        w1=jax.random.normal(k1, (d_model, 4 * d_model), jnp.float32) * 0.02,
        b1=jnp.zeros((1, 4 * d_model), jnp.float32),
        w2=jax.random.normal(k2, (4 * d_model, d_model), jnp.float32) * 0.02,
        b2=jnp.zeros((1, d_model), jnp.float32),
        ln_g=jnp.ones((1, d_model), jnp.float32),
        ln_b=jnp.zeros((1, d_model), jnp.float32),
    )


if __name__ == "__main__":
    B, N, L, D = 2, 3, 8, 32  # batch, n_nodes, seq_len, d_model

    key = jax.random.PRNGKey(0)
    k_in, k_p = jax.random.split(key)
    ki = jax.random.split(k_in, 3)
    decoder_time_input = jax.random.normal(ki[0], (B, N, L, D), jnp.float32)
    encoder_output_time = jax.random.normal(ki[1], (B, N, L, D), jnp.float32)
    encoder_output_target = jax.random.normal(ki[2], (B, N, L, D), jnp.float32)

    kp = jax.random.split(k_p, 4)
    params = dict(
        self_attn=init_attn_params(kp[0], D),
        cross_attn=init_attn_params(kp[1], D),
        time_fc=init_ffn_params(kp[2], D),
        target_fc=init_ffn_params(kp[3], D),
    )

    fn = jax.jit(decoder_layer)
    outs = fn(params, decoder_time_input, encoder_output_time,
              encoder_output_target)
    jax.block_until_ready(outs)
    print("KERNEL_OK")
</pallas_src>

<mosaic_0001>
module attributes {stable_mosaic.version = 11 : i64} {
  func.func @_decoder_layer_kernel(%arg0: memref<48x32xf32, #tpu.memory_space<vmem>>, %arg1: memref<48x32xf32, #tpu.memory_space<vmem>>, %arg2: memref<48x32xf32, #tpu.memory_space<vmem>>, %arg3: memref<4x32x48xf32, #tpu.memory_space<vmem>>, %arg4: memref<4x1x48xf32, #tpu.memory_space<vmem>>, %arg5: memref<4x32x48xf32, #tpu.memory_space<vmem>>, %arg6: memref<4x1x48xf32, #tpu.memory_space<vmem>>, %arg7: memref<4x32x48xf32, #tpu.memory_space<vmem>>, %arg8: memref<4x1x48xf32, #tpu.memory_space<vmem>>, %arg9: memref<4x48x32xf32, #tpu.memory_space<vmem>>, %arg10: memref<1x32xf32, #tpu.memory_space<vmem>>, %arg11: memref<1x32xf32, #tpu.memory_space<vmem>>, %arg12: memref<1x32xf32, #tpu.memory_space<vmem>>, %arg13: memref<4x32x48xf32, #tpu.memory_space<vmem>>, %arg14: memref<4x1x48xf32, #tpu.memory_space<vmem>>, %arg15: memref<4x32x48xf32, #tpu.memory_space<vmem>>, %arg16: memref<4x1x48xf32, #tpu.memory_space<vmem>>, %arg17: memref<4x32x48xf32, #tpu.memory_space<vmem>>, %arg18: memref<4x1x48xf32, #tpu.memory_space<vmem>>, %arg19: memref<4x48x32xf32, #tpu.memory_space<vmem>>, %arg20: memref<1x32xf32, #tpu.memory_space<vmem>>, %arg21: memref<1x32xf32, #tpu.memory_space<vmem>>, %arg22: memref<1x32xf32, #tpu.memory_space<vmem>>, %arg23: memref<32x128xf32, #tpu.memory_space<vmem>>, %arg24: memref<1x128xf32, #tpu.memory_space<vmem>>, %arg25: memref<128x32xf32, #tpu.memory_space<vmem>>, %arg26: memref<1x32xf32, #tpu.memory_space<vmem>>, %arg27: memref<1x32xf32, #tpu.memory_space<vmem>>, %arg28: memref<1x32xf32, #tpu.memory_space<vmem>>, %arg29: memref<32x128xf32, #tpu.memory_space<vmem>>, %arg30: memref<1x128xf32, #tpu.memory_space<vmem>>, %arg31: memref<128x32xf32, #tpu.memory_space<vmem>>, %arg32: memref<1x32xf32, #tpu.memory_space<vmem>>, %arg33: memref<1x32xf32, #tpu.memory_space<vmem>>, %arg34: memref<1x32xf32, #tpu.memory_space<vmem>>, %arg35: memref<4x6x8x8xf32, #tpu.memory_space<vmem>>, %arg36: memref<4x6x8x8xf32, #tpu.memory_space<vmem>>, %arg37: memref<48x32xf32, #tpu.memory_space<vmem>>, %arg38: memref<48x32xf32, #tpu.memory_space<vmem>>) attributes {dimension_semantics = [], scalar_prefetch = 0 : i64, scratch_operands = 0 : i64, tpu.core_type = #tpu.core_type<tc>} {
    %c0 = arith.constant 0 : index
    %c0_0 = arith.constant 0 : index
    %0 = vector.load %arg0[%c0, %c0_0] : memref<48x32xf32, #tpu.memory_space<vmem>>, vector<48x32xf32>
    %c0_1 = arith.constant 0 : index
    %c0_2 = arith.constant 0 : index
    %1 = vector.load %arg1[%c0_1, %c0_2] : memref<48x32xf32, #tpu.memory_space<vmem>>, vector<48x32xf32>
    %c0_3 = arith.constant 0 : index
    %c0_4 = arith.constant 0 : index
    %2 = vector.load %arg2[%c0_3, %c0_4] : memref<48x32xf32, #tpu.memory_space<vmem>>, vector<48x32xf32>
    %c0_5 = arith.constant 0 : index
    %c0_6 = arith.constant 0 : index
    %c0_7 = arith.constant 0 : index
    %3 = vector.load %arg3[%c0_5, %c0_6, %c0_7] : memref<4x32x48xf32, #tpu.memory_space<vmem>>, vector<1x32x48xf32>
    %4 = vector.shape_cast %3 : vector<1x32x48xf32> to vector<32x48xf32>
    %c0_8 = arith.constant 0 : index
    %c0_9 = arith.constant 0 : index
    %c0_10 = arith.constant 0 : index
    %5 = vector.load %arg5[%c0_8, %c0_9, %c0_10] : memref<4x32x48xf32, #tpu.memory_space<vmem>>, vector<1x32x48xf32>
    %6 = vector.shape_cast %5 : vector<1x32x48xf32> to vector<32x48xf32>
    %c0_11 = arith.constant 0 : index
    %c0_12 = arith.constant 0 : index
    %c0_13 = arith.constant 0 : index
    %7 = vector.load %arg7[%c0_11, %c0_12, %c0_13] : memref<4x32x48xf32, #tpu.memory_space<vmem>>, vector<1x32x48xf32>
    %8 = vector.shape_cast %7 : vector<1x32x48xf32> to vector<32x48xf32>
    %c0_14 = arith.constant 0 : index
    %c0_15 = arith.constant 0 : index
    %c0_16 = arith.constant 0 : index
    %9 = vector.load %arg9[%c0_14, %c0_15, %c0_16] : memref<4x48x32xf32, #tpu.memory_space<vmem>>, vector<1x48x32xf32>
    %10 = vector.shape_cast %9 : vector<1x48x32xf32> to vector<48x32xf32>
    %cst = arith.constant dense<0.000000e+00> : vector<48x48xf32>
    %11 = tpu.matmul %0, %4, %cst {dimension_numbers = #tpu.dot_dimension_numbers<[1], [0], [0], [1], [0, 0, 1, 1], [], []>} : vector<48x32xf32>, vector<32x48xf32>, vector<48x48xf32> -> vector<48x48xf32>
    %c0_17 = arith.constant 0 : index
    %c0_18 = arith.constant 0 : index
    %c0_19 = arith.constant 0 : index
    %12 = vector.load %arg4[%c0_17, %c0_18, %c0_19] : memref<4x1x48xf32, #tpu.memory_space<vmem>>, vector<1x1x48xf32>
    %13 = vector.shape_cast %12 : vector<1x1x48xf32> to vector<1x48xf32>
    %14 = vector.broadcast %13 : vector<1x48xf32> to vector<48x48xf32>
    %15 = arith.addf %11, %14 : vector<48x48xf32>
    %cst_20 = arith.constant dense<0.000000e+00> : vector<48x48xf32>
    %16 = tpu.matmul %0, %6, %cst_20 {dimension_numbers = #tpu.dot_dimension_numbers<[1], [0], [0], [1], [0, 0, 1, 1], [], []>} : vector<48x32xf32>, vector<32x48xf32>, vector<48x48xf32> -> vector<48x48xf32>
    %c0_21 = arith.constant 0 : index
    %c0_22 = arith.constant 0 : index
    %c0_23 = arith.constant 0 : index
    %17 = vector.load %arg6[%c0_21, %c0_22, %c0_23] : memref<4x1x48xf32, #tpu.memory_space<vmem>>, vector<1x1x48xf32>
    %18 = vector.shape_cast %17 : vector<1x1x48xf32> to vector<1x48xf32>
    %19 = vector.broadcast %18 : vector<1x48xf32> to vector<48x48xf32>
    %20 = arith.addf %16, %19 : vector<48x48xf32>
    %cst_24 = arith.constant dense<0.000000e+00> : vector<48x48xf32>
    %21 = tpu.matmul %0, %8, %cst_24 {dimension_numbers = #tpu.dot_dimension_numbers<[1], [0], [0], [1], [0, 0, 1, 1], [], []>} : vector<48x32xf32>, vector<32x48xf32>, vector<48x48xf32> -> vector<48x48xf32>
    %c0_25 = arith.constant 0 : index
    %c0_26 = arith.constant 0 : index
    %c0_27 = arith.constant 0 : index
    %22 = vector.load %arg8[%c0_25, %c0_26, %c0_27] : memref<4x1x48xf32, #tpu.memory_space<vmem>>, vector<1x1x48xf32>
    %23 = vector.shape_cast %22 : vector<1x1x48xf32> to vector<1x48xf32>
    %24 = vector.broadcast %23 : vector<1x48xf32> to vector<48x48xf32>
    %25 = arith.addf %21, %24 : vector<48x48xf32>
    %26 = vector.shape_cast %15 : vector<48x48xf32> to vector<6x8x48xf32>
    %27 = vector.shape_cast %20 : vector<48x48xf32> to vector<6x8x48xf32>
    "tpu.trace_start"() <{level = 10 : i32, message = "bld,bmd->blm"}> : () -> ()
    %cst_28 = arith.constant dense<0.000000e+00> : vector<6x8x8xf32>
    %28 = tpu.matmul %26, %27, %cst_28 {dimension_numbers = #tpu.dot_dimension_numbers<[2], [2], [1], [1], [0, 0, 0, 1, 1, 1], [0], [0]>} : vector<6x8x48xf32>, vector<6x8x48xf32>, vector<6x8x8xf32> -> vector<6x8x8xf32>
    "tpu.trace_stop"() : () -> ()
    %cst_29 = arith.constant 0.144337565 : f32
    %29 = vector.broadcast %cst_29 : f32 to vector<6x8x8xf32>
    %30 = arith.mulf %28, %29 : vector<6x8x8xf32>
    %cst_30 = arith.constant dense<0xFF800000> : vector<6x8xf32>
    %31 = vector.multi_reduction <maximumf>, %30, %cst_30 [2] : vector<6x8x8xf32> to vector<6x8xf32>
    %32 = vector.shape_cast %31 : vector<6x8xf32> to vector<6x8x1xf32>
    %33 = vector.broadcast %32 : vector<6x8x1xf32> to vector<6x8x8xf32>
    %34 = arith.subf %30, %33 : vector<6x8x8xf32>
    %35 = math.exp %34 : vector<6x8x8xf32>
    %cst_31 = arith.constant dense<0.000000e+00> : vector<6x8xf32>
    %36 = vector.multi_reduction <add>, %35, %cst_31 [2] : vector<6x8x8xf32> to vector<6x8xf32>
    %37 = vector.shape_cast %36 : vector<6x8xf32> to vector<6x8x1xf32>
    %38 = tpu.reciprocal %37 {approx = true} : vector<6x8x1xf32> -> vector<6x8x1xf32>
    %39 = vector.broadcast %38 : vector<6x8x1xf32> to vector<6x8x8xf32>
    %40 = arith.mulf %35, %39 : vector<6x8x8xf32>
    %c0_32 = arith.constant 0 : index
    %c0_33 = arith.constant 0 : index
    %c0_34 = arith.constant 0 : index
    %c0_35 = arith.constant 0 : index
    %41 = vector.load %arg35[%c0_32, %c0_33, %c0_34, %c0_35] : memref<4x6x8x8xf32, #tpu.memory_space<vmem>>, vector<1x6x8x8xf32>
    %42 = vector.shape_cast %41 : vector<1x6x8x8xf32> to vector<6x8x8xf32>
    %43 = vector.shape_cast %40 : vector<6x8x8xf32> to vector<1x6x8x8xf32>
    tpu.vector_store %arg35[%c0_32, %c0_33, %c0_34, %c0_35], %43 {strides = array<i32>} : memref<4x6x8x8xf32, #tpu.memory_space<vmem>>, vector<1x6x8x8xf32>,
    %44 = vector.shape_cast %25 : vector<48x48xf32> to vector<6x8x48xf32>
    "tpu.trace_start"() <{level = 10 : i32, message = "blm,bmd->bld"}> : () -> ()
    %cst_36 = arith.constant dense<0.000000e+00> : vector<6x8x48xf32>
    %45 = tpu.matmul %40, %44, %cst_36 {dimension_numbers = #tpu.dot_dimension_numbers<[2], [1], [1], [2], [0, 0, 0, 1, 1, 2], [0], [0]>} : vector<6x8x8xf32>, vector<6x8x48xf32>, vector<6x8x48xf32> -> vector<6x8x48xf32>
    "tpu.trace_stop"() : () -> ()
    %46 = vector.shape_cast %45 : vector<6x8x48xf32> to vector<48x48xf32>
    %cst_37 = arith.constant dense<0.000000e+00> : vector<48x32xf32>
    %47 = tpu.matmul %46, %10, %cst_37 {dimension_numbers = #tpu.dot_dimension_numbers<[1], [0], [0], [1], [0, 0, 1, 1], [], []>} : vector<48x48xf32>, vector<48x32xf32>, vector<48x32xf32> -> vector<48x32xf32>
    %c1 = arith.constant 1 : index
    %c0_38 = arith.constant 0 : index
    %c0_39 = arith.constant 0 : index
    %48 = vector.load %arg3[%c1, %c0_38, %c0_39] : memref<4x32x48xf32, #tpu.memory_space<vmem>>, vector<1x32x48xf32>
    %49 = vector.shape_cast %48 : vector<1x32x48xf32> to vector<32x48xf32>
    %c1_40 = arith.constant 1 : index
    %c0_41 = arith.constant 0 : index
    %c0_42 = arith.constant 0 : index
    %50 = vector.load %arg5[%c1_40, %c0_41, %c0_42] : memref<4x32x48xf32, #tpu.memory_space<vmem>>, vector<1x32x48xf32>
    %51 = vector.shape_cast %50 : vector<1x32x48xf32> to vector<32x48xf32>
    %c1_43 = arith.constant 1 : index
    %c0_44 = arith.constant 0 : index
    %c0_45 = arith.constant 0 : index
    %52 = vector.load %arg7[%c1_43, %c0_44, %c0_45] : memref<4x32x48xf32, #tpu.memory_space<vmem>>, vector<1x32x48xf32>
    %53 = vector.shape_cast %52 : vector<1x32x48xf32> to vector<32x48xf32>
    %c1_46 = arith.constant 1 : index
    %c0_47 = arith.constant 0 : index
    %c0_48 = arith.constant 0 : index
    %54 = vector.load %arg9[%c1_46, %c0_47, %c0_48] : memref<4x48x32xf32, #tpu.memory_space<vmem>>, vector<1x48x32xf32>
    %55 = vector.shape_cast %54 : vector<1x48x32xf32> to vector<48x32xf32>
    %cst_49 = arith.constant dense<0.000000e+00> : vector<48x48xf32>
    %56 = tpu.matmul %0, %49, %cst_49 {dimension_numbers = #tpu.dot_dimension_numbers<[1], [0], [0], [1], [0, 0, 1, 1], [], []>} : vector<48x32xf32>, vector<32x48xf32>, vector<48x48xf32> -> vector<48x48xf32>
    %c1_50 = arith.constant 1 : index
    %c0_51 = arith.constant 0 : index
    %c0_52 = arith.constant 0 : index
    %57 = vector.load %arg4[%c1_50, %c0_51, %c0_52] : memref<4x1x48xf32, #tpu.memory_space<vmem>>, vector<1x1x48xf32>
    %58 = vector.shape_cast %57 : vector<1x1x48xf32> to vector<1x48xf32>
    %59 = vector.broadcast %58 : vector<1x48xf32> to vector<48x48xf32>
    %60 = arith.addf %56, %59 : vector<48x48xf32>
    %cst_53 = arith.constant dense<0.000000e+00> : vector<48x48xf32>
    %61 = tpu.matmul %0, %51, %cst_53 {dimension_numbers = #tpu.dot_dimension_numbers<[1], [0], [0], [1], [0, 0, 1, 1], [], []>} : vector<48x32xf32>, vector<32x48xf32>, vector<48x48xf32> -> vector<48x48xf32>
    %c1_54 = arith.constant 1 : index
    %c0_55 = arith.constant 0 : index
    %c0_56 = arith.constant 0 : index
    %62 = vector.load %arg6[%c1_54, %c0_55, %c0_56] : memref<4x1x48xf32, #tpu.memory_space<vmem>>, vector<1x1x48xf32>
    %63 = vector.shape_cast %62 : vector<1x1x48xf32> to vector<1x48xf32>
    %64 = vector.broadcast %63 : vector<1x48xf32> to vector<48x48xf32>
    %65 = arith.addf %61, %64 : vector<48x48xf32>
    %cst_57 = arith.constant dense<0.000000e+00> : vector<48x48xf32>
    %66 = tpu.matmul %0, %53, %cst_57 {dimension_numbers = #tpu.dot_dimension_numbers<[1], [0], [0], [1], [0, 0, 1, 1], [], []>} : vector<48x32xf32>, vector<32x48xf32>, vector<48x48xf32> -> vector<48x48xf32>
    %c1_58 = arith.constant 1 : index
    %c0_59 = arith.constant 0 : index
    %c0_60 = arith.constant 0 : index
    %67 = vector.load %arg8[%c1_58, %c0_59, %c0_60] : memref<4x1x48xf32, #tpu.memory_space<vmem>>, vector<1x1x48xf32>
    %68 = vector.shape_cast %67 : vector<1x1x48xf32> to vector<1x48xf32>
    %69 = vector.broadcast %68 : vector<1x48xf32> to vector<48x48xf32>
    %70 = arith.addf %66, %69 : vector<48x48xf32>
    %71 = vector.shape_cast %60 : vector<48x48xf32> to vector<6x8x48xf32>
    %72 = vector.shape_cast %65 : vector<48x48xf32> to vector<6x8x48xf32>
    "tpu.trace_start"() <{level = 10 : i32, message = "bld,bmd->blm"}> : () -> ()
    %cst_61 = arith.constant dense<0.000000e+00> : vector<6x8x8xf32>
    %73 = tpu.matmul %71, %72, %cst_61 {dimension_numbers = #tpu.dot_dimension_numbers<[2], [2], [1], [1], [0, 0, 0, 1, 1, 1], [0], [0]>} : vector<6x8x48xf32>, vector<6x8x48xf32>, vector<6x8x8xf32> -> vector<6x8x8xf32>
    "tpu.trace_stop"() : () -> ()
    %cst_62 = arith.constant 0.144337565 : f32
    %74 = vector.broadcast %cst_62 : f32 to vector<6x8x8xf32>
    %75 = arith.mulf %73, %74 : vector<6x8x8xf32>
    %cst_63 = arith.constant dense<0xFF800000> : vector<6x8xf32>
    %76 = vector.multi_reduction <maximumf>, %75, %cst_63 [2] : vector<6x8x8xf32> to vector<6x8xf32>
    %77 = vector.shape_cast %76 : vector<6x8xf32> to vector<6x8x1xf32>
    %78 = vector.broadcast %77 : vector<6x8x1xf32> to vector<6x8x8xf32>
    %79 = arith.subf %75, %78 : vector<6x8x8xf32>
    %80 = math.exp %79 : vector<6x8x8xf32>
    %cst_64 = arith.constant dense<0.000000e+00> : vector<6x8xf32>
    %81 = vector.multi_reduction <add>, %80, %cst_64 [2] : vector<6x8x8xf32> to vector<6x8xf32>
    %82 = vector.shape_cast %81 : vector<6x8xf32> to vector<6x8x1xf32>
    %83 = tpu.reciprocal %82 {approx = true} : vector<6x8x1xf32> -> vector<6x8x1xf32>
    %84 = vector.broadcast %83 : vector<6x8x1xf32> to vector<6x8x8xf32>
    %85 = arith.mulf %80, %84 : vector<6x8x8xf32>
    %c1_65 = arith.constant 1 : index
    %c0_66 = arith.constant 0 : index
    %c0_67 = arith.constant 0 : index
    %c0_68 = arith.constant 0 : index
    %86 = vector.load %arg35[%c1_65, %c0_66, %c0_67, %c0_68] : memref<4x6x8x8xf32, #tpu.memory_space<vmem>>, vector<1x6x8x8xf32>
    %87 = vector.shape_cast %86 : vector<1x6x8x8xf32> to vector<6x8x8xf32>
    %88 = vector.shape_cast %85 : vector<6x8x8xf32> to vector<1x6x8x8xf32>
    tpu.vector_store %arg35[%c1_65, %c0_66, %c0_67, %c0_68], %88 {strides = array<i32>} : memref<4x6x8x8xf32, #tpu.memory_space<vmem>>, vector<1x6x8x8xf32>,
    %89 = vector.shape_cast %70 : vector<48x48xf32> to vector<6x8x48xf32>
    "tpu.trace_start"() <{level = 10 : i32, message = "blm,bmd->bld"}> : () -> ()
    %cst_69 = arith.constant dense<0.000000e+00> : vector<6x8x48xf32>
    %90 = tpu.matmul %85, %89, %cst_69 {dimension_numbers = #tpu.dot_dimension_numbers<[2], [1], [1], [2], [0, 0, 0, 1, 1, 2], [0], [0]>} : vector<6x8x8xf32>, vector<6x8x48xf32>, vector<6x8x48xf32> -> vector<6x8x48xf32>
    "tpu.trace_stop"() : () -> ()
    %91 = vector.shape_cast %90 : vector<6x8x48xf32> to vector<48x48xf32>
    %cst_70 = arith.constant dense<0.000000e+00> : vector<48x32xf32>
    %92 = tpu.matmul %91, %55, %cst_70 {dimension_numbers = #tpu.dot_dimension_numbers<[1], [0], [0], [1], [0, 0, 1, 1], [], []>} : vector<48x48xf32>, vector<48x32xf32>, vector<48x32xf32> -> vector<48x32xf32>
    %93 = arith.addf %47, %92 : vector<48x32xf32>
    %c2 = arith.constant 2 : index
    %c0_71 = arith.constant 0 : index
    %c0_72 = arith.constant 0 : index
    %94 = vector.load %arg3[%c2, %c0_71, %c0_72] : memref<4x32x48xf32, #tpu.memory_space<vmem>>, vector<1x32x48xf32>
    %95 = vector.shape_cast %94 : vector<1x32x48xf32> to vector<32x48xf32>
    %c2_73 = arith.constant 2 : index
    %c0_74 = arith.constant 0 : index
    %c0_75 = arith.constant 0 : index
    %96 = vector.load %arg5[%c2_73, %c0_74, %c0_75] : memref<4x32x48xf32, #tpu.memory_space<vmem>>, vector<1x32x48xf32>
    %97 = vector.shape_cast %96 : vector<1x32x48xf32> to vector<32x48xf32>
    %c2_76 = arith.constant 2 : index
    %c0_77 = arith.constant 0 : index
    %c0_78 = arith.constant 0 : index
    %98 = vector.load %arg7[%c2_76, %c0_77, %c0_78] : memref<4x32x48xf32, #tpu.memory_space<vmem>>, vector<1x32x48xf32>
    %99 = vector.shape_cast %98 : vector<1x32x48xf32> to vector<32x48xf32>
    %c2_79 = arith.constant 2 : index
    %c0_80 = arith.constant 0 : index
    %c0_81 = arith.constant 0 : index
    %100 = vector.load %arg9[%c2_79, %c0_80, %c0_81] : memref<4x48x32xf32, #tpu.memory_space<vmem>>, vector<1x48x32xf32>
    %101 = vector.shape_cast %100 : vector<1x48x32xf32> to vector<48x32xf32>
    %cst_82 = arith.constant dense<0.000000e+00> : vector<48x48xf32>
    %102 = tpu.matmul %0, %95, %cst_82 {dimension_numbers = #tpu.dot_dimension_numbers<[1], [0], [0], [1], [0, 0, 1, 1], [], []>} : vector<48x32xf32>, vector<32x48xf32>, vector<48x48xf32> -> vector<48x48xf32>
    %c2_83 = arith.constant 2 : index
    %c0_84 = arith.constant 0 : index
    %c0_85 = arith.constant 0 : index
    %103 = vector.load %arg4[%c2_83, %c0_84, %c0_85] : memref<4x1x48xf32, #tpu.memory_space<vmem>>, vector<1x1x48xf32>
    %104 = vector.shape_cast %103 : vector<1x1x48xf32> to vector<1x48xf32>
    %105 = vector.broadcast %104 : vector<1x48xf32> to vector<48x48xf32>
    %106 = arith.addf %102, %105 : vector<48x48xf32>
    %cst_86 = arith.constant dense<0.000000e+00> : vector<48x48xf32>
    %107 = tpu.matmul %0, %97, %cst_86 {dimension_numbers = #tpu.dot_dimension_numbers<[1], [0], [0], [1], [0, 0, 1, 1], [], []>} : vector<48x32xf32>, vector<32x48xf32>, vector<48x48xf32> -> vector<48x48xf32>
    %c2_87 = arith.constant 2 : index
    %c0_88 = arith.constant 0 : index
    %c0_89 = arith.constant 0 : index
    %108 = vector.load %arg6[%c2_87, %c0_88, %c0_89] : memref<4x1x48xf32, #tpu.memory_space<vmem>>, vector<1x1x48xf32>
    %109 = vector.shape_cast %108 : vector<1x1x48xf32> to vector<1x48xf32>
    %110 = vector.broadcast %109 : vector<1x48xf32> to vector<48x48xf32>
    %111 = arith.addf %107, %110 : vector<48x48xf32>
    %cst_90 = arith.constant dense<0.000000e+00> : vector<48x48xf32>
    %112 = tpu.matmul %0, %99, %cst_90 {dimension_numbers = #tpu.dot_dimension_numbers<[1], [0], [0], [1], [0, 0, 1, 1], [], []>} : vector<48x32xf32>, vector<32x48xf32>, vector<48x48xf32> -> vector<48x48xf32>
    %c2_91 = arith.constant 2 : index
    %c0_92 = arith.constant 0 : index
    %c0_93 = arith.constant 0 : index
    %113 = vector.load %arg8[%c2_91, %c0_92, %c0_93] : memref<4x1x48xf32, #tpu.memory_space<vmem>>, vector<1x1x48xf32>
    %114 = vector.shape_cast %113 : vector<1x1x48xf32> to vector<1x48xf32>
    %115 = vector.broadcast %114 : vector<1x48xf32> to vector<48x48xf32>
    %116 = arith.addf %112, %115 : vector<48x48xf32>
    %117 = vector.shape_cast %106 : vector<48x48xf32> to vector<6x8x48xf32>
    %118 = vector.shape_cast %111 : vector<48x48xf32> to vector<6x8x48xf32>
    "tpu.trace_start"() <{level = 10 : i32, message = "bld,bmd->blm"}> : () -> ()
    %cst_94 = arith.constant dense<0.000000e+00> : vector<6x8x8xf32>
    %119 = tpu.matmul %117, %118, %cst_94 {dimension_numbers = #tpu.dot_dimension_numbers<[2], [2], [1], [1], [0, 0, 0, 1, 1, 1], [0], [0]>} : vector<6x8x48xf32>, vector<6x8x48xf32>, vector<6x8x8xf32> -> vector<6x8x8xf32>
    "tpu.trace_stop"() : () -> ()
    %cst_95 = arith.constant 0.144337565 : f32
    %120 = vector.broadcast %cst_95 : f32 to vector<6x8x8xf32>
    %121 = arith.mulf %119, %120 : vector<6x8x8xf32>
    %cst_96 = arith.constant dense<0xFF800000> : vector<6x8xf32>
    %122 = vector.multi_reduction <maximumf>, %121, %cst_96 [2] : vector<6x8x8xf32> to vector<6x8xf32>
    %123 = vector.shape_cast %122 : vector<6x8xf32> to vector<6x8x1xf32>
    %124 = vector.broadcast %123 : vector<6x8x1xf32> to vector<6x8x8xf32>
    %125 = arith.subf %121, %124 : vector<6x8x8xf32>
    %126 = math.exp %125 : vector<6x8x8xf32>
    %cst_97 = arith.constant dense<0.000000e+00> : vector<6x8xf32>
    %127 = vector.multi_reduction <add>, %126, %cst_97 [2] : vector<6x8x8xf32> to vector<6x8xf32>
    %128 = vector.shape_cast %127 : vector<6x8xf32> to vector<6x8x1xf32>
    %129 = tpu.reciprocal %128 {approx = true} : vector<6x8x1xf32> -> vector<6x8x1xf32>
    %130 = vector.broadcast %129 : vector<6x8x1xf32> to vector<6x8x8xf32>
    %131 = arith.mulf %126, %130 : vector<6x8x8xf32>
    %c2_98 = arith.constant 2 : index
    %c0_99 = arith.constant 0 : index
    %c0_100 = arith.constant 0 : index
    %c0_101 = arith.constant 0 : index
    %132 = vector.load %arg35[%c2_98, %c0_99, %c0_100, %c0_101] : memref<4x6x8x8xf32, #tpu.memory_space<vmem>>, vector<1x6x8x8xf32>
    %133 = vector.shape_cast %132 : vector<1x6x8x8xf32> to vector<6x8x8xf32>
    %134 = vector.shape_cast %131 : vector<6x8x8xf32> to vector<1x6x8x8xf32>
    tpu.vector_store %arg35[%c2_98, %c0_99, %c0_100, %c0_101], %134 {strides = array<i32>} : memref<4x6x8x8xf32, #tpu.memory_space<vmem>>, vector<1x6x8x8xf32>,
    %135 = vector.shape_cast %116 : vector<48x48xf32> to vector<6x8x48xf32>
    "tpu.trace_start"() <{level = 10 : i32, message = "blm,bmd->bld"}> : () -> ()
    %cst_102 = arith.constant dense<0.000000e+00> : vector<6x8x48xf32>
    %136 = tpu.matmul %131, %135, %cst_102 {dimension_numbers = #tpu.dot_dimension_numbers<[2], [1], [1], [2], [0, 0, 0, 1, 1, 2], [0], [0]>} : vector<6x8x8xf32>, vector<6x8x48xf32>, vector<6x8x48xf32> -> vector<6x8x48xf32>
    "tpu.trace_stop"() : () -> ()
    %137 = vector.shape_cast %136 : vector<6x8x48xf32> to vector<48x48xf32>
    %cst_103 = arith.constant dense<0.000000e+00> : vector<48x32xf32>
    %138 = tpu.matmul %137, %101, %cst_103 {dimension_numbers = #tpu.dot_dimension_numbers<[1], [0], [0], [1], [0, 0, 1, 1], [], []>} : vector<48x48xf32>, vector<48x32xf32>, vector<48x32xf32> -> vector<48x32xf32>
    %139 = arith.addf %93, %138 : vector<48x32xf32>
    %c3 = arith.constant 3 : index
    %c0_104 = arith.constant 0 : index
    %c0_105 = arith.constant 0 : index
    %140 = vector.load %arg3[%c3, %c0_104, %c0_105] : memref<4x32x48xf32, #tpu.memory_space<vmem>>, vector<1x32x48xf32>
    %141 = vector.shape_cast %140 : vector<1x32x48xf32> to vector<32x48xf32>
    %c3_106 = arith.constant 3 : index
    %c0_107 = arith.constant 0 : index
    %c0_108 = arith.constant 0 : index
    %142 = vector.load %arg5[%c3_106, %c0_107, %c0_108] : memref<4x32x48xf32, #tpu.memory_space<vmem>>, vector<1x32x48xf32>
    %143 = vector.shape_cast %142 : vector<1x32x48xf32> to vector<32x48xf32>
    %c3_109 = arith.constant 3 : index
    %c0_110 = arith.constant 0 : index
    %c0_111 = arith.constant 0 : index
    %144 = vector.load %arg7[%c3_109, %c0_110, %c0_111] : memref<4x32x48xf32, #tpu.memory_space<vmem>>, vector<1x32x48xf32>
    %145 = vector.shape_cast %144 : vector<1x32x48xf32> to vector<32x48xf32>
    %c3_112 = arith.constant 3 : index
    %c0_113 = arith.constant 0 : index
    %c0_114 = arith.constant 0 : index
    %146 = vector.load %arg9[%c3_112, %c0_113, %c0_114] : memref<4x48x32xf32, #tpu.memory_space<vmem>>, vector<1x48x32xf32>
    %147 = vector.shape_cast %146 : vector<1x48x32xf32> to vector<48x32xf32>
    %cst_115 = arith.constant dense<0.000000e+00> : vector<48x48xf32>
    %148 = tpu.matmul %0, %141, %cst_115 {dimension_numbers = #tpu.dot_dimension_numbers<[1], [0], [0], [1], [0, 0, 1, 1], [], []>} : vector<48x32xf32>, vector<32x48xf32>, vector<48x48xf32> -> vector<48x48xf32>
    %c3_116 = arith.constant 3 : index
    %c0_117 = arith.constant 0 : index
    %c0_118 = arith.constant 0 : index
    %149 = vector.load %arg4[%c3_116, %c0_117, %c0_118] : memref<4x1x48xf32, #tpu.memory_space<vmem>>, vector<1x1x48xf32>
    %150 = vector.shape_cast %149 : vector<1x1x48xf32> to vector<1x48xf32>
    %151 = vector.broadcast %150 : vector<1x48xf32> to vector<48x48xf32>
    %152 = arith.addf %148, %151 : vector<48x48xf32>
    %cst_119 = arith.constant dense<0.000000e+00> : vector<48x48xf32>
    %153 = tpu.matmul %0, %143, %cst_119 {dimension_numbers = #tpu.dot_dimension_numbers<[1], [0], [0], [1], [0, 0, 1, 1], [], []>} : vector<48x32xf32>, vector<32x48xf32>, vector<48x48xf32> -> vector<48x48xf32>
    %c3_120 = arith.constant 3 : index
    %c0_121 = arith.constant 0 : index
    %c0_122 = arith.constant 0 : index
    %154 = vector.load %arg6[%c3_120, %c0_121, %c0_122] : memref<4x1x48xf32, #tpu.memory_space<vmem>>, vector<1x1x48xf32>
    %155 = vector.shape_cast %154 : vector<1x1x48xf32> to vector<1x48xf32>
    %156 = vector.broadcast %155 : vector<1x48xf32> to vector<48x48xf32>
    %157 = arith.addf %153, %156 : vector<48x48xf32>
    %cst_123 = arith.constant dense<0.000000e+00> : vector<48x48xf32>
    %158 = tpu.matmul %0, %145, %cst_123 {dimension_numbers = #tpu.dot_dimension_numbers<[1], [0], [0], [1], [0, 0, 1, 1], [], []>} : vector<48x32xf32>, vector<32x48xf32>, vector<48x48xf32> -> vector<48x48xf32>
    %c3_124 = arith.constant 3 : index
    %c0_125 = arith.constant 0 : index
    %c0_126 = arith.constant 0 : index
    %159 = vector.load %arg8[%c3_124, %c0_125, %c0_126] : memref<4x1x48xf32, #tpu.memory_space<vmem>>, vector<1x1x48xf32>
    %160 = vector.shape_cast %159 : vector<1x1x48xf32> to vector<1x48xf32>
    %161 = vector.broadcast %160 : vector<1x48xf32> to vector<48x48xf32>
    %162 = arith.addf %158, %161 : vector<48x48xf32>
    %163 = vector.shape_cast %152 : vector<48x48xf32> to vector<6x8x48xf32>
    %164 = vector.shape_cast %157 : vector<48x48xf32> to vector<6x8x48xf32>
    "tpu.trace_start"() <{level = 10 : i32, message = "bld,bmd->blm"}> : () -> ()
    %cst_127 = arith.constant dense<0.000000e+00> : vector<6x8x8xf32>
    %165 = tpu.matmul %163, %164, %cst_127 {dimension_numbers = #tpu.dot_dimension_numbers<[2], [2], [1], [1], [0, 0, 0, 1, 1, 1], [0], [0]>} : vector<6x8x48xf32>, vector<6x8x48xf32>, vector<6x8x8xf32> -> vector<6x8x8xf32>
    "tpu.trace_stop"() : () -> ()
    %cst_128 = arith.constant 0.144337565 : f32
    %166 = vector.broadcast %cst_128 : f32 to vector<6x8x8xf32>
    %167 = arith.mulf %165, %166 : vector<6x8x8xf32>
    %cst_129 = arith.constant dense<0xFF800000> : vector<6x8xf32>
    %168 = vector.multi_reduction <maximumf>, %167, %cst_129 [2] : vector<6x8x8xf32> to vector<6x8xf32>
    %169 = vector.shape_cast %168 : vector<6x8xf32> to vector<6x8x1xf32>
    %170 = vector.broadcast %169 : vector<6x8x1xf32> to vector<6x8x8xf32>
    %171 = arith.subf %167, %170 : vector<6x8x8xf32>
    %172 = math.exp %171 : vector<6x8x8xf32>
    %cst_130 = arith.constant dense<0.000000e+00> : vector<6x8xf32>
    %173 = vector.multi_reduction <add>, %172, %cst_130 [2] : vector<6x8x8xf32> to vector<6x8xf32>
    %174 = vector.shape_cast %173 : vector<6x8xf32> to vector<6x8x1xf32>
    %175 = tpu.reciprocal %174 {approx = true} : vector<6x8x1xf32> -> vector<6x8x1xf32>
    %176 = vector.broadcast %175 : vector<6x8x1xf32> to vector<6x8x8xf32>
    %177 = arith.mulf %172, %176 : vector<6x8x8xf32>
    %c3_131 = arith.constant 3 : index
    %c0_132 = arith.constant 0 : index
    %c0_133 = arith.constant 0 : index
    %c0_134 = arith.constant 0 : index
    %178 = vector.load %arg35[%c3_131, %c0_132, %c0_133, %c0_134] : memref<4x6x8x8xf32, #tpu.memory_space<vmem>>, vector<1x6x8x8xf32>
    %179 = vector.shape_cast %178 : vector<1x6x8x8xf32> to vector<6x8x8xf32>
    %180 = vector.shape_cast %177 : vector<6x8x8xf32> to vector<1x6x8x8xf32>
    tpu.vector_store %arg35[%c3_131, %c0_132, %c0_133, %c0_134], %180 {strides = array<i32>} : memref<4x6x8x8xf32, #tpu.memory_space<vmem>>, vector<1x6x8x8xf32>,
    %181 = vector.shape_cast %162 : vector<48x48xf32> to vector<6x8x48xf32>
    "tpu.trace_start"() <{level = 10 : i32, message = "blm,bmd->bld"}> : () -> ()
    %cst_135 = arith.constant dense<0.000000e+00> : vector<6x8x48xf32>
    %182 = tpu.matmul %177, %181, %cst_135 {dimension_numbers = #tpu.dot_dimension_numbers<[2], [1], [1], [2], [0, 0, 0, 1, 1, 2], [0], [0]>} : vector<6x8x8xf32>, vector<6x8x48xf32>, vector<6x8x48xf32> -> vector<6x8x48xf32>
    "tpu.trace_stop"() : () -> ()
    %183 = vector.shape_cast %182 : vector<6x8x48xf32> to vector<48x48xf32>
    %cst_136 = arith.constant dense<0.000000e+00> : vector<48x32xf32>
    %184 = tpu.matmul %183, %147, %cst_136 {dimension_numbers = #tpu.dot_dimension_numbers<[1], [0], [0], [1], [0, 0, 1, 1], [], []>} : vector<48x48xf32>, vector<48x32xf32>, vector<48x32xf32> -> vector<48x32xf32>
    %185 = arith.addf %139, %184 : vector<48x32xf32>
    %c0_137 = arith.constant 0 : index
    %c0_138 = arith.constant 0 : index
    %186 = vector.load %arg10[%c0_137, %c0_138] : memref<1x32xf32, #tpu.memory_space<vmem>>, vector<1x32xf32>
    %187 = vector.broadcast %186 : vector<1x32xf32> to vector<48x32xf32>
    %188 = arith.addf %185, %187 : vector<48x32xf32>
    %189 = arith.addf %188, %0 : vector<48x32xf32>
    %cst_139 = arith.constant dense<0.000000e+00> : vector<48xf32>
    %190 = vector.multi_reduction <add>, %189, %cst_139 [1] : vector<48x32xf32> to vector<48xf32>
    %191 = vector.shape_cast %190 : vector<48xf32> to vector<48x1xf32>
    %cst_140 = arith.constant 3.200000e+01 : f32
    %192 = vector.broadcast %cst_140 : f32 to vector<48x1xf32>
    %193 = arith.divf %191, %192 : vector<48x1xf32>
    %194 = vector.broadcast %193 : vector<48x1xf32> to vector<48x32xf32>
    %195 = arith.subf %189, %194 : vector<48x32xf32>
    %196 = arith.mulf %195, %195 : vector<48x32xf32>
    %cst_141 = arith.constant dense<0.000000e+00> : vector<48xf32>
    %197 = vector.multi_reduction <add>, %196, %cst_141 [1] : vector<48x32xf32> to vector<48xf32>
    %198 = vector.shape_cast %197 : vector<48xf32> to vector<48x1xf32>
    %cst_142 = arith.constant 3.200000e+01 : f32
    %199 = vector.broadcast %cst_142 : f32 to vector<48x1xf32>
    %200 = arith.divf %198, %199 : vector<48x1xf32>
    %201 = vector.broadcast %193 : vector<48x1xf32> to vector<48x32xf32>
    %202 = arith.subf %189, %201 : vector<48x32xf32>
    %cst_143 = arith.constant 9.99999974E-6 : f32
    %203 = vector.broadcast %cst_143 : f32 to vector<48x1xf32>
    %204 = arith.addf %200, %203 : vector<48x1xf32>
    %205 = math.rsqrt %204 : vector<48x1xf32>
    %206 = vector.broadcast %205 : vector<48x1xf32> to vector<48x32xf32>
    %207 = arith.mulf %202, %206 : vector<48x32xf32>
    %c0_144 = arith.constant 0 : index
    %c0_145 = arith.constant 0 : index
    %208 = vector.load %arg11[%c0_144, %c0_145] : memref<1x32xf32, #tpu.memory_space<vmem>>, vector<1x32xf32>
    %209 = vector.broadcast %208 : vector<1x32xf32> to vector<48x32xf32>
    %210 = arith.mulf %207, %209 : vector<48x32xf32>
    %c0_146 = arith.constant 0 : index
    %c0_147 = arith.constant 0 : index
    %211 = vector.load %arg12[%c0_146, %c0_147] : memref<1x32xf32, #tpu.memory_space<vmem>>, vector<1x32xf32>
    %212 = vector.broadcast %211 : vector<1x32xf32> to vector<48x32xf32>
    %213 = arith.addf %210, %212 : vector<48x32xf32>
    %c0_148 = arith.constant 0 : index
    %c0_149 = arith.constant 0 : index
    %c0_150 = arith.constant 0 : index
    %214 = vector.load %arg13[%c0_148, %c0_149, %c0_150] : memref<4x32x48xf32, #tpu.memory_space<vmem>>, vector<1x32x48xf32>
    %215 = vector.shape_cast %214 : vector<1x32x48xf32> to vector<32x48xf32>
    %c0_151 = arith.constant 0 : index
    %c0_152 = arith.constant 0 : index
    %c0_153 = arith.constant 0 : index
    %216 = vector.load %arg15[%c0_151, %c0_152, %c0_153] : memref<4x32x48xf32, #tpu.memory_space<vmem>>, vector<1x32x48xf32>
    %217 = vector.shape_cast %216 : vector<1x32x48xf32> to vector<32x48xf32>
    %c0_154 = arith.constant 0 : index
    %c0_155 = arith.constant 0 : index
    %c0_156 = arith.constant 0 : index
    %218 = vector.load %arg17[%c0_154, %c0_155, %c0_156] : memref<4x32x48xf32, #tpu.memory_space<vmem>>, vector<1x32x48xf32>
    %219 = vector.shape_cast %218 : vector<1x32x48xf32> to vector<32x48xf32>
    %c0_157 = arith.constant 0 : index
    %c0_158 = arith.constant 0 : index
    %c0_159 = arith.constant 0 : index
    %220 = vector.load %arg19[%c0_157, %c0_158, %c0_159] : memref<4x48x32xf32, #tpu.memory_space<vmem>>, vector<1x48x32xf32>
    %221 = vector.shape_cast %220 : vector<1x48x32xf32> to vector<48x32xf32>
    %cst_160 = arith.constant dense<0.000000e+00> : vector<48x48xf32>
    %222 = tpu.matmul %213, %215, %cst_160 {dimension_numbers = #tpu.dot_dimension_numbers<[1], [0], [0], [1], [0, 0, 1, 1], [], []>} : vector<48x32xf32>, vector<32x48xf32>, vector<48x48xf32> -> vector<48x48xf32>
    %c0_161 = arith.constant 0 : index
    %c0_162 = arith.constant 0 : index
    %c0_163 = arith.constant 0 : index
    %223 = vector.load %arg14[%c0_161, %c0_162, %c0_163] : memref<4x1x48xf32, #tpu.memory_space<vmem>>, vector<1x1x48xf32>
    %224 = vector.shape_cast %223 : vector<1x1x48xf32> to vector<1x48xf32>
    %225 = vector.broadcast %224 : vector<1x48xf32> to vector<48x48xf32>
    %226 = arith.addf %222, %225 : vector<48x48xf32>
    %cst_164 = arith.constant dense<0.000000e+00> : vector<48x48xf32>
    %227 = tpu.matmul %1, %217, %cst_164 {dimension_numbers = #tpu.dot_dimension_numbers<[1], [0], [0], [1], [0, 0, 1, 1], [], []>} : vector<48x32xf32>, vector<32x48xf32>, vector<48x48xf32> -> vector<48x48xf32>
    %c0_165 = arith.constant 0 : index
    %c0_166 = arith.constant 0 : index
    %c0_167 = arith.constant 0 : index
    %228 = vector.load %arg16[%c0_165, %c0_166, %c0_167] : memref<4x1x48xf32, #tpu.memory_space<vmem>>, vector<1x1x48xf32>
    %229 = vector.shape_cast %228 : vector<1x1x48xf32> to vector<1x48xf32>
    %230 = vector.broadcast %229 : vector<1x48xf32> to vector<48x48xf32>
    %231 = arith.addf %227, %230 : vector<48x48xf32>
    %cst_168 = arith.constant dense<0.000000e+00> : vector<48x48xf32>
    %232 = tpu.matmul %1, %219, %cst_168 {dimension_numbers = #tpu.dot_dimension_numbers<[1], [0], [0], [1], [0, 0, 1, 1], [], []>} : vector<48x32xf32>, vector<32x48xf32>, vector<48x48xf32> -> vector<48x48xf32>
    %c0_169 = arith.constant 0 : index
    %c0_170 = arith.constant 0 : index
    %c0_171 = arith.constant 0 : index
    %233 = vector.load %arg18[%c0_169, %c0_170, %c0_171] : memref<4x1x48xf32, #tpu.memory_space<vmem>>, vector<1x1x48xf32>
    %234 = vector.shape_cast %233 : vector<1x1x48xf32> to vector<1x48xf32>
    %235 = vector.broadcast %234 : vector<1x48xf32> to vector<48x48xf32>
    %236 = arith.addf %232, %235 : vector<48x48xf32>
    %237 = vector.shape_cast %226 : vector<48x48xf32> to vector<6x8x48xf32>
    %238 = vector.shape_cast %231 : vector<48x48xf32> to vector<6x8x48xf32>
    "tpu.trace_start"() <{level = 10 : i32, message = "bld,bmd->blm"}> : () -> ()
    %cst_172 = arith.constant dense<0.000000e+00> : vector<6x8x8xf32>
    %239 = tpu.matmul %237, %238, %cst_172 {dimension_numbers = #tpu.dot_dimension_numbers<[2], [2], [1], [1], [0, 0, 0, 1, 1, 1], [0], [0]>} : vector<6x8x48xf32>, vector<6x8x48xf32>, vector<6x8x8xf32> -> vector<6x8x8xf32>
    "tpu.trace_stop"() : () -> ()
    %cst_173 = arith.constant 0.144337565 : f32
    %240 = vector.broadcast %cst_173 : f32 to vector<6x8x8xf32>
    %241 = arith.mulf %239, %240 : vector<6x8x8xf32>
    %cst_174 = arith.constant dense<0xFF800000> : vector<6x8xf32>
    %242 = vector.multi_reduction <maximumf>, %241, %cst_174 [2] : vector<6x8x8xf32> to vector<6x8xf32>
    %243 = vector.shape_cast %242 : vector<6x8xf32> to vector<6x8x1xf32>
    %244 = vector.broadcast %243 : vector<6x8x1xf32> to vector<6x8x8xf32>
    %245 = arith.subf %241, %244 : vector<6x8x8xf32>
    %246 = math.exp %245 : vector<6x8x8xf32>
    %cst_175 = arith.constant dense<0.000000e+00> : vector<6x8xf32>
    %247 = vector.multi_reduction <add>, %246, %cst_175 [2] : vector<6x8x8xf32> to vector<6x8xf32>
    %248 = vector.shape_cast %247 : vector<6x8xf32> to vector<6x8x1xf32>
    %249 = tpu.reciprocal %248 {approx = true} : vector<6x8x1xf32> -> vector<6x8x1xf32>
    %250 = vector.broadcast %249 : vector<6x8x1xf32> to vector<6x8x8xf32>
    %251 = arith.mulf %246, %250 : vector<6x8x8xf32>
    %c0_176 = arith.constant 0 : index
    %c0_177 = arith.constant 0 : index
    %c0_178 = arith.constant 0 : index
    %c0_179 = arith.constant 0 : index
    %252 = vector.load %arg36[%c0_176, %c0_177, %c0_178, %c0_179] : memref<4x6x8x8xf32, #tpu.memory_space<vmem>>, vector<1x6x8x8xf32>
    %253 = vector.shape_cast %252 : vector<1x6x8x8xf32> to vector<6x8x8xf32>
    %254 = vector.shape_cast %251 : vector<6x8x8xf32> to vector<1x6x8x8xf32>
    tpu.vector_store %arg36[%c0_176, %c0_177, %c0_178, %c0_179], %254 {strides = array<i32>} : memref<4x6x8x8xf32, #tpu.memory_space<vmem>>, vector<1x6x8x8xf32>,
    %255 = vector.shape_cast %236 : vector<48x48xf32> to vector<6x8x48xf32>
    "tpu.trace_start"() <{level = 10 : i32, message = "blm,bmd->bld"}> : () -> ()
    %cst_180 = arith.constant dense<0.000000e+00> : vector<6x8x48xf32>
    %256 = tpu.matmul %251, %255, %cst_180 {dimension_numbers = #tpu.dot_dimension_numbers<[2], [1], [1], [2], [0, 0, 0, 1, 1, 2], [0], [0]>} : vector<6x8x8xf32>, vector<6x8x48xf32>, vector<6x8x48xf32> -> vector<6x8x48xf32>
    "tpu.trace_stop"() : () -> ()
    %257 = vector.shape_cast %256 : vector<6x8x48xf32> to vector<48x48xf32>
    %cst_181 = arith.constant dense<0.000000e+00> : vector<48x32xf32>
    %258 = tpu.matmul %257, %221, %cst_181 {dimension_numbers = #tpu.dot_dimension_numbers<[1], [0], [0], [1], [0, 0, 1, 1], [], []>} : vector<48x48xf32>, vector<48x32xf32>, vector<48x32xf32> -> vector<48x32xf32>
    %cst_182 = arith.constant dense<0.000000e+00> : vector<48x48xf32>
    %259 = tpu.matmul %2, %219, %cst_182 {dimension_numbers = #tpu.dot_dimension_numbers<[1], [0], [0], [1], [0, 0, 1, 1], [], []>} : vector<48x32xf32>, vector<32x48xf32>, vector<48x48xf32> -> vector<48x48xf32>
    %c0_183 = arith.constant 0 : index
    %c0_184 = arith.constant 0 : index
    %c0_185 = arith.constant 0 : index
    %260 = vector.load %arg18[%c0_183, %c0_184, %c0_185] : memref<4x1x48xf32, #tpu.memory_space<vmem>>, vector<1x1x48xf32>
    %261 = vector.shape_cast %260 : vector<1x1x48xf32> to vector<1x48xf32>
    %262 = vector.broadcast %261 : vector<1x48xf32> to vector<48x48xf32>
    %263 = arith.addf %259, %262 : vector<48x48xf32>
    %264 = vector.shape_cast %263 : vector<48x48xf32> to vector<6x8x48xf32>
    "tpu.trace_start"() <{level = 10 : i32, message = "blm,bmd->bld"}> : () -> ()
    %cst_186 = arith.constant dense<0.000000e+00> : vector<6x8x48xf32>
    %265 = tpu.matmul %251, %264, %cst_186 {dimension_numbers = #tpu.dot_dimension_numbers<[2], [1], [1], [2], [0, 0, 0, 1, 1, 2], [0], [0]>} : vector<6x8x8xf32>, vector<6x8x48xf32>, vector<6x8x48xf32> -> vector<6x8x48xf32>
    "tpu.trace_stop"() : () -> ()
    %266 = vector.shape_cast %265 : vector<6x8x48xf32> to vector<48x48xf32>
    %cst_187 = arith.constant dense<0.000000e+00> : vector<48x32xf32>
    %267 = tpu.matmul %266, %221, %cst_187 {dimension_numbers = #tpu.dot_dimension_numbers<[1], [0], [0], [1], [0, 0, 1, 1], [], []>} : vector<48x48xf32>, vector<48x32xf32>, vector<48x32xf32> -> vector<48x32xf32>
    %c1_188 = arith.constant 1 : index
    %c0_189 = arith.constant 0 : index
    %c0_190 = arith.constant 0 : index
    %268 = vector.load %arg13[%c1_188, %c0_189, %c0_190] : memref<4x32x48xf32, #tpu.memory_space<vmem>>, vector<1x32x48xf32>
    %269 = vector.shape_cast %268 : vector<1x32x48xf32> to vector<32x48xf32>
    %c1_191 = arith.constant 1 : index
    %c0_192 = arith.constant 0 : index
    %c0_193 = arith.constant 0 : index
    %270 = vector.load %arg15[%c1_191, %c0_192, %c0_193] : memref<4x32x48xf32, #tpu.memory_space<vmem>>, vector<1x32x48xf32>
    %271 = vector.shape_cast %270 : vector<1x32x48xf32> to vector<32x48xf32>
    %c1_194 = arith.constant 1 : index
    %c0_195 = arith.constant 0 : index
    %c0_196 = arith.constant 0 : index
    %272 = vector.load %arg17[%c1_194, %c0_195, %c0_196] : memref<4x32x48xf32, #tpu.memory_space<vmem>>, vector<1x32x48xf32>
    %273 = vector.shape_cast %272 : vector<1x32x48xf32> to vector<32x48xf32>
    %c1_197 = arith.constant 1 : index
    %c0_198 = arith.constant 0 : index
    %c0_199 = arith.constant 0 : index
    %274 = vector.load %arg19[%c1_197, %c0_198, %c0_199] : memref<4x48x32xf32, #tpu.memory_space<vmem>>, vector<1x48x32xf32>
    %275 = vector.shape_cast %274 : vector<1x48x32xf32> to vector<48x32xf32>
    %cst_200 = arith.constant dense<0.000000e+00> : vector<48x48xf32>
    %276 = tpu.matmul %213, %269, %cst_200 {dimension_numbers = #tpu.dot_dimension_numbers<[1], [0], [0], [1], [0, 0, 1, 1], [], []>} : vector<48x32xf32>, vector<32x48xf32>, vector<48x48xf32> -> vector<48x48xf32>
    %c1_201 = arith.constant 1 : index
    %c0_202 = arith.constant 0 : index
    %c0_203 = arith.constant 0 : index
    %277 = vector.load %arg14[%c1_201, %c0_202, %c0_203] : memref<4x1x48xf32, #tpu.memory_space<vmem>>, vector<1x1x48xf32>
    %278 = vector.shape_cast %277 : vector<1x1x48xf32> to vector<1x48xf32>
    %279 = vector.broadcast %278 : vector<1x48xf32> to vector<48x48xf32>
    %280 = arith.addf %276, %279 : vector<48x48xf32>
    %cst_204 = arith.constant dense<0.000000e+00> : vector<48x48xf32>
    %281 = tpu.matmul %1, %271, %cst_204 {dimension_numbers = #tpu.dot_dimension_numbers<[1], [0], [0], [1], [0, 0, 1, 1], [], []>} : vector<48x32xf32>, vector<32x48xf32>, vector<48x48xf32> -> vector<48x48xf32>
    %c1_205 = arith.constant 1 : index
    %c0_206 = arith.constant 0 : index
    %c0_207 = arith.constant 0 : index
    %282 = vector.load %arg16[%c1_205, %c0_206, %c0_207] : memref<4x1x48xf32, #tpu.memory_space<vmem>>, vector<1x1x48xf32>
    %283 = vector.shape_cast %282 : vector<1x1x48xf32> to vector<1x48xf32>
    %284 = vector.broadcast %283 : vector<1x48xf32> to vector<48x48xf32>
    %285 = arith.addf %281, %284 : vector<48x48xf32>
    %cst_208 = arith.constant dense<0.000000e+00> : vector<48x48xf32>
    %286 = tpu.matmul %1, %273, %cst_208 {dimension_numbers = #tpu.dot_dimension_numbers<[1], [0], [0], [1], [0, 0, 1, 1], [], []>} : vector<48x32xf32>, vector<32x48xf32>, vector<48x48xf32> -> vector<48x48xf32>
    %c1_209 = arith.constant 1 : index
    %c0_210 = arith.constant 0 : index
    %c0_211 = arith.constant 0 : index
    %287 = vector.load %arg18[%c1_209, %c0_210, %c0_211] : memref<4x1x48xf32, #tpu.memory_space<vmem>>, vector<1x1x48xf32>
    %288 = vector.shape_cast %287 : vector<1x1x48xf32> to vector<1x48xf32>
    %289 = vector.broadcast %288 : vector<1x48xf32> to vector<48x48xf32>
    %290 = arith.addf %286, %289 : vector<48x48xf32>
    %291 = vector.shape_cast %280 : vector<48x48xf32> to vector<6x8x48xf32>
    %292 = vector.shape_cast %285 : vector<48x48xf32> to vector<6x8x48xf32>
    "tpu.trace_start"() <{level = 10 : i32, message = "bld,bmd->blm"}> : () -> ()
    %cst_212 = arith.constant dense<0.000000e+00> : vector<6x8x8xf32>
    %293 = tpu.matmul %291, %292, %cst_212 {dimension_numbers = #tpu.dot_dimension_numbers<[2], [2], [1], [1], [0, 0, 0, 1, 1, 1], [0], [0]>} : vector<6x8x48xf32>, vector<6x8x48xf32>, vector<6x8x8xf32> -> vector<6x8x8xf32>
    "tpu.trace_stop"() : () -> ()
    %cst_213 = arith.constant 0.144337565 : f32
    %294 = vector.broadcast %cst_213 : f32 to vector<6x8x8xf32>
    %295 = arith.mulf %293, %294 : vector<6x8x8xf32>
    %cst_214 = arith.constant dense<0xFF800000> : vector<6x8xf32>
    %296 = vector.multi_reduction <maximumf>, %295, %cst_214 [2] : vector<6x8x8xf32> to vector<6x8xf32>
    %297 = vector.shape_cast %296 : vector<6x8xf32> to vector<6x8x1xf32>
    %298 = vector.broadcast %297 : vector<6x8x1xf32> to vector<6x8x8xf32>
    %299 = arith.subf %295, %298 : vector<6x8x8xf32>
    %300 = math.exp %299 : vector<6x8x8xf32>
    %cst_215 = arith.constant dense<0.000000e+00> : vector<6x8xf32>
    %301 = vector.multi_reduction <add>, %300, %cst_215 [2] : vector<6x8x8xf32> to vector<6x8xf32>
    %302 = vector.shape_cast %301 : vector<6x8xf32> to vector<6x8x1xf32>
    %303 = tpu.reciprocal %302 {approx = true} : vector<6x8x1xf32> -> vector<6x8x1xf32>
    %304 = vector.broadcast %303 : vector<6x8x1xf32> to vector<6x8x8xf32>
    %305 = arith.mulf %300, %304 : vector<6x8x8xf32>
    %c1_216 = arith.constant 1 : index
    %c0_217 = arith.constant 0 : index
    %c0_218 = arith.constant 0 : index
    %c0_219 = arith.constant 0 : index
    %306 = vector.load %arg36[%c1_216, %c0_217, %c0_218, %c0_219] : memref<4x6x8x8xf32, #tpu.memory_space<vmem>>, vector<1x6x8x8xf32>
    %307 = vector.shape_cast %306 : vector<1x6x8x8xf32> to vector<6x8x8xf32>
    %308 = vector.shape_cast %305 : vector<6x8x8xf32> to vector<1x6x8x8xf32>
    tpu.vector_store %arg36[%c1_216, %c0_217, %c0_218, %c0_219], %308 {strides = array<i32>} : memref<4x6x8x8xf32, #tpu.memory_space<vmem>>, vector<1x6x8x8xf32>,
    %309 = vector.shape_cast %290 : vector<48x48xf32> to vector<6x8x48xf32>
    "tpu.trace_start"() <{level = 10 : i32, message = "blm,bmd->bld"}> : () -> ()
    %cst_220 = arith.constant dense<0.000000e+00> : vector<6x8x48xf32>
    %310 = tpu.matmul %305, %309, %cst_220 {dimension_numbers = #tpu.dot_dimension_numbers<[2], [1], [1], [2], [0, 0, 0, 1, 1, 2], [0], [0]>} : vector<6x8x8xf32>, vector<6x8x48xf32>, vector<6x8x48xf32> -> vector<6x8x48xf32>
    "tpu.trace_stop"() : () -> ()
    %311 = vector.shape_cast %310 : vector<6x8x48xf32> to vector<48x48xf32>
    %cst_221 = arith.constant dense<0.000000e+00> : vector<48x32xf32>
    %312 = tpu.matmul %311, %275, %cst_221 {dimension_numbers = #tpu.dot_dimension_numbers<[1], [0], [0], [1], [0, 0, 1, 1], [], []>} : vector<48x48xf32>, vector<48x32xf32>, vector<48x32xf32> -> vector<48x32xf32>
    %313 = arith.addf %258, %312 : vector<48x32xf32>
    %cst_222 = arith.constant dense<0.000000e+00> : vector<48x48xf32>
    %314 = tpu.matmul %2, %273, %cst_222 {dimension_numbers = #tpu.dot_dimension_numbers<[1], [0], [0], [1], [0, 0, 1, 1], [], []>} : vector<48x32xf32>, vector<32x48xf32>, vector<48x48xf32> -> vector<48x48xf32>
    %c1_223 = arith.constant 1 : index
    %c0_224 = arith.constant 0 : index
    %c0_225 = arith.constant 0 : index
    %315 = vector.load %arg18[%c1_223, %c0_224, %c0_225] : memref<4x1x48xf32, #tpu.memory_space<vmem>>, vector<1x1x48xf32>
    %316 = vector.shape_cast %315 : vector<1x1x48xf32> to vector<1x48xf32>
    %317 = vector.broadcast %316 : vector<1x48xf32> to vector<48x48xf32>
    %318 = arith.addf %314, %317 : vector<48x48xf32>
    %319 = vector.shape_cast %318 : vector<48x48xf32> to vector<6x8x48xf32>
    "tpu.trace_start"() <{level = 10 : i32, message = "blm,bmd->bld"}> : () -> ()
    %cst_226 = arith.constant dense<0.000000e+00> : vector<6x8x48xf32>
    %320 = tpu.matmul %305, %319, %cst_226 {dimension_numbers = #tpu.dot_dimension_numbers<[2], [1], [1], [2], [0, 0, 0, 1, 1, 2], [0], [0]>} : vector<6x8x8xf32>, vector<6x8x48xf32>, vector<6x8x48xf32> -> vector<6x8x48xf32>
    "tpu.trace_stop"() : () -> ()
    %321 = vector.shape_cast %320 : vector<6x8x48xf32> to vector<48x48xf32>
    %cst_227 = arith.constant dense<0.000000e+00> : vector<48x32xf32>
    %322 = tpu.matmul %321, %275, %cst_227 {dimension_numbers = #tpu.dot_dimension_numbers<[1], [0], [0], [1], [0, 0, 1, 1], [], []>} : vector<48x48xf32>, vector<48x32xf32>, vector<48x32xf32> -> vector<48x32xf32>
    %323 = arith.addf %267, %322 : vector<48x32xf32>
    %c2_228 = arith.constant 2 : index
    %c0_229 = arith.constant 0 : index
    %c0_230 = arith.constant 0 : index
    %324 = vector.load %arg13[%c2_228, %c0_229, %c0_230] : memref<4x32x48xf32, #tpu.memory_space<vmem>>, vector<1x32x48xf32>
    %325 = vector.shape_cast %324 : vector<1x32x48xf32> to vector<32x48xf32>
    %c2_231 = arith.constant 2 : index
    %c0_232 = arith.constant 0 : index
    %c0_233 = arith.constant 0 : index
    %326 = vector.load %arg15[%c2_231, %c0_232, %c0_233] : memref<4x32x48xf32, #tpu.memory_space<vmem>>, vector<1x32x48xf32>
    %327 = vector.shape_cast %326 : vector<1x32x48xf32> to vector<32x48xf32>
    %c2_234 = arith.constant 2 : index
    %c0_235 = arith.constant 0 : index
    %c0_236 = arith.constant 0 : index
    %328 = vector.load %arg17[%c2_234, %c0_235, %c0_236] : memref<4x32x48xf32, #tpu.memory_space<vmem>>, vector<1x32x48xf32>
    %329 = vector.shape_cast %328 : vector<1x32x48xf32> to vector<32x48xf32>
    %c2_237 = arith.constant 2 : index
    %c0_238 = arith.constant 0 : index
    %c0_239 = arith.constant 0 : index
    %330 = vector.load %arg19[%c2_237, %c0_238, %c0_239] : memref<4x48x32xf32, #tpu.memory_space<vmem>>, vector<1x48x32xf32>
    %331 = vector.shape_cast %330 : vector<1x48x32xf32> to vector<48x32xf32>
    %cst_240 = arith.constant dense<0.000000e+00> : vector<48x48xf32>
    %332 = tpu.matmul %213, %325, %cst_240 {dimension_numbers = #tpu.dot_dimension_numbers<[1], [0], [0], [1], [0, 0, 1, 1], [], []>} : vector<48x32xf32>, vector<32x48xf32>, vector<48x48xf32> -> vector<48x48xf32>
    %c2_241 = arith.constant 2 : index
    %c0_242 = arith.constant 0 : index
    %c0_243 = arith.constant 0 : index
    %333 = vector.load %arg14[%c2_241, %c0_242, %c0_243] : memref<4x1x48xf32, #tpu.memory_space<vmem>>, vector<1x1x48xf32>
    %334 = vector.shape_cast %333 : vector<1x1x48xf32> to vector<1x48xf32>
    %335 = vector.broadcast %334 : vector<1x48xf32> to vector<48x48xf32>
    %336 = arith.addf %332, %335 : vector<48x48xf32>
    %cst_244 = arith.constant dense<0.000000e+00> : vector<48x48xf32>
    %337 = tpu.matmul %1, %327, %cst_244 {dimension_numbers = #tpu.dot_dimension_numbers<[1], [0], [0], [1], [0, 0, 1, 1], [], []>} : vector<48x32xf32>, vector<32x48xf32>, vector<48x48xf32> -> vector<48x48xf32>
    %c2_245 = arith.constant 2 : index
    %c0_246 = arith.constant 0 : index
    %c0_247 = arith.constant 0 : index
    %338 = vector.load %arg16[%c2_245, %c0_246, %c0_247] : memref<4x1x48xf32, #tpu.memory_space<vmem>>, vector<1x1x48xf32>
    %339 = vector.shape_cast %338 : vector<1x1x48xf32> to vector<1x48xf32>
    %340 = vector.broadcast %339 : vector<1x48xf32> to vector<48x48xf32>
    %341 = arith.addf %337, %340 : vector<48x48xf32>
    %cst_248 = arith.constant dense<0.000000e+00> : vector<48x48xf32>
    %342 = tpu.matmul %1, %329, %cst_248 {dimension_numbers = #tpu.dot_dimension_numbers<[1], [0], [0], [1], [0, 0, 1, 1], [], []>} : vector<48x32xf32>, vector<32x48xf32>, vector<48x48xf32> -> vector<48x48xf32>
    %c2_249 = arith.constant 2 : index
    %c0_250 = arith.constant 0 : index
    %c0_251 = arith.constant 0 : index
    %343 = vector.load %arg18[%c2_249, %c0_250, %c0_251] : memref<4x1x48xf32, #tpu.memory_space<vmem>>, vector<1x1x48xf32>
    %344 = vector.shape_cast %343 : vector<1x1x48xf32> to vector<1x48xf32>
    %345 = vector.broadcast %344 : vector<1x48xf32> to vector<48x48xf32>
    %346 = arith.addf %342, %345 : vector<48x48xf32>
    %347 = vector.shape_cast %336 : vector<48x48xf32> to vector<6x8x48xf32>
    %348 = vector.shape_cast %341 : vector<48x48xf32> to vector<6x8x48xf32>
    "tpu.trace_start"() <{level = 10 : i32, message = "bld,bmd->blm"}> : () -> ()
    %cst_252 = arith.constant dense<0.000000e+00> : vector<6x8x8xf32>
    %349 = tpu.matmul %347, %348, %cst_252 {dimension_numbers = #tpu.dot_dimension_numbers<[2], [2], [1], [1], [0, 0, 0, 1, 1, 1], [0], [0]>} : vector<6x8x48xf32>, vector<6x8x48xf32>, vector<6x8x8xf32> -> vector<6x8x8xf32>
    "tpu.trace_stop"() : () -> ()
    %cst_253 = arith.constant 0.144337565 : f32
    %350 = vector.broadcast %cst_253 : f32 to vector<6x8x8xf32>
    %351 = arith.mulf %349, %350 : vector<6x8x8xf32>
    %cst_254 = arith.constant dense<0xFF800000> : vector<6x8xf32>
    %352 = vector.multi_reduction <maximumf>, %351, %cst_254 [2] : vector<6x8x8xf32> to vector<6x8xf32>
    %353 = vector.shape_cast %352 : vector<6x8xf32> to vector<6x8x1xf32>
    %354 = vector.broadcast %353 : vector<6x8x1xf32> to vector<6x8x8xf32>
    %355 = arith.subf %351, %354 : vector<6x8x8xf32>
    %356 = math.exp %355 : vector<6x8x8xf32>
    %cst_255 = arith.constant dense<0.000000e+00> : vector<6x8xf32>
    %357 = vector.multi_reduction <add>, %356, %cst_255 [2] : vector<6x8x8xf32> to vector<6x8xf32>
    %358 = vector.shape_cast %357 : vector<6x8xf32> to vector<6x8x1xf32>
    %359 = tpu.reciprocal %358 {approx = true} : vector<6x8x1xf32> -> vector<6x8x1xf32>
    %360 = vector.broadcast %359 : vector<6x8x1xf32> to vector<6x8x8xf32>
    %361 = arith.mulf %356, %360 : vector<6x8x8xf32>
    %c2_256 = arith.constant 2 : index
    %c0_257 = arith.constant 0 : index
    %c0_258 = arith.constant 0 : index
    %c0_259 = arith.constant 0 : index
    %362 = vector.load %arg36[%c2_256, %c0_257, %c0_258, %c0_259] : memref<4x6x8x8xf32, #tpu.memory_space<vmem>>, vector<1x6x8x8xf32>
    %363 = vector.shape_cast %362 : vector<1x6x8x8xf32> to vector<6x8x8xf32>
    %364 = vector.shape_cast %361 : vector<6x8x8xf32> to vector<1x6x8x8xf32>
    tpu.vector_store %arg36[%c2_256, %c0_257, %c0_258, %c0_259], %364 {strides = array<i32>} : memref<4x6x8x8xf32, #tpu.memory_space<vmem>>, vector<1x6x8x8xf32>,
    %365 = vector.shape_cast %346 : vector<48x48xf32> to vector<6x8x48xf32>
    "tpu.trace_start"() <{level = 10 : i32, message = "blm,bmd->bld"}> : () -> ()
    %cst_260 = arith.constant dense<0.000000e+00> : vector<6x8x48xf32>
    %366 = tpu.matmul %361, %365, %cst_260 {dimension_numbers = #tpu.dot_dimension_numbers<[2], [1], [1], [2], [0, 0, 0, 1, 1, 2], [0], [0]>} : vector<6x8x8xf32>, vector<6x8x48xf32>, vector<6x8x48xf32> -> vector<6x8x48xf32>
    "tpu.trace_stop"() : () -> ()
    %367 = vector.shape_cast %366 : vector<6x8x48xf32> to vector<48x48xf32>
    %cst_261 = arith.constant dense<0.000000e+00> : vector<48x32xf32>
    %368 = tpu.matmul %367, %331, %cst_261 {dimension_numbers = #tpu.dot_dimension_numbers<[1], [0], [0], [1], [0, 0, 1, 1], [], []>} : vector<48x48xf32>, vector<48x32xf32>, vector<48x32xf32> -> vector<48x32xf32>
    %369 = arith.addf %313, %368 : vector<48x32xf32>
    %cst_262 = arith.constant dense<0.000000e+00> : vector<48x48xf32>
    %370 = tpu.matmul %2, %329, %cst_262 {dimension_numbers = #tpu.dot_dimension_numbers<[1], [0], [0], [1], [0, 0, 1, 1], [], []>} : vector<48x32xf32>, vector<32x48xf32>, vector<48x48xf32> -> vector<48x48xf32>
    %c2_263 = arith.constant 2 : index
    %c0_264 = arith.constant 0 : index
    %c0_265 = arith.constant 0 : index
    %371 = vector.load %arg18[%c2_263, %c0_264, %c0_265] : memref<4x1x48xf32, #tpu.memory_space<vmem>>, vector<1x1x48xf32>
    %372 = vector.shape_cast %371 : vector<1x1x48xf32> to vector<1x48xf32>
    %373 = vector.broadcast %372 : vector<1x48xf32> to vector<48x48xf32>
    %374 = arith.addf %370, %373 : vector<48x48xf32>
    %375 = vector.shape_cast %374 : vector<48x48xf32> to vector<6x8x48xf32>
    "tpu.trace_start"() <{level = 10 : i32, message = "blm,bmd->bld"}> : () -> ()
    %cst_266 = arith.constant dense<0.000000e+00> : vector<6x8x48xf32>
    %376 = tpu.matmul %361, %375, %cst_266 {dimension_numbers = #tpu.dot_dimension_numbers<[2], [1], [1], [2], [0, 0, 0, 1, 1, 2], [0], [0]>} : vector<6x8x8xf32>, vector<6x8x48xf32>, vector<6x8x48xf32> -> vector<6x8x48xf32>
    "tpu.trace_stop"() : () -> ()
    %377 = vector.shape_cast %376 : vector<6x8x48xf32> to vector<48x48xf32>
    %cst_267 = arith.constant dense<0.000000e+00> : vector<48x32xf32>
    %378 = tpu.matmul %377, %331, %cst_267 {dimension_numbers = #tpu.dot_dimension_numbers<[1], [0], [0], [1], [0, 0, 1, 1], [], []>} : vector<48x48xf32>, vector<48x32xf32>, vector<48x32xf32> -> vector<48x32xf32>
    %379 = arith.addf %323, %378 : vector<48x32xf32>
    %c3_268 = arith.constant 3 : index
    %c0_269 = arith.constant 0 : index
    %c0_270 = arith.constant 0 : index
    %380 = vector.load %arg13[%c3_268, %c0_269, %c0_270] : memref<4x32x48xf32, #tpu.memory_space<vmem>>, vector<1x32x48xf32>
    %381 = vector.shape_cast %380 : vector<1x32x48xf32> to vector<32x48xf32>
    %c3_271 = arith.constant 3 : index
    %c0_272 = arith.constant 0 : index
    %c0_273 = arith.constant 0 : index
    %382 = vector.load %arg15[%c3_271, %c0_272, %c0_273] : memref<4x32x48xf32, #tpu.memory_space<vmem>>, vector<1x32x48xf32>
    %383 = vector.shape_cast %382 : vector<1x32x48xf32> to vector<32x48xf32>
    %c3_274 = arith.constant 3 : index
    %c0_275 = arith.constant 0 : index
    %c0_276 = arith.constant 0 : index
    %384 = vector.load %arg17[%c3_274, %c0_275, %c0_276] : memref<4x32x48xf32, #tpu.memory_space<vmem>>, vector<1x32x48xf32>
    %385 = vector.shape_cast %384 : vector<1x32x48xf32> to vector<32x48xf32>
    %c3_277 = arith.constant 3 : index
    %c0_278 = arith.constant 0 : index
    %c0_279 = arith.constant 0 : index
    %386 = vector.load %arg19[%c3_277, %c0_278, %c0_279] : memref<4x48x32xf32, #tpu.memory_space<vmem>>, vector<1x48x32xf32>
    %387 = vector.shape_cast %386 : vector<1x48x32xf32> to vector<48x32xf32>
    %cst_280 = arith.constant dense<0.000000e+00> : vector<48x48xf32>
    %388 = tpu.matmul %213, %381, %cst_280 {dimension_numbers = #tpu.dot_dimension_numbers<[1], [0], [0], [1], [0, 0, 1, 1], [], []>} : vector<48x32xf32>, vector<32x48xf32>, vector<48x48xf32> -> vector<48x48xf32>
    %c3_281 = arith.constant 3 : index
    %c0_282 = arith.constant 0 : index
    %c0_283 = arith.constant 0 : index
    %389 = vector.load %arg14[%c3_281, %c0_282, %c0_283] : memref<4x1x48xf32, #tpu.memory_space<vmem>>, vector<1x1x48xf32>
    %390 = vector.shape_cast %389 : vector<1x1x48xf32> to vector<1x48xf32>
    %391 = vector.broadcast %390 : vector<1x48xf32> to vector<48x48xf32>
    %392 = arith.addf %388, %391 : vector<48x48xf32>
    %cst_284 = arith.constant dense<0.000000e+00> : vector<48x48xf32>
    %393 = tpu.matmul %1, %383, %cst_284 {dimension_numbers = #tpu.dot_dimension_numbers<[1], [0], [0], [1], [0, 0, 1, 1], [], []>} : vector<48x32xf32>, vector<32x48xf32>, vector<48x48xf32> -> vector<48x48xf32>
    %c3_285 = arith.constant 3 : index
    %c0_286 = arith.constant 0 : index
    %c0_287 = arith.constant 0 : index
    %394 = vector.load %arg16[%c3_285, %c0_286, %c0_287] : memref<4x1x48xf32, #tpu.memory_space<vmem>>, vector<1x1x48xf32>
    %395 = vector.shape_cast %394 : vector<1x1x48xf32> to vector<1x48xf32>
    %396 = vector.broadcast %395 : vector<1x48xf32> to vector<48x48xf32>
    %397 = arith.addf %393, %396 : vector<48x48xf32>
    %cst_288 = arith.constant dense<0.000000e+00> : vector<48x48xf32>
    %398 = tpu.matmul %1, %385, %cst_288 {dimension_numbers = #tpu.dot_dimension_numbers<[1], [0], [0], [1], [0, 0, 1, 1], [], []>} : vector<48x32xf32>, vector<32x48xf32>, vector<48x48xf32> -> vector<48x48xf32>
    %c3_289 = arith.constant 3 : index
    %c0_290 = arith.constant 0 : index
    %c0_291 = arith.constant 0 : index
    %399 = vector.load %arg18[%c3_289, %c0_290, %c0_291] : memref<4x1x48xf32, #tpu.memory_space<vmem>>, vector<1x1x48xf32>
    %400 = vector.shape_cast %399 : vector<1x1x48xf32> to vector<1x48xf32>
    %401 = vector.broadcast %400 : vector<1x48xf32> to vector<48x48xf32>
    %402 = arith.addf %398, %401 : vector<48x48xf32>
    %403 = vector.shape_cast %392 : vector<48x48xf32> to vector<6x8x48xf32>
    %404 = vector.shape_cast %397 : vector<48x48xf32> to vector<6x8x48xf32>
    "tpu.trace_start"() <{level = 10 : i32, message = "bld,bmd->blm"}> : () -> ()
    %cst_292 = arith.constant dense<0.000000e+00> : vector<6x8x8xf32>
    %405 = tpu.matmul %403, %404, %cst_292 {dimension_numbers = #tpu.dot_dimension_numbers<[2], [2], [1], [1], [0, 0, 0, 1, 1, 1], [0], [0]>} : vector<6x8x48xf32>, vector<6x8x48xf32>, vector<6x8x8xf32> -> vector<6x8x8xf32>
    "tpu.trace_stop"() : () -> ()
    %cst_293 = arith.constant 0.144337565 : f32
    %406 = vector.broadcast %cst_293 : f32 to vector<6x8x8xf32>
    %407 = arith.mulf %405, %406 : vector<6x8x8xf32>
    %cst_294 = arith.constant dense<0xFF800000> : vector<6x8xf32>
    %408 = vector.multi_reduction <maximumf>, %407, %cst_294 [2] : vector<6x8x8xf32> to vector<6x8xf32>
    %409 = vector.shape_cast %408 : vector<6x8xf32> to vector<6x8x1xf32>
    %410 = vector.broadcast %409 : vector<6x8x1xf32> to vector<6x8x8xf32>
    %411 = arith.subf %407, %410 : vector<6x8x8xf32>
    %412 = math.exp %411 : vector<6x8x8xf32>
    %cst_295 = arith.constant dense<0.000000e+00> : vector<6x8xf32>
    %413 = vector.multi_reduction <add>, %412, %cst_295 [2] : vector<6x8x8xf32> to vector<6x8xf32>
    %414 = vector.shape_cast %413 : vector<6x8xf32> to vector<6x8x1xf32>
    %415 = tpu.reciprocal %414 {approx = true} : vector<6x8x1xf32> -> vector<6x8x1xf32>
    %416 = vector.broadcast %415 : vector<6x8x1xf32> to vector<6x8x8xf32>
    %417 = arith.mulf %412, %416 : vector<6x8x8xf32>
    %c3_296 = arith.constant 3 : index
    %c0_297 = arith.constant 0 : index
    %c0_298 = arith.constant 0 : index
    %c0_299 = arith.constant 0 : index
    %418 = vector.load %arg36[%c3_296, %c0_297, %c0_298, %c0_299] : memref<4x6x8x8xf32, #tpu.memory_space<vmem>>, vector<1x6x8x8xf32>
    %419 = vector.shape_cast %418 : vector<1x6x8x8xf32> to vector<6x8x8xf32>
    %420 = vector.shape_cast %417 : vector<6x8x8xf32> to vector<1x6x8x8xf32>
    tpu.vector_store %arg36[%c3_296, %c0_297, %c0_298, %c0_299], %420 {strides = array<i32>} : memref<4x6x8x8xf32, #tpu.memory_space<vmem>>, vector<1x6x8x8xf32>,
    %421 = vector.shape_cast %402 : vector<48x48xf32> to vector<6x8x48xf32>
    "tpu.trace_start"() <{level = 10 : i32, message = "blm,bmd->bld"}> : () -> ()
    %cst_300 = arith.constant dense<0.000000e+00> : vector<6x8x48xf32>
    %422 = tpu.matmul %417, %421, %cst_300 {dimension_numbers = #tpu.dot_dimension_numbers<[2], [1], [1], [2], [0, 0, 0, 1, 1, 2], [0], [0]>} : vector<6x8x8xf32>, vector<6x8x48xf32>, vector<6x8x48xf32> -> vector<6x8x48xf32>
    "tpu.trace_stop"() : () -> ()
    %423 = vector.shape_cast %422 : vector<6x8x48xf32> to vector<48x48xf32>
    %cst_301 = arith.constant dense<0.000000e+00> : vector<48x32xf32>
    %424 = tpu.matmul %423, %387, %cst_301 {dimension_numbers = #tpu.dot_dimension_numbers<[1], [0], [0], [1], [0, 0, 1, 1], [], []>} : vector<48x48xf32>, vector<48x32xf32>, vector<48x32xf32> -> vector<48x32xf32>
    %425 = arith.addf %369, %424 : vector<48x32xf32>
    %cst_302 = arith.constant dense<0.000000e+00> : vector<48x48xf32>
    %426 = tpu.matmul %2, %385, %cst_302 {dimension_numbers = #tpu.dot_dimension_numbers<[1], [0], [0], [1], [0, 0, 1, 1], [], []>} : vector<48x32xf32>, vector<32x48xf32>, vector<48x48xf32> -> vector<48x48xf32>
    %c3_303 = arith.constant 3 : index
    %c0_304 = arith.constant 0 : index
    %c0_305 = arith.constant 0 : index
    %427 = vector.load %arg18[%c3_303, %c0_304, %c0_305] : memref<4x1x48xf32, #tpu.memory_space<vmem>>, vector<1x1x48xf32>
    %428 = vector.shape_cast %427 : vector<1x1x48xf32> to vector<1x48xf32>
    %429 = vector.broadcast %428 : vector<1x48xf32> to vector<48x48xf32>
    %430 = arith.addf %426, %429 : vector<48x48xf32>
    %431 = vector.shape_cast %430 : vector<48x48xf32> to vector<6x8x48xf32>
    "tpu.trace_start"() <{level = 10 : i32, message = "blm,bmd->bld"}> : () -> ()
    %cst_306 = arith.constant dense<0.000000e+00> : vector<6x8x48xf32>
    %432 = tpu.matmul %417, %431, %cst_306 {dimension_numbers = #tpu.dot_dimension_numbers<[2], [1], [1], [2], [0, 0, 0, 1, 1, 2], [0], [0]>} : vector<6x8x8xf32>, vector<6x8x48xf32>, vector<6x8x48xf32> -> vector<6x8x48xf32>
    "tpu.trace_stop"() : () -> ()
    %433 = vector.shape_cast %432 : vector<6x8x48xf32> to vector<48x48xf32>
    %cst_307 = arith.constant dense<0.000000e+00> : vector<48x32xf32>
    %434 = tpu.matmul %433, %387, %cst_307 {dimension_numbers = #tpu.dot_dimension_numbers<[1], [0], [0], [1], [0, 0, 1, 1], [], []>} : vector<48x48xf32>, vector<48x32xf32>, vector<48x32xf32> -> vector<48x32xf32>
    %435 = arith.addf %379, %434 : vector<48x32xf32>
    %c0_308 = arith.constant 0 : index
    %c0_309 = arith.constant 0 : index
    %436 = vector.load %arg20[%c0_308, %c0_309] : memref<1x32xf32, #tpu.memory_space<vmem>>, vector<1x32xf32>
    %437 = vector.broadcast %436 : vector<1x32xf32> to vector<48x32xf32>
    %438 = arith.addf %425, %437 : vector<48x32xf32>
    %c0_310 = arith.constant 0 : index
    %c0_311 = arith.constant 0 : index
    %439 = vector.load %arg20[%c0_310, %c0_311] : memref<1x32xf32, #tpu.memory_space<vmem>>, vector<1x32xf32>
    %440 = vector.broadcast %439 : vector<1x32xf32> to vector<48x32xf32>
    %441 = arith.addf %435, %440 : vector<48x32xf32>
    %442 = arith.addf %438, %213 : vector<48x32xf32>
    %cst_312 = arith.constant dense<0.000000e+00> : vector<48xf32>
    %443 = vector.multi_reduction <add>, %442, %cst_312 [1] : vector<48x32xf32> to vector<48xf32>
    %444 = vector.shape_cast %443 : vector<48xf32> to vector<48x1xf32>
    %cst_313 = arith.constant 3.200000e+01 : f32
    %445 = vector.broadcast %cst_313 : f32 to vector<48x1xf32>
    %446 = arith.divf %444, %445 : vector<48x1xf32>
    %447 = vector.broadcast %446 : vector<48x1xf32> to vector<48x32xf32>
    %448 = arith.subf %442, %447 : vector<48x32xf32>
    %449 = arith.mulf %448, %448 : vector<48x32xf32>
    %cst_314 = arith.constant dense<0.000000e+00> : vector<48xf32>
    %450 = vector.multi_reduction <add>, %449, %cst_314 [1] : vector<48x32xf32> to vector<48xf32>
    %451 = vector.shape_cast %450 : vector<48xf32> to vector<48x1xf32>
    %cst_315 = arith.constant 3.200000e+01 : f32
    %452 = vector.broadcast %cst_315 : f32 to vector<48x1xf32>
    %453 = arith.divf %451, %452 : vector<48x1xf32>
    %454 = vector.broadcast %446 : vector<48x1xf32> to vector<48x32xf32>
    %455 = arith.subf %442, %454 : vector<48x32xf32>
    %cst_316 = arith.constant 9.99999974E-6 : f32
    %456 = vector.broadcast %cst_316 : f32 to vector<48x1xf32>
    %457 = arith.addf %453, %456 : vector<48x1xf32>
    %458 = math.rsqrt %457 : vector<48x1xf32>
    %459 = vector.broadcast %458 : vector<48x1xf32> to vector<48x32xf32>
    %460 = arith.mulf %455, %459 : vector<48x32xf32>
    %c0_317 = arith.constant 0 : index
    %c0_318 = arith.constant 0 : index
    %461 = vector.load %arg21[%c0_317, %c0_318] : memref<1x32xf32, #tpu.memory_space<vmem>>, vector<1x32xf32>
    %462 = vector.broadcast %461 : vector<1x32xf32> to vector<48x32xf32>
    %463 = arith.mulf %460, %462 : vector<48x32xf32>
    %c0_319 = arith.constant 0 : index
    %c0_320 = arith.constant 0 : index
    %464 = vector.load %arg22[%c0_319, %c0_320] : memref<1x32xf32, #tpu.memory_space<vmem>>, vector<1x32xf32>
    %465 = vector.broadcast %464 : vector<1x32xf32> to vector<48x32xf32>
    %466 = arith.addf %463, %465 : vector<48x32xf32>
    %467 = arith.addf %441, %2 : vector<48x32xf32>
    %cst_321 = arith.constant dense<0.000000e+00> : vector<48xf32>
    %468 = vector.multi_reduction <add>, %467, %cst_321 [1] : vector<48x32xf32> to vector<48xf32>
    %469 = vector.shape_cast %468 : vector<48xf32> to vector<48x1xf32>
    %cst_322 = arith.constant 3.200000e+01 : f32
    %470 = vector.broadcast %cst_322 : f32 to vector<48x1xf32>
    %471 = arith.divf %469, %470 : vector<48x1xf32>
    %472 = vector.broadcast %471 : vector<48x1xf32> to vector<48x32xf32>
    %473 = arith.subf %467, %472 : vector<48x32xf32>
    %474 = arith.mulf %473, %473 : vector<48x32xf32>
    %cst_323 = arith.constant dense<0.000000e+00> : vector<48xf32>
    %475 = vector.multi_reduction <add>, %474, %cst_323 [1] : vector<48x32xf32> to vector<48xf32>
    %476 = vector.shape_cast %475 : vector<48xf32> to vector<48x1xf32>
    %cst_324 = arith.constant 3.200000e+01 : f32
    %477 = vector.broadcast %cst_324 : f32 to vector<48x1xf32>
    %478 = arith.divf %476, %477 : vector<48x1xf32>
    %479 = vector.broadcast %471 : vector<48x1xf32> to vector<48x32xf32>
    %480 = arith.subf %467, %479 : vector<48x32xf32>
    %cst_325 = arith.constant 9.99999974E-6 : f32
    %481 = vector.broadcast %cst_325 : f32 to vector<48x1xf32>
    %482 = arith.addf %478, %481 : vector<48x1xf32>
    %483 = math.rsqrt %482 : vector<48x1xf32>
    %484 = vector.broadcast %483 : vector<48x1xf32> to vector<48x32xf32>
    %485 = arith.mulf %480, %484 : vector<48x32xf32>
    %c0_326 = arith.constant 0 : index
    %c0_327 = arith.constant 0 : index
    %486 = vector.load %arg21[%c0_326, %c0_327] : memref<1x32xf32, #tpu.memory_space<vmem>>, vector<1x32xf32>
    %487 = vector.broadcast %486 : vector<1x32xf32> to vector<48x32xf32>
    %488 = arith.mulf %485, %487 : vector<48x32xf32>
    %c0_328 = arith.constant 0 : index
    %c0_329 = arith.constant 0 : index
    %489 = vector.load %arg22[%c0_328, %c0_329] : memref<1x32xf32, #tpu.memory_space<vmem>>, vector<1x32xf32>
    %490 = vector.broadcast %489 : vector<1x32xf32> to vector<48x32xf32>
    %491 = arith.addf %488, %490 : vector<48x32xf32>
    %c0_330 = arith.constant 0 : index
    %c0_331 = arith.constant 0 : index
    %492 = vector.load %arg23[%c0_330, %c0_331] : memref<32x128xf32, #tpu.memory_space<vmem>>, vector<32x128xf32>
    %cst_332 = arith.constant dense<0.000000e+00> : vector<48x128xf32>
    %493 = tpu.matmul %466, %492, %cst_332 {dimension_numbers = #tpu.dot_dimension_numbers<[1], [0], [0], [1], [0, 0, 1, 1], [], []>} : vector<48x32xf32>, vector<32x128xf32>, vector<48x128xf32> -> vector<48x128xf32>
    %c0_333 = arith.constant 0 : index
    %c0_334 = arith.constant 0 : index
    %494 = vector.load %arg24[%c0_333, %c0_334] : memref<1x128xf32, #tpu.memory_space<vmem>>, vector<1x128xf32>
    %495 = vector.broadcast %494 : vector<1x128xf32> to vector<48x128xf32>
    %496 = arith.addf %493, %495 : vector<48x128xf32>
    %cst_335 = arith.constant 0.000000e+00 : f32
    %497 = vector.broadcast %cst_335 : f32 to vector<48x128xf32>
    %498 = arith.maximumf %496, %497 : vector<48x128xf32>
    %c0_336 = arith.constant 0 : index
    %c0_337 = arith.constant 0 : index
    %499 = vector.load %arg25[%c0_336, %c0_337] : memref<128x32xf32, #tpu.memory_space<vmem>>, vector<128x32xf32>
    %cst_338 = arith.constant dense<0.000000e+00> : vector<48x32xf32>
    %500 = tpu.matmul %498, %499, %cst_338 {dimension_numbers = #tpu.dot_dimension_numbers<[1], [0], [0], [1], [0, 0, 1, 1], [], []>} : vector<48x128xf32>, vector<128x32xf32>, vector<48x32xf32> -> vector<48x32xf32>
    %c0_339 = arith.constant 0 : index
    %c0_340 = arith.constant 0 : index
    %501 = vector.load %arg26[%c0_339, %c0_340] : memref<1x32xf32, #tpu.memory_space<vmem>>, vector<1x32xf32>
    %502 = vector.broadcast %501 : vector<1x32xf32> to vector<48x32xf32>
    %503 = arith.addf %500, %502 : vector<48x32xf32>
    %504 = arith.addf %466, %503 : vector<48x32xf32>
    %cst_341 = arith.constant dense<0.000000e+00> : vector<48xf32>
    %505 = vector.multi_reduction <add>, %504, %cst_341 [1] : vector<48x32xf32> to vector<48xf32>
    %506 = vector.shape_cast %505 : vector<48xf32> to vector<48x1xf32>
    %cst_342 = arith.constant 3.200000e+01 : f32
    %507 = vector.broadcast %cst_342 : f32 to vector<48x1xf32>
    %508 = arith.divf %506, %507 : vector<48x1xf32>
    %509 = vector.broadcast %508 : vector<48x1xf32> to vector<48x32xf32>
    %510 = arith.subf %504, %509 : vector<48x32xf32>
    %511 = arith.mulf %510, %510 : vector<48x32xf32>
    %cst_343 = arith.constant dense<0.000000e+00> : vector<48xf32>
    %512 = vector.multi_reduction <add>, %511, %cst_343 [1] : vector<48x32xf32> to vector<48xf32>
    %513 = vector.shape_cast %512 : vector<48xf32> to vector<48x1xf32>
    %cst_344 = arith.constant 3.200000e+01 : f32
    %514 = vector.broadcast %cst_344 : f32 to vector<48x1xf32>
    %515 = arith.divf %513, %514 : vector<48x1xf32>
    %516 = vector.broadcast %508 : vector<48x1xf32> to vector<48x32xf32>
    %517 = arith.subf %504, %516 : vector<48x32xf32>
    %cst_345 = arith.constant 9.99999974E-6 : f32
    %518 = vector.broadcast %cst_345 : f32 to vector<48x1xf32>
    %519 = arith.addf %515, %518 : vector<48x1xf32>
    %520 = math.rsqrt %519 : vector<48x1xf32>
    %521 = vector.broadcast %520 : vector<48x1xf32> to vector<48x32xf32>
    %522 = arith.mulf %517, %521 : vector<48x32xf32>
    %c0_346 = arith.constant 0 : index
    %c0_347 = arith.constant 0 : index
    %523 = vector.load %arg27[%c0_346, %c0_347] : memref<1x32xf32, #tpu.memory_space<vmem>>, vector<1x32xf32>
    %524 = vector.broadcast %523 : vector<1x32xf32> to vector<48x32xf32>
    %525 = arith.mulf %522, %524 : vector<48x32xf32>
    %c0_348 = arith.constant 0 : index
    %c0_349 = arith.constant 0 : index
    %526 = vector.load %arg28[%c0_348, %c0_349] : memref<1x32xf32, #tpu.memory_space<vmem>>, vector<1x32xf32>
    %527 = vector.broadcast %526 : vector<1x32xf32> to vector<48x32xf32>
    %528 = arith.addf %525, %527 : vector<48x32xf32>
    %c0_350 = arith.constant 0 : index
    %c0_351 = arith.constant 0 : index
    %529 = vector.load %arg37[%c0_350, %c0_351] : memref<48x32xf32, #tpu.memory_space<vmem>>, vector<48x32xf32>
    tpu.vector_store %arg37[%c0_350, %c0_351], %528 {strides = array<i32>} : memref<48x32xf32, #tpu.memory_space<vmem>>, vector<48x32xf32>,
    %c0_352 = arith.constant 0 : index
    %c0_353 = arith.constant 0 : index
    %530 = vector.load %arg29[%c0_352, %c0_353] : memref<32x128xf32, #tpu.memory_space<vmem>>, vector<32x128xf32>
    %cst_354 = arith.constant dense<0.000000e+00> : vector<48x128xf32>
    %531 = tpu.matmul %491, %530, %cst_354 {dimension_numbers = #tpu.dot_dimension_numbers<[1], [0], [0], [1], [0, 0, 1, 1], [], []>} : vector<48x32xf32>, vector<32x128xf32>, vector<48x128xf32> -> vector<48x128xf32>
    %c0_355 = arith.constant 0 : index
    %c0_356 = arith.constant 0 : index
    %532 = vector.load %arg30[%c0_355, %c0_356] : memref<1x128xf32, #tpu.memory_space<vmem>>, vector<1x128xf32>
    %533 = vector.broadcast %532 : vector<1x128xf32> to vector<48x128xf32>
    %534 = arith.addf %531, %533 : vector<48x128xf32>
    %cst_357 = arith.constant 0.000000e+00 : f32
    %535 = vector.broadcast %cst_357 : f32 to vector<48x128xf32>
    %536 = arith.maximumf %534, %535 : vector<48x128xf32>
    %c0_358 = arith.constant 0 : index
    %c0_359 = arith.constant 0 : index
    %537 = vector.load %arg31[%c0_358, %c0_359] : memref<128x32xf32, #tpu.memory_space<vmem>>, vector<128x32xf32>
    %cst_360 = arith.constant dense<0.000000e+00> : vector<48x32xf32>
    %538 = tpu.matmul %536, %537, %cst_360 {dimension_numbers = #tpu.dot_dimension_numbers<[1], [0], [0], [1], [0, 0, 1, 1], [], []>} : vector<48x128xf32>, vector<128x32xf32>, vector<48x32xf32> -> vector<48x32xf32>
    %c0_361 = arith.constant 0 : index
    %c0_362 = arith.constant 0 : index
    %539 = vector.load %arg32[%c0_361, %c0_362] : memref<1x32xf32, #tpu.memory_space<vmem>>, vector<1x32xf32>
    %540 = vector.broadcast %539 : vector<1x32xf32> to vector<48x32xf32>
    %541 = arith.addf %538, %540 : vector<48x32xf32>
    %542 = arith.addf %491, %541 : vector<48x32xf32>
    %cst_363 = arith.constant dense<0.000000e+00> : vector<48xf32>
    %543 = vector.multi_reduction <add>, %542, %cst_363 [1] : vector<48x32xf32> to vector<48xf32>
    %544 = vector.shape_cast %543 : vector<48xf32> to vector<48x1xf32>
    %cst_364 = arith.constant 3.200000e+01 : f32
    %545 = vector.broadcast %cst_364 : f32 to vector<48x1xf32>
    %546 = arith.divf %544, %545 : vector<48x1xf32>
    %547 = vector.broadcast %546 : vector<48x1xf32> to vector<48x32xf32>
    %548 = arith.subf %542, %547 : vector<48x32xf32>
    %549 = arith.mulf %548, %548 : vector<48x32xf32>
    %cst_365 = arith.constant dense<0.000000e+00> : vector<48xf32>
    %550 = vector.multi_reduction <add>, %549, %cst_365 [1] : vector<48x32xf32> to vector<48xf32>
    %551 = vector.shape_cast %550 : vector<48xf32> to vector<48x1xf32>
    %cst_366 = arith.constant 3.200000e+01 : f32
    %552 = vector.broadcast %cst_366 : f32 to vector<48x1xf32>
    %553 = arith.divf %551, %552 : vector<48x1xf32>
    %554 = vector.broadcast %546 : vector<48x1xf32> to vector<48x32xf32>
    %555 = arith.subf %542, %554 : vector<48x32xf32>
    %cst_367 = arith.constant 9.99999974E-6 : f32
    %556 = vector.broadcast %cst_367 : f32 to vector<48x1xf32>
    %557 = arith.addf %553, %556 : vector<48x1xf32>
    %558 = math.rsqrt %557 : vector<48x1xf32>
    %559 = vector.broadcast %558 : vector<48x1xf32> to vector<48x32xf32>
    %560 = arith.mulf %555, %559 : vector<48x32xf32>
    %c0_368 = arith.constant 0 : index
    %c0_369 = arith.constant 0 : index
    %561 = vector.load %arg33[%c0_368, %c0_369] : memref<1x32xf32, #tpu.memory_space<vmem>>, vector<1x32xf32>
    %562 = vector.broadcast %561 : vector<1x32xf32> to vector<48x32xf32>
    %563 = arith.mulf %560, %562 : vector<48x32xf32>
    %c0_370 = arith.constant 0 : index
    %c0_371 = arith.constant 0 : index
    %564 = vector.load %arg34[%c0_370, %c0_371] : memref<1x32xf32, #tpu.memory_space<vmem>>, vector<1x32xf32>
    %565 = vector.broadcast %564 : vector<1x32xf32> to vector<48x32xf32>
    %566 = arith.addf %563, %565 : vector<48x32xf32>
    %c0_372 = arith.constant 0 : index
    %c0_373 = arith.constant 0 : index
    %567 = vector.load %arg38[%c0_372, %c0_373] : memref<48x32xf32, #tpu.memory_space<vmem>>, vector<48x32xf32>
    tpu.vector_store %arg38[%c0_372, %c0_373], %566 {strides = array<i32>} : memref<48x32xf32, #tpu.memory_space<vmem>>, vector<48x32xf32>,
    return
  }
}

</mosaic_0001>

<bundles_post_ra>
// kernel: decoder_layer.1
= control target key start
LH: loop header
LB: loop body
LE: loop exit
PB: predicated region body
PF: predicated region fallthrough
CT: control target
= control target key end

     0   :  { %s18468_s6 = smov 1   ;;  %s18469_s10 = smov 2   ;;  %s21341_s0 = inlined_call_operand.smem [shape: u32[39], index: -1, kind: input, shape index: {}] }
   0x1   :  { %s18520_s5 = sld [smem:[%s21341_s0]]   ;;  %s18470_s14 = smov 3  }
   0x2   :  { %s18525_s9 = sld [smem:[%s21341_s0 + %s18468_s6]]   ;;  %s18471_s18 = smov 4  }
   0x3   :  { %s18530_s13 = sld [smem:[%s21341_s0 + %s18469_s10]]   ;;  %s18472_s22 = smov 5  }
   0x4   :  { %s18535_s17 = sld [smem:[%s21341_s0 + %s18470_s14]]   ;;  %s18473_s26 = smov 6  }
   0x5   :  { %s18540_s21 = sld [smem:[%s21341_s0 + %s18471_s18]]   ;;  %s18474_s30 = smov 7  }
   0x6   :  { %s18545_s25 = sld [smem:[%s21341_s0 + %s18472_s22]]   ;;  %s18475_s4 = smov 8  }
   0x7   :  { %s18550_s29 = sld [smem:[%s21341_s0 + %s18473_s26]]   ;;  %s18476_s10 = smov 9  }
   0x8   :  { %s18555_s3 = sld [smem:[%s21341_s0 + %s18474_s30]]   ;;  %s18477_s15 = smov 10  }
   0x9   :  { %21353 = sst [smem:[#allocation8_spill]] %s18530_s13  ;;  %s18478_s20 = smov 11  }
   0xa   :  { %s18560_s8 = sld [smem:[%s21341_s0 + %s18475_s4]]   ;;  %s18479_s26 = smov 12  }
   0xb   :  { %s18565_s14 = sld [smem:[%s21341_s0 + %s18476_s10]]   ;;  %s18480_s1 = smov 13  }
   0xc   :  { %s18570_s19 = sld [smem:[%s21341_s0 + %s18477_s15]]   ;;  %s18481_s7 = smov 14  }
   0xd   :  { %s18575_s24 = sld [smem:[%s21341_s0 + %s18478_s20]]   ;;  %s18482_s15 = smov 15  }
   0xe   :  { %s18580_s30 = sld [smem:[%s21341_s0 + %s18479_s26]]   ;;  %s18483_s22 = smov 16  }
   0xf   :  { %s18585_s6 = sld [smem:[%s21341_s0 + %s18480_s1]]   ;;  %s18484_s28 = smov 17  }
  0x10   :  { %s18590_s12 = sld [smem:[%s21341_s0 + %s18481_s7]]   ;;  %s18485_s7 = smov 18  }
  0x11   :  { %s18595_s20 = sld [smem:[%s21341_s0 + %s18482_s15]]   ;;  %s18486_s15 = smov 19  }
  0x12   :  { %s18600_s27 = sld [smem:[%s21341_s0 + %s18483_s22]]   ;;  %s18487_s22 = smov 20  }
  0x13   :  { %s18605_s4 = sld [smem:[%s21341_s0 + %s18484_s28]]   ;;  %s18488_s28 = smov 21  }
  0x14   :  { %21354 = sst [smem:[#allocation9_spill]] %s18580_s30 }
  0x15   :  { %s18610_s13 = sld [smem:[%s21341_s0 + %s18485_s7]]   ;;  %s18489_s7 = smov 22  }
  0x16   :  { %21355 = sst [smem:[#allocation10_spill]] %s18590_s12 }
  0x17   :  { %s18615_s12 = sld [smem:[%s21341_s0 + %s18486_s15]]   ;;  %s18490_s15 = smov 23  }
  0x18   :  { %21356 = sst [smem:[#allocation11_spill]] %s18600_s27 }
  0x19   :  { %s18620_s27 = sld [smem:[%s21341_s0 + %s18487_s22]]   ;;  %s18491_s22 = smov 24  }
  0x1a   :  { %s18625_s30 = sld [smem:[%s21341_s0 + %s18488_s28]]   ;;  %s18492_s28 = smov 25  }
  0x1b   :  { %21357 = sst [smem:[#allocation12_spill]] %s18610_s13 }
  0x1c   :  { %s18630_s13 = sld [smem:[%s21341_s0 + %s18489_s7]]   ;;  %s18493_s7 = smov 26  }
  0x1d   :  { %21358 = sst [smem:[#allocation13_spill]] %s18615_s12 }
  0x1e   :  { %s18635_s12 = sld [smem:[%s21341_s0 + %s18490_s15]]   ;;  %s18494_s15 = smov 27  }
  0x1f   :  { %21359 = sst [smem:[#allocation14_spill]] %s18620_s27 }
  0x20   :  { %21360 = sst [smem:[#allocation15_spill]] %s18625_s30 }
  0x21   :  { %s18640_s27 = sld [smem:[%s21341_s0 + %s18491_s22]]   ;;  %s18495_s22 = smov 28  }
  0x22   :  { %21361 = sst [smem:[#allocation16_spill]] %s18630_s13 }
  0x23   :  { %s18645_s30 = sld [smem:[%s21341_s0 + %s18492_s28]]   ;;  %s18496_s28 = smov 29  }
  0x24   :  { %21362 = sst [smem:[#allocation17_spill]] %s18635_s12 }
  0x25   :  { %s18650_s13 = sld [smem:[%s21341_s0 + %s18493_s7]]   ;;  %s18497_s7 = smov 30  }
  0x26   :  { %s18655_s12 = sld [smem:[%s21341_s0 + %s18494_s15]]   ;;  %s18498_s15 = smov 31  }
  0x27   :  { %21363 = sst [smem:[#allocation18_spill]] %s18640_s27 }
  0x28   :  { %s18660_s27 = sld [smem:[%s21341_s0 + %s18495_s22]]   ;;  %s18499_s22 = smov 32  }
  0x29   :  { %21364 = sst [smem:[#allocation19_spill]] %s18645_s30 }
  0x2a   :  { %s18665_s30 = sld [smem:[%s21341_s0 + %s18496_s28]]   ;;  %s18500_s28 = smov 33  }
  0x2b   :  { %21365 = sst [smem:[#allocation20_spill]] %s18650_s13 }
  0x2c   :  { %21366 = sst [smem:[#allocation21_spill]] %s18655_s12 }
  0x2d   :  { %s18670_s13 = sld [smem:[%s21341_s0 + %s18497_s7]]   ;;  %s18501_s7 = smov 34  }
  0x2e   :  { %21367 = sst [smem:[#allocation22_spill]] %s18660_s27 }
  0x2f   :  { %s18675_s12 = sld [smem:[%s21341_s0 + %s18498_s15]]   ;;  %s18502_s15 = smov 35  }
  0x30   :  { %21368 = sst [smem:[#allocation23_spill]] %s18665_s30 }
  0x31   :  { %s18680_s27 = sld [smem:[%s21341_s0 + %s18499_s22]]   ;;  %s18503_s22 = smov 36  }
  0x32   :  { %s18685_s30 = sld [smem:[%s21341_s0 + %s18500_s28]]   ;;  %s18504_s28 = smov 37  }
  0x33   :  { %21369 = sst [smem:[#allocation24_spill]] %s18670_s13 }
  0x34   :  { %s18690_s13 = sld [smem:[%s21341_s0 + %s18501_s7]]   ;;  %s18505_s7 = smov 38  }
  0x35   :  { %21370 = sst [smem:[#allocation25_spill]] %s18675_s12 }
  0x36   :  { %s18695_s12 = sld [smem:[%s21341_s0 + %s18502_s15]]  }
  0x37   :  { %21371 = sst [smem:[#allocation26_spill]] %s18680_s27 }
  0x38   :  { %21372 = sst [smem:[#allocation27_spill]] %s18685_s30 }
  0x39   :  { %s18700_s27 = sld [smem:[%s21341_s0 + %s18503_s22]]  }
  0x3a   :  { %21373 = sst [smem:[#allocation28_spill]] %s18690_s13 }
  0x3b   :  { %s18705_s30 = sld [smem:[%s21341_s0 + %s18504_s28]]  }
  0x3c   :  { %s18710_s13 = sld [smem:[%s21341_s0 + %s18505_s7]]  }
  0x3d   :  { %83 = vsyncpa [#allocation3], 0  ;;  %v180_v0 = vld [vmem:[%s18545_s25 + $0x18] sm:$0xff]  ;;  %v179_v2 = vld [vmem:[%s18545_s25 + $0x10] sm:$0xff]  ;;  %vm198_vm0 = vcmask 261120  }
  0x3e   :  { %v176_v1 = vld [vmem:[%s18535_s17 + $0x18] sm:$0xff]  ;;  %16671 = vmatprep.subr.mxu1 %v180_v0  ;;  %v175_v3 = vld [vmem:[%s18535_s17 + $0x10] sm:$0xff]  ;;  %v178_v4 = vld [vmem:[%s18545_s25 + $0x8] sm:$0xff] }
  0x3f   :  { %16654 = vmatprep.subr.mxu0 %v176_v1  ;;  %16672 = vmatpush3.msra.mxu1 %v180_v0  ;;  %v174_v5 = vld [vmem:[%s18535_s17 + $0x8] sm:$0xff]  ;;  %v177_v6 = vld [vmem:[%s18545_s25] sm:$0xff] }
  0x40   :  { %16655 = vmatpush3.msra.mxu0 %v176_v1  ;;  %16673 = vmatprep.subr.mxu1 %v179_v2  ;;  %v173_v7 = vld [vmem:[%s18535_s17] sm:$0xff] }
  0x41   :  { %16656 = vmatprep.subr.mxu0 %v175_v3  ;;  %16674 = vmatpush3.msra.mxu1 %v179_v2  ;;  %v18721_v8 = vld [vmem:[%s18520_s5] sm:$0xff] }
  0x42   :  { %16657 = vmatpush3.msra.mxu0 %v175_v3  ;;  %16675 = vmatprep.subr.mxu1 %v178_v4 }
  0x43   :  { %16658 = vmatprep.subr.mxu0 %v174_v5  ;;  %16676 = vmatpush3.msra.mxu1 %v178_v4 }
  0x44   :  { %16659 = vmatpush3.msra.mxu0 %v174_v5 }
  0x45   :  { %84 = vsyncpa [#allocation5], 0  ;;  %16677 = vmatprep.subr.mxu1 %v177_v6  ;;  %16660 = vmatprep.subr.mxu0 %v173_v7  ;;  %v18724_v9 = vld [vmem:[%s18520_s5 + $0x8] sm:$0xff]  ;;  %v18729_v10 = vld [vmem:[%s18520_s5 + $0x10] sm:$0xff]  ;;  %v21351_v18 = vmov 0.0   ;;  %vm18507_vm1 = vmmov 0  }
  0x46   :  { %16678 = vmatpush3.msra.mxu1 %v177_v6  ;;  %16679 = vmatprep.mubr.msk.f32.mxu1 %vm198_vm0, %v18721_v8  ;;  %v184_v11 = vld [vmem:[%s18555_s3 + $0x18] sm:$0xff]  ;;  %v18746_v13 = vld [vmem:[%s18520_s5 + $0x20] sm:$0xff]  ;;  %v183_v14 = vld [vmem:[%s18555_s3 + $0x10] sm:$0xff]  ;;  %vm516_vm2 = vcmask 392192   ;;  %vm979_vm3 = vcmask 64512   ;;  %s21374_s0 = sld [smem:[#allocation9_spill]] }
  0x47   :  { %16661 = vmatpush3.msra.mxu0 %v173_v7  ;;  %16662 = vmatprep.mubr.msk.f32.mxu0 %vm198_vm0, %v18721_v8  ;;  %v18741_v12 = vld [vmem:[%s18520_s5 + $0x18] sm:$0xff]  ;;  %v18756_v15 = vld [vmem:[%s18520_s5 + $0x28] sm:$0xff]  ;;  %v181_v17 = vld [vmem:[%s18555_s3] sm:$0xff]  ;;  %s21400_s15 = sld [smem:[#allocation21_spill]]  ;;  %s18508_s18 = smov [#allocation2]  }
  0x48   :  { %16680 = vmatmul.mubr.msk.f32.vlgmr.msra.gmra.mxu1 %vm198_vm0, %v18724_v9  ;;  %16663 = vmatmul.mubr.msk.f32.vlgmr.msra.gmra.mxu0 %vm198_vm0, %v18724_v9  ;;  %v182_v16 = vld [vmem:[%s18555_s3 + $0x8] sm:$0xff]  ;;  %v15306_v21 = vld [vmem:[%s18550_s29] ss:$0 sm:$0xff]  ;;  %s21401_s16 = sld [smem:[#allocation22_spill]]  ;;  %s15230_s22 = sshll.u32 %s18508_s18, 4  ;;  %s15231_s22 = int_to_ptr.vmem [resolvable:$true] %s15230_s22 }
  0x49   :  { %16682 = vmatprep.mubr.msk.f32.mxu1 %vm198_vm0, %v18729_v10  ;;  %16665 = vmatprep.mubr.msk.f32.mxu0 %vm198_vm0, %v18729_v10  ;;  %v15299_v24 = vld [vmem:[%s18540_s21] ss:$0 sm:$0xff]  ;;  %s18424_s23 = scalar_lea.vmem %s15231_s22, 768  ;;  %p18429_p1 = scmp.lt.s32.totalorder %s15231_s22, %s15231_s22 }
  0x4a   :  { %16688 = vmatprep.subr.mxu0 %v184_v11  ;;  %16705 = vmatprep.subr.mxu1 %v21351_v18  ;;  %v18800_v42 = vld [vmem:[%s18560_s8] ss:$0 sm:$0xff]  ;;  %p18425_p0 = scmp.ne.s32.totalorder %s15231_s22, %s18424_s23  ;;  %p18430_p2 = scmp.lt.s32.totalorder %s18424_s23, %s18424_s23 }
  0x4b   :  { %16689 = vmatpush3.msra.mxu0 %v184_v11 }
  0x4c   :  { %16683 = vmatmul.mubr.msk.f32.gmra.mxu1 %vm198_vm0, %v18741_v12  ;;  %16666 = vmatmul.mubr.msk.f32.gmra.mxu0 %vm198_vm0, %v18741_v12  ;;  %p18431_p3 = por %p18430_p2, %p18429_p1 }
  0x4d   :  { %16685 = vmatprep.mubr.msk.f32.mxu1 %vm198_vm0, %v18746_v13  ;;  %16668 = vmatprep.mubr.msk.f32.mxu0 %vm198_vm0, %v18746_v13 }
  0x4e   :  { %16690 = vmatprep.subr.mxu0 %v183_v14  ;;  %p18432_p4 = pnand %p18431_p3, %p18425_p0 }
  0x4f   :  { %16691 = vmatpush3.msra.mxu0 %v183_v14 }
  0x50   :  { %16686 = vmatmul.mubr.msk.f32.gmra.mxu1 %vm198_vm0, %v18756_v15  ;;  %16669 = vmatmul.mubr.msk.f32.gmra.mxu0 %vm198_vm0, %v18756_v15 }
  0x51   :  { %16692 = vmatprep.subr.mxu0 %v182_v16  ;;  %16696 = vmatprep.mubr.msk.f32.mxu0 %vm198_vm0, %v18721_v8 }
  0x52   :  { %16693 = vmatpush3.msra.mxu0 %v182_v16  ;;  %16707 = vmatprep.mubr.msk.f32.mxu1 %vm18507_vm1, %v21351_v18 }
  0x53   :  { %16694 = vmatprep.subr.mxu0 %v181_v17 }
  0x54   :  { %16695 = vmatpush3.msra.mxu0 %v181_v17 }
  0x55   :  { %16697 = vmatmul.mubr.msk.f32.vlgmr.msra.gmra.mxu0 %vm198_vm0, %v18724_v9  ;;  %16720 = vmatprep.subr.mxu0 %v21351_v18 }
  0x56   :  { %16699 = vmatprep.mubr.msk.f32.mxu0 %vm198_vm0, %v18729_v10 }
  0x59   :  { %16700 = vmatmul.mubr.msk.f32.gmra.mxu0 %vm198_vm0, %v18741_v12 }
  0x5a   :  { %16702 = vmatprep.mubr.msk.f32.mxu0 %vm198_vm0, %v18746_v13 }
  0x5d   :  { %16703 = vmatmul.mubr.msk.f32.gmra.mxu0 %vm198_vm0, %v18756_v15 }
  0x5e   :  { %16722 = vmatprep.mubr.msk.f32.mxu0 %vm18507_vm1, %v21351_v18 }
 0x108   :  { %v16681_v19 = vpop.f32.mrf.mxu1  ;;  %v16664_v20 = vpop.f32.mrf.mxu0 }
 0x109   :  { %v391_v33 = vadd.f32 %v16681_v19, %v15306_v21  ;;  %v289_v38 = vadd.f32 %v16664_v20, %v15299_v24 }
 0x10a   :  { %v385_v22 = vpop.f32.mrf.mxu1  ;;  %v283_v23 = vpop.f32.mrf.mxu0 }
 0x10b   :  { %v386_v25 = vadd.f32 %v15306_v21, %v385_v22  ;;  %v284_v29 = vadd.f32 %v15299_v24, %v283_v23 }
 0x10c   :  { %v16684_v26 = vpop.f32.mrf.mxu1  ;;  %v16667_v27 = vpop.f32.mrf.mxu0 }
 0x10d   :  { %v401_v28 = vadd.f32 %v16684_v26, %v15306_v21  ;;  %16706 = vmatpush3.xpose.msk.msra.mxu1 %vm516_vm2, %v386_v25  ;;  %v299_v30 = vadd.f32 %v16667_v27, %v15299_v24 }
 0x10e   :  { %16710 = vmatprep.subr.mxu1 %v21351_v18  ;;  %v395_v31 = vpop.f32.mrf.mxu1  ;;  %v293_v32 = vpop.f32.mrf.mxu0 }
 0x10f   :  { %16721 = vmatpush3.xpose.msk.msra.mxu0 %vm516_vm2, %v401_v28  ;;  %v396_v36 = vadd.f32 %v15306_v21, %v395_v31  ;;  %v294_v43 = vadd.f32 %v15299_v24, %v293_v32 }
 0x110   :  { %16708 = vmatmul.mubr.msk.f32.vlgmr.msra.gmra.mxu1 %vm516_vm2, %v284_v29  ;;  %v16687_v34 = vpop.f32.mrf.mxu1  ;;  %v16670_v35 = vpop.f32.mrf.mxu0  ;;  %16730 = vmatprep.subr.mxu0 %v21351_v18 }
 0x111   :  { %16711 = vmatpush3.xpose.msk.msra.mxu1 %vm516_vm2, %v391_v33  ;;  %16712 = vmatprep.mubr.msk.f32.mxu1 %vm18507_vm1, %v21351_v18  ;;  %v411_v37 = vadd.f32 %v16687_v34, %v15306_v21  ;;  %v309_v40 = vadd.f32 %v16670_v35, %v15299_v24 }
 0x112   :  { %16723 = vmatmul.mubr.msk.f32.vlgmr.msra.gmra.mxu0 %vm516_vm2, %v299_v30  ;;  %16715 = vmatprep.subr.mxu1 %v21351_v18  ;;  %v405_v39 = vpop.f32.mrf.mxu1  ;;  %v303_v41 = vpop.f32.mrf.mxu0 }
 0x113   :  { %16731 = vmatpush3.xpose.msk.msra.mxu0 %vm516_vm2, %v411_v37  ;;  %16732 = vmatprep.mubr.msk.f32.mxu0 %vm18507_vm1, %v21351_v18  ;;  %v406_v44 = vadd.f32 %v15306_v21, %v405_v39  ;;  %v304_v48 = vadd.f32 %v15299_v24, %v303_v41 }
 0x114   :  { %16713 = vmatmul.mubr.msk.f32.vlgmr.msra.gmra.mxu1 %vm516_vm2, %v289_v38  ;;  %16740 = vmatprep.subr.mxu0 %v21351_v18 }
 0x115   :  { %16716 = vmatpush3.xpose.msk.msra.mxu1 %vm516_vm2, %v396_v36  ;;  %16717 = vmatprep.mubr.msk.f32.mxu1 %vm18507_vm1, %v21351_v18  ;;  %v16698_v45 = vpop.f32.mrf.mxu0 }
 0x116   :  { %16725 = vmatprep.subr.mxu1 %v21351_v18  ;;  %16733 = vmatmul.mubr.msk.f32.vlgmr.msra.gmra.mxu0 %vm516_vm2, %v309_v40  ;;  %v493_v46 = vadd.f32 %v16698_v45, %v18800_v42 }
 0x117   :  { %v487_v47 = vpop.f32.mrf.mxu0  ;;  %16742 = vmatprep.mubr.msk.f32.mxu0 %vm18507_vm1, %v21351_v18 }
 0x118   :  { %16718 = vmatmul.mubr.msk.f32.vlgmr.msra.gmra.mxu1 %vm516_vm2, %v294_v43  ;;  %16741 = vmatpush3.msra.mxu0 %v493_v46  ;;  %v488_v49 = vadd.f32 %v18800_v42, %v487_v47 }
 0x119   :  { %16726 = vmatpush3.xpose.msk.msra.mxu1 %vm516_vm2, %v406_v44  ;;  %16727 = vmatprep.mubr.msk.f32.mxu1 %vm18507_vm1, %v21351_v18  ;;  %v16701_v50 = vpop.f32.mrf.mxu0 }
 0x11a   :  { %v18818_v51 = vadd.f32 %v16701_v50, %v18800_v42  ;;  %16735 = vmatprep.subr.mxu1 %v21351_v18  ;;  %16750 = vmatprep.subr.mxu0 %v21351_v18 }
 0x11b   :  { %v18822_v52 = vpop.f32.mrf.mxu0 }
 0x11c   :  { %16728 = vmatmul.mubr.msk.f32.vlgmr.msra.gmra.mxu1 %vm516_vm2, %v304_v48 }
 0x11d   :  { %v16704_v53 = vpop.f32.mrf.mxu0  ;;  %16736 = vmatpush3.msra.mxu1 %v488_v49  ;;  %16737 = vmatprep.mubr.msk.f32.mxu1 %vm18507_vm1, %v21351_v18 }
 0x11e   :  { %v18828_v54 = vadd.f32 %v16704_v53, %v18800_v42  ;;  %16745 = vmatprep.subr.mxu1 %v21351_v18 }
 0x11f   :  { %v18831_v55 = vpop.f32.mrf.mxu0 }
 0x1d0   :  { %v589_v56 = vpop.f32.mrf.mxu1 }
 0x1d1   :  { %v973_v2 = vmul.f32 0.14433756, %v589_v56 }
 0x1d2   :  { %v16709_v57 = vpop.f32.mrf.mxu1  ;;  %v817_v58 = vpop.f32.mrf.mxu0 }
 0x1d3   :  { %v976_v59 = vmul.f32 0.14433756, %v817_v58  ;;  %v980_v14 = vsel %vm979_vm3, %v973_v2, -inf }
 0x1d4   :  { %v665_v60 = vpop.f32.mrf.mxu1  ;;  %v16724_v61 = vpop.f32.mrf.mxu0 }
 0x1d5   :  { %v974_v62 = vmul.f32 0.14433756, %v665_v60  ;;  %v989_v63 = vsel %vm979_vm3, %v976_v59, -inf }
 0x1d6   :  { %990 = vmax.xlane.f32.xlu1 %v989_v63  ;;  %v16714_v0 = vpop.f32.mrf.mxu1  ;;  %v969_v1 = vpop.f32.mrf.mxu0 }
 0x1d7   :  { %v983_v3 = vsel %vm979_vm3, %v974_v62, -inf  ;;  %v978_v7 = vmul.f32 0.14433756, %v969_v1 }
 0x1d8   :  { %984 = vmax.xlane.f32.xlu0 %v983_v3  ;;  %v741_v4 = vpop.f32.mrf.mxu1  ;;  %v16734_v5 = vpop.f32.mrf.mxu0 }
 0x1d9   :  { %v975_v6 = vmul.f32 0.14433756, %v741_v4  ;;  %v995_v20 = vsel %vm979_vm3, %v978_v7, -inf }
 0x1da   :  { %v16719_v11 = vpop.f32.mrf.mxu1 }
 0x1db   :  { %v986_v16 = vsel %vm979_vm3, %v975_v6, -inf }
 0x1dc   :  { %981 = vmax.xlane.f32.xlu0 %v980_v14  ;;  %987 = vmax.xlane.f32.xlu1 %v986_v16  ;;  %v893_v17 = vpop.f32.mrf.mxu1  ;;  %v15344_v16 = vld [vmem:[%s18545_s25 + $0x30] sm:$0xff] }
 0x1dd   :  { %v977_v19 = vmul.f32 0.14433756, %v893_v17 }
 0x1de   :  { %v16729_v21 = vpop.f32.mrf.mxu1 }
 0x1df   :  { %v992_v22 = vsel %vm979_vm3, %v977_v19, -inf }
 0x1e0   :  { %996 = vmax.xlane.f32.xlu0 %v995_v20  ;;  %993 = vmax.xlane.f32.xlu1 %v992_v22  ;;  %v15343_v20 = vld [vmem:[%s18545_s25 + $0x28] sm:$0xff] }
 0x1e1   :  { %v15339_v22 = vld [vmem:[%s18535_s17 + $0x28] sm:$0xff] }
 0x25f   :  { %v991_v23 = vpop.xlane.xlu1 %990 }
 0x260   :  { %v1001_v24 = vsub.f32 %v976_v59, %v991_v23  ;;  %v15338_v23 = vld [vmem:[%s18535_s17 + $0x20] sm:$0xff] }
 0x261   :  { %v985_v25 = vpop.xlane.xlu0 %984 }
 0x262   :  { %v999_v26 = vsub.f32 %v974_v62, %v985_v25  ;;  %v1010_v27 = vmul.f32 1.442695, %v1001_v24  ;;  %v15349_v24 = vld [vmem:[%s18555_s3 + $0x38] sm:$0xff]  ;;  %v15348_v25 = vld [vmem:[%s18555_s3 + $0x30] sm:$0xff] }
 0x264   :  { %v1006_v28 = vmul.f32 1.442695, %v999_v26  ;;  %v15347_v26 = vld [vmem:[%s18555_s3 + $0x28] sm:$0xff] }
 0x265   :  { %v982_v29 = vpop.xlane.xlu0 %981  ;;  %v988_v30 = vpop.xlane.xlu1 %987 }
 0x266   :  { %18142 = vpow2.f32 %v1006_v28  ;;  %v998_v31 = vsub.f32 %v973_v2, %v982_v29  ;;  %v1000_v32 = vsub.f32 %v975_v6, %v988_v30  ;;  %v498_v6 = vadd.f32 %v18800_v42, %v18822_v52 }
 0x267   :  { %18144 = vpow2.f32 %v1010_v27  ;;  %v15346_v27 = vld [vmem:[%s18555_s3 + $0x20] sm:$0xff] }
 0x268   :  { %v1004_v33 = vmul.f32 1.442695, %v998_v31  ;;  %v1008_v34 = vmul.f32 1.442695, %v1000_v32 }
 0x269   :  { %v997_v35 = vpop.xlane.xlu0 %996  ;;  %v994_v36 = vpop.xlane.xlu1 %993 }
 0x26a   :  { %18146 = vpow2.f32 %v1004_v33  ;;  %v1003_v37 = vsub.f32 %v978_v7, %v997_v35  ;;  %v1002_v38 = vsub.f32 %v977_v19, %v994_v36  ;;  %v15341_v19 = vld [vmem:[%s18535_s17 + $0x38] sm:$0xff]  ;;  %v15365_v35 = vld [vmem:[%s18550_s29 + $0x1] ss:$0 sm:$0xff] }
 0x26b   :  { %18148 = vpow2.f32 %v1008_v34 }
 0x26c   :  { %v1014_v39 = vmul.f32 1.442695, %v1003_v37  ;;  %v1012_v40 = vmul.f32 1.442695, %v1002_v38 }
 0x26e   :  { %18150 = vpow2.f32 %v1014_v39 }
 0x26f   :  { %18152 = vpow2.f32 %v1012_v40 }
 0x273   :  { %v18143_v41 = vpop.eup %18142 }
 0x274   :  { %v1019_v43 = vsel %vm979_vm3, %v18143_v41, 0.0  ;;  %v18145_v44 = vpop.eup %18144 }
 0x275   :  { %1020 = vadd.xlane.f32.xlu0 %v1019_v43  ;;  %v1025_v46 = vsel %vm979_vm3, %v18145_v44, 0.0 }
 0x277   :  { %v18147_v45 = vpop.eup %18146 }
 0x278   :  { %v1016_v47 = vsel %vm979_vm3, %v18147_v45, 0.0  ;;  %v18149_v48 = vpop.eup %18148 }
 0x279   :  { %1026 = vadd.xlane.f32.xlu0 %v1025_v46  ;;  %1017 = vadd.xlane.f32.xlu1 %v1016_v47  ;;  %v1022_v53 = vsel %vm979_vm3, %v18149_v48, 0.0 }
 0x27b   :  { %v18151_v49 = vpop.eup %18150 }
 0x27c   :  { %v1031_v50 = vsel %vm979_vm3, %v18151_v49, 0.0  ;;  %v18153_v56 = vpop.eup %18152 }
 0x27d   :  { %1032 = vadd.xlane.f32.xlu0 %v1031_v50  ;;  %1023 = vadd.xlane.f32.xlu1 %v1022_v53  ;;  %v1028_v57 = vsel %vm979_vm3, %v18153_v56, 0.0 }
 0x281   :  { %1029 = vadd.xlane.f32.xlu1 %v1028_v57 }
 0x2fe   :  { %v1021_v58 = vpop.xlane.xlu0 %1020 }
 0x2ff   :  { %18154 = vrcp.f32 %v1021_v58 }
 0x302   :  { %v1027_v59 = vpop.xlane.xlu0 %1026  ;;  %v1018_v60 = vpop.xlane.xlu1 %1017 }
 0x303   :  { %18156 = vrcp.f32 %v1027_v59 }
 0x304   :  { %18158 = vrcp.f32 %v1018_v60 }
 0x306   :  { %v1033_v61 = vpop.xlane.xlu0 %1032  ;;  %v1024_v62 = vpop.xlane.xlu1 %1023 }
 0x307   :  { %18160 = vrcp.f32 %v1033_v61 }
 0x308   :  { %18162 = vrcp.f32 %v1024_v62 }
 0x30a   :  { %v1030_v63 = vpop.xlane.xlu1 %1029 }
 0x30b   :  { %18164 = vrcp.f32 %v1030_v63 }
 0x30c   :  { %v18155_v0 = vpop.eup %18154 }
 0x30d   :  { %v1041_v1 = vmul.f32 %v18155_v0, %v18143_v41  ;;  %v15357_v41 = vld [vmem:[%s18540_s21 + $0x1] ss:$0 sm:$0xff] }
 0x30f   :  { %1047 = vst.msk [vmem:[%s18695_s12 + $0x8] sm:$0xff] %vm979_vm3, %v1041_v1  ;;  %16743 = vmatmul.mubr.msk.f32.vlgmr.msra.gmra.mxu0 %vm979_vm3, %v1041_v1  ;;  %v18978_v1 = vld [vmem:[%s18560_s8 + $0x1] ss:$0 sm:$0xff] }
 0x310   :  { %v18157_v2 = vpop.eup %18156  ;;  %16751 = vmatpush3.msra.mxu0 %v18818_v51  ;;  %16752 = vmatprep.mubr.msk.f32.mxu0 %vm18507_vm1, %v21351_v18  ;;  %v15345_v51 = vld [vmem:[%s18545_s25 + $0x38] sm:$0xff] }
 0x311   :  { %v18159_v3 = vpop.eup %18158  ;;  %16760 = vmatprep.subr.mxu0 %v21351_v18  ;;  %v1043_v4 = vmul.f32 %v18157_v2, %v18145_v44 }
 0x312   :  { %v1040_v5 = vmul.f32 %v18159_v3, %v18147_v45 }
 0x313   :  { %1049 = vst.msk [vmem:[%s18695_s12 + $0x18] sm:$0xff] %vm979_vm3, %v1043_v4  ;;  %16753 = vmatmul.mubr.msk.f32.vlgmr.msra.gmra.mxu0 %vm979_vm3, %v1043_v4 }
 0x314   :  { %v18161_v7 = vpop.eup %18160  ;;  %1046 = vst.msk [vmem:[%s18695_s12] sm:$0xff] %vm979_vm3, %v1040_v5  ;;  %16738 = vmatmul.mubr.msk.f32.vlgmr.msra.gmra.mxu1 %vm979_vm3, %v1040_v5  ;;  %16761 = vmatpush3.msra.mxu0 %v18828_v54  ;;  %v508_v54 = vadd.f32 %v18800_v42, %v18831_v55  ;;  %v15342_v42 = vld [vmem:[%s18545_s25 + $0x20] sm:$0xff]  ;;  %v15340_v55 = vld [vmem:[%s18535_s17 + $0x30] sm:$0xff] }
 0x315   :  { %v18163_v11 = vpop.eup %18162  ;;  %16746 = vmatpush3.msra.mxu1 %v498_v6  ;;  %16747 = vmatprep.mubr.msk.f32.mxu1 %vm18507_vm1, %v21351_v18  ;;  %v1045_v52 = vmul.f32 %v18161_v7, %v18151_v49 }
 0x316   :  { %16755 = vmatprep.subr.mxu1 %v21351_v18  ;;  %16762 = vmatprep.mubr.msk.f32.mxu0 %vm18507_vm1, %v21351_v18  ;;  %v1042_v14 = vmul.f32 %v18163_v11, %v18149_v48 }
 0x317   :  { %16782 = vmatprep.subr.mxu0 %v15345_v51  ;;  %1051 = vst.msk [vmem:[%s18695_s12 + $0x28] sm:$0xff] %vm979_vm3, %v1045_v52  ;;  %16763 = vmatmul.mubr.msk.f32.vlgmr.msra.gmra.mxu0 %vm979_vm3, %v1045_v52 }
 0x318   :  { %v18165_v17 = vpop.eup %18164  ;;  %1048 = vst.msk [vmem:[%s18695_s12 + $0x10] sm:$0xff] %vm979_vm3, %v1042_v14  ;;  %16748 = vmatmul.mubr.msk.f32.vlgmr.msra.gmra.mxu1 %vm979_vm3, %v1042_v14  ;;  %16783 = vmatpush3.msra.mxu0 %v15345_v51 }
 0x319   :  { %16756 = vmatpush3.msra.mxu1 %v508_v54  ;;  %16784 = vmatprep.subr.mxu0 %v15344_v16  ;;  %v1044_v21 = vmul.f32 %v18165_v17, %v18153_v56 }
 0x31a   :  { %16785 = vmatpush3.msra.mxu0 %v15344_v16  ;;  %16757 = vmatprep.mubr.msk.f32.mxu1 %vm18507_vm1, %v21351_v18 }
 0x31b   :  { %16765 = vmatprep.subr.mxu1 %v15341_v19  ;;  %16786 = vmatprep.subr.mxu0 %v15343_v20  ;;  %1050 = vst.msk [vmem:[%s18695_s12 + $0x20] sm:$0xff] %vm979_vm3, %v1044_v21 }
 0x31c   :  { %16758 = vmatmul.mubr.msk.f32.vlgmr.msra.gmra.mxu1 %vm979_vm3, %v1044_v21  ;;  %16787 = vmatpush3.msra.mxu0 %v15343_v20 }
 0x31d   :  { %16766 = vmatpush3.msra.mxu1 %v15341_v19  ;;  %16788 = vmatprep.subr.mxu0 %v15342_v42 }
 0x31e   :  { %16767 = vmatprep.subr.mxu1 %v15340_v55  ;;  %16789 = vmatpush3.msra.mxu0 %v15342_v42 }
 0x31f   :  { %16768 = vmatpush3.msra.mxu1 %v15340_v55  ;;  %16790 = vmatprep.mubr.msk.f32.mxu0 %vm198_vm0, %v18721_v8 }
 0x320   :  { %16769 = vmatprep.subr.mxu1 %v15339_v22  ;;  %16791 = vmatmul.mubr.msk.f32.vlgmr.msra.gmra.mxu0 %vm198_vm0, %v18724_v9 }
 0x321   :  { %16770 = vmatpush3.msra.mxu1 %v15339_v22  ;;  %16773 = vmatprep.mubr.msk.f32.mxu1 %vm198_vm0, %v18721_v8 }
 0x322   :  { %16771 = vmatprep.subr.mxu1 %v15338_v23  ;;  %16793 = vmatprep.mubr.msk.f32.mxu0 %vm198_vm0, %v18729_v10 }
 0x323   :  { %16772 = vmatpush3.msra.mxu1 %v15338_v23  ;;  %16816 = vmatprep.subr.mxu0 %v21351_v18 }
 0x324   :  { %16774 = vmatmul.mubr.msk.f32.vlgmr.msra.gmra.mxu1 %vm198_vm0, %v18724_v9  ;;  %16794 = vmatmul.mubr.msk.f32.gmra.mxu0 %vm198_vm0, %v18741_v12 }
 0x325   :  { %16776 = vmatprep.mubr.msk.f32.mxu1 %vm198_vm0, %v18729_v10  ;;  %16796 = vmatprep.mubr.msk.f32.mxu0 %vm198_vm0, %v18746_v13 }
 0x326   :  { %16799 = vmatprep.subr.mxu1 %v15349_v24 }
 0x327   :  { %16800 = vmatpush3.msra.mxu1 %v15349_v24 }
 0x328   :  { %16777 = vmatmul.mubr.msk.f32.gmra.mxu1 %vm198_vm0, %v18741_v12  ;;  %16797 = vmatmul.mubr.msk.f32.gmra.mxu0 %vm198_vm0, %v18756_v15 }
 0x329   :  { %16779 = vmatprep.mubr.msk.f32.mxu1 %vm198_vm0, %v18746_v13  ;;  %16818 = vmatprep.mubr.msk.f32.mxu0 %vm18507_vm1, %v21351_v18 }
 0x32a   :  { %16801 = vmatprep.subr.mxu1 %v15348_v25 }
 0x32b   :  { %16802 = vmatpush3.msra.mxu1 %v15348_v25 }
 0x32c   :  { %16780 = vmatmul.mubr.msk.f32.gmra.mxu1 %vm198_vm0, %v18756_v15  ;;  %16803 = vmatprep.subr.mxu1 %v15347_v26 }
 0x32d   :  { %16807 = vmatprep.mubr.msk.f32.mxu1 %vm198_vm0, %v18721_v8  ;;  %16804 = vmatpush3.msra.mxu1 %v15347_v26 }
 0x32e   :  { %16805 = vmatprep.subr.mxu1 %v15346_v27 }
 0x32f   :  { %16806 = vmatpush3.msra.mxu1 %v15346_v27 }
 0x330   :  { %16808 = vmatmul.mubr.msk.f32.vlgmr.msra.gmra.mxu1 %vm198_vm0, %v18724_v9  ;;  %16831 = vmatprep.subr.mxu1 %v21351_v18 }
 0x331   :  { %16810 = vmatprep.mubr.msk.f32.mxu1 %vm198_vm0, %v18729_v10 }
 0x334   :  { %16811 = vmatmul.mubr.msk.f32.gmra.mxu1 %vm198_vm0, %v18741_v12 }
 0x335   :  { %16813 = vmatprep.mubr.msk.f32.mxu1 %vm198_vm0, %v18746_v13 }
 0x338   :  { %16814 = vmatmul.mubr.msk.f32.gmra.mxu1 %vm198_vm0, %v18756_v15 }
 0x339   :  { %16833 = vmatprep.mubr.msk.f32.mxu1 %vm18507_vm1, %v21351_v18 }
 0x3cf   :  { %v18933_v8 = vpop.f32.mrf.mxu0 }
 0x3d1   :  { %v16744_v9 = vpop.f32.mrf.mxu0 }
 0x3d3   :  { %v18935_v28 = vpop.f32.mrf.mxu0 }
 0x3d4   :  { %v18937_v29 = vpop.f32.mrf.mxu1 }
 0x3d5   :  { %v16754_v10 = vpop.f32.mrf.mxu0 }
 0x3d6   :  { %v16739_v12 = vpop.f32.mrf.mxu1 }
 0x3d7   :  { %v18939_v30 = vpop.f32.mrf.mxu0 }
 0x3d8   :  { %v18941_v13 = vpop.f32.mrf.mxu1 }
 0x3d9   :  { %v16764_v31 = vpop.f32.mrf.mxu0 }
 0x3da   :  { %v16749_v32 = vpop.f32.mrf.mxu1 }
 0x3dc   :  { %v18943_v15 = vpop.f32.mrf.mxu1 }
 0x3de   :  { %v16759_v33 = vpop.f32.mrf.mxu1 }
 0x3e0   :  { %v16792_v34 = vpop.f32.mrf.mxu0 }
 0x3e1   :  { %v1695_v46 = vadd.f32 %v16792_v34, %v15365_v35 }
 0x3e2   :  { %v1689_v36 = vpop.f32.mrf.mxu0 }
 0x3e3   :  { %v1690_v37 = vadd.f32 %v15365_v35, %v1689_v36 }
 0x3e4   :  { %v16775_v38 = vpop.f32.mrf.mxu1  ;;  %v16795_v39 = vpop.f32.mrf.mxu0 }
 0x3e5   :  { %16817 = vmatpush3.xpose.msk.msra.mxu0 %vm516_vm2, %v1690_v37  ;;  %v1705_v40 = vadd.f32 %v16795_v39, %v15365_v35  ;;  %v1592_v57 = vadd.f32 %v16775_v38, %v15357_v41 }
 0x3e6   :  { %v1586_v43 = vpop.f32.mrf.mxu1  ;;  %16821 = vmatprep.subr.mxu0 %v21351_v18  ;;  %v1699_v44 = vpop.f32.mrf.mxu0 }
 0x3e7   :  { %v1587_v45 = vadd.f32 %v15357_v41, %v1586_v43  ;;  %16832 = vmatpush3.xpose.msk.msra.mxu1 %vm516_vm2, %v1705_v40  ;;  %v1700_v53 = vadd.f32 %v15365_v35, %v1699_v44 }
 0x3e8   :  { %v16778_v47 = vpop.f32.mrf.mxu1  ;;  %v16798_v48 = vpop.f32.mrf.mxu0  ;;  %16841 = vmatprep.subr.mxu1 %v21351_v18 }
 0x3e9   :  { %16819 = vmatmul.mubr.msk.f32.vlgmr.msra.gmra.mxu0 %vm516_vm2, %v1587_v45  ;;  %v1602_v49 = vadd.f32 %v16778_v47, %v15357_v41  ;;  %v1715_v50 = vadd.f32 %v16798_v48, %v15365_v35 }
 0x3ea   :  { %16822 = vmatpush3.xpose.msk.msra.mxu0 %vm516_vm2, %v1695_v46  ;;  %v1596_v56 = vpop.f32.mrf.mxu1  ;;  %16823 = vmatprep.mubr.msk.f32.mxu0 %vm18507_vm1, %v21351_v18  ;;  %v1709_v58 = vpop.f32.mrf.mxu0 }
 0x3eb   :  { %16826 = vmatprep.subr.mxu0 %v21351_v18  ;;  %16834 = vmatmul.mubr.msk.f32.vlgmr.msra.gmra.mxu1 %vm516_vm2, %v1602_v49  ;;  %v1710_v61 = vadd.f32 %v15365_v35, %v1709_v58  ;;  %v1597_v62 = vadd.f32 %v15357_v41, %v1596_v56 }
 0x3ec   :  { %v16781_v59 = vpop.f32.mrf.mxu1  ;;  %16842 = vmatpush3.xpose.msk.msra.mxu1 %vm516_vm2, %v1715_v50  ;;  %16843 = vmatprep.mubr.msk.f32.mxu1 %vm18507_vm1, %v21351_v18 }
 0x3ed   :  { %16824 = vmatmul.mubr.msk.f32.vlgmr.msra.gmra.mxu0 %vm516_vm2, %v1592_v57  ;;  %v1612_v60 = vadd.f32 %v16781_v59, %v15357_v41  ;;  %16851 = vmatprep.subr.mxu1 %v21351_v18 }
 0x3ee   :  { %16827 = vmatpush3.xpose.msk.msra.mxu0 %vm516_vm2, %v1700_v53  ;;  %16828 = vmatprep.mubr.msk.f32.mxu0 %vm18507_vm1, %v21351_v18  ;;  %v1606_v63 = vpop.f32.mrf.mxu1 }
 0x3ef   :  { %16836 = vmatprep.subr.mxu0 %v21351_v18  ;;  %16844 = vmatmul.mubr.msk.f32.vlgmr.msra.gmra.mxu1 %vm516_vm2, %v1612_v60  ;;  %v1607_v0 = vadd.f32 %v15357_v41, %v1606_v63 }
 0x3f0   :  { %16853 = vmatprep.mubr.msk.f32.mxu1 %vm18507_vm1, %v21351_v18  ;;  %v16809_v2 = vpop.f32.mrf.mxu1 }
 0x3f1   :  { %16829 = vmatmul.mubr.msk.f32.vlgmr.msra.gmra.mxu0 %vm516_vm2, %v1597_v62  ;;  %v1798_v3 = vadd.f32 %v16809_v2, %v18978_v1 }
 0x3f2   :  { %16837 = vmatpush3.xpose.msk.msra.mxu0 %vm516_vm2, %v1710_v61  ;;  %16838 = vmatprep.mubr.msk.f32.mxu0 %vm18507_vm1, %v21351_v18  ;;  %v1792_v4 = vpop.f32.mrf.mxu1 }
 0x3f3   :  { %16846 = vmatprep.subr.mxu0 %v21351_v18  ;;  %v1793_v5 = vadd.f32 %v18978_v1, %v1792_v4  ;;  %16852 = vmatpush3.msra.mxu1 %v1798_v3 }
 0x3f4   :  { %v16812_v6 = vpop.f32.mrf.mxu1  ;;  %16861 = vmatprep.subr.mxu1 %v21351_v18 }
 0x3f5   :  { %16839 = vmatmul.mubr.msk.f32.vlgmr.msra.gmra.mxu0 %vm516_vm2, %v1607_v0  ;;  %v18984_v7 = vadd.f32 %v16812_v6, %v18978_v1 }
 0x3f6   :  { %16848 = vmatprep.mubr.msk.f32.mxu0 %vm18507_vm1, %v21351_v18  ;;  %16847 = vmatpush3.msra.mxu0 %v1793_v5  ;;  %v18986_v51 = vpop.f32.mrf.mxu1 }
 0x3f7   :  { %16856 = vmatprep.subr.mxu0 %v21351_v18 }
 0x3f8   :  { %v16815_v11 = vpop.f32.mrf.mxu1 }
 0x3f9   :  { %v18990_v52 = vadd.f32 %v16815_v11, %v18978_v1 }
 0x3fa   :  { %v18992_v14 = vpop.f32.mrf.mxu1 }
 0x4a9   :  { %v1893_v16 = vpop.f32.mrf.mxu0 }
 0x4aa   :  { %v2277_v54 = vmul.f32 0.14433756, %v1893_v16 }
 0x4ab   :  { %v16820_v17 = vpop.f32.mrf.mxu0  ;;  %v2121_v19 = vpop.f32.mrf.mxu1 }
 0x4ac   :  { %v2283_v20 = vsel %vm979_vm3, %v2277_v54, -inf  ;;  %v2280_v24 = vmul.f32 0.14433756, %v2121_v19 }
 0x4ad   :  { %2284 = vmax.xlane.f32.xlu0 %v2283_v20  ;;  %v1969_v21 = vpop.f32.mrf.mxu0  ;;  %v16835_v42 = vpop.f32.mrf.mxu1 }
 0x4ae   :  { %v2278_v55 = vmul.f32 0.14433756, %v1969_v21  ;;  %v2292_v31 = vsel %vm979_vm3, %v2280_v24, -inf }
 0x4af   :  { %v16825_v22 = vpop.f32.mrf.mxu0  ;;  %v2273_v23 = vpop.f32.mrf.mxu1 }
 0x4b0   :  { %v2286_v25 = vsel %vm979_vm3, %v2278_v55, -inf  ;;  %v2282_v12 = vmul.f32 0.14433756, %v2273_v23 }
 0x4b1   :  { %2287 = vmax.xlane.f32.xlu1 %v2286_v25  ;;  %v2045_v26 = vpop.f32.mrf.mxu0  ;;  %v16845_v27 = vpop.f32.mrf.mxu1 }
 0x4b2   :  { %v2279_v9 = vmul.f32 0.14433756, %v2045_v26  ;;  %v2298_v36 = vsel %vm979_vm3, %v2282_v12, -inf }
 0x4b3   :  { %v16830_v10 = vpop.f32.mrf.mxu0 }
 0x4b4   :  { %v2289_v32 = vsel %vm979_vm3, %v2279_v9, -inf }
 0x4b5   :  { %2293 = vmax.xlane.f32.xlu1 %v2292_v31  ;;  %2290 = vmax.xlane.f32.xlu0 %v2289_v32  ;;  %v2197_v33 = vpop.f32.mrf.mxu0  ;;  %v190_v31 = vld [vmem:[%s18565_s14 + $0x28] sm:$0xff] }
 0x4b6   :  { %v2281_v34 = vmul.f32 0.14433756, %v2197_v33 }
 0x4b7   :  { %v16840_v35 = vpop.f32.mrf.mxu0 }
 0x4b8   :  { %v2295_v37 = vsel %vm979_vm3, %v2281_v34, -inf  ;;  %v15354_v35 = vld [vmem:[%s18565_s14 + $0x50] sm:$0xff] }
 0x4b9   :  { %2299 = vmax.xlane.f32.xlu1 %v2298_v36  ;;  %2296 = vmax.xlane.f32.xlu0 %v2295_v37  ;;  %v187_v36 = vld [vmem:[%s18565_s14 + $0x10] sm:$0xff]  ;;  %v15353_v37 = vld [vmem:[%s18565_s14 + $0x48] sm:$0xff] }
 0x536   :  { %v2285_v38 = vpop.xlane.xlu0 %2284 }
 0x537   :  { %v2301_v39 = vsub.f32 %v2277_v54, %v2285_v38  ;;  %v186_v38 = vld [vmem:[%s18565_s14 + $0x8] sm:$0xff] }
 0x539   :  { %v2307_v40 = vmul.f32 1.442695, %v2301_v39  ;;  %v15352_v39 = vld [vmem:[%s18565_s14 + $0x40] sm:$0xff] }
 0x53a   :  { %v2288_v41 = vpop.xlane.xlu1 %2287 }
 0x53b   :  { %18166 = vpow2.f32 %v2307_v40  ;;  %v2302_v43 = vsub.f32 %v2278_v55, %v2288_v41  ;;  %v185_v40 = vld [vmem:[%s18565_s14] sm:$0xff]  ;;  %v15419_v41 = vld [vmem:[%s18535_s17 + $0x58] sm:$0xff] }
 0x53d   :  { %v2309_v44 = vmul.f32 1.442695, %v2302_v43  ;;  %v15420_v43 = vld [vmem:[%s18545_s25 + $0x40] sm:$0xff] }
 0x53e   :  { %v2294_v45 = vpop.xlane.xlu1 %2293  ;;  %v2291_v46 = vpop.xlane.xlu0 %2290 }
 0x53f   :  { %18168 = vpow2.f32 %v2309_v44  ;;  %v2304_v47 = vsub.f32 %v2280_v24, %v2294_v45  ;;  %v2303_v48 = vsub.f32 %v2279_v9, %v2291_v46  ;;  %v1803_v24 = vadd.f32 %v18978_v1, %v18986_v51  ;;  %v19075_v44 = vld [vmem:[%s18520_s5 + $0x8] sm:$0xff]  ;;  %v19081_v45 = vld [vmem:[%s18520_s5 + $0x10] sm:$0xff]  ;;  %v19086_v46 = vld [vmem:[%s18520_s5 + $0x18] sm:$0xff] }
 0x541   :  { %v2313_v49 = vmul.f32 1.442695, %v2304_v47  ;;  %v2311_v50 = vmul.f32 1.442695, %v2303_v48  ;;  %v19091_v47 = vld [vmem:[%s18520_s5 + $0x20] sm:$0xff]  ;;  %v19096_v48 = vld [vmem:[%s18520_s5 + $0x28] sm:$0xff] }
 0x542   :  { %v2300_v53 = vpop.xlane.xlu1 %2299  ;;  %v2297_v56 = vpop.xlane.xlu0 %2296 }
 0x543   :  { %18170 = vpow2.f32 %v2313_v49  ;;  %v2306_v57 = vsub.f32 %v2282_v12, %v2300_v53  ;;  %v2305_v58 = vsub.f32 %v2281_v34, %v2297_v56  ;;  %v1813_v12 = vadd.f32 %v18978_v1, %v18992_v14  ;;  %v189_v34 = vld [vmem:[%s18565_s14 + $0x20] sm:$0xff]  ;;  %v15418_v56 = vld [vmem:[%s18535_s17 + $0x50] sm:$0xff] }
 0x544   :  { %18172 = vpow2.f32 %v2311_v50 }
 0x545   :  { %v2317_v59 = vmul.f32 1.442695, %v2306_v57  ;;  %v2315_v60 = vmul.f32 1.442695, %v2305_v58  ;;  %v15417_v58 = vld [vmem:[%s18535_s17 + $0x48] sm:$0xff] }
 0x547   :  { %18174 = vpow2.f32 %v2317_v59 }
 0x548   :  { %v18167_v61 = vpop.eup %18166  ;;  %18176 = vpow2.f32 %v2315_v60  ;;  %v15416_v60 = vld [vmem:[%s18535_s17 + $0x40] sm:$0xff] }
 0x549   :  { %v2319_v62 = vsel %vm979_vm3, %v18167_v61, 0.0 }
 0x54a   :  { %2320 = vadd.xlane.f32.xlu0 %v2319_v62 }
 0x54c   :  { %v18169_v63 = vpop.eup %18168 }
 0x54d   :  { %v2322_v0 = vsel %vm979_vm3, %v18169_v63, 0.0 }
 0x54e   :  { %2323 = vadd.xlane.f32.xlu1 %v2322_v0 }
 0x550   :  { %v18171_v2 = vpop.eup %18170 }
 0x551   :  { %v18173_v3 = vpop.eup %18172  ;;  %v2328_v4 = vsel %vm979_vm3, %v18171_v2, 0.0 }
 0x552   :  { %2329 = vadd.xlane.f32.xlu1 %v2328_v4  ;;  %v2325_v5 = vsel %vm979_vm3, %v18173_v3, 0.0 }
 0x553   :  { %2326 = vadd.xlane.f32.xlu0 %v2325_v5 }
 0x554   :  { %v18175_v6 = vpop.eup %18174 }
 0x555   :  { %v18177_v11 = vpop.eup %18176  ;;  %v2334_v16 = vsel %vm979_vm3, %v18175_v6, 0.0 }
 0x556   :  { %2335 = vadd.xlane.f32.xlu1 %v2334_v16  ;;  %v2331_v54 = vsel %vm979_vm3, %v18177_v11, 0.0 }
 0x557   :  { %2332 = vadd.xlane.f32.xlu0 %v2331_v54  ;;  %v15427_v54 = vld [vmem:[%s18555_s3 + $0x58] sm:$0xff] }
 0x5d3   :  { %v2321_v17 = vpop.xlane.xlu0 %2320 }
 0x5d4   :  { %18178 = vrcp.f32 %v2321_v17  ;;  %v15426_v17 = vld [vmem:[%s18555_s3 + $0x50] sm:$0xff] }
 0x5d7   :  { %v2324_v19 = vpop.xlane.xlu1 %2323 }
 0x5d8   :  { %18180 = vrcp.f32 %v2324_v19  ;;  %v15425_v19 = vld [vmem:[%s18555_s3 + $0x48] sm:$0xff] }
 0x5db   :  { %v2330_v20 = vpop.xlane.xlu1 %2329 }
 0x5dc   :  { %18182 = vrcp.f32 %v2330_v20  ;;  %v2327_v21 = vpop.xlane.xlu0 %2326 }
 0x5dd   :  { %18184 = vrcp.f32 %v2327_v21  ;;  %v15424_v21 = vld [vmem:[%s18555_s3 + $0x40] sm:$0xff] }
 0x5df   :  { %v2336_v42 = vpop.xlane.xlu1 %2335 }
 0x5e0   :  { %18186 = vrcp.f32 %v2336_v42  ;;  %v2333_v55 = vpop.xlane.xlu0 %2332 }
 0x5e1   :  { %v18179_v22 = vpop.eup %18178  ;;  %18188 = vrcp.f32 %v2333_v55  ;;  %v15443_v55 = vld [vmem:[%s18550_s29 + $0x2] ss:$0 sm:$0xff] }
 0x5e2   :  { %v2343_v23 = vmul.f32 %v18179_v22, %v18167_v61 }
 0x5e4   :  { %15392 = vst.msk [vmem:[%s18695_s12 + $0x30] sm:$0xff] %vm979_vm3, %v2343_v23  ;;  %16849 = vmatmul.mubr.msk.f32.vlgmr.msra.gmra.mxu0 %vm979_vm3, %v2343_v23 }
 0x5e5   :  { %v18181_v25 = vpop.eup %18180  ;;  %16857 = vmatpush3.msra.mxu0 %v1803_v24  ;;  %16858 = vmatprep.mubr.msk.f32.mxu0 %vm18507_vm1, %v21351_v18 }
 0x5e6   :  { %v2344_v26 = vmul.f32 %v18181_v25, %v18169_v63  ;;  %16866 = vmatprep.subr.mxu0 %v21351_v18 }
 0x5e8   :  { %15393 = vst.msk [vmem:[%s18695_s12 + $0x38] sm:$0xff] %vm979_vm3, %v2344_v26  ;;  %16854 = vmatmul.mubr.msk.f32.vlgmr.msra.gmra.mxu1 %vm979_vm3, %v2344_v26 }
 0x5e9   :  { %v18183_v51 = vpop.eup %18182  ;;  %16862 = vmatpush3.msra.mxu1 %v18984_v7  ;;  %16863 = vmatprep.mubr.msk.f32.mxu1 %vm18507_vm1, %v21351_v18  ;;  %v15355_v7 = vld [vmem:[%s18565_s14 + $0x58] sm:$0xff] }
 0x5ea   :  { %v18185_v27 = vpop.eup %18184  ;;  %16871 = vmatprep.subr.mxu1 %v21351_v18  ;;  %v2346_v9 = vmul.f32 %v18183_v51, %v18171_v2 }
 0x5eb   :  { %v2345_v10 = vmul.f32 %v18185_v27, %v18173_v3 }
 0x5ec   :  { %15395 = vst.msk [vmem:[%s18695_s12 + $0x48] sm:$0xff] %vm979_vm3, %v2346_v9  ;;  %16864 = vmatmul.mubr.msk.f32.vlgmr.msra.gmra.mxu1 %vm979_vm3, %v2346_v9 }
 0x5ed   :  { %v18187_v32 = vpop.eup %18186  ;;  %15394 = vst.msk [vmem:[%s18695_s12 + $0x40] sm:$0xff] %vm979_vm3, %v2345_v10  ;;  %16859 = vmatmul.mubr.msk.f32.vlgmr.msra.gmra.mxu0 %vm979_vm3, %v2345_v10  ;;  %16872 = vmatpush3.msra.mxu1 %v18990_v52  ;;  %v188_v52 = vld [vmem:[%s18565_s14 + $0x18] sm:$0xff] }
 0x5ee   :  { %v18189_v33 = vpop.eup %18188  ;;  %16867 = vmatpush3.msra.mxu0 %v1813_v12  ;;  %16868 = vmatprep.mubr.msk.f32.mxu0 %vm18507_vm1, %v21351_v18  ;;  %v2348_v1 = vmul.f32 %v18187_v32, %v18175_v6 }
 0x5ef   :  { %16873 = vmatprep.mubr.msk.f32.mxu1 %vm18507_vm1, %v21351_v18  ;;  %16897 = vmatprep.subr.mxu1 %v190_v31  ;;  %v2347_v14 = vmul.f32 %v18189_v33, %v18177_v11 }
 0x5f0   :  { %15397 = vst.msk [vmem:[%s18695_s12 + $0x58] sm:$0xff] %vm979_vm3, %v2348_v1  ;;  %16874 = vmatmul.mubr.msk.f32.vlgmr.msra.gmra.mxu1 %vm979_vm3, %v2348_v1  ;;  %16876 = vmatprep.subr.mxu0 %v15355_v7 }
 0x5f1   :  { %15396 = vst.msk [vmem:[%s18695_s12 + $0x50] sm:$0xff] %vm979_vm3, %v2347_v14  ;;  %16869 = vmatmul.mubr.msk.f32.vlgmr.msra.gmra.mxu0 %vm979_vm3, %v2347_v14  ;;  %16898 = vmatpush3.msra.mxu1 %v190_v31  ;;  %v15435_v14 = vld [vmem:[%s18540_s21 + $0x2] ss:$0 sm:$0xff] }
 0x5f2   :  { %16899 = vmatprep.subr.mxu1 %v189_v34  ;;  %16909 = vmatprep.mubr.msk.f32.mxu1 %vm516_vm2, %v18937_v29  ;;  %v19063_v29 = vld [vmem:[%s18520_s5] sm:$0xff] }
 0x5f3   :  { %16900 = vmatpush3.msra.mxu1 %v189_v34  ;;  %16877 = vmatpush3.msra.mxu0 %v15355_v7 }
 0x5f4   :  { %16901 = vmatprep.subr.mxu1 %v188_v52  ;;  %16878 = vmatprep.subr.mxu0 %v15354_v35 }
 0x5f5   :  { %16902 = vmatpush3.msra.mxu1 %v188_v52  ;;  %16879 = vmatpush3.msra.mxu0 %v15354_v35 }
 0x5f6   :  { %16903 = vmatprep.subr.mxu1 %v187_v36  ;;  %16880 = vmatprep.subr.mxu0 %v15353_v37 }
 0x5f7   :  { %16904 = vmatpush3.msra.mxu1 %v187_v36  ;;  %16881 = vmatpush3.msra.mxu0 %v15353_v37 }
 0x5f8   :  { %16905 = vmatprep.subr.mxu1 %v186_v38  ;;  %16882 = vmatprep.subr.mxu0 %v15352_v39 }
 0x5f9   :  { %16906 = vmatpush3.msra.mxu1 %v186_v38  ;;  %16883 = vmatpush3.msra.mxu0 %v15352_v39 }
 0x5fa   :  { %16907 = vmatprep.subr.mxu1 %v185_v40 }
 0x5fb   :  { %16908 = vmatpush3.msra.mxu1 %v185_v40 }
 0x5fc   :  { %16910 = vmatmul.mubr.msk.f32.vlgmr.msra.gmra.mxu1 %vm516_vm2, %v18933_v8  ;;  %v15351_v8 = vld [vmem:[%s18565_s14 + $0x38] sm:$0xff] }
 0x5fd   :  { %16912 = vmatprep.mubr.msk.f32.mxu1 %vm516_vm2, %v18941_v13  ;;  %16884 = vmatprep.subr.mxu0 %v15351_v8  ;;  %v15350_v13 = vld [vmem:[%s18565_s14 + $0x30] sm:$0xff] }
 0x5fe   :  { %16885 = vmatpush3.msra.mxu0 %v15351_v8 }
 0x5ff   :  { %16886 = vmatprep.subr.mxu0 %v15350_v13 }
 0x600   :  { %16913 = vmatmul.mubr.msk.f32.gmra.mxu1 %vm516_vm2, %v18935_v28  ;;  %16887 = vmatpush3.msra.mxu0 %v15350_v13  ;;  %v15423_v28 = vld [vmem:[%s18545_s25 + $0x58] sm:$0xff] }
 0x601   :  { %16915 = vmatprep.mubr.msk.f32.mxu1 %vm516_vm2, %v18943_v15  ;;  %16935 = vmatprep.subr.mxu1 %v15423_v28  ;;  %v15422_v15 = vld [vmem:[%s18545_s25 + $0x50] sm:$0xff] }
 0x602   :  { %16936 = vmatpush3.msra.mxu1 %v15423_v28  ;;  %16918 = vmatprep.subr.mxu0 %v15419_v41 }
 0x603   :  { %16937 = vmatprep.subr.mxu1 %v15422_v15 }
 0x604   :  { %16916 = vmatmul.mubr.msk.f32.gmra.mxu1 %vm516_vm2, %v18939_v30  ;;  %v15421_v30 = vld [vmem:[%s18545_s25 + $0x48] sm:$0xff] }
 0x605   :  { %16943 = vmatprep.mubr.msk.f32.mxu1 %vm198_vm0, %v19063_v29  ;;  %16938 = vmatpush3.msra.mxu1 %v15422_v15 }
 0x606   :  { %16939 = vmatprep.subr.mxu1 %v15421_v30 }
 0x607   :  { %16940 = vmatpush3.msra.mxu1 %v15421_v30 }
 0x608   :  { %16941 = vmatprep.subr.mxu1 %v15420_v43 }
 0x609   :  { %16942 = vmatpush3.msra.mxu1 %v15420_v43 }
 0x60a   :  { %16944 = vmatmul.mubr.msk.f32.vlgmr.msra.gmra.mxu1 %vm198_vm0, %v19075_v44  ;;  %16969 = vmatprep.subr.mxu1 %v21351_v18 }
 0x60b   :  { %16946 = vmatprep.mubr.msk.f32.mxu1 %vm198_vm0, %v19081_v45 }
 0x60e   :  { %16947 = vmatmul.mubr.msk.f32.gmra.mxu1 %vm198_vm0, %v19086_v46 }
 0x60f   :  { %16949 = vmatprep.mubr.msk.f32.mxu1 %vm198_vm0, %v19091_v47 }
 0x612   :  { %16950 = vmatmul.mubr.msk.f32.gmra.mxu1 %vm198_vm0, %v19096_v48 }
 0x613   :  { %16971 = vmatprep.mubr.msk.f32.mxu1 %vm18507_vm1, %v21351_v18 }
 0x6a4   :  { %v2425_v49 = vpop.f32.mrf.mxu0 }
 0x6a5   :  { %16888 = vmatprep.mubr.msk.f32.mxu0 %vm516_vm2, %v2425_v49  ;;  %v19199_v49 = vld [vmem:[%s18560_s8 + $0x2] ss:$0 sm:$0xff] }
 0x6a6   :  { %v16850_v50 = vpop.f32.mrf.mxu0 }
 0x6a8   :  { %v2498_v53 = vpop.f32.mrf.mxu1 }
 0x6a9   :  { %16889 = vmatmul.mubr.msk.f32.vlgmr.msra.gmra.mxu0 %vm516_vm2, %v2498_v53 }
 0x6aa   :  { %v16855_v57 = vpop.f32.mrf.mxu1  ;;  %16919 = vmatpush3.msra.mxu0 %v15419_v41 }
 0x6ab   :  { %16920 = vmatprep.subr.mxu0 %v15418_v56 }
 0x6ac   :  { %v2644_v59 = vpop.f32.mrf.mxu1  ;;  %16921 = vmatpush3.msra.mxu0 %v15418_v56 }
 0x6ad   :  { %v2571_v61 = vpop.f32.mrf.mxu0  ;;  %16922 = vmatprep.subr.mxu0 %v15417_v58 }
 0x6ae   :  { %16891 = vmatprep.mubr.msk.f32.mxu0 %vm516_vm2, %v2571_v61  ;;  %v16865_v62 = vpop.f32.mrf.mxu1  ;;  %16923 = vmatpush3.msra.mxu0 %v15417_v58 }
 0x6af   :  { %v16860_v63 = vpop.f32.mrf.mxu0  ;;  %16892 = vmatmul.mubr.msk.f32.gmra.mxu0 %vm516_vm2, %v2644_v59  ;;  %16924 = vmatprep.subr.mxu0 %v15416_v60 }
 0x6b0   :  { %v2790_v0 = vpop.f32.mrf.mxu1  ;;  %16925 = vmatpush3.msra.mxu0 %v15416_v60 }
 0x6b1   :  { %v2717_v2 = vpop.f32.mrf.mxu0  ;;  %16952 = vmatprep.subr.mxu0 %v15427_v54 }
 0x6b2   :  { %16894 = vmatprep.mubr.msk.f32.mxu0 %vm516_vm2, %v2717_v2  ;;  %v16875_v3 = vpop.f32.mrf.mxu1 }
 0x6b3   :  { %v16870_v4 = vpop.f32.mrf.mxu0  ;;  %16895 = vmatmul.mubr.msk.f32.gmra.mxu0 %vm516_vm2, %v2790_v0 }
 0x6b4   :  { %16926 = vmatprep.mubr.msk.f32.mxu0 %vm198_vm0, %v19063_v29 }
 0x6b7   :  { %16927 = vmatmul.mubr.msk.f32.vlgmr.msra.gmra.mxu0 %vm198_vm0, %v19075_v44 }
 0x6b8   :  { %16929 = vmatprep.mubr.msk.f32.mxu0 %vm198_vm0, %v19081_v45  ;;  %16953 = vmatpush3.msra.mxu0 %v15427_v54 }
 0x6b9   :  { %16954 = vmatprep.subr.mxu0 %v15426_v17 }
 0x6ba   :  { %16955 = vmatpush3.msra.mxu0 %v15426_v17 }
 0x6bb   :  { %16930 = vmatmul.mubr.msk.f32.gmra.mxu0 %vm198_vm0, %v19086_v46  ;;  %16956 = vmatprep.subr.mxu0 %v15425_v19 }
 0x6bc   :  { %16932 = vmatprep.mubr.msk.f32.mxu0 %vm198_vm0, %v19091_v47  ;;  %v19125_v5 = vpop.f32.mrf.mxu1  ;;  %16957 = vmatpush3.msra.mxu0 %v15425_v19 }
 0x6bd   :  { %16958 = vmatprep.subr.mxu0 %v15424_v21 }
 0x6be   :  { %v19127_v6 = vpop.f32.mrf.mxu1  ;;  %16959 = vmatpush3.msra.mxu0 %v15424_v21 }
 0x6bf   :  { %16933 = vmatmul.mubr.msk.f32.gmra.mxu0 %vm198_vm0, %v19096_v48  ;;  %16984 = vmatprep.subr.mxu0 %v21351_v18 }
 0x6c0   :  { %16960 = vmatprep.mubr.msk.f32.mxu0 %vm198_vm0, %v19063_v29  ;;  %v19129_v11 = vpop.f32.mrf.mxu1 }
 0x6c2   :  { %v19131_v16 = vpop.f32.mrf.mxu1 }
 0x6c3   :  { %16961 = vmatmul.mubr.msk.f32.vlgmr.msra.gmra.mxu0 %vm198_vm0, %v19075_v44 }
 0x6c4   :  { %v19136_v20 = vpop.f32.mrf.mxu1  ;;  %16963 = vmatprep.mubr.msk.f32.mxu0 %vm198_vm0, %v19081_v45 }
 0x6c6   :  { %v19139_v42 = vpop.f32.mrf.mxu1 }
 0x6c7   :  { %16964 = vmatmul.mubr.msk.f32.gmra.mxu0 %vm198_vm0, %v19086_v46 }
 0x6c8   :  { %16966 = vmatprep.mubr.msk.f32.mxu0 %vm198_vm0, %v19091_v47 }
 0x6ca   :  { %v16945_v22 = vpop.f32.mrf.mxu1 }
 0x6cb   :  { %v3225_v23 = vadd.f32 %v16945_v22, %v15443_v55  ;;  %16967 = vmatmul.mubr.msk.f32.gmra.mxu0 %vm198_vm0, %v19096_v48 }
 0x6cc   :  { %v3219_v24 = vpop.f32.mrf.mxu1  ;;  %16986 = vmatprep.mubr.msk.f32.mxu0 %vm18507_vm1, %v21351_v18 }
 0x6cd   :  { %v3220_v25 = vadd.f32 %v15443_v55, %v3219_v24 }
 0x6ce   :  { %v16948_v26 = vpop.f32.mrf.mxu1 }
 0x6cf   :  { %16970 = vmatpush3.xpose.msk.msra.mxu1 %vm516_vm2, %v3220_v25  ;;  %v3235_v51 = vadd.f32 %v16948_v26, %v15443_v55 }
 0x6d0   :  { %16974 = vmatprep.subr.mxu1 %v21351_v18  ;;  %v3229_v32 = vpop.f32.mrf.mxu1 }
 0x6d1   :  { %16985 = vmatpush3.xpose.msk.msra.mxu0 %vm516_vm2, %v3235_v51  ;;  %v3230_v38 = vadd.f32 %v15443_v55, %v3229_v32 }
 0x6d2   :  { %16994 = vmatprep.subr.mxu0 %v21351_v18  ;;  %v16951_v1 = vpop.f32.mrf.mxu1 }
 0x6d3   :  { %v3245_v36 = vadd.f32 %v16951_v1, %v15443_v55 }
 0x6d4   :  { %v3239_v8 = vpop.f32.mrf.mxu1 }
 0x6d5   :  { %v3240_v30 = vadd.f32 %v15443_v55, %v3239_v8 }
 0x769   :  { %v19159_v27 = vpop.f32.mrf.mxu0 }
 0x76b   :  { %v19161_v9 = vpop.f32.mrf.mxu0 }
 0x76f   :  { %v19163_v10 = vpop.f32.mrf.mxu0 }
 0x771   :  { %v19165_v12 = vpop.f32.mrf.mxu0 }
 0x773   :  { %v19167_v31 = vpop.f32.mrf.mxu0 }
 0x775   :  { %v19169_v7 = vpop.f32.mrf.mxu0 }
 0x777   :  { %v16928_v33 = vpop.f32.mrf.mxu0 }
 0x778   :  { %v3122_v40 = vadd.f32 %v16928_v33, %v15435_v14 }
 0x779   :  { %v3116_v34 = vpop.f32.mrf.mxu0 }
 0x77a   :  { %v3117_v52 = vadd.f32 %v15435_v14, %v3116_v34 }
 0x77b   :  { %v16931_v35 = vpop.f32.mrf.mxu0 }
 0x77c   :  { %v3132_v37 = vadd.f32 %v16931_v35, %v15435_v14  ;;  %16972 = vmatmul.mubr.msk.f32.vlgmr.msra.gmra.mxu1 %vm516_vm2, %v3117_v52 }
 0x77d   :  { %16975 = vmatpush3.xpose.msk.msra.mxu1 %vm516_vm2, %v3225_v23  ;;  %v3126_v39 = vpop.f32.mrf.mxu0  ;;  %16976 = vmatprep.mubr.msk.f32.mxu1 %vm18507_vm1, %v21351_v18 }
 0x77e   :  { %16987 = vmatmul.mubr.msk.f32.vlgmr.msra.gmra.mxu0 %vm516_vm2, %v3132_v37  ;;  %16979 = vmatprep.subr.mxu1 %v21351_v18  ;;  %v3127_v28 = vadd.f32 %v15435_v14, %v3126_v39 }
 0x77f   :  { %v16934_v13 = vpop.f32.mrf.mxu0  ;;  %16995 = vmatpush3.xpose.msk.msra.mxu0 %vm516_vm2, %v3245_v36  ;;  %16996 = vmatprep.mubr.msk.f32.mxu0 %vm18507_vm1, %v21351_v18 }
 0x780   :  { %16977 = vmatmul.mubr.msk.f32.vlgmr.msra.gmra.mxu1 %vm516_vm2, %v3122_v40  ;;  %v3142_v15 = vadd.f32 %v16934_v13, %v15435_v14  ;;  %17004 = vmatprep.subr.mxu0 %v21351_v18 }
 0x781   :  { %16980 = vmatpush3.xpose.msk.msra.mxu1 %vm516_vm2, %v3230_v38  ;;  %16981 = vmatprep.mubr.msk.f32.mxu1 %vm18507_vm1, %v21351_v18  ;;  %v3136_v41 = vpop.f32.mrf.mxu0 }
 0x782   :  { %16989 = vmatprep.subr.mxu1 %v21351_v18  ;;  %16997 = vmatmul.mubr.msk.f32.vlgmr.msra.gmra.mxu0 %vm516_vm2, %v3142_v15  ;;  %v3137_v43 = vadd.f32 %v15435_v14, %v3136_v41 }
 0x783   :  { %17006 = vmatprep.mubr.msk.f32.mxu0 %vm18507_vm1, %v21351_v18  ;;  %v16962_v50 = vpop.f32.mrf.mxu0 }
 0x784   :  { %16982 = vmatmul.mubr.msk.f32.vlgmr.msra.gmra.mxu1 %vm516_vm2, %v3127_v28  ;;  %v3328_v53 = vadd.f32 %v16962_v50, %v19199_v49 }
 0x785   :  { %16990 = vmatpush3.xpose.msk.msra.mxu1 %vm516_vm2, %v3240_v30  ;;  %16991 = vmatprep.mubr.msk.f32.mxu1 %vm18507_vm1, %v21351_v18  ;;  %v3322_v56 = vpop.f32.mrf.mxu0 }
 0x786   :  { %16999 = vmatprep.subr.mxu1 %v21351_v18  ;;  %v3323_v57 = vadd.f32 %v19199_v49, %v3322_v56  ;;  %17005 = vmatpush3.msra.mxu0 %v3328_v53 }
 0x787   :  { %v16965_v58 = vpop.f32.mrf.mxu0  ;;  %17014 = vmatprep.subr.mxu0 %v21351_v18 }
 0x788   :  { %16992 = vmatmul.mubr.msk.f32.vlgmr.msra.gmra.mxu1 %vm516_vm2, %v3137_v43  ;;  %v19205_v59 = vadd.f32 %v16965_v58, %v19199_v49 }
 0x789   :  { %17001 = vmatprep.mubr.msk.f32.mxu1 %vm18507_vm1, %v21351_v18  ;;  %17000 = vmatpush3.msra.mxu1 %v3323_v57  ;;  %v19207_v60 = vpop.f32.mrf.mxu0 }
 0x78a   :  { %17009 = vmatprep.subr.mxu1 %v21351_v18 }
 0x78b   :  { %v16968_v61 = vpop.f32.mrf.mxu0 }
 0x78c   :  { %v19211_v62 = vadd.f32 %v16968_v61, %v19199_v49 }
 0x78d   :  { %v19213_v63 = vpop.f32.mrf.mxu0 }
 0x83c   :  { %v3423_v0 = vpop.f32.mrf.mxu1 }
 0x83d   :  { %v3807_v19 = vmul.f32 0.14433756, %v3423_v0 }
 0x83e   :  { %v16973_v2 = vpop.f32.mrf.mxu1  ;;  %v3651_v3 = vpop.f32.mrf.mxu0 }
 0x83f   :  { %v3810_v4 = vmul.f32 0.14433756, %v3651_v3  ;;  %v3813_v32 = vsel %vm979_vm3, %v3807_v19, -inf }
 0x840   :  { %v3499_v54 = vpop.f32.mrf.mxu1  ;;  %v16988_v17 = vpop.f32.mrf.mxu0 }
 0x841   :  { %v3808_v21 = vmul.f32 0.14433756, %v3499_v54  ;;  %v3822_v55 = vsel %vm979_vm3, %v3810_v4, -inf }
 0x842   :  { %3823 = vmax.xlane.f32.xlu1 %v3822_v55  ;;  %v16978_v22 = vpop.f32.mrf.mxu1  ;;  %v3803_v23 = vpop.f32.mrf.mxu0 }
 0x843   :  { %v3812_v24 = vmul.f32 0.14433756, %v3803_v23  ;;  %v3816_v25 = vsel %vm979_vm3, %v3808_v21, -inf }
 0x844   :  { %3817 = vmax.xlane.f32.xlu0 %v3816_v25  ;;  %v3575_v26 = vpop.f32.mrf.mxu1  ;;  %v16998_v51 = vpop.f32.mrf.mxu0 }
 0x845   :  { %v3828_v33 = vsel %vm979_vm3, %v3812_v24, -inf  ;;  %v3809_v14 = vmul.f32 0.14433756, %v3575_v26 }
 0x846   :  { %3814 = vmax.xlane.f32.xlu1 %v3813_v32  ;;  %v16983_v1 = vpop.f32.mrf.mxu1 }
 0x847   :  { %v3819_v36 = vsel %vm979_vm3, %v3809_v14, -inf }
 0x848   :  { %3829 = vmax.xlane.f32.xlu0 %v3828_v33  ;;  %v3727_v34 = vpop.f32.mrf.mxu1 }
 0x849   :  { %v3811_v52 = vmul.f32 0.14433756, %v3727_v34 }
 0x84a   :  { %v16993_v35 = vpop.f32.mrf.mxu1 }
 0x84b   :  { %v3825_v37 = vsel %vm979_vm3, %v3811_v52, -inf }
 0x84c   :  { %3820 = vmax.xlane.f32.xlu0 %v3819_v36  ;;  %3826 = vmax.xlane.f32.xlu1 %v3825_v37 }
 0x8cb   :  { %v3824_v38 = vpop.xlane.xlu1 %3823 }
 0x8cc   :  { %v3834_v39 = vsub.f32 %v3810_v4, %v3824_v38 }
 0x8cd   :  { %v3818_v40 = vpop.xlane.xlu0 %3817 }
 0x8ce   :  { %v3843_v8 = vmul.f32 1.442695, %v3834_v39  ;;  %v3832_v13 = vsub.f32 %v3808_v21, %v3818_v40 }
 0x8cf   :  { %v3815_v28 = vpop.xlane.xlu1 %3814 }
 0x8d0   :  { %18190 = vpow2.f32 %v3843_v8  ;;  %v3839_v15 = vmul.f32 1.442695, %v3832_v13  ;;  %v3831_v30 = vsub.f32 %v3807_v19, %v3815_v28  ;;  %v3333_v8 = vadd.f32 %v19199_v49, %v19207_v60  ;;  %v15491_v28 = vld [vmem:[%s18535_s17 + $0x78] sm:$0xff] }
 0x8d1   :  { %v3830_v41 = vpop.xlane.xlu0 %3829 }
 0x8d2   :  { %18192 = vpow2.f32 %v3839_v15  ;;  %v3837_v43 = vmul.f32 1.442695, %v3831_v30  ;;  %v3836_v50 = vsub.f32 %v3812_v24, %v3830_v41  ;;  %v3343_v30 = vadd.f32 %v19199_v49, %v19213_v63  ;;  %v15490_v41 = vld [vmem:[%s18535_s17 + $0x70] sm:$0xff]  ;;  %v15433_v49 = vld [vmem:[%s18565_s14 + $0x88] sm:$0xff]  ;;  %v15488_v63 = vld [vmem:[%s18535_s17 + $0x60] sm:$0xff] }
 0x8d4   :  { %18194 = vpow2.f32 %v3837_v43  ;;  %v3847_v53 = vmul.f32 1.442695, %v3836_v50  ;;  %v15432_v50 = vld [vmem:[%s18565_s14 + $0x80] sm:$0xff] }
 0x8d5   :  { %v3821_v56 = vpop.xlane.xlu0 %3820  ;;  %v3827_v57 = vpop.xlane.xlu1 %3826 }
 0x8d6   :  { %18196 = vpow2.f32 %v3847_v53  ;;  %v3833_v58 = vsub.f32 %v3809_v14, %v3821_v56  ;;  %v3835_v61 = vsub.f32 %v3811_v52, %v3827_v57  ;;  %v15495_v53 = vld [vmem:[%s18545_s25 + $0x78] sm:$0xff]  ;;  %v15494_v56 = vld [vmem:[%s18545_s25 + $0x70] sm:$0xff] }
 0x8d7   :  { %v15431_v57 = vld [vmem:[%s18565_s14 + $0x78] sm:$0xff] }
 0x8d8   :  { %v3841_v0 = vmul.f32 1.442695, %v3833_v58  ;;  %v3845_v2 = vmul.f32 1.442695, %v3835_v61  ;;  %v15493_v58 = vld [vmem:[%s18545_s25 + $0x68] sm:$0xff]  ;;  %v15492_v61 = vld [vmem:[%s18545_s25 + $0x60] sm:$0xff] }
 0x8d9   :  { %s21378_s25 = sld [smem:[#allocation8_spill]] }
 0x8da   :  { %18198 = vpow2.f32 %v3841_v0  ;;  %v15430_v0 = vld [vmem:[%s18565_s14 + $0x70] sm:$0xff] }
 0x8db   :  { %18200 = vpow2.f32 %v3845_v2  ;;  %v15429_v2 = vld [vmem:[%s18565_s14 + $0x68] sm:$0xff] }
 0x8dd   :  { %v18191_v3 = vpop.eup %18190 }
 0x8de   :  { %v3858_v4 = vsel %vm979_vm3, %v18191_v3, 0.0 }
 0x8df   :  { %v18193_v54 = vpop.eup %18192  ;;  %3859 = vadd.xlane.f32.xlu1 %v3858_v4  ;;  %v15499_v4 = vld [vmem:[%s18555_s3 + $0x78] sm:$0xff] }
 0x8e0   :  { %v3852_v17 = vsel %vm979_vm3, %v18193_v54, 0.0 }
 0x8e1   :  { %v18195_v19 = vpop.eup %18194  ;;  %3853 = vadd.xlane.f32.xlu0 %v3852_v17 }
 0x8e2   :  { %v3849_v21 = vsel %vm979_vm3, %v18195_v19, 0.0 }
 0x8e3   :  { %v18197_v55 = vpop.eup %18196  ;;  %3850 = vadd.xlane.f32.xlu1 %v3849_v21  ;;  %v15498_v21 = vld [vmem:[%s18555_s3 + $0x70] sm:$0xff] }
 0x8e4   :  { %v3864_v22 = vsel %vm979_vm3, %v18197_v55, 0.0 }
 0x8e5   :  { %3865 = vadd.xlane.f32.xlu0 %v3864_v22 }
 0x8e7   :  { %v18199_v23 = vpop.eup %18198 }
 0x8e8   :  { %v18201_v24 = vpop.eup %18200  ;;  %v3855_v25 = vsel %vm979_vm3, %v18199_v23, 0.0 }
 0x8e9   :  { %3856 = vadd.xlane.f32.xlu0 %v3855_v25  ;;  %v3861_v26 = vsel %vm979_vm3, %v18201_v24, 0.0  ;;  %v15496_v25 = vld [vmem:[%s18555_s3 + $0x60] sm:$0xff] }
 0x8ea   :  { %3862 = vadd.xlane.f32.xlu1 %v3861_v26 }
 0x968   :  { %v3860_v51 = vpop.xlane.xlu1 %3859 }
 0x969   :  { %18202 = vrcp.f32 %v3860_v51 }
 0x96a   :  { %v3854_v32 = vpop.xlane.xlu0 %3853 }
 0x96b   :  { %18204 = vrcp.f32 %v3854_v32 }
 0x96c   :  { %v3851_v33 = vpop.xlane.xlu1 %3850 }
 0x96d   :  { %18206 = vrcp.f32 %v3851_v33 }
 0x96e   :  { %v3866_v1 = vpop.xlane.xlu0 %3865 }
 0x96f   :  { %18208 = vrcp.f32 %v3866_v1 }
 0x972   :  { %v3857_v14 = vpop.xlane.xlu0 %3856 }
 0x973   :  { %18210 = vrcp.f32 %v3857_v14  ;;  %v3863_v34 = vpop.xlane.xlu1 %3862 }
 0x974   :  { %18212 = vrcp.f32 %v3863_v34 }
 0x976   :  { %v18203_v52 = vpop.eup %18202 }
 0x977   :  { %v3876_v35 = vmul.f32 %v18203_v52, %v18191_v3  ;;  %v15428_v3 = vld [vmem:[%s18565_s14 + $0x60] sm:$0xff] }
 0x978   :  { %v18205_v36 = vpop.eup %18204 }
 0x979   :  { %v3874_v37 = vmul.f32 %v18205_v36, %v18193_v54  ;;  %15473 = vst.msk [vmem:[%s18695_s12 + $0x78] sm:$0xff] %vm979_vm3, %v3876_v35 }
 0x97a   :  { %v18207_v38 = vpop.eup %18206 }
 0x97b   :  { %15471 = vst.msk [vmem:[%s18695_s12 + $0x68] sm:$0xff] %vm979_vm3, %v3874_v37  ;;  %17007 = vmatmul.mubr.msk.f32.vlgmr.msra.gmra.mxu0 %vm979_vm3, %v3874_v37  ;;  %v3873_v39 = vmul.f32 %v18207_v38, %v18195_v19 }
 0x97c   :  { %v18209_v40 = vpop.eup %18208  ;;  %17015 = vmatpush3.msra.mxu0 %v19205_v59  ;;  %17016 = vmatprep.mubr.msk.f32.mxu0 %vm18507_vm1, %v21351_v18 }
 0x97d   :  { %15470 = vst.msk [vmem:[%s18695_s12 + $0x60] sm:$0xff] %vm979_vm3, %v3873_v39  ;;  %17002 = vmatmul.mubr.msk.f32.vlgmr.msra.gmra.mxu1 %vm979_vm3, %v3873_v39  ;;  %17024 = vmatprep.subr.mxu0 %v21351_v18  ;;  %v3878_v13 = vmul.f32 %v18209_v40, %v18197_v55  ;;  %v15515_v39 = vld [vmem:[%s18550_s29 + $0x3] ss:$0 sm:$0xff]  ;;  %s21379_s29 = sld [smem:[#allocation13_spill]] }
 0x97e   :  { %17010 = vmatpush3.msra.mxu1 %v3333_v8  ;;  %17011 = vmatprep.mubr.msk.f32.mxu1 %vm18507_vm1, %v21351_v18 }
 0x97f   :  { %17017 = vmatmul.mubr.msk.f32.vlgmr.msra.gmra.mxu0 %vm979_vm3, %v3876_v35  ;;  %17019 = vmatprep.subr.mxu1 %v21351_v18  ;;  %15475 = vst.msk [vmem:[%s18695_s12 + $0x88] sm:$0xff] %vm979_vm3, %v3878_v13 }
 0x980   :  { %v18211_v59 = vpop.eup %18210  ;;  %17025 = vmatpush3.msra.mxu0 %v19211_v62  ;;  %17026 = vmatprep.mubr.msk.f32.mxu0 %vm18507_vm1, %v21351_v18  ;;  %v15489_v62 = vld [vmem:[%s18535_s17 + $0x68] sm:$0xff]  ;;  %s21376_s17 = sld [smem:[#allocation10_spill]] }
 0x981   :  { %v18213_v60 = vpop.eup %18212  ;;  %17050 = vmatprep.subr.mxu0 %v15491_v28  ;;  %v3875_v15 = vmul.f32 %v18211_v59, %v18199_v23  ;;  %v15497_v23 = vld [vmem:[%s18555_s3 + $0x68] sm:$0xff]  ;;  %s21390_s3 = sld [smem:[#allocation17_spill]] }
 0x982   :  { %v3877_v43 = vmul.f32 %v18213_v60, %v18201_v24 }
 0x983   :  { %15472 = vst.msk [vmem:[%s18695_s12 + $0x70] sm:$0xff] %vm979_vm3, %v3875_v15  ;;  %17012 = vmatmul.mubr.msk.f32.vlgmr.msra.gmra.mxu1 %vm979_vm3, %v3875_v15  ;;  %17027 = vmatmul.mubr.msk.f32.vlgmr.msra.gmra.mxu0 %vm979_vm3, %v3878_v13 }
 0x984   :  { %17020 = vmatpush3.msra.mxu1 %v3343_v30  ;;  %17051 = vmatpush3.msra.mxu0 %v15491_v28  ;;  %15474 = vst.msk [vmem:[%s18695_s12 + $0x80] sm:$0xff] %vm979_vm3, %v3877_v43 }
 0x985   :  { %17052 = vmatprep.subr.mxu0 %v15490_v41  ;;  %17021 = vmatprep.mubr.msk.f32.mxu1 %vm18507_vm1, %v21351_v18 }
 0x986   :  { %17053 = vmatpush3.msra.mxu0 %v15490_v41  ;;  %17058 = vmatprep.mubr.msk.f32.mxu0 %vm198_vm0, %v19063_v29 }
 0x987   :  { %17054 = vmatprep.subr.mxu0 %v15489_v62  ;;  %17022 = vmatmul.mubr.msk.f32.vlgmr.msra.gmra.mxu1 %vm979_vm3, %v3877_v43 }
 0x988   :  { %17055 = vmatpush3.msra.mxu0 %v15489_v62  ;;  %17029 = vmatprep.subr.mxu1 %v15433_v49 }
 0x989   :  { %17056 = vmatprep.subr.mxu0 %v15488_v63  ;;  %17030 = vmatpush3.msra.mxu1 %v15433_v49 }
 0x98a   :  { %17057 = vmatpush3.msra.mxu0 %v15488_v63  ;;  %17031 = vmatprep.subr.mxu1 %v15432_v50 }
 0x98b   :  { %17059 = vmatmul.mubr.msk.f32.vlgmr.msra.gmra.mxu0 %vm198_vm0, %v19075_v44  ;;  %17067 = vmatprep.subr.mxu0 %v15495_v53 }
 0x98c   :  { %17061 = vmatprep.mubr.msk.f32.mxu0 %vm198_vm0, %v19081_v45  ;;  %17068 = vmatpush3.msra.mxu0 %v15495_v53 }
 0x98d   :  { %17069 = vmatprep.subr.mxu0 %v15494_v56  ;;  %17032 = vmatpush3.msra.mxu1 %v15432_v50  ;;  %v2997_v50 = vadd.f32 %v19125_v5, %v19159_v27  ;;  %v19378_v27 = vld [vmem:[%s18560_s8 + $0x3] ss:$0 sm:$0xff]  ;;  %s21391_s8 = sld [smem:[#allocation19_spill]] }
 0x98e   :  { %17070 = vmatpush3.msra.mxu0 %v15494_v56  ;;  %17033 = vmatprep.subr.mxu1 %v15431_v57 }
 0x98f   :  { %17062 = vmatmul.mubr.msk.f32.gmra.mxu0 %vm198_vm0, %v19086_v46  ;;  %17071 = vmatprep.subr.mxu0 %v15493_v58 }
 0x990   :  { %17064 = vmatprep.mubr.msk.f32.mxu0 %vm198_vm0, %v19091_v47  ;;  %17072 = vmatpush3.msra.mxu0 %v15493_v58  ;;  %v3007_v58 = vadd.f32 %v19129_v11, %v19163_v10 }
 0x991   :  { %17073 = vmatprep.subr.mxu0 %v15492_v61  ;;  %17034 = vmatpush3.msra.mxu1 %v15431_v57 }
 0x992   :  { %17074 = vmatpush3.msra.mxu0 %v15492_v61  ;;  %17035 = vmatprep.subr.mxu1 %v15430_v0 }
 0x993   :  { %17065 = vmatmul.mubr.msk.f32.gmra.mxu0 %vm198_vm0, %v19096_v48  ;;  %17036 = vmatpush3.msra.mxu1 %v15430_v0 }
 0x994   :  { %17075 = vmatprep.mubr.msk.f32.mxu0 %vm198_vm0, %v19063_v29  ;;  %17101 = vmatprep.subr.mxu0 %v21351_v18 }
 0x995   :  { %17037 = vmatprep.subr.mxu1 %v15429_v2 }
 0x996   :  { %17038 = vmatpush3.msra.mxu1 %v15429_v2 }
 0x997   :  { %17076 = vmatmul.mubr.msk.f32.vlgmr.msra.gmra.mxu0 %vm198_vm0, %v19075_v44  ;;  %17039 = vmatprep.subr.mxu1 %v15428_v3 }
 0x998   :  { %17078 = vmatprep.mubr.msk.f32.mxu0 %vm198_vm0, %v19081_v45  ;;  %17040 = vmatpush3.msra.mxu1 %v15428_v3  ;;  %v3017_v3 = vadd.f32 %v19136_v20, %v19167_v31 }
 0x999   :  { %17084 = vmatprep.subr.mxu1 %v15499_v4 }
 0x99b   :  { %17079 = vmatmul.mubr.msk.f32.gmra.mxu0 %vm198_vm0, %v19086_v46 }
 0x99c   :  { %17081 = vmatprep.mubr.msk.f32.mxu0 %vm198_vm0, %v19091_v47 }
 0x99f   :  { %17082 = vmatmul.mubr.msk.f32.gmra.mxu0 %vm198_vm0, %v19096_v48 }
 0x9a0   :  { %17103 = vmatprep.mubr.msk.f32.mxu0 %vm18507_vm1, %v21351_v18 }
 0xa3b   :  { %v4028_v54 = vpop.f32.mrf.mxu0 }
 0xa3d   :  { %v3955_v17 = vpop.f32.mrf.mxu1  ;;  %v17008_v19 = vpop.f32.mrf.mxu0 }
 0xa3e   :  { %17041 = vmatprep.mubr.msk.f32.mxu1 %vm516_vm2, %v3955_v17 }
 0xa3f   :  { %v17003_v55 = vpop.f32.mrf.mxu1  ;;  %v4174_v22 = vpop.f32.mrf.mxu0  ;;  %17042 = vmatmul.mubr.msk.f32.vlgmr.msra.gmra.mxu1 %vm516_vm2, %v4028_v54 }
 0xa40   :  { %17085 = vmatpush3.msra.mxu1 %v15499_v4 }
 0xa41   :  { %v17018_v24 = vpop.f32.mrf.mxu0  ;;  %17086 = vmatprep.subr.mxu1 %v15498_v21 }
 0xa42   :  { %17087 = vmatpush3.msra.mxu1 %v15498_v21 }
 0xa43   :  { %v4101_v26 = vpop.f32.mrf.mxu1  ;;  %v4320_v51 = vpop.f32.mrf.mxu0  ;;  %17088 = vmatprep.subr.mxu1 %v15497_v23 }
 0xa44   :  { %17044 = vmatprep.mubr.msk.f32.mxu1 %vm516_vm2, %v4101_v26  ;;  %17089 = vmatpush3.msra.mxu1 %v15497_v23 }
 0xa45   :  { %v17013_v32 = vpop.f32.mrf.mxu1  ;;  %v17028_v33 = vpop.f32.mrf.mxu0  ;;  %17045 = vmatmul.mubr.msk.f32.gmra.mxu1 %vm516_vm2, %v4174_v22  ;;  %17090 = vmatprep.subr.mxu1 %v15496_v25 }
 0xa46   :  { %17091 = vmatpush3.msra.mxu1 %v15496_v25 }
 0xa47   :  { %v4247_v1 = vpop.f32.mrf.mxu1  ;;  %17106 = vmatprep.subr.mxu1 %v21351_v18 }
 0xa48   :  { %17047 = vmatprep.mubr.msk.f32.mxu1 %vm516_vm2, %v4247_v1 }
 0xa49   :  { %v17023_v14 = vpop.f32.mrf.mxu1  ;;  %17048 = vmatmul.mubr.msk.f32.gmra.mxu1 %vm516_vm2, %v4320_v51 }
 0xa4a   :  { %17092 = vmatprep.mubr.msk.f32.mxu1 %vm198_vm0, %v19063_v29 }
 0xa4b   :  { %v17060_v34 = vpop.f32.mrf.mxu0 }
 0xa4d   :  { %v4539_v52 = vpop.f32.mrf.mxu0  ;;  %17093 = vmatmul.mubr.msk.f32.vlgmr.msra.gmra.mxu1 %vm198_vm0, %v19075_v44  ;;  %v15507_v44 = vld [vmem:[%s18540_s21 + $0x3] ss:$0 sm:$0xff]  ;;  %s21377_s21 = sld [smem:[#allocation12_spill]] }
 0xa4e   :  { %17095 = vmatprep.mubr.msk.f32.mxu1 %vm198_vm0, %v19081_v45  ;;  %v4540_v28 = vadd.f32 %v15507_v44, %v4539_v52 }
 0xa4f   :  { %v17063_v35 = vpop.f32.mrf.mxu0 }
 0xa50   :  { %v4555_v60 = vadd.f32 %v17063_v35, %v15507_v44 }
 0xa51   :  { %v4549_v36 = vpop.f32.mrf.mxu0  ;;  %17096 = vmatmul.mubr.msk.f32.gmra.mxu1 %vm198_vm0, %v19086_v46  ;;  %v4545_v46 = vadd.f32 %v17060_v34, %v15507_v44 }
 0xa52   :  { %17098 = vmatprep.mubr.msk.f32.mxu1 %vm198_vm0, %v19091_v47  ;;  %v4550_v41 = vadd.f32 %v15507_v44, %v4549_v36 }
 0xa53   :  { %v17066_v37 = vpop.f32.mrf.mxu0 }
 0xa54   :  { %v4565_v49 = vadd.f32 %v17066_v37, %v15507_v44 }
 0xa55   :  { %v4559_v38 = vpop.f32.mrf.mxu0  ;;  %17099 = vmatmul.mubr.msk.f32.gmra.mxu1 %vm198_vm0, %v19096_v48 }
 0xa56   :  { %17108 = vmatprep.mubr.msk.f32.mxu1 %vm18507_vm1, %v21351_v18  ;;  %v4560_v63 = vadd.f32 %v15507_v44, %v4559_v38 }
 0xa57   :  { %v17077_v29 = vpop.f32.mrf.mxu0 }
 0xa58   :  { %v4648_v45 = vadd.f32 %v17077_v29, %v15515_v39 }
 0xa59   :  { %v4642_v40 = vpop.f32.mrf.mxu0 }
 0xa5a   :  { %v4643_v8 = vadd.f32 %v15515_v39, %v4642_v40  ;;  %17107 = vmatpush3.xpose.msk.msra.mxu1 %vm516_vm2, %v4648_v45 }
 0xa5b   :  { %v17080_v13 = vpop.f32.mrf.mxu0  ;;  %17116 = vmatprep.subr.mxu1 %v21351_v18 }
 0xa5c   :  { %v4658_v47 = vadd.f32 %v17080_v13, %v15515_v39  ;;  %17102 = vmatpush3.xpose.msk.msra.mxu0 %vm516_vm2, %v4643_v8 }
 0xa5d   :  { %v4652_v59 = vpop.f32.mrf.mxu0  ;;  %17109 = vmatmul.mubr.msk.f32.vlgmr.msra.gmra.mxu1 %vm516_vm2, %v4545_v46  ;;  %17111 = vmatprep.subr.mxu0 %v21351_v18 }
 0xa5e   :  { %v4653_v48 = vadd.f32 %v15515_v39, %v4652_v59  ;;  %17117 = vmatpush3.xpose.msk.msra.mxu1 %vm516_vm2, %v4658_v47  ;;  %17118 = vmatprep.mubr.msk.f32.mxu1 %vm18507_vm1, %v21351_v18 }
 0xa5f   :  { %v17083_v15 = vpop.f32.mrf.mxu0  ;;  %17104 = vmatmul.mubr.msk.f32.vlgmr.msra.gmra.mxu0 %vm516_vm2, %v4540_v28  ;;  %17126 = vmatprep.subr.mxu1 %v21351_v18 }
 0xa60   :  { %v4668_v30 = vadd.f32 %v17083_v15, %v15515_v39  ;;  %17112 = vmatpush3.xpose.msk.msra.mxu0 %vm516_vm2, %v4653_v48  ;;  %17113 = vmatprep.mubr.msk.f32.mxu0 %vm18507_vm1, %v21351_v18 }
 0xa61   :  { %v4662_v43 = vpop.f32.mrf.mxu0  ;;  %17119 = vmatmul.mubr.msk.f32.vlgmr.msra.gmra.mxu1 %vm516_vm2, %v4555_v60  ;;  %17121 = vmatprep.subr.mxu0 %v21351_v18 }
 0xa62   :  { %v4663_v62 = vadd.f32 %v15515_v39, %v4662_v43  ;;  %17127 = vmatpush3.xpose.msk.msra.mxu1 %vm516_vm2, %v4668_v30  ;;  %17128 = vmatprep.mubr.msk.f32.mxu1 %vm18507_vm1, %v21351_v18 }
 0xa63   :  { %17114 = vmatmul.mubr.msk.f32.vlgmr.msra.gmra.mxu0 %vm516_vm2, %v4550_v41  ;;  %17136 = vmatprep.subr.mxu1 %v21351_v18 }
 0xa64   :  { %17122 = vmatpush3.xpose.msk.msra.mxu0 %vm516_vm2, %v4663_v62  ;;  %17123 = vmatprep.mubr.msk.f32.mxu0 %vm18507_vm1, %v21351_v18 }
 0xa65   :  { %17129 = vmatmul.mubr.msk.f32.vlgmr.msra.gmra.mxu1 %vm516_vm2, %v4565_v49  ;;  %17131 = vmatprep.subr.mxu0 %v21351_v18 }
 0xa66   :  { %17138 = vmatprep.mubr.msk.f32.mxu1 %vm18507_vm1, %v21351_v18 }
 0xa67   :  { %17124 = vmatmul.mubr.msk.f32.vlgmr.msra.gmra.mxu0 %vm516_vm2, %v4560_v63 }
 0xa68   :  { %17133 = vmatprep.mubr.msk.f32.mxu0 %vm18507_vm1, %v21351_v18 }
 0xaff   :  { %v17043_v53 = vpop.f32.mrf.mxu1 }
 0xb00   :  { %v19361_v56 = vadd.f32 %v17043_v53, %v2997_v50 }
 0xb01   :  { %v19363_v57 = vpop.f32.mrf.mxu1 }
 0xb05   :  { %v17046_v61 = vpop.f32.mrf.mxu1 }
 0xb06   :  { %v19367_v0 = vadd.f32 %v17046_v61, %v3007_v58 }
 0xb07   :  { %v19369_v2 = vpop.f32.mrf.mxu1 }
 0xb09   :  { %v17049_v4 = vpop.f32.mrf.mxu1 }
 0xb0a   :  { %v19373_v54 = vadd.f32 %v17049_v4, %v3017_v3 }
 0xb0b   :  { %v19375_v5 = vpop.f32.mrf.mxu1 }
 0xb0d   :  { %v17094_v17 = vpop.f32.mrf.mxu1 }
 0xb0e   :  { %v4751_v19 = vadd.f32 %v17094_v17, %v19378_v27 }
 0xb0f   :  { %v4745_v21 = vpop.f32.mrf.mxu1 }
 0xb10   :  { %v4746_v11 = vadd.f32 %v19378_v27, %v4745_v21  ;;  %17137 = vmatpush3.msra.mxu1 %v4751_v19 }
 0xb11   :  { %v17097_v10 = vpop.f32.mrf.mxu1  ;;  %17146 = vmatprep.subr.mxu1 %v21351_v18 }
 0xb12   :  { %v19384_v55 = vadd.f32 %v17097_v10, %v19378_v27  ;;  %17132 = vmatpush3.msra.mxu0 %v4746_v11 }
 0xb13   :  { %v19386_v20 = vpop.f32.mrf.mxu1  ;;  %17141 = vmatprep.subr.mxu0 %v21351_v18 }
 0xb15   :  { %v17100_v31 = vpop.f32.mrf.mxu1 }
 0xb16   :  { %v19390_v22 = vadd.f32 %v17100_v31, %v19378_v27 }
 0xb17   :  { %v19392_v23 = vpop.f32.mrf.mxu1 }
 0xb1d   :  { %v4922_v24 = vpop.f32.mrf.mxu1 }
 0xb1e   :  { %v5231_v25 = vmul.f32 0.14433756, %v4922_v24 }
 0xb1f   :  { %v4846_v26 = vpop.f32.mrf.mxu0  ;;  %v17110_v51 = vpop.f32.mrf.mxu1 }
 0xb20   :  { %v5230_v32 = vmul.f32 0.14433756, %v4846_v26  ;;  %v5239_v33 = vsel %vm979_vm3, %v5231_v25, -inf }
 0xb21   :  { %v17105_v1 = vpop.f32.mrf.mxu0  ;;  %5240 = vmax.xlane.f32.xlu1 %v5239_v33  ;;  %v5074_v14 = vpop.f32.mrf.mxu1 }
 0xb22   :  { %v5233_v34 = vmul.f32 0.14433756, %v5074_v14  ;;  %v5236_v52 = vsel %vm979_vm3, %v5230_v32, -inf }
 0xb23   :  { %5237 = vmax.xlane.f32.xlu0 %v5236_v52  ;;  %v4998_v35 = vpop.f32.mrf.mxu0  ;;  %v17120_v36 = vpop.f32.mrf.mxu1 }
 0xb24   :  { %v5232_v37 = vmul.f32 0.14433756, %v4998_v35  ;;  %v5245_v38 = vsel %vm979_vm3, %v5233_v34, -inf }
 0xb25   :  { %v17115_v39 = vpop.f32.mrf.mxu0  ;;  %5246 = vmax.xlane.f32.xlu1 %v5245_v38  ;;  %v5226_v29 = vpop.f32.mrf.mxu1 }
 0xb26   :  { %v5235_v44 = vmul.f32 0.14433756, %v5226_v29  ;;  %v5242_v45 = vsel %vm979_vm3, %v5232_v37, -inf }
 0xb27   :  { %5243 = vmax.xlane.f32.xlu0 %v5242_v45  ;;  %v5150_v40 = vpop.f32.mrf.mxu0  ;;  %v17130_v8 = vpop.f32.mrf.mxu1 }
 0xb28   :  { %v5234_v46 = vmul.f32 0.14433756, %v5150_v40  ;;  %v5251_v13 = vsel %vm979_vm3, %v5235_v44, -inf  ;;  %v4756_v8 = vadd.f32 %v19378_v27, %v19386_v20 }
 0xb29   :  { %v17125_v47 = vpop.f32.mrf.mxu0  ;;  %5252 = vmax.xlane.f32.xlu1 %v5251_v13 }
 0xb2a   :  { %v5248_v28 = vsel %vm979_vm3, %v5234_v46, -inf  ;;  %v4766_v47 = vadd.f32 %v19378_v27, %v19392_v23  ;;  %v15503_v23 = vld [vmem:[%s18565_s14 + $0xa8] sm:$0xff] }
 0xb2b   :  { %5249 = vmax.xlane.f32.xlu0 %v5248_v28  ;;  %v15505_v28 = vld [vmem:[%s18565_s14 + $0xb8] sm:$0xff] }
 0xbaa   :  { %v5241_v59 = vpop.xlane.xlu1 %5240 }
 0xbab   :  { %v5255_v48 = vsub.f32 %v5231_v25, %v5241_v59 }
 0xbac   :  { %v5238_v60 = vpop.xlane.xlu0 %5237 }
 0xbad   :  { %v5262_v15 = vmul.f32 1.442695, %v5255_v48  ;;  %v5254_v30 = vsub.f32 %v5230_v32, %v5238_v60  ;;  %v15502_v60 = vld [vmem:[%s18565_s14 + $0xa0] sm:$0xff] }
 0xbae   :  { %v5247_v41 = vpop.xlane.xlu1 %5246 }
 0xbaf   :  { %18214 = vpow2.f32 %v5262_v15  ;;  %v5260_v43 = vmul.f32 1.442695, %v5254_v30  ;;  %v5257_v62 = vsub.f32 %v5233_v34, %v5247_v41  ;;  %v15501_v15 = vld [vmem:[%s18565_s14 + $0x98] sm:$0xff]  ;;  %v15500_v30 = vld [vmem:[%s18565_s14 + $0x90] sm:$0xff] }
 0xbb0   :  { %v5244_v49 = vpop.xlane.xlu0 %5243 }
 0xbb1   :  { %18216 = vpow2.f32 %v5260_v43  ;;  %v5266_v63 = vmul.f32 1.442695, %v5257_v62  ;;  %v5256_v50 = vsub.f32 %v5232_v37, %v5244_v49 }
 0xbb2   :  { %v5253_v53 = vpop.xlane.xlu1 %5252 }
 0xbb3   :  { %18218 = vpow2.f32 %v5266_v63  ;;  %v5264_v58 = vmul.f32 1.442695, %v5256_v50  ;;  %v5259_v61 = vsub.f32 %v5235_v44, %v5253_v53 }
 0xbb4   :  { %v5250_v3 = vpop.xlane.xlu0 %5249 }
 0xbb5   :  { %18220 = vpow2.f32 %v5264_v58  ;;  %v5270_v4 = vmul.f32 1.442695, %v5259_v61  ;;  %v5258_v17 = vsub.f32 %v5234_v46, %v5250_v3 }
 0xbb7   :  { %18222 = vpow2.f32 %v5270_v4  ;;  %v5268_v19 = vmul.f32 1.442695, %v5258_v17 }
 0xbb9   :  { %18224 = vpow2.f32 %v5268_v19  ;;  %v2992_v19 = vadd.f32 %v19127_v6, %v19161_v9  ;;  %v18400_v6 = vld [vmem:[%s18520_s5 + $0x8] sm:$0xff] }
 0xbbc   :  { %v18215_v21 = vpop.eup %18214 }
 0xbbd   :  { %v5275_v11 = vsel %vm979_vm3, %v18215_v21, 0.0 }
 0xbbe   :  { %v18217_v10 = vpop.eup %18216  ;;  %5276 = vadd.xlane.f32.xlu1 %v5275_v11  ;;  %v15560_v11 = vld [vmem:[%s18570_s19] ss:$0 sm:$0xff]  ;;  %s21393_s19 = sld [smem:[#allocation16_spill]] }
 0xbbf   :  { %v5272_v31 = vsel %vm979_vm3, %v18217_v10, 0.0 }
 0xbc0   :  { %v18219_v24 = vpop.eup %18218  ;;  %5273 = vadd.xlane.f32.xlu0 %v5272_v31 }
 0xbc1   :  { %v5281_v25 = vsel %vm979_vm3, %v18219_v24, 0.0 }
 0xbc2   :  { %v18221_v26 = vpop.eup %18220  ;;  %5282 = vadd.xlane.f32.xlu1 %v5281_v25  ;;  %v3002_v25 = vadd.f32 %v19131_v16, %v19165_v12  ;;  %v18401_v16 = vld [vmem:[%s18520_s5] sm:$0xff] }
 0xbc3   :  { %v5278_v51 = vsel %vm979_vm3, %v18221_v26, 0.0 }
 0xbc4   :  { %v18223_v32 = vpop.eup %18222  ;;  %5279 = vadd.xlane.f32.xlu0 %v5278_v51 }
 0xbc5   :  { %v5287_v33 = vsel %vm979_vm3, %v18223_v32, 0.0 }
 0xbc6   :  { %v18225_v1 = vpop.eup %18224  ;;  %5288 = vadd.xlane.f32.xlu1 %v5287_v33  ;;  %v4439_v33 = vadd.f32 %v19369_v2, %v3002_v25 }
 0xbc7   :  { %v5284_v14 = vsel %vm979_vm3, %v18225_v1, 0.0 }
 0xbc8   :  { %5285 = vadd.xlane.f32.xlu0 %v5284_v14 }
 0xc47   :  { %v5277_v34 = vpop.xlane.xlu1 %5276 }
 0xc48   :  { %18226 = vrcp.f32 %v5277_v34 }
 0xc49   :  { %v5274_v52 = vpop.xlane.xlu0 %5273 }
 0xc4a   :  { %18228 = vrcp.f32 %v5274_v52 }
 0xc4b   :  { %v5283_v35 = vpop.xlane.xlu1 %5282 }
 0xc4c   :  { %18230 = vrcp.f32 %v5283_v35 }
 0xc4d   :  { %v5280_v36 = vpop.xlane.xlu0 %5279 }
 0xc4e   :  { %18232 = vrcp.f32 %v5280_v36 }
 0xc4f   :  { %v5289_v37 = vpop.xlane.xlu1 %5288 }
 0xc50   :  { %18234 = vrcp.f32 %v5289_v37 }
 0xc51   :  { %v5286_v38 = vpop.xlane.xlu0 %5285 }
 0xc52   :  { %18236 = vrcp.f32 %v5286_v38 }
 0xc55   :  { %v18227_v39 = vpop.eup %18226 }
 0xc56   :  { %v5297_v29 = vmul.f32 %v18227_v39, %v18215_v21  ;;  %v18402_v39 = vld [vmem:[%s18520_s5 + $0x18] sm:$0xff] }
 0xc57   :  { %v18229_v44 = vpop.eup %18228 }
 0xc58   :  { %15543 = vst.msk [vmem:[%s18695_s12 + $0x98] sm:$0xff] %vm979_vm3, %v5297_v29  ;;  %17139 = vmatmul.mubr.msk.f32.vlgmr.msra.gmra.mxu1 %vm979_vm3, %v5297_v29  ;;  %v5296_v45 = vmul.f32 %v18229_v44, %v18217_v10  ;;  %v4437_v10 = vadd.f32 %v19363_v57, %v2992_v19  ;;  %v3012_v57 = vadd.f32 %v19139_v42, %v19169_v7 }
 0xc59   :  { %v18231_v40 = vpop.eup %18230  ;;  %17147 = vmatpush3.msra.mxu1 %v19384_v55  ;;  %17148 = vmatprep.mubr.msk.f32.mxu1 %vm18507_vm1, %v21351_v18 }
 0xc5a   :  { %15542 = vst.msk [vmem:[%s18695_s12 + $0x90] sm:$0xff] %vm979_vm3, %v5296_v45  ;;  %17134 = vmatmul.mubr.msk.f32.vlgmr.msra.gmra.mxu0 %vm979_vm3, %v5296_v45  ;;  %17156 = vmatprep.subr.mxu1 %v21351_v18  ;;  %v5299_v46 = vmul.f32 %v18231_v40, %v18219_v24  ;;  %v4441_v36 = vadd.f32 %v19375_v5, %v3012_v57  ;;  %v18403_v40 = vld [vmem:[%s18520_s5 + $0x10] sm:$0xff]  ;;  %v19513_v57 = vld [vmem:[%s18525_s9] sm:$0xff] }
 0xc5b   :  { %v18233_v13 = vpop.eup %18232  ;;  %17142 = vmatpush3.msra.mxu0 %v4756_v8  ;;  %17143 = vmatprep.mubr.msk.f32.mxu0 %vm18507_vm1, %v21351_v18 }
 0xc5c   :  { %15545 = vst.msk [vmem:[%s18695_s12 + $0xa8] sm:$0xff] %vm979_vm3, %v5299_v46  ;;  %17149 = vmatmul.mubr.msk.f32.vlgmr.msra.gmra.mxu1 %vm979_vm3, %v5299_v46  ;;  %17151 = vmatprep.subr.mxu0 %v21351_v18  ;;  %v5298_v55 = vmul.f32 %v18233_v13, %v18221_v26  ;;  %v18404_v13 = vld [vmem:[%s18520_s5 + $0x28] sm:$0xff] }
 0xc5d   :  { %v18235_v20 = vpop.eup %18234  ;;  %17157 = vmatpush3.msra.mxu1 %v19390_v22  ;;  %17158 = vmatprep.mubr.msk.f32.mxu1 %vm18507_vm1, %v21351_v18  ;;  %v15504_v22 = vld [vmem:[%s18565_s14 + $0xb0] sm:$0xff]  ;;  %s21392_s14 = sld [smem:[#allocation15_spill]] }
 0xc5e   :  { %15544 = vst.msk [vmem:[%s18695_s12 + $0xa0] sm:$0xff] %vm979_vm3, %v5298_v55  ;;  %17144 = vmatmul.mubr.msk.f32.vlgmr.msra.gmra.mxu0 %vm979_vm3, %v5298_v55  ;;  %v5301_v59 = vmul.f32 %v18235_v20, %v18223_v32  ;;  %v18405_v20 = vld [vmem:[%s18520_s5 + $0x20] sm:$0xff]  ;;  %s21375_s5 = sld [smem:[#allocation11_spill]] }
 0xc5f   :  { %v18237_v48 = vpop.eup %18236  ;;  %17152 = vmatpush3.msra.mxu0 %v4766_v47  ;;  %17153 = vmatprep.mubr.msk.f32.mxu0 %vm18507_vm1, %v21351_v18 }
 0xc60   :  { %15547 = vst.msk [vmem:[%s18695_s12 + $0xb8] sm:$0xff] %vm979_vm3, %v5301_v59  ;;  %17159 = vmatmul.mubr.msk.f32.vlgmr.msra.gmra.mxu1 %vm979_vm3, %v5301_v59  ;;  %v5300_v27 = vmul.f32 %v18237_v48, %v18225_v1  ;;  %17161 = vmatprep.subr.mxu0 %v15505_v28 }
 0xc62   :  { %15546 = vst.msk [vmem:[%s18695_s12 + $0xb0] sm:$0xff] %vm979_vm3, %v5300_v27  ;;  %17154 = vmatmul.mubr.msk.f32.vlgmr.msra.gmra.mxu0 %vm979_vm3, %v5300_v27  ;;  %s21396_s12 = sld [smem:[#allocation18_spill]] }
 0xc63   :  { %17162 = vmatpush3.msra.mxu0 %v15505_v28 }
 0xc64   :  { %17163 = vmatprep.subr.mxu0 %v15504_v22 }
 0xc65   :  { %17164 = vmatpush3.msra.mxu0 %v15504_v22 }
 0xc66   :  { %17165 = vmatprep.subr.mxu0 %v15503_v23 }
 0xc67   :  { %17166 = vmatpush3.msra.mxu0 %v15503_v23 }
 0xc68   :  { %17167 = vmatprep.subr.mxu0 %v15502_v60 }
 0xc69   :  { %17168 = vmatpush3.msra.mxu0 %v15502_v60 }
 0xc6a   :  { %17169 = vmatprep.subr.mxu0 %v15501_v15 }
 0xc6b   :  { %17170 = vmatpush3.msra.mxu0 %v15501_v15 }
 0xc6c   :  { %17171 = vmatprep.subr.mxu0 %v15500_v30 }
 0xc6d   :  { %17172 = vmatpush3.msra.mxu0 %v15500_v30 }
 0xd18   :  { %v5451_v41 = vpop.f32.mrf.mxu1 }
 0xd1a   :  { %v5378_v43 = vpop.f32.mrf.mxu0  ;;  %v17140_v62 = vpop.f32.mrf.mxu1 }
 0xd1b   :  { %17173 = vmatprep.mubr.msk.f32.mxu0 %vm516_vm2, %v5378_v43 }
 0xd1c   :  { %v17135_v49 = vpop.f32.mrf.mxu0  ;;  %v5597_v63 = vpop.f32.mrf.mxu1  ;;  %17174 = vmatmul.mubr.msk.f32.vlgmr.msra.gmra.mxu0 %vm516_vm2, %v5451_v41 }
 0xd1e   :  { %v5524_v50 = vpop.f32.mrf.mxu0  ;;  %v17150_v53 = vpop.f32.mrf.mxu1 }
 0xd1f   :  { %17176 = vmatprep.mubr.msk.f32.mxu0 %vm516_vm2, %v5524_v50 }
 0xd20   :  { %v17145_v58 = vpop.f32.mrf.mxu0  ;;  %v5743_v61 = vpop.f32.mrf.mxu1  ;;  %17177 = vmatmul.mubr.msk.f32.gmra.mxu0 %vm516_vm2, %v5597_v63 }
 0xd22   :  { %v5670_v3 = vpop.f32.mrf.mxu0  ;;  %v17160_v4 = vpop.f32.mrf.mxu1 }
 0xd23   :  { %17179 = vmatprep.mubr.msk.f32.mxu0 %vm516_vm2, %v5670_v3 }
 0xd24   :  { %v17155_v17 = vpop.f32.mrf.mxu0  ;;  %17180 = vmatmul.mubr.msk.f32.gmra.mxu0 %vm516_vm2, %v5743_v61 }
 0xd25   :  { %17224 = vmatprep.mubr.msk.f32.mxu0 %vm198_vm0, %v19513_v57 }
 0xddc   :  { %v17175_v21 = vpop.f32.mrf.mxu0 }
 0xddd   :  { %v5861_v31 = vadd.f32 %v17175_v21, %v19361_v56 }
 0xdde   :  { %v5831_v24 = vpop.f32.mrf.mxu0 }
 0xddf   :  { %v5874_v26 = vadd.f32 %v15560_v11, %v5861_v31  ;;  %v5860_v51 = vadd.f32 %v5831_v24, %v4437_v10 }
 0xde0   :  { %v17178_v32 = vpop.f32.mrf.mxu0 }
 0xde1   :  { %v5873_v1 = vadd.f32 %v15560_v11, %v5860_v51  ;;  %v5863_v14 = vadd.f32 %v17178_v32, %v19367_v0  ;;  %v5880_v9 = vadd.f32 %v18400_v6, %v5874_v26  ;;  %v5990_v6 = vld [vmem:[%s18585_s6] sm:$0xff] }
 0xde2   :  { %v5841_v56 = vpop.f32.mrf.mxu0 }
 0xde3   :  { %v5876_v34 = vadd.f32 %v15560_v11, %v5863_v14  ;;  %v5862_v52 = vadd.f32 %v5841_v56, %v4439_v33  ;;  %v5888_v35 = vsel %vm198_vm0, %v5880_v9, 0.0  ;;  %v5879_v12 = vadd.f32 %v18401_v16, %v5873_v1  ;;  %v5993_v33 = vld [vmem:[%s18585_s6 + $0x18] sm:$0xff]  ;;  %v5992_v1 = vld [vmem:[%s18585_s6 + $0x10] sm:$0xff]  ;;  %v5991_v14 = vld [vmem:[%s18585_s6 + $0x8] sm:$0xff] }
 0xde4   :  { %5889 = vadd.xlane.f32.xlu1 %v5888_v35  ;;  %v17181_v2 = vpop.f32.mrf.mxu0  ;;  %17182 = vmatprep.subr.mxu1 %v5993_v33  ;;  %v19518_v56 = vld [vmem:[%s18605_s4 + $0x18] sm:$0xff] }
 0xde5   :  { %v5875_v0 = vadd.f32 %v15560_v11, %v5862_v52  ;;  %v5865_v37 = vadd.f32 %v17181_v2, %v19373_v54  ;;  %v5885_v38 = vsel %vm198_vm0, %v5879_v12, 0.0  ;;  %v5882_v42 = vadd.f32 %v18402_v39, %v5876_v34  ;;  %17183 = vmatpush3.msra.mxu1 %v5993_v33  ;;  %17216 = vmatprep.subr.mxu0 %v19518_v56 }
 0xde6   :  { %5886 = vadd.xlane.f32.xlu0 %v5885_v38  ;;  %v5851_v7 = vpop.f32.mrf.mxu0  ;;  %17184 = vmatprep.subr.mxu1 %v5992_v1 }
 0xde7   :  { %v5878_v29 = vadd.f32 %v15560_v11, %v5865_v37  ;;  %v5864_v44 = vadd.f32 %v5851_v7, %v4441_v36  ;;  %v5894_v45 = vsel %vm198_vm0, %v5882_v42, 0.0  ;;  %v5881_v8 = vadd.f32 %v18403_v40, %v5875_v0  ;;  %17185 = vmatpush3.msra.mxu1 %v5992_v1  ;;  %17217 = vmatpush3.msra.mxu0 %v19518_v56 }
 0xde8   :  { %5895 = vadd.xlane.f32.xlu1 %v5894_v45  ;;  %17186 = vmatprep.subr.mxu1 %v5991_v14 }
 0xde9   :  { %v5877_v5 = vadd.f32 %v15560_v11, %v5864_v44  ;;  %v5891_v46 = vsel %vm198_vm0, %v5881_v8, 0.0  ;;  %v5884_v55 = vadd.f32 %v18404_v13, %v5878_v29  ;;  %17187 = vmatpush3.msra.mxu1 %v5991_v14 }
 0xdea   :  { %5892 = vadd.xlane.f32.xlu0 %v5891_v46  ;;  %17188 = vmatprep.subr.mxu1 %v5990_v6  ;;  %v15561_v46 = vld [vmem:[%s18575_s24] ss:$0 sm:$0xff]  ;;  %s21394_s24 = sld [smem:[#allocation23_spill]] }
 0xdeb   :  { %v5900_v54 = vsel %vm198_vm0, %v5884_v55, 0.0  ;;  %v5883_v47 = vadd.f32 %v18405_v20, %v5877_v5  ;;  %17189 = vmatpush3.msra.mxu1 %v5990_v6 }
 0xdec   :  { %5901 = vadd.xlane.f32.xlu1 %v5900_v54 }
 0xded   :  { %v5897_v28 = vsel %vm198_vm0, %v5883_v47, 0.0 }
 0xdee   :  { %5898 = vadd.xlane.f32.xlu0 %v5897_v28 }
 0xe6d   :  { %v5890_v59 = vpop.xlane.xlu1 %5889 }
 0xe6e   :  { %v5905_v48 = vmul.f32 0.03125, %v5890_v59  ;;  %v15562_v59 = vld [vmem:[%s21374_s0] ss:$0 sm:$0xff] }
 0xe6f   :  { %v5887_v27 = vpop.xlane.xlu0 %5886 }
 0xe70   :  { %v19477_v22 = vsub.f32 %v5880_v9, %v5905_v48  ;;  %v5904_v23 = vmul.f32 0.03125, %v5887_v27  ;;  %v5997_v9 = vld [vmem:[%s18595_s20 + $0x18] sm:$0xff] }
 0xe71   :  { %v5896_v60 = vpop.xlane.xlu1 %5895  ;;  %17199 = vmatprep.subr.mxu1 %v5997_v9 }
 0xe72   :  { %v19479_v15 = vsub.f32 %v5879_v12, %v5904_v23  ;;  %v5907_v30 = vmul.f32 0.03125, %v5896_v60  ;;  %v5917_v41 = vmul.f32 %v19477_v22, %v19477_v22 }
 0xe73   :  { %v5893_v43 = vpop.xlane.xlu0 %5892 }
 0xe74   :  { %v19483_v62 = vsub.f32 %v5882_v42, %v5907_v30  ;;  %v5906_v49 = vmul.f32 0.03125, %v5893_v43  ;;  %v5925_v63 = vsel %vm198_vm0, %v5917_v41, 0.0  ;;  %v5916_v50 = vmul.f32 %v19479_v15, %v19479_v15 }
 0xe75   :  { %5926 = vadd.xlane.f32.xlu1 %v5925_v63  ;;  %v5902_v53 = vpop.xlane.xlu1 %5901 }
 0xe76   :  { %v19488_v58 = vsub.f32 %v5881_v8, %v5906_v49  ;;  %v5909_v61 = vmul.f32 0.03125, %v5902_v53  ;;  %v5922_v3 = vsel %vm198_vm0, %v5916_v50, 0.0  ;;  %v5919_v4 = vmul.f32 %v19483_v62, %v19483_v62  ;;  %v5996_v49 = vld [vmem:[%s18595_s20 + $0x10] sm:$0xff]  ;;  %v5995_v53 = vld [vmem:[%s18595_s20 + $0x8] sm:$0xff] }
 0xe77   :  { %5923 = vadd.xlane.f32.xlu0 %v5922_v3  ;;  %v5899_v17 = vpop.xlane.xlu0 %5898 }
 0xe78   :  { %v19493_v19 = vsub.f32 %v5884_v55, %v5909_v61  ;;  %v5908_v21 = vmul.f32 0.03125, %v5899_v17  ;;  %v5931_v11 = vsel %vm198_vm0, %v5919_v4, 0.0  ;;  %v5918_v10 = vmul.f32 %v19488_v58, %v19488_v58  ;;  %v5994_v4 = vld [vmem:[%s18595_s20] sm:$0xff] }
 0xe79   :  { %5932 = vadd.xlane.f32.xlu1 %v5931_v11  ;;  %v19564_v11 = vld [vmem:[%s18525_s9 + $0x10] sm:$0xff] }
 0xe7a   :  { %v19498_v31 = vsub.f32 %v5883_v47, %v5908_v21  ;;  %v5928_v24 = vsel %vm198_vm0, %v5918_v10, 0.0  ;;  %v5921_v25 = vmul.f32 %v19493_v19, %v19493_v19  ;;  %v19561_v21 = vld [vmem:[%s18525_s9 + $0x8] sm:$0xff]  ;;  %v19571_v10 = vld [vmem:[%s18525_s9 + $0x18] sm:$0xff] }
 0xe7b   :  { %5929 = vadd.xlane.f32.xlu0 %v5928_v24  ;;  %v19581_v24 = vld [vmem:[%s18525_s9 + $0x28] sm:$0xff] }
 0xe7c   :  { %v5937_v26 = vsel %vm198_vm0, %v5921_v25, 0.0  ;;  %v5920_v51 = vmul.f32 %v19498_v31, %v19498_v31  ;;  %v19588_v25 = vld [vmem:[%s18605_s4 + $0x10] sm:$0xff] }
 0xe7d   :  { %5938 = vadd.xlane.f32.xlu1 %v5937_v26  ;;  %17218 = vmatprep.subr.mxu0 %v19588_v25  ;;  %v19593_v26 = vld [vmem:[%s18605_s4 + $0x8] sm:$0xff] }
 0xe7e   :  { %v5934_v32 = vsel %vm198_vm0, %v5920_v51, 0.0  ;;  %17219 = vmatpush3.msra.mxu0 %v19588_v25  ;;  %v19598_v51 = vld [vmem:[%s18605_s4] sm:$0xff] }
 0xe7f   :  { %5935 = vadd.xlane.f32.xlu0 %v5934_v32  ;;  %17220 = vmatprep.subr.mxu0 %v19593_v26 }
 0xe80   :  { %17221 = vmatpush3.msra.mxu0 %v19593_v26 }
 0xe81   :  { %17222 = vmatprep.subr.mxu0 %v19598_v51 }
 0xe82   :  { %17223 = vmatpush3.msra.mxu0 %v19598_v51 }
 0xe83   :  { %17225 = vmatmul.mubr.msk.f32.vlgmr.msra.gmra.mxu0 %vm198_vm0, %v19561_v21  ;;  %17238 = vmatprep.subr.mxu0 %v21351_v18 }
 0xe84   :  { %17227 = vmatprep.mubr.msk.f32.mxu0 %vm198_vm0, %v19564_v11 }
 0xe87   :  { %17228 = vmatmul.mubr.msk.f32.gmra.mxu0 %vm198_vm0, %v19571_v10 }
 0xefe   :  { %v5927_v34 = vpop.xlane.xlu1 %5926 }
 0xeff   :  { %v5941_v52 = vmul.f32 0.03125, %v5927_v34  ;;  %v15570_v34 = vld [vmem:[%s21375_s5] ss:$0 sm:$0xff] }
 0xf00   :  { %v5924_v35 = vpop.xlane.xlu0 %5923 }
 0xf01   :  { %v5947_v16 = vadd.f32 1e-05, %v5941_v52  ;;  %v5940_v12 = vmul.f32 0.03125, %v5924_v35  ;;  %v15563_v35 = vld [vmem:[%s21376_s17] ss:$0 sm:$0xff] }
 0xf02   :  { %v5933_v36 = vpop.xlane.xlu1 %5932 }
 0xf03   :  { %18238 = vrsqrt.f32 %v5947_v16  ;;  %v5946_v2 = vadd.f32 1e-05, %v5940_v12  ;;  %v5943_v0 = vmul.f32 0.03125, %v5933_v36 }
 0xf04   :  { %v5930_v37 = vpop.xlane.xlu0 %5929 }
 0xf05   :  { %18240 = vrsqrt.f32 %v5946_v2  ;;  %v5949_v38 = vadd.f32 1e-05, %v5943_v0  ;;  %v5942_v39 = vmul.f32 0.03125, %v5930_v37 }
 0xf06   :  { %v5939_v42 = vpop.xlane.xlu1 %5938 }
 0xf07   :  { %18242 = vrsqrt.f32 %v5949_v38  ;;  %v5948_v7 = vadd.f32 1e-05, %v5942_v39  ;;  %v5945_v29 = vmul.f32 0.03125, %v5939_v42 }
 0xf08   :  { %v5936_v44 = vpop.xlane.xlu0 %5935 }
 0xf09   :  { %18244 = vrsqrt.f32 %v5948_v7  ;;  %v5951_v45 = vadd.f32 1e-05, %v5945_v29  ;;  %v5944_v40 = vmul.f32 0.03125, %v5936_v44 }
 0xf0b   :  { %18246 = vrsqrt.f32 %v5951_v45  ;;  %v5950_v8 = vadd.f32 1e-05, %v5944_v40 }
 0xf0d   :  { %18248 = vrsqrt.f32 %v5950_v8 }
 0xf10   :  { %v18239_v5 = vpop.eup %18238 }
 0xf11   :  { %v5959_v13 = vmul.f32 %v18239_v5, %v19477_v22 }
 0xf12   :  { %v18241_v55 = vpop.eup %18240 }
 0xf13   :  { %v5958_v54 = vmul.f32 %v18241_v55, %v19479_v15  ;;  %v5972_v47 = vmul.f32 %v15561_v46, %v5959_v13  ;;  %v19648_v13 = vld [vmem:[%s21377_s21] ss:$0 sm:$0xff] }
 0xf14   :  { %v18243_v20 = vpop.eup %18242 }
 0xf15   :  { %v5971_v28 = vmul.f32 %v15561_v46, %v5958_v54  ;;  %v5961_v48 = vmul.f32 %v18243_v20, %v19483_v62  ;;  %v19530_v41 = vadd.f32 %v15562_v59, %v5972_v47 }
 0xf16   :  { %v18245_v27 = vpop.eup %18244 }
 0xf17   :  { %v19527_v23 = vadd.f32 %v15562_v59, %v5971_v28  ;;  %v5960_v60 = vmul.f32 %v18245_v27, %v19488_v58  ;;  %v5974_v22 = vmul.f32 %v15561_v46, %v5961_v48 }
 0xf18   :  { %v18247_v30 = vpop.eup %18246 }
 0xf19   :  { %v5963_v43 = vmul.f32 %v18247_v30, %v19493_v19  ;;  %17190 = vmatprep.mubr.msk.f32.mxu1 %vm198_vm0, %v19527_v23  ;;  %v5973_v15 = vmul.f32 %v15561_v46, %v5960_v60  ;;  %v19542_v58 = vadd.f32 %v15562_v59, %v5974_v22 }
 0xf1a   :  { %v18249_v63 = vpop.eup %18248  ;;  %17191 = vmatmul.mubr.msk.f32.vlgmr.msra.gmra.mxu1 %vm198_vm0, %v19530_v41 }
 0xf1b   :  { %v5962_v62 = vmul.f32 %v18249_v63, %v19498_v31  ;;  %v19539_v50 = vadd.f32 %v15562_v59, %v5973_v15  ;;  %17200 = vmatpush3.msra.mxu1 %v5997_v9  ;;  %v5976_v61 = vmul.f32 %v15561_v46, %v5963_v43  ;;  %v19574_v31 = vld [vmem:[%s18525_s9 + $0x20] sm:$0xff] }
 0xf1c   :  { %17201 = vmatprep.subr.mxu1 %v5996_v49  ;;  %17230 = vmatprep.mubr.msk.f32.mxu0 %vm198_vm0, %v19574_v31 }
 0xf1d   :  { %17193 = vmatprep.mubr.msk.f32.mxu1 %vm198_vm0, %v19539_v50  ;;  %v5975_v3 = vmul.f32 %v15561_v46, %v5962_v62  ;;  %17202 = vmatpush3.msra.mxu1 %v5996_v49  ;;  %v19551_v19 = vadd.f32 %v15562_v59, %v5976_v61 }
 0xf1e   :  { %17194 = vmatmul.mubr.msk.f32.gmra.mxu1 %vm198_vm0, %v19542_v58  ;;  %17203 = vmatprep.subr.mxu1 %v5995_v53 }
 0xf1f   :  { %v19549_v17 = vadd.f32 %v15562_v59, %v5975_v3  ;;  %17204 = vmatpush3.msra.mxu1 %v5995_v53  ;;  %17231 = vmatmul.mubr.msk.f32.gmra.mxu0 %vm198_vm0, %v19581_v24 }
 0xf20   :  { %17205 = vmatprep.subr.mxu1 %v5994_v4  ;;  %17240 = vmatprep.mubr.msk.f32.mxu0 %vm18507_vm1, %v21351_v18 }
 0xf21   :  { %17196 = vmatprep.mubr.msk.f32.mxu1 %vm198_vm0, %v19549_v17  ;;  %17206 = vmatpush3.msra.mxu1 %v5994_v4 }
 0xf22   :  { %17197 = vmatmul.mubr.msk.f32.gmra.mxu1 %vm198_vm0, %v19551_v19  ;;  %17233 = vmatprep.subr.mxu1 %v21351_v18 }
 0xf23   :  { %17207 = vmatprep.mubr.msk.f32.mxu1 %vm198_vm0, %v19513_v57 }
 0xf26   :  { %17208 = vmatmul.mubr.msk.f32.vlgmr.msra.gmra.mxu1 %vm198_vm0, %v19561_v21 }
 0xf27   :  { %17210 = vmatprep.mubr.msk.f32.mxu1 %vm198_vm0, %v19564_v11 }
 0xf2a   :  { %17211 = vmatmul.mubr.msk.f32.gmra.mxu1 %vm198_vm0, %v19571_v10 }
 0xf2b   :  { %17213 = vmatprep.mubr.msk.f32.mxu1 %vm198_vm0, %v19574_v31 }
 0xf2e   :  { %17214 = vmatmul.mubr.msk.f32.gmra.mxu1 %vm198_vm0, %v19581_v24 }
 0xf2f   :  { %17235 = vmatprep.mubr.msk.f32.mxu1 %vm18507_vm1, %v21351_v18 }
 0xf43   :  { %v17226_v55 = vpop.f32.mrf.mxu0 }
 0xf44   :  { %v6327_v54 = vadd.f32 %v17226_v55, %v19648_v13 }
 0xf45   :  { %v6321_v20 = vpop.f32.mrf.mxu0 }
 0xf46   :  { %v6322_v47 = vadd.f32 %v19648_v13, %v6321_v20 }
 0xf47   :  { %v19654_v28 = vpop.f32.mrf.mxu0 }
 0xf49   :  { %v19656_v59 = vpop.f32.mrf.mxu0 }
 0xfda   :  { %v17192_v32 = vpop.f32.mrf.mxu1 }
 0xfdb   :  { %v6105_v2 = vadd.f32 %v17192_v32, %v15563_v35 }
 0xfdc   :  { %v6099_v33 = vpop.f32.mrf.mxu1 }
 0xfdd   :  { %v6100_v38 = vadd.f32 %v15563_v35, %v6099_v33 }
 0xfde   :  { %v17195_v1 = vpop.f32.mrf.mxu1 }
 0xfdf   :  { %v6115_v7 = vadd.f32 %v17195_v1, %v15563_v35  ;;  %v19658_v48 = vpop.f32.mrf.mxu0 }
 0xfe0   :  { %v6109_v14 = vpop.f32.mrf.mxu1 }
 0xfe1   :  { %v6110_v45 = vadd.f32 %v15563_v35, %v6109_v14  ;;  %v19660_v27 = vpop.f32.mrf.mxu0 }
 0xfe2   :  { %v17198_v6 = vpop.f32.mrf.mxu1 }
 0xfe3   :  { %v6125_v5 = vadd.f32 %v17198_v6, %v15563_v35 }
 0xfe4   :  { %v6119_v9 = vpop.f32.mrf.mxu1 }
 0xfe5   :  { %v6120_v46 = vadd.f32 %v15563_v35, %v6119_v9 }
 0xfe6   :  { %v17209_v52 = vpop.f32.mrf.mxu1 }
 0xfe7   :  { %v6225_v16 = vadd.f32 %v17209_v52, %v15570_v34 }
 0xfe8   :  { %v6219_v12 = vpop.f32.mrf.mxu1 }
 0xfe9   :  { %v6220_v36 = vadd.f32 %v15570_v34, %v6219_v12  ;;  %17239 = vmatpush3.xpose.msk.msra.mxu0 %vm516_vm2, %v6225_v16 }
 0xfea   :  { %v17212_v0 = vpop.f32.mrf.mxu1  ;;  %17248 = vmatprep.subr.mxu0 %v21351_v18 }
 0xfeb   :  { %v6235_v37 = vadd.f32 %v17212_v0, %v15570_v34  ;;  %17234 = vmatpush3.xpose.msk.msra.mxu1 %vm516_vm2, %v6220_v36 }
 0xfec   :  { %v6229_v39 = vpop.f32.mrf.mxu1  ;;  %17241 = vmatmul.mubr.msk.f32.vlgmr.msra.gmra.mxu0 %vm516_vm2, %v6105_v2  ;;  %17243 = vmatprep.subr.mxu1 %v21351_v18 }
 0xfed   :  { %v6230_v42 = vadd.f32 %v15570_v34, %v6229_v39  ;;  %17249 = vmatpush3.xpose.msk.msra.mxu0 %vm516_vm2, %v6235_v37  ;;  %17250 = vmatprep.mubr.msk.f32.mxu0 %vm18507_vm1, %v21351_v18 }
 0xfee   :  { %v17215_v29 = vpop.f32.mrf.mxu1  ;;  %17236 = vmatmul.mubr.msk.f32.vlgmr.msra.gmra.mxu1 %vm516_vm2, %v6100_v38  ;;  %17258 = vmatprep.subr.mxu0 %v21351_v18 }
 0xfef   :  { %v6245_v44 = vadd.f32 %v17215_v29, %v15570_v34  ;;  %17244 = vmatpush3.xpose.msk.msra.mxu1 %vm516_vm2, %v6230_v42  ;;  %17245 = vmatprep.mubr.msk.f32.mxu1 %vm18507_vm1, %v21351_v18 }
 0xff0   :  { %v6239_v40 = vpop.f32.mrf.mxu1  ;;  %17251 = vmatmul.mubr.msk.f32.vlgmr.msra.gmra.mxu0 %vm516_vm2, %v6115_v7  ;;  %17253 = vmatprep.subr.mxu1 %v21351_v18 }
 0xff1   :  { %v6240_v8 = vadd.f32 %v15570_v34, %v6239_v40  ;;  %17259 = vmatpush3.xpose.msk.msra.mxu0 %vm516_vm2, %v6245_v44  ;;  %17260 = vmatprep.mubr.msk.f32.mxu0 %vm18507_vm1, %v21351_v18 }
 0xff2   :  { %17246 = vmatmul.mubr.msk.f32.vlgmr.msra.gmra.mxu1 %vm516_vm2, %v6110_v45  ;;  %17268 = vmatprep.subr.mxu0 %v21351_v18 }
 0xff3   :  { %17254 = vmatpush3.xpose.msk.msra.mxu1 %vm516_vm2, %v6240_v8  ;;  %17255 = vmatprep.mubr.msk.f32.mxu1 %vm18507_vm1, %v21351_v18 }
 0xff4   :  { %17261 = vmatmul.mubr.msk.f32.vlgmr.msra.gmra.mxu0 %vm516_vm2, %v6125_v5  ;;  %17263 = vmatprep.subr.mxu1 %v21351_v18 }
 0xff5   :  { %17270 = vmatprep.mubr.msk.f32.mxu0 %vm18507_vm1, %v21351_v18  ;;  %17269 = vmatpush3.msra.mxu0 %v6327_v54 }
 0xff6   :  { %17256 = vmatmul.mubr.msk.f32.vlgmr.msra.gmra.mxu1 %vm516_vm2, %v6120_v46  ;;  %17278 = vmatprep.subr.mxu0 %v21351_v18 }
 0xff7   :  { %17265 = vmatprep.mubr.msk.f32.mxu1 %vm18507_vm1, %v21351_v18  ;;  %17264 = vmatpush3.msra.mxu1 %v6322_v47 }
 0xff8   :  { %17273 = vmatprep.subr.mxu1 %v21351_v18 }
0x10ac   :  { %v6498_v60 = vpop.f32.mrf.mxu0 }
0x10ad   :  { %v6807_v7 = vmul.f32 0.14433756, %v6498_v60 }
0x10ae   :  { %v6422_v30 = vpop.f32.mrf.mxu1  ;;  %v17242_v22 = vpop.f32.mrf.mxu0 }
0x10af   :  { %v6806_v43 = vmul.f32 0.14433756, %v6422_v30  ;;  %v6815_v8 = vsel %vm979_vm3, %v6807_v7, -inf }
0x10b0   :  { %v17237_v15 = vpop.f32.mrf.mxu1  ;;  %v6650_v49 = vpop.f32.mrf.mxu0 }
0x10b1   :  { %v6812_v63 = vsel %vm979_vm3, %v6806_v43, -inf  ;;  %v6809_v45 = vmul.f32 0.14433756, %v6650_v49 }
0x10b2   :  { %v17252_v62 = vpop.f32.mrf.mxu0  ;;  %6813 = vmax.xlane.f32.xlu0 %v6812_v63  ;;  %v6574_v53 = vpop.f32.mrf.mxu1 }
0x10b3   :  { %v6808_v61 = vmul.f32 0.14433756, %v6574_v53  ;;  %v6821_v55 = vsel %vm979_vm3, %v6809_v45, -inf }
0x10b4   :  { %v17247_v3 = vpop.f32.mrf.mxu1  ;;  %v6802_v4 = vpop.f32.mrf.mxu0 }
0x10b5   :  { %v6818_v32 = vsel %vm979_vm3, %v6808_v61, -inf  ;;  %v6811_v40 = vmul.f32 0.14433756, %v6802_v4  ;;  %v6332_v4 = vadd.f32 %v19648_v13, %v19656_v59  ;;  %v6342_v59 = vadd.f32 %v19648_v13, %v19660_v27 }
0x10b6   :  { %v17262_v33 = vpop.f32.mrf.mxu0  ;;  %6819 = vmax.xlane.f32.xlu1 %v6818_v32  ;;  %v6726_v1 = vpop.f32.mrf.mxu1 }
0x10b7   :  { %v6810_v14 = vmul.f32 0.14433756, %v6726_v1  ;;  %v6827_v46 = vsel %vm979_vm3, %v6811_v40, -inf }
0x10b8   :  { %v17257_v6 = vpop.f32.mrf.mxu1 }
0x10b9   :  { %v6824_v9 = vsel %vm979_vm3, %v6810_v14, -inf  ;;  %v19698_v6 = vld [vmem:[%s21378_s25] sm:$0xff] }
0x10ba   :  { %6825 = vmax.xlane.f32.xlu0 %v6824_v9 }
0x113b   :  { %v6814_v34 = vpop.xlane.xlu0 %6813 }
0x113c   :  { %v6830_v52 = vsub.f32 %v6806_v43, %v6814_v34 }
0x113e   :  { %v6836_v35 = vmul.f32 1.442695, %v6830_v52  ;;  %v19714_v52 = vld [vmem:[%s21378_s25 + $0x8] sm:$0xff] }
0x113f   :  { %v6820_v16 = vpop.xlane.xlu1 %6819 }
0x1140   :  { %18250 = vpow2.f32 %v6836_v35  ;;  %v6832_v12 = vsub.f32 %v6808_v61, %v6820_v16  ;;  %v19719_v16 = vld [vmem:[%s21378_s25 + $0x10] sm:$0xff] }
0x1142   :  { %v6840_v36 = vmul.f32 1.442695, %v6832_v12 }
0x1143   :  { %v6826_v2 = vpop.xlane.xlu0 %6825 }
0x1144   :  { %18252 = vpow2.f32 %v6840_v36  ;;  %v6834_v0 = vsub.f32 %v6810_v14, %v6826_v2  ;;  %v19730_v36 = vld [vmem:[%s21378_s25 + $0x18] sm:$0xff]  ;;  %v19733_v2 = vld [vmem:[%s21378_s25 + $0x20] sm:$0xff] }
0x1146   :  { %v6844_v37 = vmul.f32 1.442695, %v6834_v0  ;;  %v19741_v0 = vld [vmem:[%s21378_s25 + $0x28] sm:$0xff] }
0x1148   :  { %18254 = vpow2.f32 %v6844_v37  ;;  %v15615_v37 = vld [vmem:[%s18585_s6 + $0x20] sm:$0xff] }
0x114d   :  { %v18251_v38 = vpop.eup %18250 }
0x114e   :  { %v6848_v39 = vsel %vm979_vm3, %v18251_v38, 0.0 }
0x114f   :  { %6849 = vadd.xlane.f32.xlu1 %v6848_v39 }
0x1151   :  { %v18253_v42 = vpop.eup %18252 }
0x1152   :  { %v6854_v29 = vsel %vm979_vm3, %v18253_v42, 0.0 }
0x1153   :  { %6855 = vadd.xlane.f32.xlu0 %v6854_v29 }
0x1155   :  { %v18255_v44 = vpop.eup %18254 }
0x1156   :  { %v6860_v5 = vsel %vm979_vm3, %v18255_v44, 0.0 }
0x1157   :  { %6816 = vmax.xlane.f32.xlu0 %v6815_v8  ;;  %6861 = vadd.xlane.f32.xlu1 %v6860_v5  ;;  %v6347_v5 = vadd.f32 %v19658_v48, %v19648_v13 }
0x115b   :  { %6828 = vmax.xlane.f32.xlu0 %v6827_v46  ;;  %6822 = vmax.xlane.f32.xlu1 %v6821_v55 }
0x11d8   :  { %v6850_v54 = vpop.xlane.xlu1 %6849 }
0x11d9   :  { %18256 = vrcp.f32 %v6850_v54 }
0x11dc   :  { %v6856_v20 = vpop.xlane.xlu0 %6855 }
0x11dd   :  { %18258 = vrcp.f32 %v6856_v20 }
0x11e0   :  { %v6862_v47 = vpop.xlane.xlu1 %6861  ;;  %v6817_v60 = vpop.xlane.xlu0 %6816 }
0x11e1   :  { %18260 = vrcp.f32 %v6862_v47  ;;  %v6831_v30 = vsub.f32 %v6807_v7, %v6817_v60 }
0x11e3   :  { %v6838_v22 = vmul.f32 1.442695, %v6831_v30 }
0x11e4   :  { %v6823_v43 = vpop.xlane.xlu1 %6822  ;;  %v6829_v15 = vpop.xlane.xlu0 %6828 }
0x11e5   :  { %18262 = vpow2.f32 %v6838_v22  ;;  %v6833_v49 = vsub.f32 %v6809_v45, %v6823_v43  ;;  %v6835_v63 = vsub.f32 %v6811_v40, %v6829_v15 }
0x11e6   :  { %v18257_v62 = vpop.eup %18256 }
0x11e7   :  { %v6842_v53 = vmul.f32 1.442695, %v6833_v49  ;;  %v6846_v61 = vmul.f32 1.442695, %v6835_v63  ;;  %v19671_v3 = vmul.f32 %v18257_v62, %v18251_v38 }
0x11e9   :  { %18264 = vpow2.f32 %v6842_v53  ;;  %6878 = vst.msk [vmem:[%s18700_s27] sm:$0xff] %vm979_vm3, %v19671_v3  ;;  %17266 = vmatmul.mubr.msk.f32.vlgmr.msra.gmra.mxu1 %vm979_vm3, %v19671_v3 }
0x11ea   :  { %v18259_v32 = vpop.eup %18258  ;;  %18266 = vpow2.f32 %v6846_v61  ;;  %17274 = vmatpush3.msra.mxu1 %v6332_v4  ;;  %17275 = vmatprep.mubr.msk.f32.mxu1 %vm18507_vm1, %v21351_v18 }
0x11eb   :  { %v19682_v33 = vmul.f32 %v18259_v32, %v18253_v42  ;;  %17283 = vmatprep.subr.mxu1 %v21351_v18  ;;  %v15622_v32 = vld [vmem:[%s18595_s20 + $0x38] sm:$0xff] }
0x11ed   :  { %6880 = vst.msk [vmem:[%s18700_s27 + $0x10] sm:$0xff] %vm979_vm3, %v19682_v33  ;;  %17276 = vmatmul.mubr.msk.f32.vlgmr.msra.gmra.mxu1 %vm979_vm3, %v19682_v33 }
0x11ee   :  { %v18261_v1 = vpop.eup %18260  ;;  %17284 = vmatpush3.msra.mxu1 %v6342_v59  ;;  %17285 = vmatprep.mubr.msk.f32.mxu1 %vm18507_vm1, %v21351_v18  ;;  %v15620_v59 = vld [vmem:[%s18595_s20 + $0x28] sm:$0xff] }
0x11ef   :  { %v19694_v14 = vmul.f32 %v18261_v1, %v18255_v44  ;;  %17293 = vmatprep.subr.mxu1 %v19518_v56  ;;  %v6337_v44 = vadd.f32 %v19654_v28, %v19648_v13  ;;  %v19842_v1 = vld [vmem:[%s18605_s4 + $0x30] sm:$0xff] }
0x11f1   :  { %6882 = vst.msk [vmem:[%s18700_s27 + $0x20] sm:$0xff] %vm979_vm3, %v19694_v14  ;;  %17286 = vmatmul.mubr.msk.f32.vlgmr.msra.gmra.mxu1 %vm979_vm3, %v19694_v14 }
0x11f2   :  { %v18263_v27 = vpop.eup %18262  ;;  %17294 = vmatpush3.msra.mxu1 %v19518_v56  ;;  %17301 = vmatprep.mubr.msk.f32.mxu1 %vm198_vm0, %v19698_v6 }
0x11f3   :  { %17295 = vmatprep.subr.mxu1 %v19588_v25  ;;  %v6851_v9 = vsel %vm979_vm3, %v18263_v27, 0.0 }
0x11f4   :  { %17296 = vmatpush3.msra.mxu1 %v19588_v25  ;;  %6852 = vadd.xlane.f32.xlu1 %v6851_v9  ;;  %v15618_v25 = vld [vmem:[%s18585_s6 + $0x38] sm:$0xff] }
0x11f5   :  { %17297 = vmatprep.subr.mxu1 %v19593_v26 }
0x11f6   :  { %v18265_v34 = vpop.eup %18264  ;;  %17298 = vmatpush3.msra.mxu1 %v19593_v26  ;;  %v15617_v26 = vld [vmem:[%s18585_s6 + $0x30] sm:$0xff] }
0x11f7   :  { %v18267_v56 = vpop.eup %18266  ;;  %17299 = vmatprep.subr.mxu1 %v19598_v51  ;;  %v6857_v35 = vsel %vm979_vm3, %v18265_v34, 0.0 }
0x11f8   :  { %17300 = vmatpush3.msra.mxu1 %v19598_v51  ;;  %6858 = vadd.xlane.f32.xlu0 %v6857_v35  ;;  %v6863_v12 = vsel %vm979_vm3, %v18267_v56, 0.0  ;;  %v15616_v51 = vld [vmem:[%s18585_s6 + $0x28] sm:$0xff] }
0x11f9   :  { %17302 = vmatmul.mubr.msk.f32.vlgmr.msra.gmra.mxu1 %vm198_vm0, %v19714_v52  ;;  %6864 = vadd.xlane.f32.xlu1 %v6863_v12 }
0x11fa   :  { %17304 = vmatprep.mubr.msk.f32.mxu1 %vm198_vm0, %v19719_v16  ;;  %17340 = vmatprep.subr.mxu1 %v15618_v25 }
0x11fb   :  { %17341 = vmatpush3.msra.mxu1 %v15618_v25 }
0x11fc   :  { %17342 = vmatprep.subr.mxu1 %v15617_v26 }
0x11fd   :  { %17305 = vmatmul.mubr.msk.f32.gmra.mxu1 %vm198_vm0, %v19730_v36 }
0x11fe   :  { %17307 = vmatprep.mubr.msk.f32.mxu1 %vm198_vm0, %v19733_v2  ;;  %17343 = vmatpush3.msra.mxu1 %v15617_v26 }
0x11ff   :  { %17344 = vmatprep.subr.mxu1 %v15616_v51 }
0x1200   :  { %17345 = vmatpush3.msra.mxu1 %v15616_v51 }
0x1201   :  { %17308 = vmatmul.mubr.msk.f32.gmra.mxu1 %vm198_vm0, %v19741_v0  ;;  %17346 = vmatprep.subr.mxu1 %v15615_v37 }
0x1202   :  { %17348 = vmatprep.mubr.msk.f32.mxu1 %vm198_vm0, %v19527_v23  ;;  %17347 = vmatpush3.msra.mxu1 %v15615_v37 }
0x1205   :  { %17349 = vmatmul.mubr.msk.f32.vlgmr.msra.gmra.mxu1 %vm198_vm0, %v19530_v41 }
0x1206   :  { %17351 = vmatprep.mubr.msk.f32.mxu1 %vm198_vm0, %v19539_v50 }
0x1209   :  { %17352 = vmatmul.mubr.msk.f32.gmra.mxu1 %vm198_vm0, %v19542_v58 }
0x120a   :  { %17354 = vmatprep.mubr.msk.f32.mxu1 %vm198_vm0, %v19549_v17 }
0x120d   :  { %17355 = vmatmul.mubr.msk.f32.gmra.mxu1 %vm198_vm0, %v19551_v19 }
0x120e   :  { %17382 = vmatprep.mubr.msk.f32.mxu1 %vm198_vm0, %v19513_v57 }
0x127d   :  { %v6853_v38 = vpop.xlane.xlu1 %6852 }
0x127e   :  { %18268 = vrcp.f32 %v6853_v38 }
0x1281   :  { %v6859_v39 = vpop.xlane.xlu0 %6858 }
0x1282   :  { %v6865_v42 = vpop.xlane.xlu1 %6864  ;;  %18270 = vrcp.f32 %v6859_v39 }
0x1283   :  { %18272 = vrcp.f32 %v6865_v42 }
0x128b   :  { %v18269_v7 = vpop.eup %18268 }
0x128c   :  { %v6873_v29 = vmul.f32 %v18269_v7, %v18263_v27  ;;  %v19852_v27 = vld [vmem:[%s18605_s4 + $0x20] sm:$0xff] }
0x128e   :  { %6879 = vst.msk [vmem:[%s18700_s27 + $0x8] sm:$0xff] %vm979_vm3, %v6873_v29  ;;  %17271 = vmatmul.mubr.msk.f32.vlgmr.msra.gmra.mxu0 %vm979_vm3, %v6873_v29 }
0x128f   :  { %v18271_v45 = vpop.eup %18270  ;;  %17279 = vmatpush3.msra.mxu0 %v6337_v44  ;;  %17280 = vmatprep.mubr.msk.f32.mxu0 %vm18507_vm1, %v21351_v18 }
0x1290   :  { %v18273_v40 = vpop.eup %18272  ;;  %v6875_v8 = vmul.f32 %v18271_v45, %v18265_v34  ;;  %17288 = vmatprep.subr.mxu0 %v21351_v18 }
0x1291   :  { %v6877_v46 = vmul.f32 %v18273_v40, %v18267_v56 }
0x1292   :  { %6881 = vst.msk [vmem:[%s18700_s27 + $0x18] sm:$0xff] %vm979_vm3, %v6875_v8  ;;  %17281 = vmatmul.mubr.msk.f32.vlgmr.msra.gmra.mxu0 %vm979_vm3, %v6875_v8 }
0x1293   :  { %6883 = vst.msk [vmem:[%s18700_s27 + $0x28] sm:$0xff] %vm979_vm3, %v6877_v46  ;;  %17289 = vmatpush3.msra.mxu0 %v6347_v5  ;;  %17290 = vmatprep.mubr.msk.f32.mxu0 %vm18507_vm1, %v21351_v18 }
0x1294   :  { %17310 = vmatprep.subr.mxu0 %v21351_v18 }
0x1296   :  { %17291 = vmatmul.mubr.msk.f32.vlgmr.msra.gmra.mxu0 %vm979_vm3, %v6877_v46 }
0x1297   :  { %17312 = vmatprep.mubr.msk.f32.mxu0 %vm18507_vm1, %v21351_v18 }
0x12a9   :  { %v19781_v28 = vpop.f32.mrf.mxu1 }
0x12ab   :  { %v17267_v48 = vpop.f32.mrf.mxu1 }
0x12ad   :  { %v19783_v55 = vpop.f32.mrf.mxu1 }
0x12af   :  { %v17277_v54 = vpop.f32.mrf.mxu1 }
0x12b0   :  { %v15634_v54 = vld [vmem:[%s21376_s17 + $0x1] ss:$0 sm:$0xff] }
0x12b1   :  { %v19785_v20 = vpop.f32.mrf.mxu1 }
0x12b3   :  { %v17287_v47 = vpop.f32.mrf.mxu1 }
0x12b9   :  { %v17303_v60 = vpop.f32.mrf.mxu1 }
0x12ba   :  { %v7419_v15 = vadd.f32 %v17303_v60, %v19648_v13 }
0x12bb   :  { %v7413_v30 = vpop.f32.mrf.mxu1 }
0x12bc   :  { %v7414_v22 = vadd.f32 %v19648_v13, %v7413_v30 }
0x12bd   :  { %v17306_v43 = vpop.f32.mrf.mxu1 }
0x12be   :  { %17311 = vmatpush3.msra.mxu0 %v7414_v22  ;;  %v7429_v53 = vadd.f32 %v17306_v43, %v19648_v13 }
0x12bf   :  { %v7423_v49 = vpop.f32.mrf.mxu1  ;;  %17313 = vmatmul.mubr.msk.f32.vlgmr.msra.gmra.mxu0 %vm979_vm3, %v19671_v3  ;;  %17315 = vmatprep.subr.mxu0 %v21351_v18 }
0x12c0   :  { %v7424_v63 = vadd.f32 %v19648_v13, %v7423_v49  ;;  %17316 = vmatpush3.msra.mxu0 %v7419_v15  ;;  %17317 = vmatprep.mubr.msk.f32.mxu0 %vm18507_vm1, %v21351_v18 }
0x12c1   :  { %17320 = vmatprep.subr.mxu0 %v21351_v18  ;;  %v17309_v62 = vpop.f32.mrf.mxu1 }
0x12c2   :  { %v7439_v4 = vadd.f32 %v17309_v62, %v19648_v13 }
0x12c3   :  { %17318 = vmatmul.mubr.msk.f32.vlgmr.msra.gmra.mxu0 %vm979_vm3, %v6873_v29  ;;  %v7433_v61 = vpop.f32.mrf.mxu1 }
0x12c4   :  { %17321 = vmatpush3.msra.mxu0 %v7424_v63  ;;  %17322 = vmatprep.mubr.msk.f32.mxu0 %vm18507_vm1, %v21351_v18  ;;  %v7434_v3 = vadd.f32 %v19648_v13, %v7433_v61  ;;  %v15619_v13 = vld [vmem:[%s18595_s20 + $0x20] sm:$0xff] }
0x12c5   :  { %17325 = vmatprep.subr.mxu0 %v21351_v18  ;;  %v17350_v7 = vpop.f32.mrf.mxu1 }
0x12c7   :  { %17323 = vmatmul.mubr.msk.f32.vlgmr.msra.gmra.mxu0 %vm979_vm3, %v19682_v33  ;;  %v15621_v33 = vld [vmem:[%s18595_s20 + $0x30] sm:$0xff]  ;;  %v7958_v44 = vpop.f32.mrf.mxu1 }
0x12c8   :  { %17326 = vmatpush3.msra.mxu0 %v7429_v53  ;;  %17327 = vmatprep.mubr.msk.f32.mxu0 %vm18507_vm1, %v21351_v18  ;;  %v7959_v30 = vadd.f32 %v15634_v54, %v7958_v44  ;;  %v7964_v53 = vadd.f32 %v17350_v7, %v15634_v54 }
0x12c9   :  { %17330 = vmatprep.subr.mxu0 %v21351_v18  ;;  %v17353_v40 = vpop.f32.mrf.mxu1 }
0x12ca   :  { %v7974_v15 = vadd.f32 %v17353_v40, %v15634_v54 }
0x12cb   :  { %17328 = vmatmul.mubr.msk.f32.vlgmr.msra.gmra.mxu0 %vm979_vm3, %v6875_v8  ;;  %v15642_v8 = vld [vmem:[%s21375_s5 + $0x1] ss:$0 sm:$0xff]  ;;  %v7968_v47 = vpop.f32.mrf.mxu1 }
0x12cc   :  { %17331 = vmatpush3.msra.mxu0 %v7434_v3  ;;  %17332 = vmatprep.mubr.msk.f32.mxu0 %vm18507_vm1, %v21351_v18 }
0x12cd   :  { %17335 = vmatprep.subr.mxu0 %v21351_v18  ;;  %v17356_v63 = vpop.f32.mrf.mxu1 }
0x12ce   :  { %v7984_v3 = vadd.f32 %v17356_v63, %v15634_v54 }
0x12cf   :  { %17333 = vmatmul.mubr.msk.f32.vlgmr.msra.gmra.mxu0 %vm979_vm3, %v19694_v14  ;;  %v19847_v14 = vld [vmem:[%s18605_s4 + $0x28] sm:$0xff] }
0x12d0   :  { %17336 = vmatpush3.msra.mxu0 %v7439_v4  ;;  %17337 = vmatprep.mubr.msk.f32.mxu0 %vm18507_vm1, %v21351_v18 }
0x12d1   :  { %17357 = vmatprep.subr.mxu0 %v15622_v32 }
0x12d3   :  { %17338 = vmatmul.mubr.msk.f32.vlgmr.msra.gmra.mxu0 %vm979_vm3, %v6877_v46 }
0x12d4   :  { %17358 = vmatpush3.msra.mxu0 %v15622_v32  ;;  %17365 = vmatprep.mubr.msk.f32.mxu0 %vm198_vm0, %v19513_v57  ;;  %v19837_v57 = vld [vmem:[%s18605_s4 + $0x38] sm:$0xff]  ;;  %v7969_v32 = vadd.f32 %v15634_v54, %v7968_v47 }
0x12d5   :  { %17359 = vmatprep.subr.mxu0 %v15621_v33  ;;  %17374 = vmatprep.subr.mxu1 %v19837_v57 }
0x12d6   :  { %17360 = vmatpush3.msra.mxu0 %v15621_v33  ;;  %17375 = vmatpush3.msra.mxu1 %v19837_v57  ;;  %v7978_v33 = vpop.f32.mrf.mxu1 }
0x12d7   :  { %17361 = vmatprep.subr.mxu0 %v15620_v59  ;;  %17376 = vmatprep.subr.mxu1 %v19842_v1 }
0x12d8   :  { %17362 = vmatpush3.msra.mxu0 %v15620_v59  ;;  %17377 = vmatpush3.msra.mxu1 %v19842_v1 }
0x12d9   :  { %17363 = vmatprep.subr.mxu0 %v15619_v13  ;;  %17378 = vmatprep.subr.mxu1 %v19847_v14 }
0x12da   :  { %17364 = vmatpush3.msra.mxu0 %v15619_v13  ;;  %17379 = vmatpush3.msra.mxu1 %v19847_v14  ;;  %v7979_v13 = vadd.f32 %v15634_v54, %v7978_v33 }
0x12db   :  { %17366 = vmatmul.mubr.msk.f32.vlgmr.msra.gmra.mxu0 %vm198_vm0, %v19561_v21  ;;  %17391 = vmatprep.subr.mxu0 %v21351_v18 }
0x12dc   :  { %17368 = vmatprep.mubr.msk.f32.mxu0 %vm198_vm0, %v19564_v11  ;;  %17380 = vmatprep.subr.mxu1 %v19852_v27 }
0x12dd   :  { %17381 = vmatpush3.msra.mxu1 %v19852_v27 }
0x12de   :  { %17383 = vmatmul.mubr.msk.f32.vlgmr.msra.gmra.mxu1 %vm198_vm0, %v19561_v21  ;;  %17406 = vmatprep.subr.mxu1 %v21351_v18 }
0x12df   :  { %17369 = vmatmul.mubr.msk.f32.gmra.mxu0 %vm198_vm0, %v19571_v10  ;;  %17385 = vmatprep.mubr.msk.f32.mxu1 %vm198_vm0, %v19564_v11 }
0x12e0   :  { %17371 = vmatprep.mubr.msk.f32.mxu0 %vm198_vm0, %v19574_v31 }
0x12e2   :  { %17386 = vmatmul.mubr.msk.f32.gmra.mxu1 %vm198_vm0, %v19571_v10 }
0x12e3   :  { %17372 = vmatmul.mubr.msk.f32.gmra.mxu0 %vm198_vm0, %v19581_v24  ;;  %17388 = vmatprep.mubr.msk.f32.mxu1 %vm198_vm0, %v19574_v31 }
0x12e4   :  { %17393 = vmatprep.mubr.msk.f32.mxu0 %vm18507_vm1, %v21351_v18 }
0x12e6   :  { %17389 = vmatmul.mubr.msk.f32.gmra.mxu1 %vm198_vm0, %v19581_v24 }
0x12e7   :  { %17408 = vmatprep.mubr.msk.f32.mxu1 %vm18507_vm1, %v21351_v18 }
0x134e   :  { %v19869_v9 = vpop.f32.mrf.mxu0 }
0x1350   :  { %v17272_v21 = vpop.f32.mrf.mxu0 }
0x1351   :  { %v19920_v21 = vld [vmem:[%s21377_s21 + $0x1] ss:$0 sm:$0xff] }
0x1352   :  { %v19871_v34 = vpop.f32.mrf.mxu0 }
0x1354   :  { %v17282_v56 = vpop.f32.mrf.mxu0 }
0x1356   :  { %v19873_v35 = vpop.f32.mrf.mxu0 }
0x1358   :  { %v17292_v11 = vpop.f32.mrf.mxu0 }
0x137f   :  { %v19875_v25 = vpop.f32.mrf.mxu0 }
0x1381   :  { %v17314_v10 = vpop.f32.mrf.mxu0 }
0x1383   :  { %v19877_v31 = vpop.f32.mrf.mxu0 }
0x1385   :  { %v17319_v12 = vpop.f32.mrf.mxu0 }
0x1387   :  { %v19879_v24 = vpop.f32.mrf.mxu0 }
0x1389   :  { %v17324_v26 = vpop.f32.mrf.mxu0 }
0x138b   :  { %v19881_v51 = vpop.f32.mrf.mxu0 }
0x138d   :  { %v17329_v37 = vpop.f32.mrf.mxu0 }
0x138f   :  { %v19883_v38 = vpop.f32.mrf.mxu0 }
0x1391   :  { %v17334_v39 = vpop.f32.mrf.mxu0 }
0x1393   :  { %v19885_v42 = vpop.f32.mrf.mxu0 }
0x1395   :  { %v17339_v29 = vpop.f32.mrf.mxu0 }
0x139b   :  { %v17367_v45 = vpop.f32.mrf.mxu0 }
0x139c   :  { %v8067_v43 = vadd.f32 %v17367_v45, %v15642_v8 }
0x139d   :  { %v8061_v5 = vpop.f32.mrf.mxu0 }
0x139e   :  { %v8062_v46 = vadd.f32 %v15642_v8, %v8061_v5  ;;  %v17384_v56 = vpop.f32.mrf.mxu1 }
0x139f   :  { %v17370_v48 = vpop.f32.mrf.mxu0  ;;  %v8170_v11 = vadd.f32 %v17384_v56, %v19920_v21 }
0x13a0   :  { %v8077_v60 = vadd.f32 %v17370_v48, %v15642_v8  ;;  %17392 = vmatpush3.xpose.msk.msra.mxu0 %vm516_vm2, %v8062_v46  ;;  %v8164_v10 = vpop.f32.mrf.mxu1 }
0x13a1   :  { %v8071_v22 = vpop.f32.mrf.mxu0  ;;  %17396 = vmatprep.subr.mxu0 %v21351_v18  ;;  %v8165_v12 = vadd.f32 %v19920_v21, %v8164_v10 }
0x13a2   :  { %17407 = vmatpush3.xpose.msk.msra.mxu1 %vm516_vm2, %v8077_v60  ;;  %v8072_v61 = vadd.f32 %v15642_v8, %v8071_v22  ;;  %v19926_v26 = vpop.f32.mrf.mxu1 }
0x13a3   :  { %v17373_v49 = vpop.f32.mrf.mxu0  ;;  %17394 = vmatmul.mubr.msk.f32.vlgmr.msra.gmra.mxu0 %vm516_vm2, %v7959_v30  ;;  %17416 = vmatprep.subr.mxu1 %v21351_v18 }
0x13a4   :  { %v8087_v62 = vadd.f32 %v17373_v49, %v15642_v8  ;;  %17397 = vmatpush3.xpose.msk.msra.mxu0 %vm516_vm2, %v8067_v43  ;;  %17398 = vmatprep.mubr.msk.f32.mxu0 %vm18507_vm1, %v21351_v18  ;;  %v19928_v37 = vpop.f32.mrf.mxu1 }
0x13a5   :  { %17409 = vmatmul.mubr.msk.f32.vlgmr.msra.gmra.mxu1 %vm516_vm2, %v7974_v15  ;;  %17401 = vmatprep.subr.mxu0 %v21351_v18  ;;  %v8081_v4 = vpop.f32.mrf.mxu0 }
0x13a6   :  { %17417 = vmatpush3.xpose.msk.msra.mxu1 %vm516_vm2, %v8087_v62  ;;  %17418 = vmatprep.mubr.msk.f32.mxu1 %vm18507_vm1, %v21351_v18  ;;  %v8082_v59 = vadd.f32 %v15642_v8, %v8081_v4  ;;  %v19930_v39 = vpop.f32.mrf.mxu1 }
0x13a7   :  { %17399 = vmatmul.mubr.msk.f32.vlgmr.msra.gmra.mxu0 %vm516_vm2, %v7964_v53  ;;  %17426 = vmatprep.subr.mxu1 %v21351_v18 }
0x13a8   :  { %17402 = vmatpush3.xpose.msk.msra.mxu0 %vm516_vm2, %v8072_v61  ;;  %17403 = vmatprep.mubr.msk.f32.mxu0 %vm18507_vm1, %v21351_v18  ;;  %v19932_v7 = vpop.f32.mrf.mxu1 }
0x13a9   :  { %17419 = vmatmul.mubr.msk.f32.vlgmr.msra.gmra.mxu1 %vm516_vm2, %v7984_v3  ;;  %17411 = vmatprep.subr.mxu0 %v21351_v18 }
0x13aa   :  { %17428 = vmatprep.mubr.msk.f32.mxu1 %vm18507_vm1, %v21351_v18  ;;  %17427 = vmatpush3.msra.mxu1 %v8170_v11 }
0x13ab   :  { %17404 = vmatmul.mubr.msk.f32.vlgmr.msra.gmra.mxu0 %vm516_vm2, %v7969_v32  ;;  %17436 = vmatprep.subr.mxu1 %v21351_v18 }
0x13ac   :  { %17412 = vmatpush3.xpose.msk.msra.mxu0 %vm516_vm2, %v8082_v59  ;;  %17413 = vmatprep.mubr.msk.f32.mxu0 %vm18507_vm1, %v21351_v18 }
0x13ad   :  { %17421 = vmatprep.subr.mxu0 %v21351_v18 }
0x13af   :  { %17414 = vmatmul.mubr.msk.f32.vlgmr.msra.gmra.mxu0 %vm516_vm2, %v7979_v13 }
0x13b0   :  { %17423 = vmatprep.mubr.msk.f32.mxu0 %vm18507_vm1, %v21351_v18  ;;  %17422 = vmatpush3.msra.mxu0 %v8165_v12 }
0x13b1   :  { %17431 = vmatprep.subr.mxu0 %v21351_v18 }
0x1463   :  { %v8265_v29 = vpop.f32.mrf.mxu0 }
0x1464   :  { %v8649_v44 = vmul.f32 0.14433756, %v8265_v29 }
0x1465   :  { %v17395_v45 = vpop.f32.mrf.mxu0  ;;  %v8493_v40 = vpop.f32.mrf.mxu1 }
0x1466   :  { %v8655_v8 = vsel %vm979_vm3, %v8649_v44, -inf  ;;  %v8652_v60 = vmul.f32 0.14433756, %v8493_v40 }
0x1467   :  { %v17410_v5 = vpop.f32.mrf.mxu1  ;;  %8656 = vmax.xlane.f32.xlu0 %v8655_v8  ;;  %v8341_v46 = vpop.f32.mrf.mxu0 }
0x1468   :  { %v8650_v48 = vmul.f32 0.14433756, %v8341_v46  ;;  %v8664_v62 = vsel %vm979_vm3, %v8652_v60, -inf }
0x1469   :  { %v17400_v54 = vpop.f32.mrf.mxu0  ;;  %v8645_v47 = vpop.f32.mrf.mxu1 }
0x146a   :  { %v8658_v30 = vsel %vm979_vm3, %v8650_v48, -inf  ;;  %v8654_v63 = vmul.f32 0.14433756, %v8645_v47 }
0x146b   :  { %v17420_v22 = vpop.f32.mrf.mxu1  ;;  %8659 = vmax.xlane.f32.xlu1 %v8658_v30  ;;  %v8417_v43 = vpop.f32.mrf.mxu0 }
0x146c   :  { %v8651_v15 = vmul.f32 0.14433756, %v8417_v43  ;;  %v8670_v32 = vsel %vm979_vm3, %v8654_v63, -inf }
0x146d   :  { %v17405_v49 = vpop.f32.mrf.mxu0 }
0x146e   :  { %v8661_v53 = vsel %vm979_vm3, %v8651_v15, -inf }
0x146f   :  { %8665 = vmax.xlane.f32.xlu1 %v8664_v62  ;;  %8662 = vmax.xlane.f32.xlu0 %v8661_v53  ;;  %v8569_v61 = vpop.f32.mrf.mxu0 }
0x1470   :  { %v8653_v3 = vmul.f32 0.14433756, %v8569_v61 }
0x1471   :  { %v17415_v4 = vpop.f32.mrf.mxu0 }
0x1472   :  { %v8667_v33 = vsel %vm979_vm3, %v8653_v3, -inf }
0x1473   :  { %8671 = vmax.xlane.f32.xlu1 %v8670_v32  ;;  %8668 = vmax.xlane.f32.xlu0 %v8667_v33 }
0x14f0   :  { %v8657_v59 = vpop.xlane.xlu0 %8656 }
0x14f1   :  { %v8673_v13 = vsub.f32 %v8649_v44, %v8657_v59 }
0x14f3   :  { %v8679_v56 = vmul.f32 1.442695, %v8673_v13 }
0x14f4   :  { %v8660_v11 = vpop.xlane.xlu1 %8659 }
0x14f5   :  { %18274 = vpow2.f32 %v8679_v56  ;;  %v8674_v10 = vsub.f32 %v8650_v48, %v8660_v11 }
0x14f7   :  { %v8681_v12 = vmul.f32 1.442695, %v8674_v10 }
0x14f8   :  { %v8666_v29 = vpop.xlane.xlu1 %8665  ;;  %v8663_v45 = vpop.xlane.xlu0 %8662 }
0x14f9   :  { %18276 = vpow2.f32 %v8681_v12  ;;  %v8676_v40 = vsub.f32 %v8652_v60, %v8666_v29  ;;  %v8675_v8 = vsub.f32 %v8651_v15, %v8663_v45 }
0x14fb   :  { %v8685_v5 = vmul.f32 1.442695, %v8676_v40  ;;  %v8683_v46 = vmul.f32 1.442695, %v8675_v8  ;;  %v8175_v40 = vadd.f32 %v19920_v21, %v19928_v37  ;;  %v8180_v37 = vadd.f32 %v19926_v26, %v19920_v21 }
0x14fc   :  { %v8672_v54 = vpop.xlane.xlu1 %8671  ;;  %v8669_v47 = vpop.xlane.xlu0 %8668  ;;  %v8190_v26 = vadd.f32 %v19930_v39, %v19920_v21  ;;  %v19992_v39 = vld [vmem:[%s21379_s29 + $0x58] sm:$0xff] }
0x14fd   :  { %18278 = vpow2.f32 %v8685_v5  ;;  %v8678_v30 = vsub.f32 %v8654_v63, %v8672_v54  ;;  %v8677_v22 = vsub.f32 %v8653_v3, %v8669_v47 }
0x14fe   :  { %18280 = vpow2.f32 %v8683_v46 }
0x14ff   :  { %v8689_v43 = vmul.f32 1.442695, %v8678_v30  ;;  %v8687_v44 = vmul.f32 1.442695, %v8677_v22  ;;  %v8185_v22 = vadd.f32 %v19920_v21, %v19932_v7 }
0x1501   :  { %18282 = vpow2.f32 %v8689_v43  ;;  %v19984_v43 = vld [vmem:[%s21379_s29 + $0x28] sm:$0xff] }
0x1502   :  { %v18275_v49 = vpop.eup %18274  ;;  %18284 = vpow2.f32 %v8687_v44 }
0x1503   :  { %v8691_v48 = vsel %vm979_vm3, %v18275_v49, 0.0 }
0x1504   :  { %8692 = vadd.xlane.f32.xlu0 %v8691_v48 }
0x1506   :  { %v18277_v62 = vpop.eup %18276 }
0x1507   :  { %v8694_v60 = vsel %vm979_vm3, %v18277_v62, 0.0 }
0x1508   :  { %8695 = vadd.xlane.f32.xlu1 %v8694_v60  ;;  %v20019_v60 = vld [vmem:[%s21379_s29 + $0x18] sm:$0xff] }
0x150a   :  { %v18279_v15 = vpop.eup %18278 }
0x150b   :  { %v18281_v53 = vpop.eup %18280  ;;  %v8700_v61 = vsel %vm979_vm3, %v18279_v15, 0.0 }
0x150c   :  { %8701 = vadd.xlane.f32.xlu1 %v8700_v61  ;;  %v8697_v63 = vsel %vm979_vm3, %v18281_v53, 0.0  ;;  %v20033_v61 = vld [vmem:[%s21379_s29 + $0x48] sm:$0xff] }
0x150d   :  { %8698 = vadd.xlane.f32.xlu0 %v8697_v63  ;;  %v20039_v63 = vld [vmem:[%s21379_s29 + $0x8] sm:$0xff] }
0x150e   :  { %v18283_v3 = vpop.eup %18282 }
0x150f   :  { %v18285_v4 = vpop.eup %18284  ;;  %v8706_v32 = vsel %vm979_vm3, %v18283_v3, 0.0 }
0x1510   :  { %8707 = vadd.xlane.f32.xlu1 %v8706_v32  ;;  %v8703_v33 = vsel %vm979_vm3, %v18285_v4, 0.0 }
0x1511   :  { %8704 = vadd.xlane.f32.xlu0 %v8703_v33 }
0x158d   :  { %v8693_v59 = vpop.xlane.xlu0 %8692 }
0x158e   :  { %18286 = vrcp.f32 %v8693_v59 }
0x1591   :  { %v8696_v13 = vpop.xlane.xlu1 %8695 }
0x1592   :  { %18288 = vrcp.f32 %v8696_v13 }
0x1595   :  { %v8702_v56 = vpop.xlane.xlu1 %8701 }
0x1596   :  { %18290 = vrcp.f32 %v8702_v56  ;;  %v8699_v11 = vpop.xlane.xlu0 %8698 }
0x1597   :  { %18292 = vrcp.f32 %v8699_v11 }
0x1599   :  { %v8708_v10 = vpop.xlane.xlu1 %8707 }
0x159a   :  { %18294 = vrcp.f32 %v8708_v10  ;;  %v8705_v12 = vpop.xlane.xlu0 %8704 }
0x159b   :  { %v18287_v29 = vpop.eup %18286  ;;  %18296 = vrcp.f32 %v8705_v12 }
0x159c   :  { %v19946_v45 = vmul.f32 %v18287_v29, %v18275_v49 }
0x159e   :  { %15669 = vst.msk [vmem:[%s18700_s27 + $0x30] sm:$0xff] %vm979_vm3, %v19946_v45  ;;  %17424 = vmatmul.mubr.msk.f32.vlgmr.msra.gmra.mxu0 %vm979_vm3, %v19946_v45 }
0x159f   :  { %v18289_v8 = vpop.eup %18288  ;;  %17432 = vmatpush3.msra.mxu0 %v8175_v40  ;;  %17433 = vmatprep.mubr.msk.f32.mxu0 %vm18507_vm1, %v21351_v18 }
0x15a0   :  { %v19957_v5 = vmul.f32 %v18289_v8, %v18277_v62  ;;  %17441 = vmatprep.subr.mxu0 %v21351_v18  ;;  %v20004_v62 = vld [vmem:[%s21379_s29 + $0x20] sm:$0xff] }
0x15a2   :  { %15670 = vst.msk [vmem:[%s18700_s27 + $0x38] sm:$0xff] %vm979_vm3, %v19957_v5  ;;  %17429 = vmatmul.mubr.msk.f32.vlgmr.msra.gmra.mxu1 %vm979_vm3, %v19957_v5 }
0x15a3   :  { %v18291_v46 = vpop.eup %18290  ;;  %17437 = vmatpush3.msra.mxu1 %v8180_v37  ;;  %17438 = vmatprep.mubr.msk.f32.mxu1 %vm18507_vm1, %v21351_v18 }
0x15a4   :  { %v18293_v54 = vpop.eup %18292  ;;  %v19969_v47 = vmul.f32 %v18291_v46, %v18279_v15  ;;  %17446 = vmatprep.subr.mxu1 %v21351_v18  ;;  %v20022_v15 = vld [vmem:[%s21379_s29 + $0x50] sm:$0xff] }
0x15a5   :  { %v19974_v30 = vmul.f32 %v18293_v54, %v18281_v53  ;;  %v20029_v53 = vld [vmem:[%s21379_s29 + $0x10] sm:$0xff] }
0x15a6   :  { %15672 = vst.msk [vmem:[%s18700_s27 + $0x48] sm:$0xff] %vm979_vm3, %v19969_v47  ;;  %17439 = vmatmul.mubr.msk.f32.vlgmr.msra.gmra.mxu1 %vm979_vm3, %v19969_v47 }
0x15a7   :  { %v18295_v44 = vpop.eup %18294  ;;  %15671 = vst.msk [vmem:[%s18700_s27 + $0x40] sm:$0xff] %vm979_vm3, %v19974_v30  ;;  %17434 = vmatmul.mubr.msk.f32.vlgmr.msra.gmra.mxu0 %vm979_vm3, %v19974_v30  ;;  %17447 = vmatpush3.msra.mxu1 %v8190_v26  ;;  %v20210_v26 = vld [vmem:[%s18525_s9 + $0x18] sm:$0xff] }
0x15a8   :  { %v18297_v7 = vpop.eup %18296  ;;  %v19994_v49 = vmul.f32 %v18295_v44, %v18283_v3  ;;  %17442 = vmatpush3.msra.mxu0 %v8185_v22  ;;  %17443 = vmatprep.mubr.msk.f32.mxu0 %vm18507_vm1, %v21351_v18  ;;  %v20043_v3 = vld [vmem:[%s21379_s29 + $0x40] sm:$0xff]  ;;  %v20220_v22 = vld [vmem:[%s18525_s9 + $0x28] sm:$0xff] }
0x15a9   :  { %v19998_v48 = vmul.f32 %v18297_v7, %v18285_v4  ;;  %17448 = vmatprep.mubr.msk.f32.mxu1 %vm18507_vm1, %v21351_v18  ;;  %17472 = vmatprep.subr.mxu1 %v19984_v43  ;;  %v20072_v4 = vld [vmem:[%s21379_s29 + $0x38] sm:$0xff] }
0x15aa   :  { %15674 = vst.msk [vmem:[%s18700_s27 + $0x58] sm:$0xff] %vm979_vm3, %v19994_v49  ;;  %17449 = vmatmul.mubr.msk.f32.vlgmr.msra.gmra.mxu1 %vm979_vm3, %v19994_v49  ;;  %17451 = vmatprep.subr.mxu0 %v19992_v39 }
0x15ab   :  { %15673 = vst.msk [vmem:[%s18700_s27 + $0x50] sm:$0xff] %vm979_vm3, %v19998_v48  ;;  %17444 = vmatmul.mubr.msk.f32.vlgmr.msra.gmra.mxu0 %vm979_vm3, %v19998_v48  ;;  %17473 = vmatpush3.msra.mxu1 %v19984_v43 }
0x15ac   :  { %17474 = vmatprep.subr.mxu1 %v20004_v62  ;;  %17484 = vmatprep.mubr.msk.f32.mxu1 %vm516_vm2, %v19781_v28  ;;  %v20049_v28 = vld [vmem:[%s21379_s29] sm:$0xff] }
0x15ad   :  { %17475 = vmatpush3.msra.mxu1 %v20004_v62  ;;  %17452 = vmatpush3.msra.mxu0 %v19992_v39 }
0x15ae   :  { %17476 = vmatprep.subr.mxu1 %v20019_v60  ;;  %17453 = vmatprep.subr.mxu0 %v20022_v15 }
0x15af   :  { %17477 = vmatpush3.msra.mxu1 %v20019_v60  ;;  %17454 = vmatpush3.msra.mxu0 %v20022_v15 }
0x15b0   :  { %17478 = vmatprep.subr.mxu1 %v20029_v53  ;;  %17455 = vmatprep.subr.mxu0 %v20033_v61 }
0x15b1   :  { %17479 = vmatpush3.msra.mxu1 %v20029_v53  ;;  %17456 = vmatpush3.msra.mxu0 %v20033_v61 }
0x15b2   :  { %17480 = vmatprep.subr.mxu1 %v20039_v63  ;;  %17457 = vmatprep.subr.mxu0 %v20043_v3 }
0x15b3   :  { %17481 = vmatpush3.msra.mxu1 %v20039_v63  ;;  %17458 = vmatpush3.msra.mxu0 %v20043_v3 }
0x15b4   :  { %17482 = vmatprep.subr.mxu1 %v20049_v28  ;;  %17459 = vmatprep.subr.mxu0 %v20072_v4 }
0x15b5   :  { %17483 = vmatpush3.msra.mxu1 %v20049_v28  ;;  %17460 = vmatpush3.msra.mxu0 %v20072_v4 }
0x15b6   :  { %17485 = vmatmul.mubr.msk.f32.vlgmr.msra.gmra.mxu1 %vm516_vm2, %v19869_v9  ;;  %17510 = vmatprep.subr.mxu1 %v21351_v18  ;;  %v20077_v9 = vld [vmem:[%s21379_s29 + $0x30] sm:$0xff] }
0x15b7   :  { %17487 = vmatprep.mubr.msk.f32.mxu1 %vm516_vm2, %v19783_v55  ;;  %17461 = vmatprep.subr.mxu0 %v20077_v9 }
0x15b8   :  { %17462 = vmatpush3.msra.mxu0 %v20077_v9 }
0x15b9   :  { %17493 = vmatprep.subr.mxu0 %v19837_v57 }
0x15ba   :  { %17488 = vmatmul.mubr.msk.f32.gmra.mxu1 %vm516_vm2, %v19871_v34 }
0x15bb   :  { %17490 = vmatprep.mubr.msk.f32.mxu1 %vm516_vm2, %v19785_v20 }
0x15be   :  { %17491 = vmatmul.mubr.msk.f32.gmra.mxu1 %vm516_vm2, %v19873_v35 }
0x15bf   :  { %17512 = vmatprep.mubr.msk.f32.mxu1 %vm18507_vm1, %v21351_v18 }
0x165e   :  { %v8797_v55 = vpop.f32.mrf.mxu0 }
0x165f   :  { %17463 = vmatprep.mubr.msk.f32.mxu0 %vm516_vm2, %v8797_v55 }
0x1660   :  { %v17425_v20 = vpop.f32.mrf.mxu0 }
0x1661   :  { %v15719_v20 = vld [vmem:[%s18585_s6 + $0x40] sm:$0xff] }
0x1662   :  { %v8870_v34 = vpop.f32.mrf.mxu1 }
0x1663   :  { %17464 = vmatmul.mubr.msk.f32.vlgmr.msra.gmra.mxu0 %vm516_vm2, %v8870_v34 }
0x1664   :  { %v17430_v35 = vpop.f32.mrf.mxu1  ;;  %17494 = vmatpush3.msra.mxu0 %v19837_v57 }
0x1665   :  { %17495 = vmatprep.subr.mxu0 %v19842_v1 }
0x1666   :  { %v9016_v32 = vpop.f32.mrf.mxu1  ;;  %17496 = vmatpush3.msra.mxu0 %v19842_v1 }
0x1667   :  { %v8943_v33 = vpop.f32.mrf.mxu0  ;;  %17497 = vmatprep.subr.mxu0 %v19847_v14 }
0x1668   :  { %17466 = vmatprep.mubr.msk.f32.mxu0 %vm516_vm2, %v8943_v33  ;;  %v17440_v59 = vpop.f32.mrf.mxu1  ;;  %17498 = vmatpush3.msra.mxu0 %v19847_v14 }
0x1669   :  { %v17435_v13 = vpop.f32.mrf.mxu0  ;;  %17467 = vmatmul.mubr.msk.f32.gmra.mxu0 %vm516_vm2, %v9016_v32  ;;  %17499 = vmatprep.subr.mxu0 %v19852_v27 }
0x166a   :  { %v9162_v56 = vpop.f32.mrf.mxu1  ;;  %17500 = vmatpush3.msra.mxu0 %v19852_v27 }
0x166b   :  { %v9089_v57 = vpop.f32.mrf.mxu0  ;;  %17525 = vmatprep.subr.mxu0 %v21351_v18 }
0x166c   :  { %17469 = vmatprep.mubr.msk.f32.mxu0 %vm516_vm2, %v9089_v57  ;;  %v17450_v1 = vpop.f32.mrf.mxu1  ;;  %v20270_v57 = vld [vmem:[%s18605_s4 + $0x58] sm:$0xff] }
0x166d   :  { %v17445_v11 = vpop.f32.mrf.mxu0  ;;  %17470 = vmatmul.mubr.msk.f32.gmra.mxu0 %vm516_vm2, %v9162_v56  ;;  %v20275_v1 = vld [vmem:[%s18605_s4 + $0x50] sm:$0xff] }
0x166e   :  { %17501 = vmatprep.mubr.msk.f32.mxu0 %vm198_vm0, %v19698_v6 }
0x1671   :  { %17502 = vmatmul.mubr.msk.f32.vlgmr.msra.gmra.mxu0 %vm198_vm0, %v19714_v52 }
0x1672   :  { %17504 = vmatprep.mubr.msk.f32.mxu0 %vm198_vm0, %v19719_v16 }
0x1675   :  { %17505 = vmatmul.mubr.msk.f32.gmra.mxu0 %vm198_vm0, %v19730_v36 }
0x1676   :  { %17507 = vmatprep.mubr.msk.f32.mxu0 %vm198_vm0, %v19733_v2 }
0x1679   :  { %17508 = vmatmul.mubr.msk.f32.gmra.mxu0 %vm198_vm0, %v19741_v0 }
0x167a   :  { %17527 = vmatprep.mubr.msk.f32.mxu0 %vm18507_vm1, %v21351_v18 }
0x1723   :  { %v20110_v14 = vpop.f32.mrf.mxu0 }
0x1725   :  { %v20112_v6 = vpop.f32.mrf.mxu0 }
0x1729   :  { %v20114_v52 = vpop.f32.mrf.mxu0 }
0x172b   :  { %v20116_v27 = vpop.f32.mrf.mxu0 }
0x172d   :  { %v20118_v16 = vpop.f32.mrf.mxu0 }
0x172f   :  { %v20120_v36 = vpop.f32.mrf.mxu0 }
0x1731   :  { %v17503_v10 = vpop.f32.mrf.mxu0 }
0x1732   :  { %v9471_v29 = vadd.f32 %v17503_v10, %v19920_v21  ;;  %v20281_v10 = vld [vmem:[%s18605_s4 + $0x48] sm:$0xff] }
0x1733   :  { %v9465_v2 = vpop.f32.mrf.mxu0 }
0x1734   :  { %v9466_v12 = vadd.f32 %v19920_v21, %v9465_v2  ;;  %v20287_v2 = vld [vmem:[%s18605_s4 + $0x40] sm:$0xff] }
0x1735   :  { %v17506_v0 = vpop.f32.mrf.mxu0 }
0x1736   :  { %v9481_v40 = vadd.f32 %v17506_v0, %v19920_v21  ;;  %17511 = vmatpush3.msra.mxu1 %v9466_v12  ;;  %v15746_v0 = vld [vmem:[%s21375_s5 + $0x2] ss:$0 sm:$0xff] }
0x1737   :  { %v9475_v8 = vpop.f32.mrf.mxu0  ;;  %17513 = vmatmul.mubr.msk.f32.vlgmr.msra.gmra.mxu1 %vm979_vm3, %v19946_v45  ;;  %17515 = vmatprep.subr.mxu1 %v21351_v18 }
0x1738   :  { %v9476_v37 = vadd.f32 %v19920_v21, %v9475_v8  ;;  %17516 = vmatpush3.msra.mxu1 %v9471_v29  ;;  %17526 = vmatpush3.msra.mxu0 %v9481_v40 }
0x1739   :  { %v17509_v46 = vpop.f32.mrf.mxu0  ;;  %17528 = vmatmul.mubr.msk.f32.vlgmr.msra.gmra.mxu0 %vm979_vm3, %v19969_v47  ;;  %17517 = vmatprep.mubr.msk.f32.mxu1 %vm18507_vm1, %v21351_v18 }
0x173a   :  { %v9491_v54 = vadd.f32 %v17509_v46, %v19920_v21  ;;  %17520 = vmatprep.subr.mxu1 %v21351_v18  ;;  %17535 = vmatprep.subr.mxu0 %v21351_v18 }
0x173b   :  { %17518 = vmatmul.mubr.msk.f32.vlgmr.msra.gmra.mxu1 %vm979_vm3, %v19957_v5  ;;  %17537 = vmatprep.mubr.msk.f32.mxu0 %vm18507_vm1, %v21351_v18  ;;  %v9485_v45 = vpop.f32.mrf.mxu0  ;;  %v20205_v5 = vld [vmem:[%s18525_s9 + $0x10] sm:$0xff] }
0x173c   :  { %17521 = vmatpush3.msra.mxu1 %v9476_v37  ;;  %17536 = vmatpush3.msra.mxu0 %v9491_v54  ;;  %v9486_v47 = vadd.f32 %v19920_v21, %v9485_v45  ;;  %v20199_v21 = vld [vmem:[%s18525_s9 + $0x8] sm:$0xff] }
0x173d   :  { %17538 = vmatmul.mubr.msk.f32.vlgmr.msra.gmra.mxu0 %vm979_vm3, %v19994_v49  ;;  %17561 = vmatprep.subr.mxu0 %v19984_v43 }
0x173e   :  { %17522 = vmatprep.mubr.msk.f32.mxu1 %vm18507_vm1, %v21351_v18  ;;  %17562 = vmatpush3.msra.mxu0 %v19984_v43  ;;  %v20226_v43 = vpop.f32.mrf.mxu1 }
0x173f   :  { %17573 = vmatprep.mubr.msk.f32.mxu0 %vm516_vm2, %v19875_v25  ;;  %17523 = vmatmul.mubr.msk.f32.vlgmr.msra.gmra.mxu1 %vm979_vm3, %v19974_v30  ;;  %v20189_v25 = vld [vmem:[%s18525_s9] sm:$0xff] }
0x1740   :  { %17530 = vmatprep.subr.mxu1 %v21351_v18  ;;  %17563 = vmatprep.subr.mxu0 %v20004_v62  ;;  %v20215_v30 = vld [vmem:[%s18525_s9 + $0x20] sm:$0xff]  ;;  %v20228_v44 = vpop.f32.mrf.mxu1  ;;  %s21389_s9 = sld [smem:[#allocation14_spill]] }
0x1741   :  { %17531 = vmatpush3.msra.mxu1 %v9486_v47  ;;  %17564 = vmatpush3.msra.mxu0 %v20004_v62 }
0x1742   :  { %17565 = vmatprep.subr.mxu0 %v20019_v60  ;;  %17532 = vmatprep.mubr.msk.f32.mxu1 %vm18507_vm1, %v21351_v18 }
0x1743   :  { %17566 = vmatpush3.msra.mxu0 %v20019_v60  ;;  %17533 = vmatmul.mubr.msk.f32.vlgmr.msra.gmra.mxu1 %vm979_vm3, %v19998_v48 }
0x1744   :  { %17567 = vmatprep.subr.mxu0 %v20029_v53  ;;  %17540 = vmatprep.subr.mxu1 %v19992_v39 }
0x1745   :  { %17568 = vmatpush3.msra.mxu0 %v20029_v53  ;;  %17541 = vmatpush3.msra.mxu1 %v19992_v39  ;;  %v20230_v39 = vpop.f32.mrf.mxu1 }
0x1746   :  { %17569 = vmatprep.subr.mxu0 %v20039_v63  ;;  %17542 = vmatprep.subr.mxu1 %v20022_v15 }
0x1747   :  { %17570 = vmatpush3.msra.mxu0 %v20039_v63  ;;  %17543 = vmatpush3.msra.mxu1 %v20022_v15  ;;  %v20232_v7 = vpop.f32.mrf.mxu1  ;;  %v15721_v63 = vld [vmem:[%s18585_s6 + $0x50] sm:$0xff] }
0x1748   :  { %17571 = vmatprep.subr.mxu0 %v20049_v28  ;;  %17544 = vmatprep.subr.mxu1 %v20033_v61 }
0x1749   :  { %17572 = vmatpush3.msra.mxu0 %v20049_v28  ;;  %17545 = vmatpush3.msra.mxu1 %v20033_v61  ;;  %v20234_v49 = vpop.f32.mrf.mxu1 }
0x174a   :  { %17574 = vmatmul.mubr.msk.f32.vlgmr.msra.gmra.mxu0 %vm516_vm2, %v19877_v31  ;;  %17546 = vmatprep.subr.mxu1 %v20043_v3  ;;  %v15726_v31 = vld [vmem:[%s18595_s20 + $0x58] sm:$0xff] }
0x174b   :  { %17576 = vmatprep.mubr.msk.f32.mxu0 %vm516_vm2, %v19879_v24  ;;  %17547 = vmatpush3.msra.mxu1 %v20043_v3  ;;  %v15725_v24 = vld [vmem:[%s18595_s20 + $0x50] sm:$0xff]  ;;  %v20236_v48 = vpop.f32.mrf.mxu1 }
0x174c   :  { %17548 = vmatprep.subr.mxu1 %v20072_v4  ;;  %17599 = vmatprep.subr.mxu0 %v15726_v31 }
0x174d   :  { %17549 = vmatpush3.msra.mxu1 %v20072_v4  ;;  %17600 = vmatpush3.msra.mxu0 %v15726_v31  ;;  %v15720_v4 = vld [vmem:[%s18585_s6 + $0x48] sm:$0xff] }
0x174e   :  { %17577 = vmatmul.mubr.msk.f32.gmra.mxu0 %vm516_vm2, %v19881_v51  ;;  %17550 = vmatprep.subr.mxu1 %v20077_v9  ;;  %v15724_v51 = vld [vmem:[%s18595_s20 + $0x48] sm:$0xff] }
0x174f   :  { %17579 = vmatprep.mubr.msk.f32.mxu0 %vm516_vm2, %v19883_v38  ;;  %17551 = vmatpush3.msra.mxu1 %v20077_v9  ;;  %v15722_v38 = vld [vmem:[%s18585_s6 + $0x58] sm:$0xff] }
0x1750   :  { %17601 = vmatprep.subr.mxu0 %v15725_v24  ;;  %17582 = vmatprep.subr.mxu1 %v15722_v38 }
0x1751   :  { %17602 = vmatpush3.msra.mxu0 %v15725_v24 }
0x1752   :  { %17580 = vmatmul.mubr.msk.f32.gmra.mxu0 %vm516_vm2, %v19885_v42  ;;  %17603 = vmatprep.subr.mxu0 %v15724_v51  ;;  %v15723_v42 = vld [vmem:[%s18595_s20 + $0x40] sm:$0xff] }
0x1753   :  { %17607 = vmatprep.mubr.msk.f32.mxu0 %vm198_vm0, %v20189_v25  ;;  %17604 = vmatpush3.msra.mxu0 %v15724_v51 }
0x1754   :  { %17605 = vmatprep.subr.mxu0 %v15723_v42 }
0x1755   :  { %17606 = vmatpush3.msra.mxu0 %v15723_v42 }
0x1756   :  { %17608 = vmatmul.mubr.msk.f32.vlgmr.msra.gmra.mxu0 %vm198_vm0, %v20199_v21  ;;  %17633 = vmatprep.subr.mxu0 %v21351_v18 }
0x1757   :  { %17610 = vmatprep.mubr.msk.f32.mxu0 %vm198_vm0, %v20205_v5 }
0x175a   :  { %17611 = vmatmul.mubr.msk.f32.gmra.mxu0 %vm198_vm0, %v20210_v26 }
0x175b   :  { %17613 = vmatprep.mubr.msk.f32.mxu0 %vm198_vm0, %v20215_v30 }
0x175e   :  { %17614 = vmatmul.mubr.msk.f32.gmra.mxu0 %vm198_vm0, %v20220_v22 }
0x175f   :  { %17635 = vmatprep.mubr.msk.f32.mxu0 %vm18507_vm1, %v21351_v18 }
0x17f7   :  { %v9560_v62 = vpop.f32.mrf.mxu1 }
0x17f8   :  { %17552 = vmatprep.mubr.msk.f32.mxu1 %vm516_vm2, %v9560_v62 }
0x17f9   :  { %v17514_v60 = vpop.f32.mrf.mxu1  ;;  %v9770_v15 = vpop.f32.mrf.mxu0 }
0x17fb   :  { %v9630_v53 = vpop.f32.mrf.mxu1  ;;  %v17529_v61 = vpop.f32.mrf.mxu0 }
0x17fc   :  { %17553 = vmatmul.mubr.msk.f32.vlgmr.msra.gmra.mxu1 %vm516_vm2, %v9630_v53 }
0x17fd   :  { %v17519_v3 = vpop.f32.mrf.mxu1  ;;  %v9910_v28 = vpop.f32.mrf.mxu0  ;;  %17583 = vmatpush3.msra.mxu1 %v15722_v38 }
0x17fe   :  { %17584 = vmatprep.subr.mxu1 %v15721_v63 }
0x17ff   :  { %v9700_v9 = vpop.f32.mrf.mxu1  ;;  %v17539_v55 = vpop.f32.mrf.mxu0  ;;  %17585 = vmatpush3.msra.mxu1 %v15721_v63 }
0x1800   :  { %17555 = vmatprep.mubr.msk.f32.mxu1 %vm516_vm2, %v9700_v9  ;;  %17586 = vmatprep.subr.mxu1 %v15720_v4 }
0x1801   :  { %v17524_v34 = vpop.f32.mrf.mxu1  ;;  %17556 = vmatmul.mubr.msk.f32.gmra.mxu1 %vm516_vm2, %v9770_v15  ;;  %v15738_v15 = vld [vmem:[%s21376_s17 + $0x2] ss:$0 sm:$0xff] }
0x1802   :  { %17587 = vmatpush3.msra.mxu1 %v15720_v4 }
0x1803   :  { %v9840_v35 = vpop.f32.mrf.mxu1  ;;  %17588 = vmatprep.subr.mxu1 %v15719_v20 }
0x1804   :  { %17558 = vmatprep.mubr.msk.f32.mxu1 %vm516_vm2, %v9840_v35  ;;  %17589 = vmatpush3.msra.mxu1 %v15719_v20 }
0x1805   :  { %v17534_v32 = vpop.f32.mrf.mxu1  ;;  %17559 = vmatmul.mubr.msk.f32.gmra.mxu1 %vm516_vm2, %v9910_v28  ;;  %17616 = vmatprep.subr.mxu1 %v20270_v57 }
0x1806   :  { %17590 = vmatprep.mubr.msk.f32.mxu1 %vm198_vm0, %v19527_v23 }
0x1809   :  { %17591 = vmatmul.mubr.msk.f32.vlgmr.msra.gmra.mxu1 %vm198_vm0, %v19530_v41 }
0x180a   :  { %17593 = vmatprep.mubr.msk.f32.mxu1 %vm198_vm0, %v19539_v50  ;;  %v20261_v33 = vpop.f32.mrf.mxu0  ;;  %17617 = vmatpush3.msra.mxu1 %v20270_v57 }
0x180b   :  { %17618 = vmatprep.subr.mxu1 %v20275_v1 }
0x180c   :  { %v20263_v59 = vpop.f32.mrf.mxu0  ;;  %17619 = vmatpush3.msra.mxu1 %v20275_v1 }
0x180d   :  { %17594 = vmatmul.mubr.msk.f32.gmra.mxu1 %vm198_vm0, %v19542_v58  ;;  %17620 = vmatprep.subr.mxu1 %v20281_v10 }
0x180e   :  { %17596 = vmatprep.mubr.msk.f32.mxu1 %vm198_vm0, %v19549_v17  ;;  %v20265_v13 = vpop.f32.mrf.mxu0  ;;  %17621 = vmatpush3.msra.mxu1 %v20281_v10 }
0x180f   :  { %17622 = vmatprep.subr.mxu1 %v20287_v2 }
0x1810   :  { %v20267_v56 = vpop.f32.mrf.mxu0  ;;  %17623 = vmatpush3.msra.mxu1 %v20287_v2 }
0x1811   :  { %17597 = vmatmul.mubr.msk.f32.gmra.mxu1 %vm198_vm0, %v19551_v19  ;;  %17648 = vmatprep.subr.mxu1 %v21351_v18 }
0x1812   :  { %17624 = vmatprep.mubr.msk.f32.mxu1 %vm198_vm0, %v20189_v25  ;;  %v20277_v11 = vpop.f32.mrf.mxu0 }
0x1813   :  { %21380 = vst [vmem:[#allocation29_spill] sm:$0xff] %v20277_v11 }
0x1814   :  { %v20289_v12 = vpop.f32.mrf.mxu0 }
0x1815   :  { %21381 = vst [vmem:[#allocation30_spill] sm:$0xff] %v20289_v12  ;;  %17625 = vmatmul.mubr.msk.f32.vlgmr.msra.gmra.mxu1 %vm198_vm0, %v20199_v21 }
0x1816   :  { %v17609_v29 = vpop.f32.mrf.mxu0  ;;  %17627 = vmatprep.mubr.msk.f32.mxu1 %vm198_vm0, %v20205_v5 }
0x1817   :  { %v10345_v40 = vadd.f32 %v17609_v29, %v15746_v0 }
0x1818   :  { %v10339_v8 = vpop.f32.mrf.mxu0 }
0x1819   :  { %v10340_v37 = vadd.f32 %v15746_v0, %v10339_v8  ;;  %17628 = vmatmul.mubr.msk.f32.gmra.mxu1 %vm198_vm0, %v20210_v26  ;;  %v20351_v8 = vld [vmem:[%s21377_s21 + $0x2] ss:$0 sm:$0xff] }
0x181a   :  { %v17612_v46 = vpop.f32.mrf.mxu0  ;;  %17630 = vmatprep.mubr.msk.f32.mxu1 %vm198_vm0, %v20215_v30 }
0x181b   :  { %17634 = vmatpush3.xpose.msk.msra.mxu0 %vm516_vm2, %v10340_v37  ;;  %v10355_v54 = vadd.f32 %v17612_v46, %v15746_v0 }
0x181c   :  { %17638 = vmatprep.subr.mxu0 %v21351_v18  ;;  %v10349_v38 = vpop.f32.mrf.mxu0 }
0x181d   :  { %17631 = vmatmul.mubr.msk.f32.gmra.mxu1 %vm198_vm0, %v20220_v22  ;;  %v10350_v4 = vadd.f32 %v15746_v0, %v10349_v38 }
0x181e   :  { %17649 = vmatpush3.xpose.msk.msra.mxu1 %vm516_vm2, %v10355_v54  ;;  %17650 = vmatprep.mubr.msk.f32.mxu1 %vm18507_vm1, %v21351_v18  ;;  %v17615_v60 = vpop.f32.mrf.mxu0 }
0x181f   :  { %17658 = vmatprep.subr.mxu1 %v21351_v18  ;;  %v10365_v3 = vadd.f32 %v17615_v60, %v15746_v0 }
0x1820   :  { %v10359_v20 = vpop.f32.mrf.mxu0 }
0x1821   :  { %v10360_v32 = vadd.f32 %v15746_v0, %v10359_v20 }
0x18bc   :  { %v20311_v45 = vpop.f32.mrf.mxu1 }
0x18be   :  { %v20313_v47 = vpop.f32.mrf.mxu1 }
0x18c1   :  { %v20315_v31 = vpop.f32.mrf.mxu1 }
0x18c3   :  { %v20317_v24 = vpop.f32.mrf.mxu1 }
0x18c5   :  { %v20319_v51 = vpop.f32.mrf.mxu1 }
0x18c6   :  { %21382 = vst [vmem:[#allocation31_spill] sm:$0xff] %v20319_v51 }
0x18c7   :  { %v20321_v42 = vpop.f32.mrf.mxu1 }
0x18c8   :  { %21383 = vst [vmem:[#allocation32_spill] sm:$0xff] %v20321_v42 }
0x18c9   :  { %v17592_v62 = vpop.f32.mrf.mxu1 }
0x18ca   :  { %v10242_v55 = vadd.f32 %v17592_v62, %v15738_v15 }
0x18cb   :  { %v10236_v53 = vpop.f32.mrf.mxu1 }
0x18cc   :  { %v10237_v61 = vadd.f32 %v15738_v15, %v10236_v53 }
0x18cd   :  { %v17595_v63 = vpop.f32.mrf.mxu1 }
0x18ce   :  { %v10252_v28 = vadd.f32 %v17595_v63, %v15738_v15  ;;  %17636 = vmatmul.mubr.msk.f32.vlgmr.msra.gmra.mxu0 %vm516_vm2, %v10237_v61 }
0x18cf   :  { %17639 = vmatpush3.xpose.msk.msra.mxu0 %vm516_vm2, %v10345_v40  ;;  %v10246_v9 = vpop.f32.mrf.mxu1  ;;  %17640 = vmatprep.mubr.msk.f32.mxu0 %vm18507_vm1, %v21351_v18 }
0x18d0   :  { %17651 = vmatmul.mubr.msk.f32.vlgmr.msra.gmra.mxu1 %vm516_vm2, %v10252_v28  ;;  %17643 = vmatprep.subr.mxu0 %v21351_v18  ;;  %v10247_v29 = vadd.f32 %v15738_v15, %v10246_v9 }
0x18d1   :  { %v17598_v34 = vpop.f32.mrf.mxu1  ;;  %17659 = vmatpush3.xpose.msk.msra.mxu1 %vm516_vm2, %v10365_v3  ;;  %17660 = vmatprep.mubr.msk.f32.mxu1 %vm18507_vm1, %v21351_v18 }
0x18d2   :  { %v10262_v35 = vadd.f32 %v17598_v34, %v15738_v15  ;;  %17641 = vmatmul.mubr.msk.f32.vlgmr.msra.gmra.mxu0 %vm516_vm2, %v10242_v55  ;;  %17668 = vmatprep.subr.mxu1 %v21351_v18 }
0x18d3   :  { %17644 = vmatpush3.xpose.msk.msra.mxu0 %vm516_vm2, %v10350_v4  ;;  %17645 = vmatprep.mubr.msk.f32.mxu0 %vm18507_vm1, %v21351_v18  ;;  %v10256_v40 = vpop.f32.mrf.mxu1 }
0x18d4   :  { %17661 = vmatmul.mubr.msk.f32.vlgmr.msra.gmra.mxu1 %vm516_vm2, %v10262_v35  ;;  %17653 = vmatprep.subr.mxu0 %v21351_v18  ;;  %v10257_v0 = vadd.f32 %v15738_v15, %v10256_v40 }
0x18d5   :  { %17670 = vmatprep.mubr.msk.f32.mxu1 %vm18507_vm1, %v21351_v18  ;;  %v17626_v37 = vpop.f32.mrf.mxu1 }
0x18d6   :  { %17646 = vmatmul.mubr.msk.f32.vlgmr.msra.gmra.mxu0 %vm516_vm2, %v10247_v29  ;;  %v10448_v46 = vadd.f32 %v17626_v37, %v20351_v8 }
0x18d7   :  { %17654 = vmatpush3.xpose.msk.msra.mxu0 %vm516_vm2, %v10360_v32  ;;  %17655 = vmatprep.mubr.msk.f32.mxu0 %vm18507_vm1, %v21351_v18  ;;  %v10442_v54 = vpop.f32.mrf.mxu1 }
0x18d8   :  { %17663 = vmatprep.subr.mxu0 %v21351_v18  ;;  %v10443_v38 = vadd.f32 %v20351_v8, %v10442_v54  ;;  %17669 = vmatpush3.msra.mxu1 %v10448_v46 }
0x18d9   :  { %17678 = vmatprep.subr.mxu1 %v21351_v18  ;;  %v20357_v62 = vpop.f32.mrf.mxu1 }
0x18da   :  { %17656 = vmatmul.mubr.msk.f32.vlgmr.msra.gmra.mxu0 %vm516_vm2, %v10257_v0 }
0x18db   :  { %17665 = vmatprep.mubr.msk.f32.mxu0 %vm18507_vm1, %v21351_v18  ;;  %17664 = vmatpush3.msra.mxu0 %v10443_v38  ;;  %v20359_v60 = vpop.f32.mrf.mxu1 }
0x18dc   :  { %17673 = vmatprep.subr.mxu0 %v21351_v18 }
0x18dd   :  { %v20361_v15 = vpop.f32.mrf.mxu1 }
0x18df   :  { %v20363_v53 = vpop.f32.mrf.mxu1 }
0x198e   :  { %v10543_v61 = vpop.f32.mrf.mxu0 }
0x198f   :  { %v10927_v32 = vmul.f32 0.14433756, %v10543_v61 }
0x1990   :  { %v17637_v63 = vpop.f32.mrf.mxu0  ;;  %v10771_v3 = vpop.f32.mrf.mxu1 }
0x1991   :  { %v10930_v28 = vmul.f32 0.14433756, %v10771_v3  ;;  %v10933_v63 = vsel %vm979_vm3, %v10927_v32, -inf }
0x1992   :  { %v10619_v4 = vpop.f32.mrf.mxu0  ;;  %v17652_v9 = vpop.f32.mrf.mxu1 }
0x1993   :  { %v10928_v55 = vmul.f32 0.14433756, %v10619_v4  ;;  %v10942_v20 = vsel %vm979_vm3, %v10930_v28, -inf }
0x1994   :  { %10943 = vmax.xlane.f32.xlu1 %v10942_v20  ;;  %v17642_v34 = vpop.f32.mrf.mxu0  ;;  %v10923_v35 = vpop.f32.mrf.mxu1 }
0x1995   :  { %v10932_v29 = vmul.f32 0.14433756, %v10923_v35  ;;  %v10936_v40 = vsel %vm979_vm3, %v10928_v55, -inf }
0x1996   :  { %v17662_v0 = vpop.f32.mrf.mxu1  ;;  %10937 = vmax.xlane.f32.xlu0 %v10936_v40  ;;  %v10695_v37 = vpop.f32.mrf.mxu0 }
0x1997   :  { %v10948_v46 = vsel %vm979_vm3, %v10932_v29, -inf  ;;  %v10929_v38 = vmul.f32 0.14433756, %v10695_v37 }
0x1998   :  { %10949 = vmax.xlane.f32.xlu1 %v10948_v46  ;;  %v17647_v54 = vpop.f32.mrf.mxu0 }
0x1999   :  { %v10939_v20 = vsel %vm979_vm3, %v10929_v38, -inf }
0x199a   :  { %10934 = vmax.xlane.f32.xlu0 %v10933_v63  ;;  %v10847_v3 = vpop.f32.mrf.mxu0 }
0x199b   :  { %v10931_v4 = vmul.f32 0.14433756, %v10847_v3 }
0x199c   :  { %v17657_v9 = vpop.f32.mrf.mxu0 }
0x199d   :  { %v10945_v61 = vsel %vm979_vm3, %v10931_v4, -inf }
0x199e   :  { %10940 = vmax.xlane.f32.xlu0 %v10939_v20  ;;  %10946 = vmax.xlane.f32.xlu1 %v10945_v61 }
0x1a1d   :  { %v10944_v34 = vpop.xlane.xlu1 %10943 }
0x1a1e   :  { %v10954_v35 = vsub.f32 %v10930_v28, %v10944_v34 }
0x1a1f   :  { %v10938_v40 = vpop.xlane.xlu0 %10937 }
0x1a20   :  { %v10963_v0 = vmul.f32 1.442695, %v10954_v35  ;;  %v10952_v18 = vsub.f32 %v10928_v55, %v10938_v40 }
0x1a21   :  { %v10950_v46 = vpop.xlane.xlu1 %10949 }
0x1a22   :  { %18298 = vpow2.f32 %v10963_v0  ;;  %v10959_v37 = vmul.f32 1.442695, %v10952_v18  ;;  %v10956_v54 = vsub.f32 %v10932_v29, %v10950_v46 }
0x1a23   :  { %v10935_v12 = vpop.xlane.xlu0 %10934 }
0x1a24   :  { %18300 = vpow2.f32 %v10959_v37  ;;  %v10967_v63 = vmul.f32 1.442695, %v10956_v54  ;;  %v10951_v3 = vsub.f32 %v10927_v32, %v10935_v12 }
0x1a26   :  { %18302 = vpow2.f32 %v10967_v63  ;;  %v10957_v9 = vmul.f32 1.442695, %v10951_v3 }
0x1a27   :  { %v10941_v42 = vpop.xlane.xlu0 %10940  ;;  %v10947_v11 = vpop.xlane.xlu1 %10946 }
0x1a28   :  { %18304 = vpow2.f32 %v10957_v9  ;;  %v10953_v20 = vsub.f32 %v10929_v38, %v10941_v42  ;;  %v10955_v61 = vsub.f32 %v10931_v4, %v10947_v11 }
0x1a2a   :  { %v10961_v51 = vmul.f32 1.442695, %v10953_v20  ;;  %v10965_v28 = vmul.f32 1.442695, %v10955_v61 }
0x1a2c   :  { %18306 = vpow2.f32 %v10961_v51 }
0x1a2d   :  { %18308 = vpow2.f32 %v10965_v28 }
0x1a2f   :  { %v18299_v55 = vpop.eup %18298 }
0x1a30   :  { %v10978_v34 = vsel %vm979_vm3, %v18299_v55, 0.0 }
0x1a31   :  { %v18301_v18 = vpop.eup %18300  ;;  %10979 = vadd.xlane.f32.xlu1 %v10978_v34  ;;  %v10458_v34 = vadd.f32 %v20357_v62, %v20351_v8  ;;  %v10453_v62 = vadd.f32 %v20351_v8, %v20359_v60 }
0x1a32   :  { %v10972_v29 = vsel %vm979_vm3, %v18301_v18, 0.0 }
0x1a33   :  { %v18303_v35 = vpop.eup %18302  ;;  %10973 = vadd.xlane.f32.xlu0 %v10972_v29 }
0x1a34   :  { %v10984_v12 = vsel %vm979_vm3, %v18303_v35, 0.0 }
0x1a35   :  { %v18305_v32 = vpop.eup %18304  ;;  %10985 = vadd.xlane.f32.xlu1 %v10984_v12  ;;  %v21384_v12 = vmov 0.0  }
0x1a36   :  { %v10969_v42 = vsel %vm979_vm3, %v18305_v32, 0.0 }
0x1a37   :  { %10970 = vadd.xlane.f32.xlu0 %v10969_v42 }
0x1a39   :  { %v18307_v11 = vpop.eup %18306 }
0x1a3a   :  { %v18309_v38 = vpop.eup %18308  ;;  %v10975_v51 = vsel %vm979_vm3, %v18307_v11, 0.0 }
0x1a3b   :  { %10976 = vadd.xlane.f32.xlu0 %v10975_v51  ;;  %v10981_v4 = vsel %vm979_vm3, %v18309_v38, 0.0 }
0x1a3c   :  { %10982 = vadd.xlane.f32.xlu1 %v10981_v4  ;;  %v20482_v4 = vld [vmem:[%s21378_s25 + $0x20] sm:$0xff] }
0x1aba   :  { %v10980_v40 = vpop.xlane.xlu1 %10979 }
0x1abb   :  { %18310 = vrcp.f32 %v10980_v40  ;;  %v20487_v40 = vld [vmem:[%s21378_s25 + $0x28] sm:$0xff] }
0x1abc   :  { %v10974_v0 = vpop.xlane.xlu0 %10973 }
0x1abd   :  { %18312 = vrcp.f32 %v10974_v0  ;;  %v20494_v0 = vld [vmem:[%s21379_s29 + $0x70] sm:$0xff] }
0x1abe   :  { %v10986_v46 = vpop.xlane.xlu1 %10985 }
0x1abf   :  { %18314 = vrcp.f32 %v10986_v46  ;;  %v20499_v46 = vld [vmem:[%s21379_s29 + $0x68] sm:$0xff] }
0x1ac0   :  { %v10971_v37 = vpop.xlane.xlu0 %10970 }
0x1ac1   :  { %18316 = vrcp.f32 %v10971_v37  ;;  %v20504_v37 = vld [vmem:[%s21379_s29 + $0x60] sm:$0xff] }
0x1ac4   :  { %v10977_v54 = vpop.xlane.xlu0 %10976 }
0x1ac5   :  { %18318 = vrcp.f32 %v10977_v54  ;;  %v10983_v63 = vpop.xlane.xlu1 %10982 }
0x1ac6   :  { %18320 = vrcp.f32 %v10983_v63 }
0x1ac8   :  { %v18311_v3 = vpop.eup %18310 }
0x1ac9   :  { %v20377_v9 = vmul.f32 %v18311_v3, %v18299_v55 }
0x1aca   :  { %v18313_v20 = vpop.eup %18312 }
0x1acb   :  { %15776 = vst.msk [vmem:[%s18700_s27 + $0x78] sm:$0xff] %vm979_vm3, %v20377_v9  ;;  %v20382_v61 = vmul.f32 %v18313_v20, %v18301_v18 }
0x1acc   :  { %v18315_v28 = vpop.eup %18314 }
0x1acd   :  { %15774 = vst.msk [vmem:[%s18700_s27 + $0x68] sm:$0xff] %vm979_vm3, %v20382_v61  ;;  %v20389_v29 = vmul.f32 %v18315_v28, %v18303_v35  ;;  %17671 = vmatmul.mubr.msk.f32.vlgmr.msra.gmra.mxu1 %vm979_vm3, %v20382_v61  ;;  %v10468_v35 = vadd.f32 %v20361_v15, %v20351_v8  ;;  %v10463_v15 = vadd.f32 %v20351_v8, %v20363_v53  ;;  %v20439_v53 = vld [vmem:[%s21379_s29 + $0x88] sm:$0xff] }
0x1ace   :  { %v18317_v55 = vpop.eup %18316  ;;  %17679 = vmatpush3.msra.mxu1 %v10458_v34  ;;  %17680 = vmatprep.mubr.msk.f32.mxu1 %vm18507_vm1, %v21384_v12 }
0x1acf   :  { %15778 = vst.msk [vmem:[%s18700_s27 + $0x88] sm:$0xff] %vm979_vm3, %v20389_v29  ;;  %v20398_v18 = vmul.f32 %v18317_v55, %v18305_v32  ;;  %17688 = vmatprep.subr.mxu1 %v21384_v12 }
0x1ad1   :  { %15773 = vst.msk [vmem:[%s18700_s27 + $0x60] sm:$0xff] %vm979_vm3, %v20398_v18  ;;  %17666 = vmatmul.mubr.msk.f32.vlgmr.msra.gmra.mxu0 %vm979_vm3, %v20398_v18  ;;  %17681 = vmatmul.mubr.msk.f32.vlgmr.msra.gmra.mxu1 %vm979_vm3, %v20377_v9 }
0x1ad2   :  { %v18319_v32 = vpop.eup %18318  ;;  %17674 = vmatpush3.msra.mxu0 %v10453_v62  ;;  %17689 = vmatpush3.msra.mxu1 %v10468_v35 }
0x1ad3   :  { %v18321_v42 = vpop.eup %18320  ;;  %v20412_v60 = vmul.f32 %v18319_v32, %v18307_v11  ;;  %17675 = vmatprep.mubr.msk.f32.mxu0 %vm18507_vm1, %v21384_v12  ;;  %17683 = vmatprep.subr.mxu0 %v21384_v12  ;;  %v20443_v11 = vld [vmem:[%s21378_s25] sm:$0xff] }
0x1ad4   :  { %v20419_v51 = vmul.f32 %v18321_v42, %v18309_v38  ;;  %17690 = vmatprep.mubr.msk.f32.mxu1 %vm18507_vm1, %v21384_v12  ;;  %17714 = vmatprep.subr.mxu1 %v20270_v57  ;;  %v20463_v38 = vld [vmem:[%s21378_s25 + $0x8] sm:$0xff] }
0x1ad5   :  { %15775 = vst.msk [vmem:[%s18700_s27 + $0x70] sm:$0xff] %vm979_vm3, %v20412_v60  ;;  %17676 = vmatmul.mubr.msk.f32.vlgmr.msra.gmra.mxu0 %vm979_vm3, %v20412_v60  ;;  %17691 = vmatmul.mubr.msk.f32.vlgmr.msra.gmra.mxu1 %vm979_vm3, %v20389_v29 }
0x1ad6   :  { %15777 = vst.msk [vmem:[%s18700_s27 + $0x80] sm:$0xff] %vm979_vm3, %v20419_v51  ;;  %17684 = vmatpush3.msra.mxu0 %v10463_v15  ;;  %17715 = vmatpush3.msra.mxu1 %v20270_v57  ;;  %v20451_v57 = vld [vmem:[%s21379_s29 + $0x80] sm:$0xff] }
0x1ad7   :  { %17716 = vmatprep.subr.mxu1 %v20275_v1  ;;  %17685 = vmatprep.mubr.msk.f32.mxu0 %vm18507_vm1, %v21384_v12 }
0x1ad8   :  { %17717 = vmatpush3.msra.mxu1 %v20275_v1  ;;  %17722 = vmatprep.mubr.msk.f32.mxu1 %vm198_vm0, %v20443_v11  ;;  %v20458_v1 = vld [vmem:[%s21379_s29 + $0x78] sm:$0xff] }
0x1ad9   :  { %17718 = vmatprep.subr.mxu1 %v20281_v10  ;;  %17686 = vmatmul.mubr.msk.f32.vlgmr.msra.gmra.mxu0 %vm979_vm3, %v20419_v51 }
0x1ada   :  { %17719 = vmatpush3.msra.mxu1 %v20281_v10  ;;  %17693 = vmatprep.subr.mxu0 %v20439_v53  ;;  %v20469_v10 = vld [vmem:[%s21378_s25 + $0x10] sm:$0xff] }
0x1adb   :  { %17720 = vmatprep.subr.mxu1 %v20287_v2  ;;  %17694 = vmatpush3.msra.mxu0 %v20439_v53 }
0x1adc   :  { %17721 = vmatpush3.msra.mxu1 %v20287_v2  ;;  %17695 = vmatprep.subr.mxu0 %v20451_v57  ;;  %v20477_v2 = vld [vmem:[%s21378_s25 + $0x18] sm:$0xff] }
0x1add   :  { %17723 = vmatmul.mubr.msk.f32.vlgmr.msra.gmra.mxu1 %vm198_vm0, %v20463_v38  ;;  %17696 = vmatpush3.msra.mxu0 %v20451_v57 }
0x1ade   :  { %17725 = vmatprep.mubr.msk.f32.mxu1 %vm198_vm0, %v20469_v10  ;;  %17697 = vmatprep.subr.mxu0 %v20458_v1 }
0x1adf   :  { %17698 = vmatpush3.msra.mxu0 %v20458_v1  ;;  %17731 = vmatprep.subr.mxu1 %v21384_v12 }
0x1ae0   :  { %17699 = vmatprep.subr.mxu0 %v20494_v0 }
0x1ae1   :  { %17726 = vmatmul.mubr.msk.f32.gmra.mxu1 %vm198_vm0, %v20477_v2  ;;  %17700 = vmatpush3.msra.mxu0 %v20494_v0 }
0x1ae2   :  { %17728 = vmatprep.mubr.msk.f32.mxu1 %vm198_vm0, %v20482_v4  ;;  %17701 = vmatprep.subr.mxu0 %v20499_v46 }
0x1ae3   :  { %17702 = vmatpush3.msra.mxu0 %v20499_v46 }
0x1ae4   :  { %17703 = vmatprep.subr.mxu0 %v20504_v37 }
0x1ae5   :  { %17729 = vmatmul.mubr.msk.f32.gmra.mxu1 %vm198_vm0, %v20487_v40  ;;  %17704 = vmatpush3.msra.mxu0 %v20504_v37 }
0x1ae6   :  { %17733 = vmatprep.mubr.msk.f32.mxu1 %vm18507_vm1, %v21384_v12  ;;  %17736 = vmatprep.subr.mxu0 %v21384_v12 }
0x1b8d   :  { %v11148_v54 = vpop.f32.mrf.mxu1 }
0x1b8f   :  { %v17672_v63 = vpop.f32.mrf.mxu1 }
0x1b91   :  { %v11075_v3 = vpop.f32.mrf.mxu0  ;;  %v11294_v20 = vpop.f32.mrf.mxu1 }
0x1b92   :  { %17705 = vmatprep.mubr.msk.f32.mxu0 %vm516_vm2, %v11075_v3 }
0x1b93   :  { %v17667_v28 = vpop.f32.mrf.mxu0  ;;  %v17682_v34 = vpop.f32.mrf.mxu1  ;;  %17706 = vmatmul.mubr.msk.f32.vlgmr.msra.gmra.mxu0 %vm516_vm2, %v11148_v54 }
0x1b95   :  { %v11221_v55 = vpop.f32.mrf.mxu0  ;;  %v11440_v62 = vpop.f32.mrf.mxu1 }
0x1b96   :  { %17708 = vmatprep.mubr.msk.f32.mxu0 %vm516_vm2, %v11221_v55 }
0x1b97   :  { %v17677_v35 = vpop.f32.mrf.mxu0  ;;  %v17692_v32 = vpop.f32.mrf.mxu1  ;;  %17709 = vmatmul.mubr.msk.f32.gmra.mxu0 %vm516_vm2, %v11294_v20 }
0x1b99   :  { %v11367_v42 = vpop.f32.mrf.mxu0 }
0x1b9a   :  { %17711 = vmatprep.mubr.msk.f32.mxu0 %vm516_vm2, %v11367_v42 }
0x1b9b   :  { %v17687_v15 = vpop.f32.mrf.mxu0  ;;  %17712 = vmatmul.mubr.msk.f32.gmra.mxu0 %vm516_vm2, %v11440_v62 }
0x1b9c   :  { %17738 = vmatprep.mubr.msk.f32.mxu0 %vm18507_vm1, %v21384_v12 }
0x1b9d   :  { %v17724_v63 = vpop.f32.mrf.mxu1 }
0x1b9e   :  { %v11642_v54 = vadd.f32 %v17724_v63, %v20351_v8 }
0x1b9f   :  { %v11636_v3 = vpop.f32.mrf.mxu1 }
0x1ba0   :  { %v11637_v28 = vadd.f32 %v20351_v8, %v11636_v3  ;;  %17737 = vmatpush3.msra.mxu0 %v11642_v54  ;;  %v9379_v54 = vadd.f32 %v20230_v39, %v20114_v52  ;;  %v9384_v52 = vadd.f32 %v20236_v48, %v20120_v36  ;;  %v20629_v36 = vld [vmem:[%s18605_s4 + $0x68] sm:$0xff] }
0x1ba1   :  { %v17727_v34 = vpop.f32.mrf.mxu1  ;;  %17739 = vmatmul.mubr.msk.f32.vlgmr.msra.gmra.mxu0 %vm979_vm3, %v20382_v61  ;;  %17746 = vmatprep.subr.mxu0 %v21384_v12 }
0x1ba2   :  { %v11652_v20 = vadd.f32 %v17727_v34, %v20351_v8  ;;  %17732 = vmatpush3.msra.mxu1 %v11637_v28  ;;  %17748 = vmatprep.mubr.msk.f32.mxu0 %vm18507_vm1, %v21384_v12  ;;  %v9374_v34 = vadd.f32 %v20232_v7, %v20116_v27 }
0x1ba3   :  { %v11646_v55 = vpop.f32.mrf.mxu1  ;;  %17734 = vmatmul.mubr.msk.f32.vlgmr.msra.gmra.mxu1 %vm979_vm3, %v20398_v18  ;;  %17741 = vmatprep.subr.mxu1 %v21384_v12  ;;  %v15814_v18 = vld [vmem:[%s18585_s6 + $0x78] sm:$0xff] }
0x1ba4   :  { %v11647_v62 = vadd.f32 %v20351_v8, %v11646_v55  ;;  %17747 = vmatpush3.msra.mxu0 %v11652_v20  ;;  %17743 = vmatprep.mubr.msk.f32.mxu1 %vm18507_vm1, %v21384_v12 }
0x1ba5   :  { %v17730_v61 = vpop.f32.mrf.mxu1  ;;  %17749 = vmatmul.mubr.msk.f32.vlgmr.msra.gmra.mxu0 %vm979_vm3, %v20377_v9  ;;  %17756 = vmatprep.subr.mxu0 %v21384_v12  ;;  %v15813_v9 = vld [vmem:[%s18585_s6 + $0x70] sm:$0xff] }
0x1ba6   :  { %v11662_v35 = vadd.f32 %v17730_v61, %v20351_v8  ;;  %17742 = vmatpush3.msra.mxu1 %v11647_v62  ;;  %17758 = vmatprep.mubr.msk.f32.mxu0 %vm18507_vm1, %v21384_v12 }
0x1ba7   :  { %v11656_v32 = vpop.f32.mrf.mxu1  ;;  %17744 = vmatmul.mubr.msk.f32.vlgmr.msra.gmra.mxu1 %vm979_vm3, %v20412_v60  ;;  %17751 = vmatprep.subr.mxu1 %v21384_v12  ;;  %v15811_v60 = vld [vmem:[%s18585_s6 + $0x60] sm:$0xff] }
0x1ba8   :  { %v11657_v42 = vadd.f32 %v20351_v8, %v11656_v32  ;;  %17757 = vmatpush3.msra.mxu0 %v11662_v35  ;;  %17753 = vmatprep.mubr.msk.f32.mxu1 %vm18507_vm1, %v21384_v12  ;;  %v15812_v8 = vld [vmem:[%s18585_s6 + $0x68] sm:$0xff]  ;;  %v20624_v35 = vld [vmem:[%s18605_s4 + $0x70] sm:$0xff]  ;;  %v20635_v32 = vld [vmem:[%s18605_s4 + $0x60] sm:$0xff]  ;;  %s21395_s6 = sld [smem:[#allocation25_spill]] }
0x1ba9   :  { %17759 = vmatmul.mubr.msk.f32.vlgmr.msra.gmra.mxu0 %vm979_vm3, %v20389_v29  ;;  %17782 = vmatprep.subr.mxu0 %v15814_v18  ;;  %v15818_v29 = vld [vmem:[%s18595_s20 + $0x78] sm:$0xff] }
0x1baa   :  { %17752 = vmatpush3.msra.mxu1 %v11657_v42  ;;  %17783 = vmatpush3.msra.mxu0 %v15814_v18 }
0x1bab   :  { %17790 = vmatprep.mubr.msk.f32.mxu0 %vm198_vm0, %v19527_v23  ;;  %17754 = vmatmul.mubr.msk.f32.vlgmr.msra.gmra.mxu1 %vm979_vm3, %v20419_v51  ;;  %v15817_v51 = vld [vmem:[%s18595_s20 + $0x70] sm:$0xff] }
0x1bac   :  { %17784 = vmatprep.subr.mxu0 %v15813_v9  ;;  %17761 = vmatprep.subr.mxu1 %v20439_v53 }
0x1bad   :  { %17785 = vmatpush3.msra.mxu0 %v15813_v9  ;;  %17762 = vmatpush3.msra.mxu1 %v20439_v53  ;;  %v15816_v53 = vld [vmem:[%s18595_s20 + $0x68] sm:$0xff] }
0x1bae   :  { %17786 = vmatprep.subr.mxu0 %v15812_v8  ;;  %17763 = vmatprep.subr.mxu1 %v20451_v57 }
0x1baf   :  { %17787 = vmatpush3.msra.mxu0 %v15812_v8  ;;  %17764 = vmatpush3.msra.mxu1 %v20451_v57  ;;  %v15815_v57 = vld [vmem:[%s18595_s20 + $0x60] sm:$0xff]  ;;  %s21397_s20 = sld [smem:[#allocation20_spill]] }
0x1bb0   :  { %17788 = vmatprep.subr.mxu0 %v15811_v60  ;;  %17765 = vmatprep.subr.mxu1 %v20458_v1 }
0x1bb1   :  { %17789 = vmatpush3.msra.mxu0 %v15811_v60  ;;  %17766 = vmatpush3.msra.mxu1 %v20458_v1  ;;  %v20595_v1 = vld [vmem:[%s18605_s4 + $0x78] sm:$0xff]  ;;  %s21399_s4 = sld [smem:[#allocation26_spill]] }
0x1bb2   :  { %17791 = vmatmul.mubr.msk.f32.vlgmr.msra.gmra.mxu0 %vm198_vm0, %v19530_v41  ;;  %17799 = vmatprep.subr.mxu0 %v15818_v29 }
0x1bb3   :  { %17793 = vmatprep.mubr.msk.f32.mxu0 %vm198_vm0, %v19539_v50  ;;  %17800 = vmatpush3.msra.mxu0 %v15818_v29 }
0x1bb4   :  { %17801 = vmatprep.subr.mxu0 %v15817_v51  ;;  %17767 = vmatprep.subr.mxu1 %v20494_v0 }
0x1bb5   :  { %17802 = vmatpush3.msra.mxu0 %v15817_v51  ;;  %17768 = vmatpush3.msra.mxu1 %v20494_v0  ;;  %v9369_v0 = vadd.f32 %v20226_v43, %v20110_v14  ;;  %v9389_v43 = vadd.f32 %v20234_v49, %v20118_v16 }
0x1bb6   :  { %17794 = vmatmul.mubr.msk.f32.gmra.mxu0 %vm198_vm0, %v19542_v58  ;;  %17803 = vmatprep.subr.mxu0 %v15816_v53 }
0x1bb7   :  { %17796 = vmatprep.mubr.msk.f32.mxu0 %vm198_vm0, %v19549_v17  ;;  %17804 = vmatpush3.msra.mxu0 %v15816_v53 }
0x1bb8   :  { %17805 = vmatprep.subr.mxu0 %v15815_v57  ;;  %17769 = vmatprep.subr.mxu1 %v20499_v46 }
0x1bb9   :  { %17806 = vmatpush3.msra.mxu0 %v15815_v57  ;;  %17770 = vmatpush3.msra.mxu1 %v20499_v46 }
0x1bba   :  { %17797 = vmatmul.mubr.msk.f32.gmra.mxu0 %vm198_vm0, %v19551_v19  ;;  %17771 = vmatprep.subr.mxu1 %v20504_v37 }
0x1bbb   :  { %17807 = vmatprep.mubr.msk.f32.mxu0 %vm198_vm0, %v20189_v25  ;;  %17772 = vmatpush3.msra.mxu1 %v20504_v37  ;;  %v9364_v37 = vadd.f32 %v20228_v44, %v20112_v6 }
0x1bbc   :  { %17833 = vmatprep.subr.mxu0 %v21384_v12  ;;  %17816 = vmatprep.subr.mxu1 %v20595_v1 }
0x1bbe   :  { %17808 = vmatmul.mubr.msk.f32.vlgmr.msra.gmra.mxu0 %vm198_vm0, %v20199_v21 }
0x1bbf   :  { %17810 = vmatprep.mubr.msk.f32.mxu0 %vm198_vm0, %v20205_v5 }
0x1bc2   :  { %17811 = vmatmul.mubr.msk.f32.gmra.mxu0 %vm198_vm0, %v20210_v26 }
0x1bc3   :  { %17813 = vmatprep.mubr.msk.f32.mxu0 %vm198_vm0, %v20215_v30 }
0x1bc6   :  { %17814 = vmatmul.mubr.msk.f32.gmra.mxu0 %vm198_vm0, %v20220_v22 }
0x1bc7   :  { %17835 = vmatprep.mubr.msk.f32.mxu0 %vm18507_vm1, %v21384_v12 }
0x1c53   :  { %v17707_v46 = vpop.f32.mrf.mxu0 }
0x1c54   :  { %v20602_v15 = vadd.f32 %v17707_v46, %v9369_v0  ;;  %v15838_v46 = vld [vmem:[%s21375_s5 + $0x3] ss:$0 sm:$0xff] }
0x1c55   :  { %v11528_v63 = vpop.f32.mrf.mxu0 }
0x1c56   :  { %v20606_v3 = vadd.f32 %v11528_v63, %v9364_v37 }
0x1c57   :  { %v17710_v28 = vpop.f32.mrf.mxu0 }
0x1c58   :  { %v20610_v20 = vadd.f32 %v17710_v28, %v9379_v54 }
0x1c59   :  { %v11538_v14 = vpop.f32.mrf.mxu0 }
0x1c5a   :  { %v20614_v6 = vadd.f32 %v11538_v14, %v9374_v34 }
0x1c5b   :  { %v17713_v44 = vpop.f32.mrf.mxu0 }
0x1c5c   :  { %v20618_v39 = vadd.f32 %v17713_v44, %v9389_v43 }
0x1c5d   :  { %v11548_v55 = vpop.f32.mrf.mxu0 }
0x1c5e   :  { %v20620_v62 = vadd.f32 %v11548_v55, %v9384_v52 }
0x1c61   :  { %v11801_v27 = vpop.f32.mrf.mxu0 }
0x1c63   :  { %v11731_v7 = vpop.f32.mrf.mxu1  ;;  %v17740_v61 = vpop.f32.mrf.mxu0 }
0x1c64   :  { %17773 = vmatprep.mubr.msk.f32.mxu1 %vm516_vm2, %v11731_v7 }
0x1c65   :  { %v17735_v16 = vpop.f32.mrf.mxu1  ;;  %v11941_v49 = vpop.f32.mrf.mxu0  ;;  %17774 = vmatmul.mubr.msk.f32.vlgmr.msra.gmra.mxu1 %vm516_vm2, %v11801_v27 }
0x1c66   :  { %17817 = vmatpush3.msra.mxu1 %v20595_v1 }
0x1c67   :  { %v11871_v48 = vpop.f32.mrf.mxu1  ;;  %v17750_v18 = vpop.f32.mrf.mxu0  ;;  %17818 = vmatprep.subr.mxu1 %v20624_v35 }
0x1c68   :  { %17776 = vmatprep.mubr.msk.f32.mxu1 %vm516_vm2, %v11871_v48  ;;  %17819 = vmatpush3.msra.mxu1 %v20624_v35  ;;  %v10117_v48 = vadd.f32 %v20261_v33, %v20311_v45  ;;  %v21385_v45 = vld [vmem:[#allocation31_spill] sm:$0xff] }
0x1c69   :  { %v17745_v42 = vpop.f32.mrf.mxu1  ;;  %v12081_v9 = vpop.f32.mrf.mxu0  ;;  %17777 = vmatmul.mubr.msk.f32.gmra.mxu1 %vm516_vm2, %v11941_v49  ;;  %17820 = vmatprep.subr.mxu1 %v20629_v36 }
0x1c6a   :  { %17821 = vmatpush3.msra.mxu1 %v20629_v36  ;;  %v10112_v42 = vadd.f32 %v20263_v59, %v20313_v47  ;;  %v21387_v47 = vld [vmem:[#allocation32_spill] sm:$0xff] }
0x1c6b   :  { %v12011_v8 = vpop.f32.mrf.mxu1  ;;  %v17760_v60 = vpop.f32.mrf.mxu0  ;;  %17822 = vmatprep.subr.mxu1 %v20635_v32 }
0x1c6c   :  { %17779 = vmatprep.mubr.msk.f32.mxu1 %vm516_vm2, %v12011_v8  ;;  %17823 = vmatpush3.msra.mxu1 %v20635_v32  ;;  %v10127_v60 = vadd.f32 %v20265_v13, %v20315_v31  ;;  %v20714_v31 = vld [vmem:[%s21377_s21 + $0x3] ss:$0 sm:$0xff] }
0x1c6d   :  { %v17755_v29 = vpop.f32.mrf.mxu1  ;;  %17780 = vmatmul.mubr.msk.f32.gmra.mxu1 %vm516_vm2, %v12081_v9  ;;  %17838 = vmatprep.subr.mxu1 %v21384_v12 }
0x1c6e   :  { %17824 = vmatprep.mubr.msk.f32.mxu1 %vm198_vm0, %v20189_v25 }
0x1c71   :  { %17825 = vmatmul.mubr.msk.f32.vlgmr.msra.gmra.mxu1 %vm198_vm0, %v20199_v21 }
0x1c72   :  { %v17792_v51 = vpop.f32.mrf.mxu0  ;;  %17827 = vmatprep.mubr.msk.f32.mxu1 %vm198_vm0, %v20205_v5  ;;  %v15830_v5 = vld [vmem:[%s21376_s17 + $0x3] ss:$0 sm:$0xff] }
0x1c74   :  { %v12300_v53 = vpop.f32.mrf.mxu0 }
0x1c75   :  { %17828 = vmatmul.mubr.msk.f32.gmra.mxu1 %vm198_vm0, %v20210_v26  ;;  %v12306_v26 = vadd.f32 %v17792_v51, %v15830_v5 }
0x1c76   :  { %v17795_v57 = vpop.f32.mrf.mxu0  ;;  %17830 = vmatprep.mubr.msk.f32.mxu1 %vm198_vm0, %v20215_v30 }
0x1c77   :  { %v12316_v44 = vadd.f32 %v17795_v57, %v15830_v5 }
0x1c78   :  { %v12310_v0 = vpop.f32.mrf.mxu0 }
0x1c79   :  { %17831 = vmatmul.mubr.msk.f32.gmra.mxu1 %vm198_vm0, %v20220_v22  ;;  %v12301_v22 = vadd.f32 %v15830_v5, %v12300_v53  ;;  %v12311_v27 = vadd.f32 %v15830_v5, %v12310_v0  ;;  %v10122_v53 = vadd.f32 %v20267_v56, %v20317_v24  ;;  %v21386_v0 = vld [vmem:[#allocation29_spill] sm:$0xff] }
0x1c7a   :  { %v17798_v25 = vpop.f32.mrf.mxu0  ;;  %17840 = vmatprep.mubr.msk.f32.mxu1 %vm18507_vm1, %v21384_v12 }
0x1c7b   :  { %v12326_v16 = vadd.f32 %v17798_v25, %v15830_v5  ;;  %v10137_v25 = vadd.f32 %v21386_v0, %v21385_v45 }
0x1c7c   :  { %v12320_v21 = vpop.f32.mrf.mxu0 }
0x1c7d   :  { %v12321_v49 = vadd.f32 %v15830_v5, %v12320_v21 }
0x1c7e   :  { %v17809_v37 = vpop.f32.mrf.mxu0 }
0x1c7f   :  { %v12409_v63 = vadd.f32 %v17809_v37, %v15838_v46 }
0x1c80   :  { %v12403_v54 = vpop.f32.mrf.mxu0 }
0x1c81   :  { %v12404_v28 = vadd.f32 %v15838_v46, %v12403_v54  ;;  %17839 = vmatpush3.xpose.msk.msra.mxu1 %vm516_vm2, %v12409_v63 }
0x1c82   :  { %v17812_v34 = vpop.f32.mrf.mxu0  ;;  %17848 = vmatprep.subr.mxu1 %v21384_v12 }
0x1c83   :  { %v12419_v30 = vadd.f32 %v17812_v34, %v15838_v46  ;;  %17834 = vmatpush3.xpose.msk.msra.mxu0 %vm516_vm2, %v12404_v28 }
0x1c84   :  { %v12413_v14 = vpop.f32.mrf.mxu0  ;;  %17841 = vmatmul.mubr.msk.f32.vlgmr.msra.gmra.mxu1 %vm516_vm2, %v12306_v26  ;;  %17843 = vmatprep.subr.mxu0 %v21384_v12 }
0x1c85   :  { %v12414_v43 = vadd.f32 %v15838_v46, %v12413_v14  ;;  %17849 = vmatpush3.xpose.msk.msra.mxu1 %vm516_vm2, %v12419_v30  ;;  %17850 = vmatprep.mubr.msk.f32.mxu1 %vm18507_vm1, %v21384_v12 }
0x1c86   :  { %v17815_v52 = vpop.f32.mrf.mxu0  ;;  %17836 = vmatmul.mubr.msk.f32.vlgmr.msra.gmra.mxu0 %vm516_vm2, %v12301_v22  ;;  %17858 = vmatprep.subr.mxu1 %v21384_v12 }
0x1c87   :  { %v12429_v55 = vadd.f32 %v17815_v52, %v15838_v46  ;;  %17844 = vmatpush3.xpose.msk.msra.mxu0 %vm516_vm2, %v12414_v43  ;;  %17845 = vmatprep.mubr.msk.f32.mxu0 %vm18507_vm1, %v21384_v12 }
0x1c88   :  { %v12423_v7 = vpop.f32.mrf.mxu0  ;;  %17851 = vmatmul.mubr.msk.f32.vlgmr.msra.gmra.mxu1 %vm516_vm2, %v12316_v44  ;;  %17853 = vmatprep.subr.mxu0 %v21384_v12 }
0x1c89   :  { %v12424_v61 = vadd.f32 %v15838_v46, %v12423_v7  ;;  %17859 = vmatpush3.xpose.msk.msra.mxu1 %vm516_vm2, %v12429_v55  ;;  %17860 = vmatprep.mubr.msk.f32.mxu1 %vm18507_vm1, %v21384_v12  ;;  %v21388_v46 = vld [vmem:[#allocation30_spill] sm:$0xff] }
0x1c8a   :  { %17846 = vmatmul.mubr.msk.f32.vlgmr.msra.gmra.mxu0 %vm516_vm2, %v12311_v27  ;;  %17868 = vmatprep.subr.mxu1 %v21384_v12  ;;  %v10132_v37 = vadd.f32 %v21388_v46, %v21387_v47 }
0x1c8b   :  { %17854 = vmatpush3.xpose.msk.msra.mxu0 %vm516_vm2, %v12424_v61  ;;  %17855 = vmatprep.mubr.msk.f32.mxu0 %vm18507_vm1, %v21384_v12 }
0x1c8c   :  { %17861 = vmatmul.mubr.msk.f32.vlgmr.msra.gmra.mxu1 %vm516_vm2, %v12326_v16  ;;  %17863 = vmatprep.subr.mxu0 %v21384_v12 }
0x1c8d   :  { %17870 = vmatprep.mubr.msk.f32.mxu1 %vm18507_vm1, %v21384_v12 }
0x1c8e   :  { %17856 = vmatmul.mubr.msk.f32.vlgmr.msra.gmra.mxu0 %vm516_vm2, %v12321_v49 }
0x1c8f   :  { %17865 = vmatprep.mubr.msk.f32.mxu0 %vm18507_vm1, %v21384_v12 }
0x1d25   :  { %v17775_v18 = vpop.f32.mrf.mxu1 }
0x1d26   :  { %v20695_v9 = vadd.f32 %v17775_v18, %v10117_v48 }
0x1d27   :  { %v12169_v8 = vpop.f32.mrf.mxu1 }
0x1d28   :  { %v20699_v29 = vadd.f32 %v12169_v8, %v10112_v42 }
0x1d29   :  { %v17778_v51 = vpop.f32.mrf.mxu1 }
0x1d2a   :  { %v20703_v57 = vadd.f32 %v17778_v51, %v10127_v60 }
0x1d2b   :  { %v12179_v33 = vpop.f32.mrf.mxu1 }
0x1d2c   :  { %v20707_v21 = vadd.f32 %v12179_v33, %v10122_v53 }
0x1d2d   :  { %v17781_v59 = vpop.f32.mrf.mxu1 }
0x1d2e   :  { %v20711_v5 = vadd.f32 %v17781_v59, %v10137_v25 }
0x1d2f   :  { %v12189_v13 = vpop.f32.mrf.mxu1 }
0x1d30   :  { %v20716_v63 = vadd.f32 %v12189_v13, %v10132_v37 }
0x1d31   :  { %v17826_v56 = vpop.f32.mrf.mxu1 }
0x1d32   :  { %v12512_v24 = vadd.f32 %v17826_v56, %v20714_v31 }
0x1d33   :  { %v12506_v54 = vpop.f32.mrf.mxu1 }
0x1d34   :  { %v12507_v28 = vadd.f32 %v20714_v31, %v12506_v54  ;;  %17869 = vmatpush3.msra.mxu1 %v12512_v24 }
0x1d35   :  { %17878 = vmatprep.subr.mxu1 %v21384_v12  ;;  %v20721_v26 = vpop.f32.mrf.mxu1 }
0x1d36   :  { %17864 = vmatpush3.msra.mxu0 %v12507_v28 }
0x1d37   :  { %17873 = vmatprep.subr.mxu0 %v21384_v12  ;;  %v20724_v34 = vpop.f32.mrf.mxu1 }
0x1d39   :  { %v20726_v30 = vpop.f32.mrf.mxu1 }
0x1d3b   :  { %v20728_v22 = vpop.f32.mrf.mxu1 }
0x1d44   :  { %v12683_v14 = vpop.f32.mrf.mxu1 }
0x1d45   :  { %v12992_v43 = vmul.f32 0.14433756, %v12683_v14 }
0x1d46   :  { %v12607_v44 = vpop.f32.mrf.mxu0  ;;  %v17842_v52 = vpop.f32.mrf.mxu1 }
0x1d47   :  { %v12991_v55 = vmul.f32 0.14433756, %v12607_v44  ;;  %v13000_v27 = vsel %vm979_vm3, %v12992_v43, -inf }
0x1d48   :  { %13001 = vmax.xlane.f32.xlu0 %v13000_v27  ;;  %v17837_v7 = vpop.f32.mrf.mxu0  ;;  %v12835_v61 = vpop.f32.mrf.mxu1 }
0x1d49   :  { %v12994_v16 = vmul.f32 0.14433756, %v12835_v61  ;;  %v12997_v8 = vsel %vm979_vm3, %v12991_v55, -inf }
0x1d4a   :  { %v12759_v49 = vpop.f32.mrf.mxu0  ;;  %v17852_v48 = vpop.f32.mrf.mxu1 }
0x1d4b   :  { %v12993_v18 = vmul.f32 0.14433756, %v12759_v49  ;;  %v13006_v42 = vsel %vm979_vm3, %v12994_v16, -inf }
0x1d4c   :  { %13007 = vmax.xlane.f32.xlu1 %v13006_v42  ;;  %v12987_v60 = vpop.f32.mrf.mxu1  ;;  %12998 = vmax.xlane.f32.xlu0 %v12997_v8  ;;  %v17847_v51 = vpop.f32.mrf.mxu0 }
0x1d4d   :  { %v12996_v53 = vmul.f32 0.14433756, %v12987_v60  ;;  %v13003_v59 = vsel %vm979_vm3, %v12993_v18, -inf }
0x1d4e   :  { %v12911_v33 = vpop.f32.mrf.mxu0  ;;  %v17862_v45 = vpop.f32.mrf.mxu1 }
0x1d4f   :  { %v12995_v0 = vmul.f32 0.14433756, %v12911_v33  ;;  %v13012_v25 = vsel %vm979_vm3, %v12996_v53, -inf }
0x1d50   :  { %13013 = vmax.xlane.f32.xlu1 %v13012_v25  ;;  %13004 = vmax.xlane.f32.xlu0 %v13003_v59  ;;  %v17857_v47 = vpop.f32.mrf.mxu0 }
0x1d51   :  { %v13009_v46 = vsel %vm979_vm3, %v12995_v0, -inf }
0x1d54   :  { %13010 = vmax.xlane.f32.xlu1 %v13009_v46 }
0x1dd1   :  { %v13002_v37 = vpop.xlane.xlu0 %13001 }
0x1dd2   :  { %v13016_v13 = vsub.f32 %v12992_v43, %v13002_v37 }
0x1dd4   :  { %v13023_v56 = vmul.f32 1.442695, %v13016_v13 }
0x1dd5   :  { %v13008_v24 = vpop.xlane.xlu1 %13007  ;;  %v12999_v54 = vpop.xlane.xlu0 %12998 }
0x1dd6   :  { %18322 = vpow2.f32 %v13023_v56  ;;  %v13018_v28 = vsub.f32 %v12994_v16, %v13008_v24  ;;  %v13015_v14 = vsub.f32 %v12991_v55, %v12999_v54 }
0x1dd8   :  { %v13027_v44 = vmul.f32 1.442695, %v13018_v28  ;;  %v13021_v52 = vmul.f32 1.442695, %v13015_v14 }
0x1dd9   :  { %v13014_v27 = vpop.xlane.xlu1 %13013  ;;  %v13005_v7 = vpop.xlane.xlu0 %13004 }
0x1dda   :  { %18324 = vpow2.f32 %v13027_v44  ;;  %v13020_v61 = vsub.f32 %v12996_v53, %v13014_v27  ;;  %v13017_v49 = vsub.f32 %v12993_v18, %v13005_v7 }
0x1ddb   :  { %18326 = vpow2.f32 %v13021_v52  ;;  %v12522_v52 = vadd.f32 %v20721_v26, %v20714_v31 }
0x1ddc   :  { %v13031_v48 = vmul.f32 1.442695, %v13020_v61  ;;  %v13025_v42 = vmul.f32 1.442695, %v13017_v49  ;;  %v12532_v49 = vadd.f32 %v20726_v30, %v20714_v31 }
0x1ddd   :  { %v13011_v8 = vpop.xlane.xlu1 %13010 }
0x1dde   :  { %18328 = vpow2.f32 %v13031_v48  ;;  %v13019_v60 = vsub.f32 %v12995_v0, %v13011_v8  ;;  %v12517_v48 = vadd.f32 %v20714_v31, %v20724_v34 }
0x1ddf   :  { %18330 = vpow2.f32 %v13025_v42 }
0x1de0   :  { %v13029_v43 = vmul.f32 1.442695, %v13019_v60  ;;  %v12527_v60 = vadd.f32 %v20714_v31, %v20728_v22  ;;  %v20802_v22 = vld [vmem:[%s21379_s29 + $0xb8] sm:$0xff] }
0x1de2   :  { %18332 = vpow2.f32 %v13029_v43 }
0x1de3   :  { %v18323_v51 = vpop.eup %18322 }
0x1de4   :  { %v13036_v16 = vsel %vm979_vm3, %v18323_v51, 0.0 }
0x1de5   :  { %13037 = vadd.xlane.f32.xlu0 %v13036_v16 }
0x1de7   :  { %v18325_v55 = vpop.eup %18324 }
0x1de8   :  { %v18327_v33 = vpop.eup %18326  ;;  %v13042_v45 = vsel %vm979_vm3, %v18325_v55, 0.0 }
0x1de9   :  { %v13033_v53 = vsel %vm979_vm3, %v18327_v33, 0.0  ;;  %13043 = vadd.xlane.f32.xlu1 %v13042_v45 }
0x1dea   :  { %13034 = vadd.xlane.f32.xlu0 %v13033_v53 }
0x1deb   :  { %v18329_v18 = vpop.eup %18328 }
0x1dec   :  { %v18331_v25 = vpop.eup %18330  ;;  %v13048_v59 = vsel %vm979_vm3, %v18329_v18, 0.0 }
0x1ded   :  { %v13039_v0 = vsel %vm979_vm3, %v18331_v25, 0.0  ;;  %13049 = vadd.xlane.f32.xlu1 %v13048_v59 }
0x1dee   :  { %13040 = vadd.xlane.f32.xlu0 %v13039_v0 }
0x1def   :  { %v18333_v47 = vpop.eup %18332 }
0x1df0   :  { %v13045_v46 = vsel %vm979_vm3, %v18333_v47, 0.0 }
0x1df1   :  { %13046 = vadd.xlane.f32.xlu1 %v13045_v46 }
0x1e6e   :  { %v13038_v37 = vpop.xlane.xlu0 %13037 }
0x1e6f   :  { %18334 = vrcp.f32 %v13038_v37 }
0x1e72   :  { %v13044_v13 = vpop.xlane.xlu1 %13043 }
0x1e73   :  { %v13035_v56 = vpop.xlane.xlu0 %13034  ;;  %18336 = vrcp.f32 %v13044_v13 }
0x1e74   :  { %18338 = vrcp.f32 %v13035_v56 }
0x1e76   :  { %v13050_v24 = vpop.xlane.xlu1 %13049 }
0x1e77   :  { %v13041_v54 = vpop.xlane.xlu0 %13040  ;;  %18340 = vrcp.f32 %v13050_v24 }
0x1e78   :  { %18342 = vrcp.f32 %v13041_v54 }
0x1e7a   :  { %v13047_v28 = vpop.xlane.xlu1 %13046 }
0x1e7b   :  { %18344 = vrcp.f32 %v13047_v28 }
0x1e7c   :  { %v18335_v14 = vpop.eup %18334 }
0x1e7d   :  { %v20742_v44 = vmul.f32 %v18335_v14, %v18323_v51 }
0x1e7f   :  { %15866 = vst.msk [vmem:[%s18700_s27 + $0x98] sm:$0xff] %vm979_vm3, %v20742_v44  ;;  %17871 = vmatmul.mubr.msk.f32.vlgmr.msra.gmra.mxu1 %vm979_vm3, %v20742_v44 }
0x1e80   :  { %v18337_v27 = vpop.eup %18336  ;;  %17879 = vmatpush3.msra.mxu1 %v12522_v52  ;;  %17880 = vmatprep.mubr.msk.f32.mxu1 %vm18507_vm1, %v21384_v12 }
0x1e81   :  { %v18339_v7 = vpop.eup %18338  ;;  %v20753_v61 = vmul.f32 %v18337_v27, %v18325_v55  ;;  %17888 = vmatprep.subr.mxu1 %v21384_v12 }
0x1e82   :  { %v20758_v26 = vmul.f32 %v18339_v7, %v18327_v33 }
0x1e83   :  { %15868 = vst.msk [vmem:[%s18700_s27 + $0xa8] sm:$0xff] %vm979_vm3, %v20753_v61  ;;  %17881 = vmatmul.mubr.msk.f32.vlgmr.msra.gmra.mxu1 %vm979_vm3, %v20753_v61 }
0x1e84   :  { %v18341_v42 = vpop.eup %18340  ;;  %15865 = vst.msk [vmem:[%s18700_s27 + $0x90] sm:$0xff] %vm979_vm3, %v20758_v26  ;;  %17866 = vmatmul.mubr.msk.f32.vlgmr.msra.gmra.mxu0 %vm979_vm3, %v20758_v26  ;;  %17889 = vmatpush3.msra.mxu1 %v12532_v49 }
0x1e85   :  { %v18343_v30 = vpop.eup %18342  ;;  %v20772_v8 = vmul.f32 %v18341_v42, %v18329_v18  ;;  %17874 = vmatpush3.msra.mxu0 %v12517_v48  ;;  %17875 = vmatprep.mubr.msk.f32.mxu0 %vm18507_vm1, %v21384_v12 }
0x1e86   :  { %v20776_v34 = vmul.f32 %v18343_v30, %v18331_v25  ;;  %17883 = vmatprep.subr.mxu0 %v21384_v12  ;;  %17890 = vmatprep.mubr.msk.f32.mxu1 %vm18507_vm1, %v21384_v12 }
0x1e87   :  { %15870 = vst.msk [vmem:[%s18700_s27 + $0xb8] sm:$0xff] %vm979_vm3, %v20772_v8  ;;  %17914 = vmatprep.subr.mxu1 %v20595_v1  ;;  %17891 = vmatmul.mubr.msk.f32.vlgmr.msra.gmra.mxu1 %vm979_vm3, %v20772_v8 }
0x1e88   :  { %v18345_v43 = vpop.eup %18344  ;;  %15867 = vst.msk [vmem:[%s18700_s27 + $0xa0] sm:$0xff] %vm979_vm3, %v20776_v34  ;;  %17876 = vmatmul.mubr.msk.f32.vlgmr.msra.gmra.mxu0 %vm979_vm3, %v20776_v34  ;;  %17915 = vmatpush3.msra.mxu1 %v20595_v1  ;;  %v20814_v1 = vld [vmem:[%s21379_s29 + $0xb0] sm:$0xff] }
0x1e89   :  { %v20795_v51 = vmul.f32 %v18345_v43, %v18333_v47  ;;  %17884 = vmatpush3.msra.mxu0 %v12527_v60  ;;  %17916 = vmatprep.subr.mxu1 %v20624_v35 }
0x1e8a   :  { %17917 = vmatpush3.msra.mxu1 %v20624_v35  ;;  %17885 = vmatprep.mubr.msk.f32.mxu0 %vm18507_vm1, %v21384_v12  ;;  %v20821_v35 = vld [vmem:[%s21379_s29 + $0xa8] sm:$0xff] }
0x1e8b   :  { %15869 = vst.msk [vmem:[%s18700_s27 + $0xb0] sm:$0xff] %vm979_vm3, %v20795_v51  ;;  %17918 = vmatprep.subr.mxu1 %v20629_v36  ;;  %17922 = vmatprep.mubr.msk.f32.mxu1 %vm198_vm0, %v20443_v11  ;;  %v20841_v11 = vld [vmem:[%s21379_s29 + $0xa0] sm:$0xff]  ;;  %s21398_s27 = sld [smem:[#allocation24_spill]] }
0x1e8c   :  { %17886 = vmatmul.mubr.msk.f32.vlgmr.msra.gmra.mxu0 %vm979_vm3, %v20795_v51  ;;  %17919 = vmatpush3.msra.mxu1 %v20629_v36 }
0x1e8d   :  { %17920 = vmatprep.subr.mxu1 %v20635_v32  ;;  %17893 = vmatprep.subr.mxu0 %v20802_v22 }
0x1e8e   :  { %17921 = vmatpush3.msra.mxu1 %v20635_v32  ;;  %17894 = vmatpush3.msra.mxu0 %v20802_v22 }
0x1e8f   :  { %17923 = vmatmul.mubr.msk.f32.vlgmr.msra.gmra.mxu1 %vm198_vm0, %v20463_v38  ;;  %17895 = vmatprep.subr.mxu0 %v20814_v1  ;;  %v20846_v38 = vld [vmem:[%s21379_s29 + $0x98] sm:$0xff] }
0x1e90   :  { %17925 = vmatprep.mubr.msk.f32.mxu1 %vm198_vm0, %v20469_v10  ;;  %17896 = vmatpush3.msra.mxu0 %v20814_v1  ;;  %v20851_v10 = vld [vmem:[%s21379_s29 + $0x90] sm:$0xff] }
0x1e91   :  { %17897 = vmatprep.subr.mxu0 %v20821_v35  ;;  %17931 = vmatprep.subr.mxu1 %v21384_v12 }
0x1e92   :  { %17898 = vmatpush3.msra.mxu0 %v20821_v35 }
0x1e93   :  { %17926 = vmatmul.mubr.msk.f32.gmra.mxu1 %vm198_vm0, %v20477_v2  ;;  %17899 = vmatprep.subr.mxu0 %v20841_v11 }
0x1e94   :  { %17928 = vmatprep.mubr.msk.f32.mxu1 %vm198_vm0, %v20482_v4  ;;  %17900 = vmatpush3.msra.mxu0 %v20841_v11 }
0x1e95   :  { %17901 = vmatprep.subr.mxu0 %v20846_v38 }
0x1e96   :  { %17902 = vmatpush3.msra.mxu0 %v20846_v38 }
0x1e97   :  { %17929 = vmatmul.mubr.msk.f32.gmra.mxu1 %vm198_vm0, %v20487_v40  ;;  %17903 = vmatprep.subr.mxu0 %v20851_v10 }
0x1e98   :  { %17933 = vmatprep.mubr.msk.f32.mxu1 %vm18507_vm1, %v21384_v12  ;;  %17904 = vmatpush3.msra.mxu0 %v20851_v10 }
0x1e99   :  { %17936 = vmatprep.subr.mxu0 %v21384_v12 }
0x1f3f   :  { %v13212_v2 = vpop.f32.mrf.mxu1 }
0x1f41   :  { %v17872_v4 = vpop.f32.mrf.mxu1 }
0x1f43   :  { %v13358_v40 = vpop.f32.mrf.mxu1 }
0x1f44   :  { %v13139_v36 = vpop.f32.mrf.mxu0 }
0x1f45   :  { %17905 = vmatprep.mubr.msk.f32.mxu0 %vm516_vm2, %v13139_v36  ;;  %v17882_v32 = vpop.f32.mrf.mxu1 }
0x1f46   :  { %v17867_v16 = vpop.f32.mrf.mxu0  ;;  %17906 = vmatmul.mubr.msk.f32.vlgmr.msra.gmra.mxu0 %vm516_vm2, %v13212_v2 }
0x1f47   :  { %v13504_v55 = vpop.f32.mrf.mxu1 }
0x1f48   :  { %v13285_v33 = vpop.f32.mrf.mxu0 }
0x1f49   :  { %17908 = vmatprep.mubr.msk.f32.mxu0 %vm516_vm2, %v13285_v33  ;;  %v17892_v45 = vpop.f32.mrf.mxu1 }
0x1f4a   :  { %v17877_v53 = vpop.f32.mrf.mxu0  ;;  %17909 = vmatmul.mubr.msk.f32.gmra.mxu0 %vm516_vm2, %v13358_v40 }
0x1f4c   :  { %v13431_v18 = vpop.f32.mrf.mxu0 }
0x1f4d   :  { %17911 = vmatprep.mubr.msk.f32.mxu0 %vm516_vm2, %v13431_v18 }
0x1f4e   :  { %v17887_v25 = vpop.f32.mrf.mxu0  ;;  %17912 = vmatmul.mubr.msk.f32.gmra.mxu0 %vm516_vm2, %v13504_v55 }
0x1f4f   :  { %v17924_v59 = vpop.f32.mrf.mxu1  ;;  %17938 = vmatprep.mubr.msk.f32.mxu0 %vm18507_vm1, %v21384_v12 }
0x1f50   :  { %v13706_v0 = vadd.f32 %v17924_v59, %v20714_v31 }
0x1f51   :  { %v13700_v47 = vpop.f32.mrf.mxu1 }
0x1f52   :  { %v13701_v46 = vadd.f32 %v20714_v31, %v13700_v47  ;;  %17937 = vmatpush3.msra.mxu0 %v13706_v0 }
0x1f53   :  { %v17927_v37 = vpop.f32.mrf.mxu1  ;;  %17939 = vmatmul.mubr.msk.f32.vlgmr.msra.gmra.mxu0 %vm979_vm3, %v20742_v44  ;;  %17946 = vmatprep.subr.mxu0 %v21384_v12 }
0x1f54   :  { %v13716_v13 = vadd.f32 %v17927_v37, %v20714_v31  ;;  %17932 = vmatpush3.msra.mxu1 %v13701_v46  ;;  %17948 = vmatprep.mubr.msk.f32.mxu0 %vm18507_vm1, %v21384_v12 }
0x1f55   :  { %v13710_v56 = vpop.f32.mrf.mxu1  ;;  %17934 = vmatmul.mubr.msk.f32.vlgmr.msra.gmra.mxu1 %vm979_vm3, %v20758_v26  ;;  %17941 = vmatprep.subr.mxu1 %v21384_v12 }
0x1f56   :  { %v13711_v24 = vadd.f32 %v20714_v31, %v13710_v56  ;;  %17947 = vmatpush3.msra.mxu0 %v13716_v13  ;;  %17943 = vmatprep.mubr.msk.f32.mxu1 %vm18507_vm1, %v21384_v12 }
0x1f57   :  { %v17930_v54 = vpop.f32.mrf.mxu1  ;;  %17949 = vmatmul.mubr.msk.f32.vlgmr.msra.gmra.mxu0 %vm979_vm3, %v20753_v61  ;;  %17956 = vmatprep.subr.mxu0 %v21384_v12 }
0x1f58   :  { %v13726_v28 = vadd.f32 %v17930_v54, %v20714_v31  ;;  %17942 = vmatpush3.msra.mxu1 %v13711_v24  ;;  %17958 = vmatprep.mubr.msk.f32.mxu0 %vm18507_vm1, %v21384_v12 }
0x1f59   :  { %v13720_v14 = vpop.f32.mrf.mxu1  ;;  %17944 = vmatmul.mubr.msk.f32.vlgmr.msra.gmra.mxu1 %vm979_vm3, %v20776_v34  ;;  %17951 = vmatprep.subr.mxu1 %v21384_v12 }
0x1f5a   :  { %v13721_v44 = vadd.f32 %v20714_v31, %v13720_v14  ;;  %17957 = vmatpush3.msra.mxu0 %v13726_v28  ;;  %17953 = vmatprep.mubr.msk.f32.mxu1 %vm18507_vm1, %v21384_v12  ;;  %v20907_v31 = vld [vmem:[%s21389_s9] ss:$0 sm:$0xff] }
0x1f5b   :  { %17959 = vmatmul.mubr.msk.f32.vlgmr.msra.gmra.mxu0 %vm979_vm3, %v20772_v8 }
0x1f5c   :  { %17952 = vmatpush3.msra.mxu1 %v13721_v44 }
0x1f5d   :  { %17954 = vmatmul.mubr.msk.f32.vlgmr.msra.gmra.mxu1 %vm979_vm3, %v20795_v51  ;;  %17961 = vmatprep.subr.mxu1 %v20802_v22 }
0x1f5e   :  { %17962 = vmatpush3.msra.mxu1 %v20802_v22 }
0x1f5f   :  { %17963 = vmatprep.subr.mxu1 %v20814_v1 }
0x1f60   :  { %17964 = vmatpush3.msra.mxu1 %v20814_v1 }
0x1f61   :  { %17965 = vmatprep.subr.mxu1 %v20821_v35 }
0x1f62   :  { %17966 = vmatpush3.msra.mxu1 %v20821_v35 }
0x1f63   :  { %17967 = vmatprep.subr.mxu1 %v20841_v11 }
0x1f64   :  { %17968 = vmatpush3.msra.mxu1 %v20841_v11 }
0x1f65   :  { %17969 = vmatprep.subr.mxu1 %v20846_v38 }
0x1f66   :  { %17970 = vmatpush3.msra.mxu1 %v20846_v38 }
0x1f67   :  { %17971 = vmatprep.subr.mxu1 %v20851_v10 }
0x1f68   :  { %17972 = vmatpush3.msra.mxu1 %v20851_v10 }
0x2006   :  { %v17907_v12 = vpop.f32.mrf.mxu0 }
0x2007   :  { %v13622_v52 = vadd.f32 %v17907_v12, %v20602_v15 }
0x2008   :  { %v13592_v27 = vpop.f32.mrf.mxu0 }
0x2009   :  { %v14276_v7 = vadd.f32 %v20907_v31, %v13622_v52  ;;  %v13621_v61 = vadd.f32 %v13592_v27, %v20606_v3 }
0x200a   :  { %v17910_v49 = vpop.f32.mrf.mxu0 }
0x200b   :  { %v14275_v26 = vadd.f32 %v20907_v31, %v13621_v61  ;;  %v13624_v48 = vadd.f32 %v17910_v49, %v20610_v20  ;;  %v14288_v42 = vadd.f32 %v14276_v7, %v19530_v41 }
0x200c   :  { %v13602_v30 = vpop.f32.mrf.mxu0 }
0x200d   :  { %v14278_v8 = vadd.f32 %v20907_v31, %v13624_v48  ;;  %v13623_v34 = vadd.f32 %v13602_v30, %v20614_v6  ;;  %v14296_v60 = vsel %vm198_vm0, %v14288_v42, 0.0  ;;  %v14287_v15 = vadd.f32 %v14275_v26, %v19527_v23 }
0x200e   :  { %14297 = vadd.xlane.f32.xlu0 %v14296_v60  ;;  %v17913_v43 = vpop.f32.mrf.mxu0 }
0x200f   :  { %v14277_v3 = vadd.f32 %v20907_v31, %v13623_v34  ;;  %v14293_v20 = vsel %vm198_vm0, %v14287_v15, 0.0  ;;  %v14290_v41 = vadd.f32 %v14278_v8, %v19542_v58  ;;  %v13626_v35 = vadd.f32 %v17913_v43, %v20618_v39 }
0x2010   :  { %v13612_v51 = vpop.f32.mrf.mxu0 }
0x2011   :  { %v13625_v22 = vadd.f32 %v13612_v51, %v20620_v62  ;;  %v14302_v23 = vsel %vm198_vm0, %v14290_v41, 0.0  ;;  %v14289_v10 = vadd.f32 %v14277_v3, %v19539_v50  ;;  %v14280_v58 = vadd.f32 %v20907_v31, %v13626_v35  ;;  %v14496_v51 = vld [vmem:[%s21390_s3 + $0x18] sm:$0xff]  ;;  %v14495_v3 = vld [vmem:[%s21390_s3 + $0x10] sm:$0xff] }
0x2012   :  { %14294 = vadd.xlane.f32.xlu0 %v14293_v20  ;;  %17982 = vmatprep.subr.mxu0 %v14496_v51  ;;  %v14493_v20 = vld [vmem:[%s21390_s3] sm:$0xff] }
0x2013   :  { %v13865_v1 = vpop.f32.mrf.mxu0  ;;  %v14279_v6 = vadd.f32 %v20907_v31, %v13625_v22  ;;  %v14299_v39 = vsel %vm198_vm0, %v14289_v10, 0.0  ;;  %v14292_v45 = vadd.f32 %v14280_v58, %v19551_v19  ;;  %17983 = vmatpush3.msra.mxu0 %v14496_v51  ;;  %v14494_v22 = vld [vmem:[%s21390_s3 + $0x8] sm:$0xff] }
0x2014   :  { %17984 = vmatprep.subr.mxu0 %v14495_v3 }
0x2015   :  { %v13795_v11 = vpop.f32.mrf.mxu1  ;;  %v17940_v38 = vpop.f32.mrf.mxu0  ;;  %v14291_v36 = vadd.f32 %v14279_v6, %v19549_v17  ;;  %v14308_v17 = vsel %vm198_vm0, %v14292_v45, 0.0  ;;  %17985 = vmatpush3.msra.mxu0 %v14495_v3 }
0x2016   :  { %17973 = vmatprep.mubr.msk.f32.mxu1 %vm516_vm2, %v13795_v11  ;;  %14303 = vadd.xlane.f32.xlu0 %v14302_v23 }
0x2017   :  { %v17935_v62 = vpop.f32.mrf.mxu1  ;;  %v14005_v2 = vpop.f32.mrf.mxu0  ;;  %17974 = vmatmul.mubr.msk.f32.vlgmr.msra.gmra.mxu1 %vm516_vm2, %v13865_v1  ;;  %v14305_v33 = vsel %vm198_vm0, %v14291_v36, 0.0  ;;  %17986 = vmatprep.subr.mxu0 %v14494_v22 }
0x2018   :  { %17987 = vmatpush3.msra.mxu0 %v14494_v22  ;;  %v18418_v62 = vld [vmem:[%s21378_s25 + $0x8] sm:$0xff]  ;;  %v21021_v22 = vld [vmem:[%s21393_s19] ss:$0 sm:$0xff] }
0x2019   :  { %v13935_v4 = vpop.f32.mrf.mxu1  ;;  %v17950_v40 = vpop.f32.mrf.mxu0  ;;  %17988 = vmatprep.subr.mxu0 %v14493_v20 }
0x201a   :  { %14300 = vadd.xlane.f32.xlu0 %v14299_v39  ;;  %17976 = vmatprep.mubr.msk.f32.mxu1 %vm516_vm2, %v13935_v4  ;;  %v18419_v39 = vld [vmem:[%s21378_s25] sm:$0xff] }
0x201b   :  { %v17945_v32 = vpop.f32.mrf.mxu1  ;;  %v14145_v50 = vpop.f32.mrf.mxu0  ;;  %17977 = vmatmul.mubr.msk.f32.gmra.mxu1 %vm516_vm2, %v14005_v2  ;;  %17989 = vmatpush3.msra.mxu0 %v14493_v20 }
0x201d   :  { %v14075_v16 = vpop.f32.mrf.mxu1  ;;  %v17960_v55 = vpop.f32.mrf.mxu0 }
0x201e   :  { %17979 = vmatprep.mubr.msk.f32.mxu1 %vm516_vm2, %v14075_v16  ;;  %14306 = vadd.xlane.f32.xlu0 %v14305_v33 }
0x201f   :  { %v17955_v53 = vpop.f32.mrf.mxu1  ;;  %17980 = vmatmul.mubr.msk.f32.gmra.mxu1 %vm516_vm2, %v14145_v50 }
0x2022   :  { %14309 = vadd.xlane.f32.xlu0 %v14308_v17  ;;  %v18421_v17 = vld [vmem:[%s21378_s25 + $0x10] sm:$0xff] }
0x2097   :  { %v14298_v18 = vpop.xlane.xlu0 %14297 }
0x2098   :  { %v14312_v25 = vmul.f32 0.03125, %v14298_v18 }
0x209a   :  { %v20939_v47 = vsub.f32 %v14288_v42, %v14312_v25 }
0x209b   :  { %v14295_v59 = vpop.xlane.xlu0 %14294 }
0x209c   :  { %v14311_v0 = vmul.f32 0.03125, %v14295_v59  ;;  %v14324_v24 = vmul.f32 %v20939_v47, %v20939_v47  ;;  %v18422_v59 = vld [vmem:[%s21378_s25 + $0x20] sm:$0xff] }
0x209e   :  { %v20941_v46 = vsub.f32 %v14287_v15, %v14311_v0  ;;  %v14332_v12 = vsel %vm198_vm0, %v14324_v24, 0.0 }
0x209f   :  { %v14304_v37 = vpop.xlane.xlu0 %14303 }
0x20a0   :  { %v14323_v19 = vmul.f32 %v20941_v46, %v20941_v46  ;;  %v14314_v13 = vmul.f32 0.03125, %v14304_v37  ;;  %v18423_v37 = vld [vmem:[%s21378_s25 + $0x28] sm:$0xff] }
0x20a2   :  { %v14329_v56 = vsel %vm198_vm0, %v14323_v19, 0.0  ;;  %v20948_v14 = vsub.f32 %v14290_v41, %v14314_v13 }
0x20a3   :  { %v14301_v54 = vpop.xlane.xlu0 %14300  ;;  %14330 = vadd.xlane.f32.xlu0 %v14329_v56  ;;  %v14638_v56 = vld [vmem:[%s21391_s8 + $0x78] sm:$0xff] }
0x20a4   :  { %v14313_v28 = vmul.f32 0.03125, %v14301_v54  ;;  %v14326_v26 = vmul.f32 %v20948_v14, %v20948_v14  ;;  %17999 = vmatprep.subr.mxu0 %v14638_v56 }
0x20a6   :  { %v20950_v44 = vsub.f32 %v14289_v10, %v14313_v28  ;;  %v14338_v8 = vsel %vm198_vm0, %v14326_v26, 0.0 }
0x20a7   :  { %14333 = vadd.xlane.f32.xlu0 %v14332_v12  ;;  %v14307_v52 = vpop.xlane.xlu0 %14306 }
0x20a8   :  { %v14315_v27 = vmul.f32 0.03125, %v14307_v52  ;;  %v14325_v7 = vmul.f32 %v20950_v44, %v20950_v44 }
0x20aa   :  { %v20955_v61 = vsub.f32 %v14291_v36, %v14315_v27  ;;  %v14335_v49 = vsel %vm198_vm0, %v14325_v7, 0.0 }
0x20ab   :  { %14336 = vadd.xlane.f32.xlu0 %v14335_v49  ;;  %v14310_v48 = vpop.xlane.xlu0 %14309 }
0x20ac   :  { %v14316_v42 = vmul.f32 0.03125, %v14310_v48  ;;  %v14327_v34 = vmul.f32 %v20955_v61, %v20955_v61 }
0x20ae   :  { %v20960_v30 = vsub.f32 %v14292_v45, %v14316_v42  ;;  %v14341_v60 = vsel %vm198_vm0, %v14327_v34, 0.0 }
0x20af   :  { %14339 = vadd.xlane.f32.xlu0 %v14338_v8 }
0x20b0   :  { %v14328_v15 = vmul.f32 %v20960_v30, %v20960_v30 }
0x20b2   :  { %v14344_v43 = vsel %vm198_vm0, %v14328_v15, 0.0  ;;  %v21017_v15 = vld [vmem:[%s21392_s14] ss:$0 sm:$0xff] }
0x20b3   :  { %14342 = vadd.xlane.f32.xlu0 %v14341_v60 }
0x20b7   :  { %14345 = vadd.xlane.f32.xlu0 %v14344_v43 }
0x20d7   :  { %v17975_v41 = vpop.f32.mrf.mxu1 }
0x20d8   :  { %v14263_v1 = vadd.f32 %v17975_v41, %v20695_v9 }
0x20d9   :  { %v14233_v35 = vpop.f32.mrf.mxu1 }
0x20da   :  { %v14282_v6 = vadd.f32 %v20907_v31, %v14263_v1  ;;  %v14262_v11 = vadd.f32 %v14233_v35, %v20699_v29 }
0x20db   :  { %v17978_v38 = vpop.f32.mrf.mxu1 }
0x20dc   :  { %v14281_v23 = vadd.f32 %v20907_v31, %v14262_v11  ;;  %v14265_v10 = vadd.f32 %v17978_v38, %v20703_v57  ;;  %v20979_v2 = vadd.f32 %v18418_v62, %v14282_v6  ;;  %v14637_v62 = vld [vmem:[%s21391_s8 + $0x70] sm:$0xff] }
0x20dd   :  { %v14243_v58 = vpop.f32.mrf.mxu1 }
0x20de   :  { %v14284_v4 = vadd.f32 %v20907_v31, %v14265_v10  ;;  %v14264_v40 = vadd.f32 %v14243_v58, %v20707_v21  ;;  %v14406_v9 = vsel %vm198_vm0, %v20979_v2, 0.0  ;;  %v20986_v29 = vadd.f32 %v18419_v39, %v14281_v23  ;;  %v18420_v21 = vld [vmem:[%s21378_s25 + $0x18] sm:$0xff]  ;;  %v14635_v39 = vld [vmem:[%s21391_s8 + $0x60] sm:$0xff] }
0x20df   :  { %14407 = vadd.xlane.f32.xlu1 %v14406_v9  ;;  %v17981_v36 = vpop.f32.mrf.mxu1 }
0x20e0   :  { %v14283_v57 = vadd.f32 %v20907_v31, %v14264_v40  ;;  %v14403_v16 = vsel %vm198_vm0, %v20986_v29, 0.0  ;;  %v20993_v55 = vadd.f32 %v18420_v21, %v14284_v4  ;;  %v14267_v33 = vadd.f32 %v17981_v36, %v20711_v5  ;;  %v14636_v4 = vld [vmem:[%s21391_s8 + $0x68] sm:$0xff] }
0x20e1   :  { %v14253_v32 = vpop.f32.mrf.mxu1 }
0x20e2   :  { %v14266_v50 = vadd.f32 %v14253_v32, %v20716_v63  ;;  %v14412_v53 = vsel %vm198_vm0, %v20993_v55, 0.0  ;;  %v21000_v18 = vadd.f32 %v18421_v17, %v14283_v57  ;;  %v14286_v63 = vadd.f32 %v20907_v31, %v14267_v33 }
0x20e3   :  { %14404 = vadd.xlane.f32.xlu1 %v14403_v16 }
0x20e4   :  { %v14285_v45 = vadd.f32 %v20907_v31, %v14266_v50  ;;  %v14409_v25 = vsel %vm198_vm0, %v21000_v18, 0.0  ;;  %v21011_v19 = vadd.f32 %v18423_v37, %v14286_v63 }
0x20e6   :  { %v21006_v0 = vadd.f32 %v18422_v59, %v14285_v45  ;;  %v14418_v13 = vsel %vm198_vm0, %v21011_v19, 0.0 }
0x20e7   :  { %14413 = vadd.xlane.f32.xlu1 %v14412_v53 }
0x20e8   :  { %v14415_v5 = vsel %vm198_vm0, %v21006_v0, 0.0 }
0x20eb   :  { %14410 = vadd.xlane.f32.xlu1 %v14409_v25 }
0x20ef   :  { %14416 = vadd.xlane.f32.xlu1 %v14415_v5 }
0x20f3   :  { %14419 = vadd.xlane.f32.xlu1 %v14418_v13 }
0x212c   :  { %v14331_v31 = vpop.xlane.xlu0 %14330 }
0x212d   :  { %v14347_v24 = vmul.f32 0.03125, %v14331_v31 }
0x212f   :  { %v14353_v54 = vadd.f32 1e-05, %v14347_v24 }
0x2130   :  { %v14334_v28 = vpop.xlane.xlu0 %14333 }
0x2131   :  { %18346 = vrsqrt.f32 %v14353_v54  ;;  %v14348_v12 = vmul.f32 0.03125, %v14334_v28 }
0x2133   :  { %v14354_v52 = vadd.f32 1e-05, %v14348_v12 }
0x2134   :  { %v14337_v27 = vpop.xlane.xlu0 %14336 }
0x2135   :  { %18348 = vrsqrt.f32 %v14354_v52  ;;  %v14349_v7 = vmul.f32 0.03125, %v14337_v27 }
0x2137   :  { %v14355_v49 = vadd.f32 1e-05, %v14349_v7  ;;  %v14634_v7 = vld [vmem:[%s21391_s8 + $0x58] sm:$0xff] }
0x2138   :  { %v14340_v26 = vpop.xlane.xlu0 %14339 }
0x2139   :  { %18350 = vrsqrt.f32 %v14355_v49  ;;  %v14350_v48 = vmul.f32 0.03125, %v14340_v26 }
0x213b   :  { %v14356_v42 = vadd.f32 1e-05, %v14350_v48 }
0x213c   :  { %v14343_v8 = vpop.xlane.xlu0 %14342 }
0x213d   :  { %18352 = vrsqrt.f32 %v14356_v42  ;;  %v14351_v34 = vmul.f32 0.03125, %v14343_v8 }
0x213e   :  { %v18347_v60 = vpop.eup %18346 }
0x213f   :  { %v14357_v43 = vadd.f32 1e-05, %v14351_v34  ;;  %v14365_v51 = vmul.f32 %v18347_v60, %v20941_v46  ;;  %v14632_v34 = vld [vmem:[%s21391_s8 + $0x48] sm:$0xff] }
0x2140   :  { %v14346_v3 = vpop.xlane.xlu0 %14345 }
0x2141   :  { %18354 = vrsqrt.f32 %v14357_v43  ;;  %v14352_v20 = vmul.f32 0.03125, %v14346_v3  ;;  %v14378_v41 = vmul.f32 %v21017_v15, %v14365_v51  ;;  %v14631_v43 = vld [vmem:[%s21391_s8 + $0x40] sm:$0xff]  ;;  %v14630_v3 = vld [vmem:[%s21391_s8 + $0x38] sm:$0xff] }
0x2142   :  { %v18349_v1 = vpop.eup %18348 }
0x2143   :  { %v14366_v35 = vmul.f32 %v18349_v1, %v20939_v47  ;;  %v14358_v6 = vadd.f32 1e-05, %v14352_v20  ;;  %v21026_v11 = vadd.f32 %v21021_v22, %v14378_v41  ;;  %v14628_v41 = vld [vmem:[%s21391_s8 + $0x28] sm:$0xff]  ;;  %v14627_v1 = vld [vmem:[%s21391_s8 + $0x20] sm:$0xff] }
0x2145   :  { %v14379_v38 = vmul.f32 %v21017_v15, %v14366_v35  ;;  %18356 = vrsqrt.f32 %v14358_v6  ;;  %17990 = vmatprep.mubr.msk.f32.mxu0 %vm198_vm0, %v21026_v11  ;;  %v14626_v35 = vld [vmem:[%s21391_s8 + $0x18] sm:$0xff]  ;;  %v14625_v6 = vld [vmem:[%s21391_s8 + $0x10] sm:$0xff] }
0x2146   :  { %v18351_v46 = vpop.eup %18350 }
0x2147   :  { %v21032_v23 = vadd.f32 %v21021_v22, %v14379_v38  ;;  %v14367_v10 = vmul.f32 %v18351_v46, %v20950_v44  ;;  %v14624_v38 = vld [vmem:[%s21391_s8 + $0x8] sm:$0xff]  ;;  %v14623_v46 = vld [vmem:[%s21391_s8] sm:$0xff] }
0x2149   :  { %17991 = vmatmul.mubr.msk.f32.vlgmr.msra.gmra.mxu0 %vm198_vm0, %v21032_v23  ;;  %v14380_v47 = vmul.f32 %v21017_v15, %v14367_v10  ;;  %v14860_v10 = vld [vmem:[%s21394_s24 + $0x18] sm:$0xff] }
0x214a   :  { %v18353_v58 = vpop.eup %18352  ;;  %18000 = vmatpush3.msra.mxu0 %v14638_v56  ;;  %18040 = vmatprep.subr.mxu1 %v14860_v10 }
0x214b   :  { %v14368_v40 = vmul.f32 %v18353_v58, %v20948_v14  ;;  %v21042_v9 = vadd.f32 %v21021_v22, %v14380_v47  ;;  %18001 = vmatprep.subr.mxu0 %v14637_v62  ;;  %18041 = vmatpush3.msra.mxu1 %v14860_v10  ;;  %v14858_v47 = vld [vmem:[%s21394_s24 + $0x8] sm:$0xff]  ;;  %v14857_v58 = vld [vmem:[%s21394_s24] sm:$0xff] }
0x214c   :  { %18002 = vmatpush3.msra.mxu0 %v14637_v62  ;;  %v14859_v62 = vld [vmem:[%s21394_s24 + $0x10] sm:$0xff]  ;;  %v14999_v10 = vld [vmem:[%s21395_s6 + $0x60] sm:$0xff] }
0x214d   :  { %17993 = vmatprep.mubr.msk.f32.mxu0 %vm198_vm0, %v21042_v9  ;;  %v14381_v44 = vmul.f32 %v21017_v15, %v14368_v40  ;;  %18003 = vmatprep.subr.mxu0 %v14636_v4 }
0x214e   :  { %v18355_v36 = vpop.eup %18354  ;;  %18004 = vmatpush3.msra.mxu0 %v14636_v4  ;;  %18042 = vmatprep.subr.mxu1 %v14859_v62  ;;  %v15002_v4 = vld [vmem:[%s21395_s6 + $0x78] sm:$0xff] }
0x214f   :  { %v21049_v32 = vadd.f32 %v21021_v22, %v14381_v44  ;;  %v14369_v57 = vmul.f32 %v18355_v36, %v20955_v61  ;;  %18005 = vmatprep.subr.mxu0 %v14635_v39  ;;  %18043 = vmatpush3.msra.mxu1 %v14859_v62 }
0x2150   :  { %18006 = vmatpush3.msra.mxu0 %v14635_v39  ;;  %18044 = vmatprep.subr.mxu1 %v14858_v47 }
0x2151   :  { %17994 = vmatmul.mubr.msk.f32.gmra.mxu0 %vm198_vm0, %v21049_v32  ;;  %v14382_v14 = vmul.f32 %v21017_v15, %v14369_v57  ;;  %18007 = vmatprep.subr.mxu0 %v14634_v7 }
0x2152   :  { %v18357_v50 = vpop.eup %18356  ;;  %18008 = vmatpush3.msra.mxu0 %v14634_v7  ;;  %18045 = vmatpush3.msra.mxu1 %v14858_v47 }
0x2153   :  { %v14370_v16 = vmul.f32 %v18357_v50, %v20960_v30  ;;  %v21057_v21 = vadd.f32 %v21021_v22, %v14382_v14  ;;  %18046 = vmatprep.subr.mxu1 %v14857_v58 }
0x2154   :  { %18047 = vmatpush3.msra.mxu1 %v14857_v58 }
0x2155   :  { %17996 = vmatprep.mubr.msk.f32.mxu0 %vm198_vm0, %v21057_v21  ;;  %v14383_v33 = vmul.f32 %v21017_v15, %v14370_v16  ;;  %18057 = vmatprep.subr.mxu1 %v15002_v4 }
0x2157   :  { %v21063_v61 = vadd.f32 %v21021_v22, %v14383_v33 }
0x2159   :  { %17997 = vmatmul.mubr.msk.f32.gmra.mxu0 %vm198_vm0, %v21063_v61 }
0x2168   :  { %v14408_v45 = vpop.xlane.xlu1 %14407 }
0x2169   :  { %v14422_v53 = vmul.f32 0.03125, %v14408_v45 }
0x216b   :  { %v21068_v17 = vsub.f32 %v20979_v2, %v14422_v53 }
0x216c   :  { %v14405_v30 = vpop.xlane.xlu1 %14404 }
0x216d   :  { %v14421_v63 = vmul.f32 0.03125, %v14405_v30  ;;  %v14434_v25 = vmul.f32 %v21068_v17, %v21068_v17 }
0x216f   :  { %v21073_v59 = vsub.f32 %v20986_v29, %v14421_v63  ;;  %v14442_v5 = vsel %vm198_vm0, %v14434_v25, 0.0  ;;  %v15906_v63 = vld [vmem:[%s21396_s12] ss:$0 sm:$0xff] }
0x2170   :  { %v14414_v37 = vpop.xlane.xlu1 %14413  ;;  %14443 = vadd.xlane.f32.xlu1 %v14442_v5 }
0x2171   :  { %v14424_v13 = vmul.f32 0.03125, %v14414_v37  ;;  %v14433_v56 = vmul.f32 %v21073_v59, %v21073_v59 }
0x2173   :  { %v21079_v2 = vsub.f32 %v20993_v55, %v14424_v13  ;;  %v14439_v31 = vsel %vm198_vm0, %v14433_v56, 0.0 }
0x2174   :  { %v14411_v24 = vpop.xlane.xlu1 %14410  ;;  %14440 = vadd.xlane.f32.xlu1 %v14439_v31 }
0x2175   :  { %v14423_v54 = vmul.f32 0.03125, %v14411_v24  ;;  %v14436_v29 = vmul.f32 %v21079_v2, %v21079_v2 }
0x2177   :  { %v21085_v28 = vsub.f32 %v21000_v18, %v14423_v54  ;;  %v14448_v12 = vsel %vm198_vm0, %v14436_v29, 0.0  ;;  %v14633_v18 = vld [vmem:[%s21391_s8 + $0x50] sm:$0xff] }
0x2178   :  { %14449 = vadd.xlane.f32.xlu1 %v14448_v12  ;;  %v14417_v52 = vpop.xlane.xlu1 %14416  ;;  %18009 = vmatprep.subr.mxu0 %v14633_v18 }
0x2179   :  { %v14425_v27 = vmul.f32 0.03125, %v14417_v52  ;;  %v14435_v55 = vmul.f32 %v21085_v28, %v21085_v28  ;;  %18010 = vmatpush3.msra.mxu0 %v14633_v18 }
0x217a   :  { %18011 = vmatprep.subr.mxu0 %v14632_v34 }
0x217b   :  { %v21092_v49 = vsub.f32 %v21006_v0, %v14425_v27  ;;  %v14445_v26 = vsel %vm198_vm0, %v14435_v55, 0.0  ;;  %18012 = vmatpush3.msra.mxu0 %v14632_v34 }
0x217c   :  { %14446 = vadd.xlane.f32.xlu1 %v14445_v26  ;;  %v14420_v48 = vpop.xlane.xlu1 %14419  ;;  %18013 = vmatprep.subr.mxu0 %v14631_v43 }
0x217d   :  { %v14426_v42 = vmul.f32 0.03125, %v14420_v48  ;;  %v14437_v8 = vmul.f32 %v21092_v49, %v21092_v49  ;;  %18014 = vmatpush3.msra.mxu0 %v14631_v43 }
0x217e   :  { %18015 = vmatprep.subr.mxu0 %v14630_v3 }
0x217f   :  { %v21100_v60 = vsub.f32 %v21011_v19, %v14426_v42  ;;  %v14451_v0 = vsel %vm198_vm0, %v14437_v8, 0.0  ;;  %18016 = vmatpush3.msra.mxu0 %v14630_v3  ;;  %v14629_v19 = vld [vmem:[%s21391_s8 + $0x30] sm:$0xff] }
0x2180   :  { %14452 = vadd.xlane.f32.xlu1 %v14451_v0  ;;  %18017 = vmatprep.subr.mxu0 %v14629_v19 }
0x2181   :  { %v14438_v51 = vmul.f32 %v21100_v60, %v21100_v60  ;;  %18018 = vmatpush3.msra.mxu0 %v14629_v19  ;;  %v15001_v19 = vld [vmem:[%s21395_s6 + $0x70] sm:$0xff] }
0x2182   :  { %18019 = vmatprep.subr.mxu0 %v14628_v41 }
0x2183   :  { %v14454_v20 = vsel %vm198_vm0, %v14438_v51, 0.0  ;;  %18020 = vmatpush3.msra.mxu0 %v14628_v41 }
0x2184   :  { %14455 = vadd.xlane.f32.xlu1 %v14454_v20  ;;  %18021 = vmatprep.subr.mxu0 %v14627_v1 }
0x2185   :  { %18022 = vmatpush3.msra.mxu0 %v14627_v1 }
0x2186   :  { %18023 = vmatprep.subr.mxu0 %v14626_v35 }
0x2187   :  { %18024 = vmatpush3.msra.mxu0 %v14626_v35 }
0x2188   :  { %18025 = vmatprep.subr.mxu0 %v14625_v6 }
0x2189   :  { %18026 = vmatpush3.msra.mxu0 %v14625_v6  ;;  %v15000_v6 = vld [vmem:[%s21395_s6 + $0x68] sm:$0xff] }
0x218a   :  { %18027 = vmatprep.subr.mxu0 %v14624_v38 }
0x218b   :  { %18028 = vmatpush3.msra.mxu0 %v14624_v38 }
0x218c   :  { %18029 = vmatprep.subr.mxu0 %v14623_v46 }
0x218d   :  { %18030 = vmatpush3.msra.mxu0 %v14623_v46 }
0x21f9   :  { %v14444_v40 = vpop.xlane.xlu1 %14443 }
0x21fa   :  { %v14458_v39 = vmul.f32 0.03125, %v14444_v40 }
0x21fc   :  { %v14464_v44 = vadd.f32 1e-05, %v14458_v39  ;;  %v14998_v39 = vld [vmem:[%s21395_s6 + $0x58] sm:$0xff] }
0x21fd   :  { %v14441_v36 = vpop.xlane.xlu1 %14440 }
0x21fe   :  { %18358 = vrsqrt.f32 %v14464_v44  ;;  %v14457_v57 = vmul.f32 0.03125, %v14441_v36 }
0x2200   :  { %v14463_v14 = vadd.f32 1e-05, %v14457_v57 }
0x2201   :  { %v14450_v50 = vpop.xlane.xlu1 %14449 }
0x2202   :  { %18360 = vrsqrt.f32 %v14463_v14  ;;  %v14460_v16 = vmul.f32 0.03125, %v14450_v50  ;;  %v14997_v14 = vld [vmem:[%s21395_s6 + $0x50] sm:$0xff] }
0x2204   :  { %v14466_v33 = vadd.f32 1e-05, %v14460_v16 }
0x2205   :  { %v14447_v45 = vpop.xlane.xlu1 %14446 }
0x2206   :  { %18362 = vrsqrt.f32 %v14466_v33  ;;  %v14459_v53 = vmul.f32 0.03125, %v14447_v45  ;;  %v14996_v45 = vld [vmem:[%s21395_s6 + $0x48] sm:$0xff] }
0x2208   :  { %v14465_v30 = vadd.f32 1e-05, %v14459_v53 }
0x2209   :  { %v14453_v25 = vpop.xlane.xlu1 %14452  ;;  %v17992_v5 = vpop.f32.mrf.mxu0 }
0x220a   :  { %18364 = vrsqrt.f32 %v14465_v30  ;;  %v14461_v37 = vmul.f32 0.03125, %v14453_v25  ;;  %v14594_v56 = vadd.f32 %v17992_v5, %v15906_v63  ;;  %v14995_v30 = vld [vmem:[%s21395_s6 + $0x40] sm:$0xff]  ;;  %v14992_v25 = vld [vmem:[%s21395_s6 + $0x28] sm:$0xff]  ;;  %v14990_v5 = vld [vmem:[%s21395_s6 + $0x18] sm:$0xff] }
0x220b   :  { %v18359_v13 = vpop.eup %18358  ;;  %v14588_v31 = vpop.f32.mrf.mxu0 }
0x220c   :  { %v14467_v24 = vadd.f32 1e-05, %v14461_v37  ;;  %v14589_v54 = vadd.f32 %v15906_v63, %v14588_v31  ;;  %v14476_v29 = vmul.f32 %v18359_v13, %v21068_v17  ;;  %v14618_v7 = vmax.f32 %v14594_v56, 0.0  ;;  %v14989_v37 = vld [vmem:[%s21395_s6 + $0x10] sm:$0xff]  ;;  %v14988_v13 = vld [vmem:[%s21395_s6 + $0x8] sm:$0xff]  ;;  %v14987_v56 = vld [vmem:[%s21395_s6] sm:$0xff] }
0x220d   :  { %v14456_v12 = vpop.xlane.xlu1 %14455  ;;  %v15913_v31 = vld [vmem:[%s21397_s20] ss:$0 sm:$0xff] }
0x220e   :  { %18366 = vrsqrt.f32 %v14467_v24  ;;  %v14617_v52 = vmax.f32 %v14589_v54, 0.0  ;;  %v14462_v27 = vmul.f32 0.03125, %v14456_v12  ;;  %v14482_v48 = vmul.f32 %v21017_v15, %v14476_v29 }
0x220f   :  { %v18361_v55 = vpop.eup %18360 }
0x2210   :  { %v14468_v26 = vadd.f32 1e-05, %v14462_v27  ;;  %18031 = vmatprep.mubr.f32.mxu0 %v14617_v52  ;;  %v14475_v18 = vmul.f32 %v18361_v55, %v21073_v59  ;;  %v21129_v3 = vadd.f32 %v21021_v22, %v14482_v48  ;;  %v15916_v55 = vld [vmem:[%s21398_s27] ss:$0 sm:$0xff] }
0x2211   :  { %v17995_v42 = vpop.f32.mrf.mxu0  ;;  %18032 = vmatmul.mubr.f32.vlgmr.msra.gmra.mxu0 %v14618_v7 }
0x2212   :  { %18368 = vrsqrt.f32 %v14468_v26  ;;  %v14481_v8 = vmul.f32 %v21017_v15, %v14475_v18  ;;  %v14604_v17 = vadd.f32 %v17995_v42, %v15906_v63 }
0x2213   :  { %v18363_v34 = vpop.eup %18362  ;;  %v14598_v0 = vpop.f32.mrf.mxu0 }
0x2214   :  { %v14599_v43 = vadd.f32 %v15906_v63, %v14598_v0  ;;  %v21126_v51 = vadd.f32 %v21021_v22, %v14481_v8  ;;  %v14478_v59 = vmul.f32 %v18363_v34, %v21079_v2  ;;  %v14620_v1 = vmax.f32 %v14604_v17, 0.0 }
0x2216   :  { %v14619_v20 = vmax.f32 %v14599_v43, 0.0  ;;  %18048 = vmatprep.mubr.msk.f32.mxu1 %vm198_vm0, %v21126_v51  ;;  %v14484_v2 = vmul.f32 %v21017_v15, %v14478_v59 }
0x2217   :  { %v18365_v41 = vpop.eup %18364  ;;  %18049 = vmatmul.mubr.msk.f32.vlgmr.msra.gmra.mxu1 %vm198_vm0, %v21129_v3 }
0x2218   :  { %18034 = vmatprep.mubr.f32.mxu0 %v14619_v20  ;;  %v14477_v35 = vmul.f32 %v18365_v41, %v21085_v28  ;;  %18058 = vmatpush3.msra.mxu1 %v15002_v4  ;;  %v21148_v44 = vadd.f32 %v21021_v22, %v14484_v2 }
0x2219   :  { %v17998_v38 = vpop.f32.mrf.mxu0  ;;  %18035 = vmatmul.mubr.f32.gmra.mxu0 %v14620_v1  ;;  %18059 = vmatprep.subr.mxu1 %v15001_v19 }
0x221a   :  { %v14483_v46 = vmul.f32 %v21017_v15, %v14477_v35  ;;  %18060 = vmatpush3.msra.mxu1 %v15001_v19  ;;  %v14614_v47 = vadd.f32 %v17998_v38, %v15906_v63 }
0x221b   :  { %v18367_v62 = vpop.eup %18366  ;;  %v14608_v58 = vpop.f32.mrf.mxu0  ;;  %18061 = vmatprep.subr.mxu1 %v15000_v6 }
0x221c   :  { %v14609_v40 = vadd.f32 %v15906_v63, %v14608_v58  ;;  %v21143_v28 = vadd.f32 %v21021_v22, %v14483_v46  ;;  %v14479_v4 = vmul.f32 %v18367_v62, %v21092_v49  ;;  %18062 = vmatpush3.msra.mxu1 %v15000_v6  ;;  %v14622_v16 = vmax.f32 %v14614_v47, 0.0  ;;  %v14994_v63 = vld [vmem:[%s21395_s6 + $0x38] sm:$0xff] }
0x221d   :  { %18063 = vmatprep.subr.mxu1 %v14999_v10 }
0x221e   :  { %v14621_v36 = vmax.f32 %v14609_v40, 0.0  ;;  %18051 = vmatprep.mubr.msk.f32.mxu1 %vm198_vm0, %v21143_v28  ;;  %v14485_v57 = vmul.f32 %v21017_v15, %v14479_v4  ;;  %18064 = vmatpush3.msra.mxu1 %v14999_v10 }
0x221f   :  { %v18369_v50 = vpop.eup %18368  ;;  %18052 = vmatmul.mubr.msk.f32.gmra.mxu1 %vm198_vm0, %v21148_v44  ;;  %18065 = vmatprep.subr.mxu1 %v14998_v39 }
0x2220   :  { %v14480_v49 = vmul.f32 %v18369_v50, %v21100_v60  ;;  %18037 = vmatprep.mubr.f32.mxu0 %v14621_v36  ;;  %v21158_v33 = vadd.f32 %v21021_v22, %v14485_v57  ;;  %18066 = vmatpush3.msra.mxu1 %v14998_v39 }
0x2221   :  { %18038 = vmatmul.mubr.f32.gmra.mxu0 %v14622_v16  ;;  %18067 = vmatprep.subr.mxu1 %v14997_v14 }
0x2222   :  { %18054 = vmatprep.mubr.msk.f32.mxu1 %vm198_vm0, %v21158_v33  ;;  %v14486_v53 = vmul.f32 %v21017_v15, %v14480_v49  ;;  %18068 = vmatpush3.msra.mxu1 %v14997_v14  ;;  %v14993_v15 = vld [vmem:[%s21395_s6 + $0x30] sm:$0xff] }
0x2223   :  { %18069 = vmatprep.subr.mxu1 %v14996_v45 }
0x2224   :  { %v21166_v60 = vadd.f32 %v21021_v22, %v14486_v53  ;;  %18070 = vmatpush3.msra.mxu1 %v14996_v45  ;;  %v14991_v22 = vld [vmem:[%s21395_s6 + $0x20] sm:$0xff] }
0x2225   :  { %18071 = vmatprep.subr.mxu1 %v14995_v30 }
0x2226   :  { %18055 = vmatmul.mubr.msk.f32.gmra.mxu1 %vm198_vm0, %v21166_v60 }
0x2227   :  { %18072 = vmatpush3.msra.mxu1 %v14995_v30 }
0x2228   :  { %18073 = vmatprep.subr.mxu1 %v14994_v63 }
0x2229   :  { %18074 = vmatpush3.msra.mxu1 %v14994_v63 }
0x222a   :  { %18075 = vmatprep.subr.mxu1 %v14993_v15 }
0x222b   :  { %18076 = vmatpush3.msra.mxu1 %v14993_v15 }
0x222c   :  { %18077 = vmatprep.subr.mxu1 %v14992_v25 }
0x222d   :  { %18078 = vmatpush3.msra.mxu1 %v14992_v25 }
0x222e   :  { %18079 = vmatprep.subr.mxu1 %v14991_v22 }
0x222f   :  { %18080 = vmatpush3.msra.mxu1 %v14991_v22 }
0x2230   :  { %18081 = vmatprep.subr.mxu1 %v14990_v5 }
0x2231   :  { %18082 = vmatpush3.msra.mxu1 %v14990_v5 }
0x2232   :  { %18083 = vmatprep.subr.mxu1 %v14989_v37 }
0x2233   :  { %18084 = vmatpush3.msra.mxu1 %v14989_v37 }
0x2234   :  { %18085 = vmatprep.subr.mxu1 %v14988_v13 }
0x2235   :  { %18086 = vmatpush3.msra.mxu1 %v14988_v13 }
0x2236   :  { %18087 = vmatprep.subr.mxu1 %v14987_v56 }
0x2237   :  { %18088 = vmatpush3.msra.mxu1 %v14987_v56 }
0x22d1   :  { %v18033_v24 = vpop.f32.mrf.mxu0 }
0x22d2   :  { %v14718_v54 = vadd.f32 %v18033_v24, %v15913_v31 }
0x22d3   :  { %v14712_v29 = vpop.f32.mrf.mxu0 }
0x22d4   :  { %v21180_v12 = vadd.f32 %v14718_v54, %v21032_v23  ;;  %v14713_v52 = vadd.f32 %v15913_v31, %v14712_v29 }
0x22d6   :  { %v21183_v27 = vadd.f32 %v14713_v52, %v21026_v11  ;;  %v14750_v7 = vsel %vm198_vm0, %v21180_v12, 0.0 }
0x22d7   :  { %v18050_v26 = vpop.f32.mrf.mxu1  ;;  %14751 = vadd.xlane.f32.xlu1 %v14750_v7 }
0x22d8   :  { %v14747_v18 = vsel %vm198_vm0, %v21183_v27, 0.0  ;;  %v14958_v48 = vadd.f32 %v18050_v26, %v15916_v55 }
0x22d9   :  { %v18036_v42 = vpop.f32.mrf.mxu0  ;;  %v14952_v8 = vpop.f32.mrf.mxu1  ;;  %14748 = vadd.xlane.f32.xlu0 %v14747_v18 }
0x22da   :  { %v14728_v34 = vadd.f32 %v18036_v42, %v15913_v31  ;;  %v14953_v23 = vadd.f32 %v15916_v55, %v14952_v8  ;;  %v14982_v59 = vmax.f32 %v14958_v48, 0.0 }
0x22db   :  { %v14722_v17 = vpop.f32.mrf.mxu0 }
0x22dc   :  { %v21191_v0 = vadd.f32 %v14728_v34, %v21049_v32  ;;  %v14981_v11 = vmax.f32 %v14953_v23, 0.0  ;;  %v14723_v43 = vadd.f32 %v15913_v31, %v14722_v17 }
0x22de   :  { %v21194_v20 = vadd.f32 %v14723_v43, %v21042_v9  ;;  %18089 = vmatprep.mubr.f32.mxu1 %v14981_v11  ;;  %v14756_v19 = vsel %vm198_vm0, %v21191_v0, 0.0 }
0x22df   :  { %v18053_v41 = vpop.f32.mrf.mxu1  ;;  %18090 = vmatmul.mubr.f32.vlgmr.msra.gmra.mxu1 %v14982_v59  ;;  %14757 = vadd.xlane.f32.xlu1 %v14756_v19 }
0x22e0   :  { %v14753_v1 = vsel %vm198_vm0, %v21194_v20, 0.0  ;;  %v14968_v35 = vadd.f32 %v18053_v41, %v15916_v55 }
0x22e1   :  { %v14962_v6 = vpop.f32.mrf.mxu1  ;;  %14754 = vadd.xlane.f32.xlu0 %v14753_v1  ;;  %v18039_v32 = vpop.f32.mrf.mxu0 }
0x22e2   :  { %v14963_v38 = vadd.f32 %v15916_v55, %v14962_v6  ;;  %v14738_v2 = vadd.f32 %v18039_v32, %v15913_v31  ;;  %v14984_v47 = vmax.f32 %v14968_v35, 0.0 }
0x22e3   :  { %v14732_v46 = vpop.f32.mrf.mxu0 }
0x22e4   :  { %v14983_v10 = vmax.f32 %v14963_v38, 0.0  ;;  %v21201_v9 = vadd.f32 %v14738_v2, %v21063_v61  ;;  %v14733_v62 = vadd.f32 %v15913_v31, %v14732_v46 }
0x22e6   :  { %v21204_v58 = vadd.f32 %v14733_v62, %v21057_v21  ;;  %v18056_v40 = vpop.f32.mrf.mxu1  ;;  %18092 = vmatprep.mubr.f32.mxu1 %v14983_v10  ;;  %v14762_v4 = vsel %vm198_vm0, %v21201_v9, 0.0  ;;  %v15923_v21 = vld [vmem:[%s21399_s4] ss:$0 sm:$0xff] }
0x22e7   :  { %18093 = vmatmul.mubr.f32.gmra.mxu1 %v14984_v47  ;;  %14763 = vadd.xlane.f32.xlu1 %v14762_v4  ;;  %v14978_v39 = vadd.f32 %v18056_v40, %v15916_v55 }
0x22e8   :  { %v14972_v36 = vpop.f32.mrf.mxu1  ;;  %v14759_v57 = vsel %vm198_vm0, %v21204_v58, 0.0 }
0x22e9   :  { %v14973_v61 = vadd.f32 %v15916_v55, %v14972_v36  ;;  %14760 = vadd.xlane.f32.xlu0 %v14759_v57  ;;  %v14986_v50 = vmax.f32 %v14978_v39, 0.0 }
0x22eb   :  { %v14985_v14 = vmax.f32 %v14973_v61, 0.0 }
0x22ed   :  { %18095 = vmatprep.mubr.f32.mxu1 %v14985_v14 }
0x22ee   :  { %18096 = vmatmul.mubr.f32.gmra.mxu1 %v14986_v50 }
0x2360   :  { %v14752_v22 = vpop.xlane.xlu1 %14751 }
0x2361   :  { %v14766_v56 = vmul.f32 0.03125, %v14752_v22 }
0x2362   :  { %v14749_v31 = vpop.xlane.xlu0 %14748 }
0x2363   :  { %v14765_v52 = vmul.f32 0.03125, %v14749_v31  ;;  %v21230_v55 = vsub.f32 %v21180_v12, %v14766_v56 }
0x2365   :  { %v14778_v12 = vmul.f32 %v21230_v55, %v21230_v55 }
0x236a   :  { %v14755_v7 = vpop.xlane.xlu0 %14754 }
0x236b   :  { %v14767_v34 = vmul.f32 0.03125, %v14755_v7 }
0x2372   :  { %v14761_v11 = vpop.xlane.xlu0 %14760 }
0x2373   :  { %v14769_v1 = vmul.f32 0.03125, %v14761_v11 }
0x2375   :  { %v21258_v32 = vsub.f32 %v21204_v58, %v14769_v1 }
0x239f   :  { %v18091_v16 = vpop.f32.mrf.mxu1 }
0x23a0   :  { %v15082_v49 = vadd.f32 %v18091_v16, %v15923_v21 }
0x23a1   :  { %v15076_v45 = vpop.f32.mrf.mxu1 }
0x23a2   :  { %v21212_v53 = vadd.f32 %v15082_v49, %v21129_v3  ;;  %v15077_v30 = vadd.f32 %v15923_v21, %v15076_v45 }
0x23a4   :  { %v21215_v63 = vadd.f32 %v15077_v30, %v21126_v51  ;;  %v15114_v15 = vsel %vm198_vm0, %v21212_v53, 0.0  ;;  %v14758_v51 = vpop.xlane.xlu1 %14757 }
0x23a5   :  { %15115 = vadd.xlane.f32.xlu1 %v15114_v15 }
0x23a6   :  { %v15111_v25 = vsel %vm198_vm0, %v21215_v63, 0.0 }
0x23a7   :  { %v18094_v5 = vpop.f32.mrf.mxu1  ;;  %15112 = vadd.xlane.f32.xlu0 %v15111_v25 }
0x23a8   :  { %v15092_v37 = vadd.f32 %v18094_v5, %v15923_v21  ;;  %v14764_v42 = vpop.xlane.xlu1 %14763 }
0x23a9   :  { %v15086_v13 = vpop.f32.mrf.mxu1  ;;  %v14770_v59 = vmul.f32 0.03125, %v14764_v42 }
0x23aa   :  { %v21222_v3 = vadd.f32 %v15092_v37, %v21148_v44  ;;  %v15087_v24 = vadd.f32 %v15923_v21, %v15086_v13  ;;  %v14768_v44 = vmul.f32 0.03125, %v14758_v51 }
0x23ab   :  { %v21252_v6 = vsub.f32 %v21201_v9, %v14770_v59  ;;  %v14781_v9 = vmul.f32 %v21258_v32, %v21258_v32 }
0x23ac   :  { %v21225_v54 = vadd.f32 %v15087_v24, %v21143_v28  ;;  %v15120_v29 = vsel %vm198_vm0, %v21222_v3, 0.0  ;;  %v21235_v28 = vsub.f32 %v21183_v27, %v14765_v52  ;;  %v21241_v43 = vsub.f32 %v21191_v0, %v14768_v44 }
0x23ad   :  { %15121 = vadd.xlane.f32.xlu1 %v15120_v29  ;;  %v21246_v27 = vsub.f32 %v21194_v20, %v14767_v34  ;;  %v14786_v0 = vsel %vm198_vm0, %v14778_v12, 0.0  ;;  %v14782_v46 = vmul.f32 %v21252_v6, %v21252_v6  ;;  %v14795_v47 = vsel %vm198_vm0, %v14781_v9, 0.0 }
0x23ae   :  { %v18097_v26 = vpop.f32.mrf.mxu1  ;;  %v15117_v18 = vsel %vm198_vm0, %v21225_v54, 0.0  ;;  %v14777_v35 = vmul.f32 %v21235_v28, %v21235_v28 }
0x23af   :  { %v15102_v48 = vadd.f32 %v18097_v26, %v15923_v21  ;;  %15118 = vadd.xlane.f32.xlu0 %v15117_v18  ;;  %v14779_v38 = vmul.f32 %v21246_v27, %v21246_v27  ;;  %v14798_v62 = vsel %vm198_vm0, %v14782_v46, 0.0 }
0x23b0   :  { %v15096_v8 = vpop.f32.mrf.mxu1  ;;  %v14783_v20 = vsel %vm198_vm0, %v14777_v35, 0.0 }
0x23b1   :  { %v15110_v23 = vadd.f32 %v15102_v48, %v21166_v60  ;;  %v15097_v17 = vadd.f32 %v15923_v21, %v15096_v8  ;;  %v14789_v10 = vsel %vm198_vm0, %v14779_v38, 0.0 }
0x23b3   :  { %v15109_v19 = vadd.f32 %v15097_v17, %v21158_v33  ;;  %v15126_v41 = vsel %vm198_vm0, %v15110_v23, 0.0  ;;  %v14780_v33 = vmul.f32 %v21241_v43, %v21241_v43 }
0x23b4   :  { %15127 = vadd.xlane.f32.xlu1 %v15126_v41 }
0x23b5   :  { %v15123_v60 = vsel %vm198_vm0, %v15109_v19, 0.0  ;;  %v14792_v2 = vsel %vm198_vm0, %v14780_v33, 0.0  ;;  %v15914_v33 = vld [vmem:[%s21400_s15] ss:$0 sm:$0xff] }
0x23b6   :  { %15124 = vadd.xlane.f32.xlu0 %v15123_v60 }
0x23b8   :  { %14787 = vadd.xlane.f32.xlu1 %v14786_v0 }
0x23ba   :  { %14784 = vadd.xlane.f32.xlu0 %v14783_v20 }
0x23bc   :  { %14793 = vadd.xlane.f32.xlu1 %v14792_v2  ;;  %v15915_v2 = vld [vmem:[%s21401_s16] ss:$0 sm:$0xff] }
0x23be   :  { %14790 = vadd.xlane.f32.xlu0 %v14789_v10 }
0x23c0   :  { %14799 = vadd.xlane.f32.xlu1 %v14798_v62 }
0x23c2   :  { %14796 = vadd.xlane.f32.xlu0 %v14795_v47 }
0x242e   :  { %v15116_v58 = vpop.xlane.xlu1 %15115 }
0x242f   :  { %v15130_v40 = vmul.f32 0.03125, %v15116_v58 }
0x2430   :  { %v15113_v4 = vpop.xlane.xlu0 %15112 }
0x2431   :  { %v21272_v39 = vsub.f32 %v21212_v53, %v15130_v40  ;;  %v15129_v36 = vmul.f32 0.03125, %v15113_v4 }
0x2433   :  { %v21275_v57 = vsub.f32 %v21215_v63, %v15129_v36  ;;  %v15142_v61 = vmul.f32 %v21272_v39, %v21272_v39 }
0x2435   :  { %v15150_v14 = vsel %vm198_vm0, %v15142_v61, 0.0  ;;  %v15141_v50 = vmul.f32 %v21275_v57, %v21275_v57 }
0x2436   :  { %15151 = vadd.xlane.f32.xlu1 %v15150_v14  ;;  %v15122_v21 = vpop.xlane.xlu1 %15121 }
0x2437   :  { %v15132_v16 = vmul.f32 0.03125, %v15122_v21  ;;  %v15147_v49 = vsel %vm198_vm0, %v15141_v50, 0.0 }
0x2438   :  { %15148 = vadd.xlane.f32.xlu0 %v15147_v49  ;;  %v15119_v45 = vpop.xlane.xlu0 %15118 }
0x2439   :  { %v21284_v53 = vsub.f32 %v21222_v3, %v15132_v16  ;;  %v15131_v30 = vmul.f32 0.03125, %v15119_v45 }
0x243b   :  { %v21287_v63 = vsub.f32 %v21225_v54, %v15131_v30  ;;  %v15144_v15 = vmul.f32 %v21284_v53, %v21284_v53 }
0x243d   :  { %v15128_v25 = vpop.xlane.xlu1 %15127  ;;  %v15156_v22 = vsel %vm198_vm0, %v15144_v15, 0.0  ;;  %v15143_v5 = vmul.f32 %v21287_v63, %v21287_v63 }
0x243e   :  { %v15134_v37 = vmul.f32 0.03125, %v15128_v25  ;;  %15157 = vadd.xlane.f32.xlu1 %v15156_v22 }
0x243f   :  { %v15125_v13 = vpop.xlane.xlu0 %15124  ;;  %v15153_v56 = vsel %vm198_vm0, %v15143_v5, 0.0 }
0x2440   :  { %v21295_v31 = vsub.f32 %v15110_v23, %v15134_v37  ;;  %v15133_v3 = vmul.f32 0.03125, %v15125_v13  ;;  %15154 = vadd.xlane.f32.xlu0 %v15153_v56 }
0x2441   :  { %v14788_v24 = vpop.xlane.xlu1 %14787 }
0x2442   :  { %v21297_v51 = vsub.f32 %v15109_v19, %v15133_v3  ;;  %v14802_v54 = vmul.f32 0.03125, %v14788_v24  ;;  %v15146_v29 = vmul.f32 %v21295_v31, %v21295_v31 }
0x2443   :  { %v14785_v52 = vpop.xlane.xlu0 %14784 }
0x2444   :  { %v14808_v7 = vadd.f32 1e-05, %v14802_v54  ;;  %v14801_v26 = vmul.f32 0.03125, %v14785_v52  ;;  %v15162_v18 = vsel %vm198_vm0, %v15146_v29, 0.0  ;;  %v15145_v44 = vmul.f32 %v21297_v51, %v21297_v51 }
0x2445   :  { %15163 = vadd.xlane.f32.xlu1 %v15162_v18  ;;  %v14794_v48 = vpop.xlane.xlu1 %14793 }
0x2446   :  { %18370 = vrsqrt.f32 %v14808_v7  ;;  %v14807_v42 = vadd.f32 1e-05, %v14801_v26  ;;  %v14804_v8 = vmul.f32 0.03125, %v14794_v48  ;;  %v15159_v34 = vsel %vm198_vm0, %v15145_v44, 0.0 }
0x2447   :  { %15160 = vadd.xlane.f32.xlu0 %v15159_v34  ;;  %v14791_v23 = vpop.xlane.xlu0 %14790 }
0x2448   :  { %18372 = vrsqrt.f32 %v14807_v42  ;;  %v14810_v17 = vadd.f32 1e-05, %v14804_v8  ;;  %v14803_v11 = vmul.f32 0.03125, %v14791_v23 }
0x2449   :  { %v14800_v12 = vpop.xlane.xlu1 %14799 }
0x244a   :  { %18374 = vrsqrt.f32 %v14810_v17  ;;  %v14809_v59 = vadd.f32 1e-05, %v14803_v11  ;;  %v14806_v19 = vmul.f32 0.03125, %v14800_v12 }
0x244b   :  { %v14797_v41 = vpop.xlane.xlu0 %14796 }
0x244c   :  { %18376 = vrsqrt.f32 %v14809_v59  ;;  %v14812_v1 = vadd.f32 1e-05, %v14806_v19  ;;  %v14805_v60 = vmul.f32 0.03125, %v14797_v41 }
0x244e   :  { %18378 = vrsqrt.f32 %v14812_v1  ;;  %v14811_v35 = vadd.f32 1e-05, %v14805_v60 }
0x2450   :  { %18380 = vrsqrt.f32 %v14811_v35 }
0x2453   :  { %v18371_v0 = vpop.eup %18370 }
0x2454   :  { %v14820_v20 = vmul.f32 %v18371_v0, %v21230_v55 }
0x2455   :  { %v18373_v38 = vpop.eup %18372 }
0x2456   :  { %v14833_v46 = vmul.f32 %v15914_v33, %v14820_v20  ;;  %v14819_v10 = vmul.f32 %v18373_v38, %v21235_v28 }
0x2457   :  { %v18375_v9 = vpop.eup %18374 }
0x2458   :  { %v14846_v62 = vadd.f32 %v15915_v2, %v14833_v46  ;;  %v14832_v47 = vmul.f32 %v15914_v33, %v14819_v10  ;;  %v14822_v58 = vmul.f32 %v18375_v9, %v21241_v43 }
0x2459   :  { %v18377_v40 = vpop.eup %18376 }
0x245a   :  { %14852 = vst.msk [vmem:[#allocation2 + $0x8] sm:$0xff] %vm198_vm0, %v14846_v62  ;;  %v14845_v4 = vadd.f32 %v15915_v2, %v14832_v47  ;;  %v14835_v36 = vmul.f32 %v15914_v33, %v14822_v58  ;;  %v14821_v61 = vmul.f32 %v18377_v40, %v21246_v27 }
0x245b   :  { %v18379_v14 = vpop.eup %18378 }
0x245c   :  { %14851 = vst.msk [vmem:[#allocation2] sm:$0xff] %vm198_vm0, %v14845_v4  ;;  %v14848_v55 = vadd.f32 %v15915_v2, %v14835_v36  ;;  %v14834_v50 = vmul.f32 %v15914_v33, %v14821_v61  ;;  %v14824_v21 = vmul.f32 %v18379_v14, %v21252_v6 }
0x245d   :  { %v18381_v28 = vpop.eup %18380 }
0x245e   :  { %14854 = vst.msk [vmem:[#allocation2 + $0x18] sm:$0xff] %vm198_vm0, %v14848_v55  ;;  %v14847_v16 = vadd.f32 %v15915_v2, %v14834_v50  ;;  %v14837_v49 = vmul.f32 %v15914_v33, %v14824_v21  ;;  %v14823_v43 = vmul.f32 %v18381_v28, %v21258_v32 }
0x2460   :  { %14853 = vst.msk [vmem:[#allocation2 + $0x10] sm:$0xff] %vm198_vm0, %v14847_v16  ;;  %v14850_v45 = vadd.f32 %v15915_v2, %v14837_v49  ;;  %v14836_v30 = vmul.f32 %v15914_v33, %v14823_v43 }
0x2462   :  { %14856 = vst.msk [vmem:[#allocation2 + $0x28] sm:$0xff] %vm198_vm0, %v14850_v45  ;;  %v14849_v27 = vadd.f32 %v15915_v2, %v14836_v30 }
0x2464   :  { %14855 = vst.msk [vmem:[#allocation2 + $0x20] sm:$0xff] %vm198_vm0, %v14849_v27 }
0x2465   :  { %18435 = shalt.err (!%p18432_p4)
}
0x2466   :  { %s18509_s26 = smov 128   ;;  %s18510_s28 = smov 8  }
0x2467   :  { %15236 = dma.vmem_to_hbm [thread:$0]  %s15231_s22, 768, %s18705_s30, [#allocation3], %s18509_s26, %s18509_s26, %s18510_s28  }
0x2468   :  { %s21402_s1 = sld [smem:[#allocation27_spill]]  ;;  %s18511_s30 = smov [#allocation4]  }
0x2469   :  { %s21403_s2 = sld [smem:[#allocation28_spill]]  ;;  %s15242_s7 = sshll.u32 %s18511_s30, 4  ;;  %s15243_s7 = int_to_ptr.vmem [resolvable:$true] %s15242_s7 }
0x246a   :  { %s18444_s10 = scalar_lea.vmem %s15243_s7, 768  ;;  %p18449_p6 = scmp.lt.s32.totalorder %s15243_s7, %s15243_s7 }
0x246b   :  { %p18445_p5 = scmp.ne.s32.totalorder %s15243_s7, %s18444_s10  ;;  %p18450_p7 = scmp.lt.s32.totalorder %s18444_s10, %s18444_s10 }
0x246d   :  { %p18451_p8 = por %p18450_p7, %p18449_p6 }
0x246e   :  { %v15924_v18 = vld [vmem:[%s21402_s1] ss:$0 sm:$0xff] }
0x246f   :  { %v15925_v34 = vld [vmem:[%s21403_s2] ss:$0 sm:$0xff]  ;;  %p18452_p9 = pnand %p18451_p8, %p18445_p5 }
0x24bf   :  { %v15152_v6 = vpop.xlane.xlu1 %15151 }
0x24c0   :  { %v15166_v32 = vmul.f32 0.03125, %v15152_v6 }
0x24c1   :  { %v15149_v15 = vpop.xlane.xlu0 %15148 }
0x24c2   :  { %v15172_v25 = vadd.f32 1e-05, %v15166_v32  ;;  %v15165_v22 = vmul.f32 0.03125, %v15149_v15 }
0x24c4   :  { %18382 = vrsqrt.f32 %v15172_v25  ;;  %v15171_v5 = vadd.f32 1e-05, %v15165_v22 }
0x24c6   :  { %18384 = vrsqrt.f32 %v15171_v5 }
0x24c7   :  { %v15158_v37 = vpop.xlane.xlu1 %15157 }
0x24c8   :  { %v15168_v13 = vmul.f32 0.03125, %v15158_v37 }
0x24c9   :  { %v15155_v56 = vpop.xlane.xlu0 %15154 }
0x24ca   :  { %v15174_v3 = vadd.f32 1e-05, %v15168_v13  ;;  %v15167_v24 = vmul.f32 0.03125, %v15155_v56 }
0x24cc   :  { %18386 = vrsqrt.f32 %v15174_v3  ;;  %v15173_v54 = vadd.f32 1e-05, %v15167_v24 }
0x24ce   :  { %18388 = vrsqrt.f32 %v15173_v54  ;;  %v15164_v29 = vpop.xlane.xlu1 %15163 }
0x24cf   :  { %v15170_v52 = vmul.f32 0.03125, %v15164_v29 }
0x24d0   :  { %v15161_v7 = vpop.xlane.xlu0 %15160 }
0x24d1   :  { %v18383_v26 = vpop.eup %18382  ;;  %v15176_v44 = vadd.f32 1e-05, %v15170_v52  ;;  %v15169_v48 = vmul.f32 0.03125, %v15161_v7 }
0x24d2   :  { %v15184_v42 = vmul.f32 %v18383_v26, %v21272_v39 }
0x24d3   :  { %v18385_v8 = vpop.eup %18384  ;;  %18390 = vrsqrt.f32 %v15176_v44  ;;  %v15175_v23 = vadd.f32 1e-05, %v15169_v48 }
0x24d4   :  { %v15197_v17 = vmul.f32 %v15924_v18, %v15184_v42  ;;  %v15183_v11 = vmul.f32 %v18385_v8, %v21275_v57 }
0x24d5   :  { %18392 = vrsqrt.f32 %v15175_v23 }
0x24d6   :  { %v15210_v12 = vadd.f32 %v15925_v34, %v15197_v17  ;;  %v15196_v59 = vmul.f32 %v15924_v18, %v15183_v11 }
0x24d8   :  { %15216 = vst.msk [vmem:[#allocation4 + $0x8] sm:$0xff] %vm198_vm0, %v15210_v12  ;;  %v15209_v19 = vadd.f32 %v15925_v34, %v15196_v59 }
0x24d9   :  { %v18387_v41 = vpop.eup %18386 }
0x24da   :  { %15215 = vst.msk [vmem:[#allocation4] sm:$0xff] %vm198_vm0, %v15209_v19  ;;  %v15186_v1 = vmul.f32 %v18387_v41, %v21284_v53 }
0x24db   :  { %v18389_v60 = vpop.eup %18388 }
0x24dc   :  { %v15199_v39 = vmul.f32 %v15924_v18, %v15186_v1  ;;  %v15185_v35 = vmul.f32 %v18389_v60, %v21287_v63 }
0x24de   :  { %v15212_v0 = vadd.f32 %v15925_v34, %v15199_v39  ;;  %v15198_v33 = vmul.f32 %v15924_v18, %v15185_v35 }
0x24e0   :  { %v18391_v20 = vpop.eup %18390  ;;  %15218 = vst.msk [vmem:[#allocation4 + $0x18] sm:$0xff] %vm198_vm0, %v15212_v0  ;;  %v15211_v57 = vadd.f32 %v15925_v34, %v15198_v33 }
0x24e1   :  { %v15188_v38 = vmul.f32 %v18391_v20, %v21295_v31 }
0x24e2   :  { %v18393_v2 = vpop.eup %18392  ;;  %15217 = vst.msk [vmem:[#allocation4 + $0x10] sm:$0xff] %vm198_vm0, %v15211_v57 }
0x24e3   :  { %v15201_v46 = vmul.f32 %v15924_v18, %v15188_v38  ;;  %v15187_v10 = vmul.f32 %v18393_v2, %v21297_v51 }
0x24e5   :  { %v15214_v53 = vadd.f32 %v15925_v34, %v15201_v46  ;;  %v15200_v9 = vmul.f32 %v15924_v18, %v15187_v10 }
0x24e7   :  { %15220 = vst.msk [vmem:[#allocation4 + $0x28] sm:$0xff] %vm198_vm0, %v15214_v53  ;;  %v15213_v63 = vadd.f32 %v15925_v34, %v15200_v9 }
0x24e9   :  { %15219 = vst.msk [vmem:[#allocation4 + $0x20] sm:$0xff] %vm198_vm0, %v15213_v63 }
0x24ea   :  { %18455 = shalt.err (!%p18452_p9)
}
0x24eb   :  { %15248 = dma.vmem_to_hbm [thread:$0]  %s15243_s7, 768, %s18710_s13, [#allocation5], %s18509_s26, %s18509_s26, %s18510_s28  }
0x24ec   :  { %18464 = dma.done.wait [#allocation3], 768  }
0x24ed   :  { %18465 = vsyncadd [#allocation3], 4294966528 }
0x24ee   :  { %18466 = dma.done.wait [#allocation5], 768  }
0x24ef   :  { %18467 = vsyncadd [#allocation5], 4294966528 }
0x24f0   :  { %15259 = vsyncpa [#allocation3], 1 }
0x24f1   :  { %15260 = vsyncpa [#allocation5], 1 }

</bundles_post_ra>
